<compile_context>
chip_gen: v6e
topology: v6e:2x2x1
jax: 0.10.0
libtpu: 0.0.40
codegen_flags: <defaults>
</compile_context>

<pallas_src>
import functools

import jax
import jax.numpy as jnp
from jax.experimental import pallas as pl
from jax.experimental.pallas import tpu as pltpu

IN_FEATURES = 4 * 4 * 512   # 8192
HID1 = 4096
HID2 = 1024
OUT = 5
OUT_PAD = 128               # lane-dense padded width for the final layer
BATCH_PAD = 16              # covers both f32 (8) and bf16 (16) sublane tiles

_VMEM_LIMIT = 32 * 1024 * 1024   # safe on v5e/v6e (128 MiB) and v7x (64 MiB)


# ---------------------------------------------------------------------------
# Layer 1: y = relu(x @ w1 + b1), bf16 in / bf16 out, f32 accumulation.
# ---------------------------------------------------------------------------
def _linear_relu_kernel(x_ref, w_ref, b_ref, o_ref, acc_ref, *, nk):
    k = pl.program_id(1)

    @pl.when(k == 0)
    def _():
        acc_ref[...] = jnp.zeros_like(acc_ref)

    acc_ref[...] += jnp.dot(
        x_ref[...], w_ref[...], preferred_element_type=jnp.float32
    )

    @pl.when(k == nk - 1)
    def _():
        y = jnp.maximum(acc_ref[...] + b_ref[...], 0.0)
        o_ref[...] = y.astype(o_ref.dtype)


def pallas_linear_relu(x, w, b, *, tk, tn, out_dtype=jnp.bfloat16):
    """y = relu(x @ w + b). x:(B,K) bf16, w:(K,N) bf16, b:(N,) f32."""
    B, K = x.shape
    Kw, N = w.shape
    assert K == Kw and b.shape == (N,)
    assert K % tk == 0 and N % tn == 0
    nk = K // tk
    nn_ = N // tn
    b2 = b.reshape(1, N).astype(jnp.float32)

    kernel = functools.partial(_linear_relu_kernel, nk=nk)

    return pl.pallas_call(
        kernel,
        out_shape=jax.ShapeDtypeStruct((B, N), out_dtype),
        grid_spec=pltpu.PrefetchScalarGridSpec(
            num_scalar_prefetch=0,
            grid=(nn_, nk),
            in_specs=[
                pl.BlockSpec((B, tk), lambda j, k: (0, k)),   # x tile
                pl.BlockSpec((tk, tn), lambda j, k: (k, j)),  # weight tile
                pl.BlockSpec((1, tn), lambda j, k: (0, j)),   # bias tile
            ],
            out_specs=pl.BlockSpec((B, tn), lambda j, k: (0, j)),
            scratch_shapes=[pltpu.VMEM((B, tn), jnp.float32)],
        ),
        compiler_params=pltpu.CompilerParams(
            dimension_semantics=("parallel", "arbitrary"),
            vmem_limit_bytes=_VMEM_LIMIT,
        ),
    )(x, w, b2)


# ---------------------------------------------------------------------------
# Layers 2+3 fused: h2 = relu(x @ w2 + b2); out = sigmoid(h2 @ w3p + b3p).
# w3p/b3p are zero-padded to OUT_PAD lanes so the store is unmasked.
# ---------------------------------------------------------------------------
def _fused_l23_kernel(x_ref, w2_ref, b2_ref, w3_ref, b3_ref, o_ref, acc_ref, *, nk):
    k = pl.program_id(0)

    @pl.when(k == 0)
    def _():
        acc_ref[...] = jnp.zeros_like(acc_ref)

    acc_ref[...] += jnp.dot(
        x_ref[...], w2_ref[...], preferred_element_type=jnp.float32
    )

    @pl.when(k == nk - 1)
    def _():
        h2 = jnp.maximum(acc_ref[...] + b2_ref[...], 0.0)          # (B, HID2) f32
        logits = jnp.dot(h2, w3_ref[...],
                         preferred_element_type=jnp.float32) + b3_ref[...]
        o_ref[...] = jax.nn.sigmoid(logits)


def pallas_fused_l23(x, w2, b2, w3p, b3p, *, tk):
    """out = sigmoid(relu(x @ w2 + b2) @ w3p + b3p). x:(B,K) bf16."""
    B, K = x.shape
    Kw, N = w2.shape
    assert K == Kw and b2.shape == (N,) and K % tk == 0
    Np = w3p.shape[1]
    assert w3p.shape == (N, Np) and b3p.shape == (Np,)
    nk = K // tk
    b2r = b2.reshape(1, N).astype(jnp.float32)
    b3r = b3p.reshape(1, Np).astype(jnp.float32)

    kernel = functools.partial(_fused_l23_kernel, nk=nk)

    return pl.pallas_call(
        kernel,
        out_shape=jax.ShapeDtypeStruct((B, Np), jnp.float32),
        grid_spec=pltpu.PrefetchScalarGridSpec(
            num_scalar_prefetch=0,
            grid=(nk,),
            in_specs=[
                pl.BlockSpec((B, tk), lambda k: (0, k)),   # x tile
                pl.BlockSpec((tk, N), lambda k: (k, 0)),   # w2 tile
                pl.BlockSpec((1, N), lambda k: (0, 0)),    # b2 (resident)
                pl.BlockSpec((N, Np), lambda k: (0, 0)),   # w3 padded (resident)
                pl.BlockSpec((1, Np), lambda k: (0, 0)),   # b3 padded (resident)
            ],
            out_specs=pl.BlockSpec((B, Np), lambda k: (0, 0)),
            scratch_shapes=[pltpu.VMEM((B, N), jnp.float32)],
        ),
        compiler_params=pltpu.CompilerParams(
            dimension_semantics=("arbitrary",),
            vmem_limit_bytes=_VMEM_LIMIT,
        ),
    )(x, w2, b2r, w3p, b3r)


# ---------------------------------------------------------------------------
# Parameters & forward.
# ---------------------------------------------------------------------------
def init_params(key):
    """Deterministic synthetic parameters matching the module's shapes (f32)."""
    ks = jax.random.split(key, 6)

    def torch_default(k, fan_in, shape):
        bound = jnp.sqrt(1.0 / fan_in)
        return jax.random.uniform(k, shape, jnp.float32, -bound, bound)

    # Layer 1: Linear(8192 -> 4096), PyTorch default init.
    w1 = torch_default(ks[0], IN_FEATURES, (IN_FEATURES, HID1))
    b1 = torch_default(ks[1], IN_FEATURES, (HID1,))
    # Layer 2: Linear(4096 -> 1024), PyTorch default init.
    w2 = torch_default(ks[2], HID1, (HID1, HID2))
    b2 = torch_default(ks[3], HID1, (HID2,))
    # Layer 3: Linear(1024 -> 5), xavier_normal_ on weight (as in __init__).
    std3 = jnp.sqrt(2.0 / (HID2 + OUT))
    w3 = std3 * jax.random.normal(ks[4], (HID2, OUT), jnp.float32)
    b3 = torch_default(ks[5], HID2, (OUT,))
    return (w1, b1), (w2, b2), (w3, b3)


def prepare_params(params):
    """Cast streaming weights to bf16 and pad layer 3 to a lane-dense width."""
    (w1, b1), (w2, b2), (w3, b3) = params
    w1b = w1.astype(jnp.bfloat16)
    w2b = w2.astype(jnp.bfloat16)
    w3p = jnp.zeros((HID2, OUT_PAD), jnp.float32).at[:, :OUT].set(w3)
    b3p = jnp.zeros((OUT_PAD,), jnp.float32).at[:OUT].set(b3)
    return (w1b, b1), (w2b, b2), (w3p, b3p)


def bbx_decoder_forward(x, prepared):
    """x: any shape flattening to (-1, 8192). Returns (center (B,4), depth (B,))."""
    (w1, b1), (w2, b2), (w3p, b3p) = prepared
    xf = x.reshape(-1, IN_FEATURES)
    B = xf.shape[0]
    Bp = ((B + BATCH_PAD - 1) // BATCH_PAD) * BATCH_PAD
    xp = jnp.zeros((Bp, IN_FEATURES), jnp.bfloat16).at[:B].set(
        xf.astype(jnp.bfloat16))

    # Layer 1: grid=(2,4); 8 MiB bf16 weight tiles; parallel N axis for v7x.
    h1 = pallas_linear_relu(xp, w1, b1, tk=2048, tn=2048)
    # Layers 2+3 fused: grid=(2,); 4 MiB bf16 w2 tiles; sigmoid epilogue.
    out = pallas_fused_l23(h1, w2, b2, w3p, b3p, tk=2048)

    out = out[:B, :OUT]
    center = out[..., :4]
    depth = out[..., -1]
    return center, depth


def reference_forward(x, params):
    """Pure-JAX f32 reference for validation."""
    (w1, b1), (w2, b2), (w3, b3) = params
    xf = x.reshape(-1, IN_FEATURES).astype(jnp.float32)
    h1 = jax.nn.relu(xf @ w1 + b1)
    h2 = jax.nn.relu(h1 @ w2 + b2)
    out = jax.nn.sigmoid(h2 @ w3 + b3)
    return out[..., :4], out[..., -1]


if __name__ == "__main__":
    key = jax.random.PRNGKey(0)
    pkey, xkey = jax.random.split(key)
    params = init_params(pkey)
    prepared = prepare_params(params)

    batch = 2
    # Input consistent with "x.view(-1, 4*4*512)": (B, 512, 4, 4) feature map.
    x = jax.random.normal(xkey, (batch, 512, 4, 4), jnp.float32)

    center, depth = jax.block_until_ready(bbx_decoder_forward(x, prepared))

    assert center.shape == (batch, 4)
    assert depth.shape == (batch,)
    assert bool(jnp.all((center >= 0) & (center <= 1)))
    assert bool(jnp.all((depth >= 0) & (depth <= 1)))

    # Loose validation vs f32 reference (bf16 weights/activations, f32 accum).
    c_ref, d_ref = reference_forward(x, params)
    assert bool(jnp.max(jnp.abs(center - c_ref)) < 0.1)
    assert bool(jnp.max(jnp.abs(depth - d_ref)) < 0.1)

    print("KERNEL_OK")
</pallas_src>

<mosaic_0001>
module attributes {stable_mosaic.version = 11 : i64} {
  func.func @_linear_relu_kernel(%arg0: i32, %arg1: i32, %arg2: memref<16x2048xbf16, #tpu.memory_space<vmem>>, %arg3: memref<2048x2048xbf16, #tpu.memory_space<vmem>>, %arg4: memref<1x2048xf32, #tpu.memory_space<vmem>>, %arg5: memref<16x2048xbf16, #tpu.memory_space<vmem>>, %arg6: memref<16x2048xf32, #tpu.memory_space<vmem>>) attributes {dimension_semantics = [#tpu.dimension_semantics<parallel>, #tpu.dimension_semantics<arbitrary>], iteration_bounds = array<i64: 2, 4>, scalar_prefetch = 0 : i64, scratch_operands = 1 : i64, tpu.core_type = #tpu.core_type<tc>, window_params = [{transform_indices = @transform_0, window_bounds = array<i64: 16, 2048>}, {transform_indices = @transform_1, window_bounds = array<i64: 2048, 2048>}, {transform_indices = @transform_2, window_bounds = array<i64: 1, 2048>}, {transform_indices = @transform_3, window_bounds = array<i64: 16, 2048>}]} {
    %c0_i32 = arith.constant 0 : i32
    %0 = arith.cmpi eq, %arg1, %c0_i32 : i32
    %1 = arith.extui %0 : i1 to i32
    %c0_i32_0 = arith.constant 0 : i32
    %2 = arith.cmpi ne, %1, %c0_i32_0 : i32
    scf.if %2 {
      %cst_9 = arith.constant 0.000000e+00 : f32
      %12 = vector.broadcast %cst_9 : f32 to vector<16x2048xf32>
      %c0_10 = arith.constant 0 : index
      %c0_11 = arith.constant 0 : index
      %13 = vector.load %arg6[%c0_10, %c0_11] : memref<16x2048xf32, #tpu.memory_space<vmem>>, vector<16x2048xf32>
      tpu.vector_store %arg6[%c0_10, %c0_11], %12 {strides = array<i32>} : memref<16x2048xf32, #tpu.memory_space<vmem>>, vector<16x2048xf32>,
    } else {
    }
    %c0 = arith.constant 0 : index
    %c0_1 = arith.constant 0 : index
    %3 = vector.load %arg6[%c0, %c0_1] : memref<16x2048xf32, #tpu.memory_space<vmem>>, vector<16x2048xf32>
    %c0_2 = arith.constant 0 : index
    %c0_3 = arith.constant 0 : index
    %4 = vector.load %arg2[%c0_2, %c0_3] : memref<16x2048xbf16, #tpu.memory_space<vmem>>, vector<16x2048xbf16>
    %c0_4 = arith.constant 0 : index
    %c0_5 = arith.constant 0 : index
    %5 = vector.load %arg3[%c0_4, %c0_5] : memref<2048x2048xbf16, #tpu.memory_space<vmem>>, vector<2048x2048xbf16>
    %cst = arith.constant dense<0.000000e+00> : vector<16x2048xf32>
    %6 = tpu.matmul %4, %5, %cst {dimension_numbers = #tpu.dot_dimension_numbers<[1], [0], [0], [1], [0, 0, 1, 1], [], []>} : vector<16x2048xbf16>, vector<2048x2048xbf16>, vector<16x2048xf32> -> vector<16x2048xf32>
    %7 = arith.addf %3, %6 : vector<16x2048xf32>
    %c0_6 = arith.constant 0 : index
    %c0_7 = arith.constant 0 : index
    %8 = vector.load %arg6[%c0_6, %c0_7] : memref<16x2048xf32, #tpu.memory_space<vmem>>, vector<16x2048xf32>
    tpu.vector_store %arg6[%c0_6, %c0_7], %7 {strides = array<i32>} : memref<16x2048xf32, #tpu.memory_space<vmem>>, vector<16x2048xf32>,
    %c3_i32 = arith.constant 3 : i32
    %9 = arith.cmpi eq, %arg1, %c3_i32 : i32
    %10 = arith.extui %9 : i1 to i32
    %c0_i32_8 = arith.constant 0 : i32
    %11 = arith.cmpi ne, %10, %c0_i32_8 : i32
    scf.if %11 {
      %c0_9 = arith.constant 0 : index
      %c0_10 = arith.constant 0 : index
      %12 = vector.load %arg6[%c0_9, %c0_10] : memref<16x2048xf32, #tpu.memory_space<vmem>>, vector<16x2048xf32>
      %c0_11 = arith.constant 0 : index
      %c0_12 = arith.constant 0 : index
      %13 = vector.load %arg4[%c0_11, %c0_12] : memref<1x2048xf32, #tpu.memory_space<vmem>>, vector<1x2048xf32>
      %14 = vector.broadcast %13 : vector<1x2048xf32> to vector<16x2048xf32>
      %15 = arith.addf %12, %14 : vector<16x2048xf32>
      %cst_13 = arith.constant 0.000000e+00 : f32
      %16 = vector.broadcast %cst_13 : f32 to vector<16x2048xf32>
      %17 = arith.maximumf %15, %16 : vector<16x2048xf32>
      %18 = arith.truncf %17 : vector<16x2048xf32> to vector<16x2048xbf16>
      %c0_14 = arith.constant 0 : index
      %c0_15 = arith.constant 0 : index
      %19 = vector.load %arg5[%c0_14, %c0_15] : memref<16x2048xbf16, #tpu.memory_space<vmem>>, vector<16x2048xbf16>
      tpu.vector_store %arg5[%c0_14, %c0_15], %18 {strides = array<i32>} : memref<16x2048xbf16, #tpu.memory_space<vmem>>, vector<16x2048xbf16>,
    } else {
    }
    return
  }
  func.func @transform_0(%arg0: i32, %arg1: i32) -> (i32, i32) {
    %c0_i32 = arith.constant 0 : i32
    %c0_i32_0 = arith.constant 0 : i32
    return %c0_i32, %arg1 : i32, i32
  }
  func.func @transform_1(%arg0: i32, %arg1: i32) -> (i32, i32) {
    %c0_i32 = arith.constant 0 : i32
    return %arg1, %arg0 : i32, i32
  }
  func.func @transform_2(%arg0: i32, %arg1: i32) -> (i32, i32) {
    %c0_i32 = arith.constant 0 : i32
    %c0_i32_0 = arith.constant 0 : i32
    return %c0_i32, %arg0 : i32, i32
  }
  func.func @transform_3(%arg0: i32, %arg1: i32) -> (i32, i32) {
    %c0_i32 = arith.constant 0 : i32
    %c0_i32_0 = arith.constant 0 : i32
    return %c0_i32, %arg0 : i32, i32
  }
}

</mosaic_0001>

<bundles_post_ra>
// kernel: tpu_custom_call.1
= control target key start
LH: loop header
LB: loop body
LE: loop exit
PB: predicated region body
PF: predicated region fallthrough
CT: control target
= control target key end

     0   :  { %s21555_s0 = inlined_call_operand.hbm [shape: bf16[16,8192], index: 0, kind: input, shape index: {}]   ;;  %s21556_s1 = inlined_call_operand.hbm [shape: bf16[8192,4096], index: 1, kind: input, shape index: {}]   ;;  %s21557_s2 = inlined_call_operand.hbm [shape: f32[1,4096], index: 2, kind: input, shape index: {}]   ;;  %s21558_s3 = inlined_call_operand.hbm [shape: bf16[16,4096], index: 3, kind: output, shape index: {}]  }
   0x1   :  { %21568 = sst [smem:[#allocation21_spill]] %s21555_s0 }
   0x2   :  { %21569 = sst [smem:[#allocation22_spill]] %s21556_s1 }
   0x3   :  { %21570 = sst [smem:[#allocation23_spill]] %s21558_s3 }
   0x4   :  { %8 = vsyncpa [#allocation4], 0 }
   0x5   :  { %10 = vsyncpa [#allocation4 + $0x1], 0 }
   0x6   :  { %11 = vsyncpa [#allocation7], 0 }
   0x7   :  { %13 = vsyncpa [#allocation7 + $0x1], 0 }
   0x8   :  { %14 = vsyncpa [#allocation5], 0 }
   0x9   :  { %16 = vsyncpa [#allocation5 + $0x1], 0  ;;  %s18535_s12 = smov 0   ;;  %s18537_s13 = smov 0  }
   0xa   :  { %s18539_s14 = smov 0   ;;  %s18541_s15 = smov 0  }
   0xb   :  { %s18543_s16 = smov 0   ;;  %s18545_s17 = smov 0  }
   0xc   :  { %s18547_s18 = smov 0   ;;  %s18549_s19 = smov 0  }
   0xd   :  { %s18551_s20 = smov 0   ;;  %s18553_s21 = smov 0  }
   0xe   :  { %s18555_s22 = smov 0   ;;  %s18557_s23 = smov 0  }
   0xf   :  { %s18559_s24 = smov 0   ;;  %s18561_s25 = smov 0  }
  0x10 LB: > { %21571 = sst [smem:[#allocation14_spill]] %s18481_s20  ;;  %s31_s26 = sadd.s32 1, %s18493_s23  ;;  %s18501_s25 = sphi %s18561_s25, %s22_s25   ;;  %s18497_s24 = sphi %s18559_s24, %s21619_s24   ;;  %s18493_s23 = sphi %s18557_s23, %s21608_s23   ;;  %s18489_s22 = sphi %s18555_s22, %s21618_s22   ;;  %s18485_s21 = sphi %s18553_s21, %s21607_s21   ;;  %s18481_s20 = sphi %s18551_s20, %s21606_s20   ;;  %s18477_s19 = sphi %s18549_s19, %s21617_s19   ;;  %s18473_s18 = sphi %s18547_s18, %s21616_s18   ;;  %s18469_s17 = sphi %s18545_s17, %s21615_s17   ;;  %s18465_s16 = sphi %s18543_s16, %s21614_s16   ;;  %s18461_s15 = sphi %s18541_s15, %s21613_s15   ;;  %s18457_s14 = sphi %s18539_s14, %s21612_s14   ;;  %s18453_s13 = sphi %s18537_s13, %s21611_s13   ;;  %s18449_s12 = sphi %s18535_s12, %s21610_s12  }
  0x11   : > { %21572 = sst [smem:[#allocation15_spill]] %s18485_s21  ;;  %p18607_p0 = scmp.ge.s32.totalorder %s31_s26, 4 }
  0x12   : > { %21573 = sst [smem:[#allocation16_spill]] %s18489_s22  ;;  %p49_p1 = scmp.eq.s32.totalorder %s18501_s25, 0 }
  0x13   : > { %21574 = sst [smem:[#allocation17_spill]] %s18493_s23  ;;  %p76_p2 = scmp.ne.s32.totalorder %s18469_s17, %s18465_s16 }
  0x14   : > { %s21621_s26 = smov (%p18607_p0, %s31_s26), 0  ;;  %p18143_p6 = scmp.lt.s32.totalorder %s18501_s25, 8 }
  0x15   : > { %21576 = sst [smem:[#allocation18_spill]] %s21621_s26  ;;  %p18621_p3 = por %p76_p2, %p49_p1 }
  0x16   : > { %s18629_s4 = ssub.s32 %s18493_s23, %s21621_s26  ;;  %s179_s5 = sand.u32 1, %s18501_s25  }
  0x17   : > { %p39_p5 = scmp.eq.s32.totalorder %s18629_s4, 0  ;;  %s181_s6 = sand.u32 1, %s18469_s17  }
  0x18   : > { %s16001_s7 = sshll.u32 %s181_s6, 14  ;;  %s16003_s8 = sshll.u32 %s18497_s24, 4 }
  0x19   : > { %s18102_s9 = sshll.u32 %s18493_s23, 13  ;;  %s183_s10 = scalar_lea.vmem [#allocation6], %s16001_s7 }
  0x1a   : > { %s193_s11 = sshll.u32 %s183_s10, 4  ;;  %s190_s29 = sadd.s32 %s18102_s9, %s16003_s8  ;;  %s194_s11 = int_to_ptr.vmem [resolvable:$true] %s193_s11 }
  0x1b   : > { %s16005_s27 = sshll.u32 %s190_s29, 6  ;;  %p18641_p7 = pnand %p18143_p6, %p18621_p3 }
  0x1c   : > { %s21579_s1 = sld [smem:[#allocation22_spill]]  ;;  %p16009_p8 = scmp.ge.s32.totalorder %s18501_s25, 1 }
  0x1d   : > { %s18649_s6 = scalar_lea.sflag [#allocation7], %s179_s5  ;;  %p18267_p9 = pneg %p18641_p7 }
  0x1e   : > { %s18278_s7 = scalar_lea.vmem %s194_s11, 262144  ;;  %s18503_s29 = smov [#allocation6]  }
  0x1f   : > { %p18279_p10 = scmp.ne.s32.totalorder %s194_s11, %s18278_s7  ;;  %s18283_s30 = sshll.u32 %s18503_s29, 4  ;;  %s18284_s30 = int_to_ptr.vmem [resolvable:$false] %s18283_s30 }
  0x20   : > { %s18285_s8 = scalar_lea.vmem %s18284_s30, 524288  ;;  %p18286_p13 = scmp.lt.s32.totalorder %s194_s11, %s18284_s30 }
  0x21   : > { %p18281_p11 = pnand %p18279_p10, %p18267_p9  ;;  %p18287_p2 = scmp.lt.s32.totalorder %s18285_s8, %s18278_s7 }
  0x22   : > { %s192_s21 = scalar_lea.hbm %s21579_s1, %s16005_s27 }
  0x23   : > { %p18282_p12 = pneg %p18281_p11  ;;  %p18288_p3 = por %p18287_p2, %p18286_p13 }
  0x25   : > { %p18289_p4 = pnand %p18288_p3, %p18282_p12 }
  0x27   : > { %18292 = shalt.err (!%p18289_p4)
}
  0x28   : > { %s18504_s22 = smov 2048   ;;  %s21561_s26 = smov 1024  }
  0x29   : > { %s21562_s27 = smov 64   ;;  %p220_p4 = scmp.lt.s32.totalorder %s18501_s25, 9 }
  0x2a   : > { %18135 = dma.hbm_to_vmem [thread:$0]  (!%p18641_p7), %s192_s21, 262144, %s194_s11, %s18649_s6, %s18504_s22, %s21561_s26, %s21562_s27  }
  0x2b   : > { %p18661_p9 = pnand %p16009_p8, %p220_p4  ;;  %s41_s9 = sadd.s32 1, %s18481_s20 }
  0x2c   : > { %p48_p10 = scmp.ne.s32.totalorder %s18481_s20, %s18477_s19  ;;  %p54_p12 = scmp.ne.s32.totalorder %s18477_s19, %s18473_s18 }
  0x2d   : > { %s18671_s10 = scalar_select %p39_p5, %s18481_s20, %s41_s9  }
  0x2e   : > { %p50_p11 = por %p49_p1, %p48_p10  ;;  %s158_s7 = sand.u32 1, %s18481_s20  }
  0x2f   : > { %21581 = sst [smem:[#allocation19_spill]] %s18671_s10  ;;  %s18101_s29 = sshll.u32 %s18493_s23, 10 }
  0x30   : > { %s15998_s3 = sshll.u32 %s158_s7, 7  ;;  %s21582_s0 = sld [smem:[#allocation21_spill]] }
  0x31   : > { %s162_s11 = scalar_lea.vmem [#allocation3], %s15998_s3  ;;  %p18684_p7 = pnand %p18143_p6, %p50_p11 }
  0x32   : > { %s169_s22 = sshll.u32 %s162_s11, 4  ;;  %s159_s9 = scalar_lea.sflag [#allocation4], %s158_s7  ;;  %s170_s22 = int_to_ptr.vmem [resolvable:$true] %s169_s22 }
  0x33   : > { %p18295_p5 = pneg %p18684_p7  ;;  %s18306_s27 = scalar_lea.vmem %s170_s22, 2048 }
  0x34   : > { %p18307_p8 = scmp.ne.s32.totalorder %s170_s22, %s18306_s27  ;;  %s18507_s1 = smov [#allocation3]  }
  0x35   : > { %s18311_s23 = sshll.u32 %s18507_s1, 4  ;;  %s18312_s23 = int_to_ptr.vmem [resolvable:$false] %s18311_s23 }
  0x36   : > { %s168_s21 = scalar_lea.hbm %s21582_s0, %s18101_s29  ;;  %p18309_p13 = pnand %p18307_p8, %p18295_p5 }
  0x37   : > { %s18313_s29 = scalar_lea.vmem %s18312_s23, 4096  ;;  %p18314_p3 = scmp.lt.s32.totalorder %s170_s22, %s18312_s23 }
  0x38   : > { %p18310_p2 = pneg %p18309_p13  ;;  %p18315_p4 = scmp.lt.s32.totalorder %s18313_s29, %s18306_s27 }
  0x3a   : > { %p18316_p10 = por %p18315_p4, %p18314_p3 }
  0x3c   : > { %p18317_p11 = pnand %p18316_p10, %p18310_p2 }
  0x3e   : > { %18320 = shalt.err (!%p18317_p11)
}
  0x3f   : > { %s18508_s3 = smov 4096   ;;  %s21584_s30 = smov 64  }
  0x40   : > { %s21585_s7 = smov 1024   ;;  %s18695_s1 = sadd.s32 4294967295, %s18501_s25  }
  0x41   : > { %18132 = dma.hbm_to_vmem [thread:$0]  (!%p18684_p7), %s168_s21, 2048, %s170_s22, %s159_s9, %s18508_s3, %s21585_s7, %s21584_s30  }
  0x42   : > { %s15995_s23 = sadd.s32 4294967294, %s18501_s25   ;;  %p55_p5 = scmp.eq.s32.totalorder %s18695_s1, 0 }
  0x43   : > { %s21586_s26 = sadd.s32 1, %s18497_s24  ;;  %p21588_p13 = scmp.ne.s32.totalorder %s18465_s16, %s18461_s15 }
  0x44   : > { %s21623_s26 = smov (!%p18607_p0, %s21586_s26), %s18497_s24  ;;  %p18707_p8 = por %p55_p5, %p54_p12 }
  0x45   : > { %p18714_p7 = por %p21588_p13, %p55_p5  ;;  %p36_p2 = scmp.ge.s32.totalorder %s21623_s26, 2 }
  0x46   : > { %s95_s21 = sadd.s32 1, %s18457_s14  ;;  %p102_p3 = scmp.ne.s32.totalorder %s18457_s14, %s18453_s13 }
  0x47   : > { %p108_p4 = scmp.ne.s32.totalorder %s18453_s13, %s18449_s12  ;;  %s21625_s26 = smov (%p36_p2, %s21623_s26), 0 }
  0x48   : > { %21590 = sst [smem:[#allocation20_spill]] %s21625_s26  ;;  %p18727_p0 = por %p102_p3, %p49_p1 }
  0x49   : > { %p18734_p12 = por %p108_p4, %p55_p5  ;;  %s65_s28 = ssub.s32 %s18497_s24, %s21625_s26 }
  0x4a   : > { %p132_p10 = scmp.eq.s32.totalorder %s18695_s1, 7  ;;  %s66_s11 = sor.u32 %s65_s28, %s18629_s4 }
  0x4b   : > { %s21592_s18 = scalar_select %p18734_p12, 1, 0 }
  0x4c   : > { %p93_p11 = scmp.eq.s32.totalorder %s65_s28, 0  ;;  %p67_p13 = scmp.eq.s32.totalorder %s66_s11, 0 }
  0x4d   : > { %p18742_p2 = por %p132_p10, %p102_p3  ;;  %s21594_s29 = sadd.s32 1, %s18469_s17 }
  0x4e   : > { %s18747_s9 = scalar_select %p93_p11, %s18457_s14, %s95_s21  }
  0x4f   : > { %s21593_s22 = scalar_select %p18742_p2, 1, 0 }
  0x50   : > { %s18752_s3 = scalar_select %p67_p13, %s18469_s17, %s21594_s29  }
  0x51   : > { %p138_p1 = scmp.eq.s32.totalorder %s15995_s23, 7  ;;  %s205_s30 = sand.u32 1, %s18457_s14  }
  0x52   : > { %s16006_s7 = sshll.u32 %s205_s30, 4  ;;  %s18103_s0 = sshll.u32 %s18497_s24, 8 }
  0x53   : > { %p18759_p5 = por %p138_p1, %p108_p4  ;;  %s213_s11 = scalar_lea.hbm %s21557_s2, %s18103_s0 }
  0x54   : > { %s207_s10 = scalar_lea.vmem [#allocation8], %s16006_s7  ;;  %p18770_p3 = pnand %p18143_p6, %p18727_p0 }
  0x55   : > { %s21595_s26 = scalar_select %p18759_p5, 1, 0 }
  0x56   : > { %s215_s20 = sshll.u32 %s207_s10, 4  ;;  %p18323_p10 = pneg %p18770_p3  ;;  %s216_s20 = int_to_ptr.vmem [resolvable:$true] %s215_s20 }
  0x57   : > { %s18334_s23 = scalar_lea.vmem %s216_s20, 256  ;;  %s18509_s29 = smov [#allocation8]  }
  0x58   : > { %p18335_p4 = scmp.ne.s32.totalorder %s216_s20, %s18334_s23  ;;  %s18339_s30 = sshll.u32 %s18509_s29, 4  ;;  %s18340_s30 = int_to_ptr.vmem [resolvable:$false] %s18339_s30 }
  0x59   : > { %s18341_s0 = scalar_lea.vmem %s18340_s30, 512  ;;  %p18342_p1 = scmp.lt.s32.totalorder %s216_s20, %s18340_s30 }
  0x5a   : > { %p18337_p11 = pnand %p18335_p4, %p18323_p10  ;;  %p18343_p5 = scmp.lt.s32.totalorder %s18341_s0, %s18334_s23 }
  0x5c   : > { %p18338_p13 = pneg %p18337_p11  ;;  %p18344_p2 = por %p18343_p5, %p18342_p1 }
  0x5e   : > { %p18345_p12 = pnand %p18344_p2, %p18338_p13 }
  0x60   : > { %18348 = shalt.err (!%p18345_p12)
}
  0x61   : > { %18138 = dma.hbm_to_vmem [thread:$0]  (!%p18770_p3), %s213_s11, 256, %s216_s20, %s18649_s6  }
  0x62   : > { %224 = sbr.rel (%p18661_p9) target bundleno = 2467 (0x9a3), region = 32  ;;  %s226_s10 = sand.u32 (!%p18661_p9), 1, %s18477_s19  }
  0x63   : > { %s16010_s15 = sshll.u32 (!%p18661_p9), %s226_s10, 7  ;;  %s227_s7 = scalar_lea.sflag (!%p18661_p9), [#allocation4], %s226_s10 }
  0x64   : > { %s18782_s4 = scalar_lea.vmem (!%p18661_p9), [#allocation3], %s16010_s15 }
  0x67   : > { %18432 = dma.done.wait (%p18707_p8), %s227_s7, 2048  }
  0x68   : > { %18434 = vsyncadd (%p18707_p8), %s227_s7, 4294965248  ;;  %s235_s28 = sand.u32 1, %s18695_s1   ;;  %s237_s20 = sand.u32 1, %s18465_s16  }
  0x69   : > { %s16011_s6 = sshll.u32 %s237_s20, 14  ;;  %s236_s5 = scalar_lea.sflag [#allocation7], %s235_s28 }
  0x6a   : > { %s18790_s11 = scalar_lea.vmem [#allocation6], %s16011_s6 }
  0x6b   : > { %18436 = dma.done.wait (%p18714_p7), %s236_s5, 262144  }
  0x6c   : > { %18438 = vsyncadd (%p18714_p7), %s236_s5, 4294705152  ;;  %s18797_s21 = sand.u32 1, %s18453_s13   ;;  %p21597_p6 = scmp.ne.s32.totalorder %s21592_s18, 0 }
  0x6d   : > { %s16012_s27 = sshll.u32 %s18797_s21, 4 }
  0x6e   : > { %s18800_s23 = scalar_lea.vmem [#allocation8], %s16012_s27 }
  0x6f   : > { %18440 = dma.done.wait (%p21597_p6), %s236_s5, 256  }
  0x70   : > { %18442 = vsyncadd (%p21597_p6), %s236_s5, 4294967040  ;;  %s16013_s1 = sshll.u32 %s18797_s21, 7  ;;  %s21598_s30 = sld [smem:[#allocation15_spill]] }
  0x71   : > { %s18807_s29 = scalar_lea.vmem [#allocation9], %s16013_s1 }
  0x76   : > { %p16014_p9 = scmp.ne.s32.totalorder %s21598_s30, 0 }
  0x78   : > { %289 = sbr.rel (%p16014_p9) target bundleno = 142 (0x8e), region = 48 }
  0x7d   : > { %v18510_v0 = vmov 0.0  }
  0x7e   : > { %290 = vst [vmem:[#allocation2 + $0xb0] sm:$0xff] %v18510_v0  ;;  %291 = vst [vmem:[#allocation2] sm:$0xff] %v18510_v0 }
  0x7f   : > { %292 = vst [vmem:[#allocation2 + $0xd8] sm:$0xff] %v18510_v0  ;;  %293 = vst [vmem:[#allocation2 + $0x18] sm:$0xff] %v18510_v0 }
  0x80   : > { %294 = vst [vmem:[#allocation2 + $0x50] sm:$0xff] %v18510_v0  ;;  %295 = vst [vmem:[#allocation2 + $0x68] sm:$0xff] %v18510_v0 }
  0x81   : > { %296 = vst [vmem:[#allocation2 + $0x30] sm:$0xff] %v18510_v0  ;;  %297 = vst [vmem:[#allocation2 + $0x48] sm:$0xff] %v18510_v0 }
  0x82   : > { %298 = vst [vmem:[#allocation2 + $0x80] sm:$0xff] %v18510_v0  ;;  %299 = vst [vmem:[#allocation2 + $0x88] sm:$0xff] %v18510_v0 }
  0x83   : > { %300 = vst [vmem:[#allocation2 + $0xe8] sm:$0xff] %v18510_v0  ;;  %301 = vst [vmem:[#allocation2 + $0xb8] sm:$0xff] %v18510_v0 }
  0x84   : > { %302 = vst [vmem:[#allocation2 + $0x60] sm:$0xff] %v18510_v0  ;;  %303 = vst [vmem:[#allocation2 + $0xf0] sm:$0xff] %v18510_v0 }
  0x85   : > { %304 = vst [vmem:[#allocation2 + $0x8] sm:$0xff] %v18510_v0  ;;  %305 = vst [vmem:[#allocation2 + $0x78] sm:$0xff] %v18510_v0 }
  0x86   : > { %306 = vst [vmem:[#allocation2 + $0x38] sm:$0xff] %v18510_v0  ;;  %307 = vst [vmem:[#allocation2 + $0x58] sm:$0xff] %v18510_v0 }
  0x87   : > { %308 = vst [vmem:[#allocation2 + $0x40] sm:$0xff] %v18510_v0  ;;  %309 = vst [vmem:[#allocation2 + $0xc8] sm:$0xff] %v18510_v0 }
  0x88   : > { %310 = vst [vmem:[#allocation2 + $0xe0] sm:$0xff] %v18510_v0  ;;  %311 = vst [vmem:[#allocation2 + $0x90] sm:$0xff] %v18510_v0 }
  0x89   : > { %312 = vst [vmem:[#allocation2 + $0x70] sm:$0xff] %v18510_v0  ;;  %313 = vst [vmem:[#allocation2 + $0xc0] sm:$0xff] %v18510_v0 }
  0x8a   : > { %314 = vst [vmem:[#allocation2 + $0xa8] sm:$0xff] %v18510_v0  ;;  %315 = vst [vmem:[#allocation2 + $0xd0] sm:$0xff] %v18510_v0 }
  0x8b   : > { %316 = vst [vmem:[#allocation2 + $0x10] sm:$0xff] %v18510_v0  ;;  %317 = vst [vmem:[#allocation2 + $0x28] sm:$0xff] %v18510_v0 }
  0x8c   : > { %318 = vst [vmem:[#allocation2 + $0xa0] sm:$0xff] %v18510_v0  ;;  %319 = vst [vmem:[#allocation2 + $0xf8] sm:$0xff] %v18510_v0 }
  0x8d   : > { %320 = vst [vmem:[#allocation2 + $0x20] sm:$0xff] %v18510_v0  ;;  %321 = vst [vmem:[#allocation2 + $0x98] sm:$0xff] %v18510_v0 }
  0x8e PF: > { %v482_v1 = vld [vmem:[%s18790_s11 + $0x380] sm:$0xff]  ;;  %v18851_v60 = vld [vmem:[%s18782_s4 + $0x8] sm:$0xff]  ;;  %s21599_s8 = sld [smem:[#allocation15_spill]] }
  0x8f   : > { %v490_v2 = vld [vmem:[%s18790_s11 + $0x3c0] sm:$0xff]  ;;  %v18854_v61 = vld [vmem:[%s18782_s4 + $0x48] sm:$0xff] }
  0x90   : > { %v738_v3 = vld [vmem:[%s18790_s11 + $0xb80] sm:$0xff]  ;;  %v16144_v4 = vcombine.high %v482_v1, %v490_v2  ;;  %v16143_v6 = vcombine.low %v482_v1, %v490_v2  ;;  %v18860_v0 = vcombine.high %v18851_v60, %v18854_v61 }
  0x91   : > { %v746_v5 = vld [vmem:[%s18790_s11 + $0xbc0] sm:$0xff] }
  0x92   : > { %v466_v7 = vld [vmem:[%s18790_s11 + $0x300] sm:$0xff]  ;;  %v16400_v9 = vcombine.high %v738_v3, %v746_v5  ;;  %v16399_v10 = vcombine.low %v738_v3, %v746_v5  ;;  %12738 = vmatprep.subr.bf16.mxu0 %v16144_v4  ;;  %12813 = vmatprep.mubr.bf16.mxu1 %v18860_v0 }
  0x93   : > { %v474_v8 = vld [vmem:[%s18790_s11 + $0x340] sm:$0xff]  ;;  %12739 = vmatpush1.bf16.msra.mxu0 %v16143_v6 }
  0x94   : > { %v16128_v11 = vcombine.high %v466_v7, %v474_v8  ;;  %v722_v12 = vld [vmem:[%s18790_s11 + $0xb00] sm:$0xff]  ;;  %12781 = vmatprep.subr.bf16.mxu1 %v16400_v9  ;;  %v16127_v19 = vcombine.low %v466_v7, %v474_v8  ;;  %p18079_p8 = scmp.ne.s32.totalorder %s21599_s8, 3 }
  0x95   : > { %v730_v13 = vld [vmem:[%s18790_s11 + $0xb40] sm:$0xff]  ;;  %12782 = vmatpush1.bf16.msra.mxu1 %v16399_v10 }
  0x96   : > { %v450_v14 = vld [vmem:[%s18790_s11 + $0x280] sm:$0xff]  ;;  %v16384_v15 = vcombine.high %v722_v12, %v730_v13  ;;  %12740 = vmatprep.subr.bf16.mxu0 %v16128_v11  ;;  %v16383_v20 = vcombine.low %v722_v12, %v730_v13 }
  0x97   : > { %v458_v16 = vld [vmem:[%s18790_s11 + $0x2c0] sm:$0xff]  ;;  %12741 = vmatpush1.bf16.msra.mxu0 %v16127_v19 }
  0x98   : > { %v706_v17 = vld [vmem:[%s18790_s11 + $0xa80] sm:$0xff]  ;;  %v16112_v21 = vcombine.high %v450_v14, %v458_v16  ;;  %12783 = vmatprep.subr.bf16.mxu1 %v16384_v15  ;;  %v16111_v27 = vcombine.low %v450_v14, %v458_v16 }
  0x99   : > { %v714_v18 = vld [vmem:[%s18790_s11 + $0xac0] sm:$0xff]  ;;  %12784 = vmatpush1.bf16.msra.mxu1 %v16383_v20 }
  0x9a   : > { %v16368_v22 = vcombine.high %v706_v17, %v714_v18  ;;  %v434_v23 = vld [vmem:[%s18790_s11 + $0x200] sm:$0xff]  ;;  %12742 = vmatprep.subr.bf16.mxu0 %v16112_v21  ;;  %v16367_v28 = vcombine.low %v706_v17, %v714_v18 }
  0x9b   : > { %v442_v24 = vld [vmem:[%s18790_s11 + $0x240] sm:$0xff]  ;;  %12743 = vmatpush1.bf16.msra.mxu0 %v16111_v27 }
  0x9c   : > { %v690_v25 = vld [vmem:[%s18790_s11 + $0xa00] sm:$0xff]  ;;  %v16096_v29 = vcombine.high %v434_v23, %v442_v24  ;;  %12785 = vmatprep.subr.bf16.mxu1 %v16368_v22  ;;  %v16095_v35 = vcombine.low %v434_v23, %v442_v24 }
  0x9d   : > { %v698_v26 = vld [vmem:[%s18790_s11 + $0xa40] sm:$0xff]  ;;  %12786 = vmatpush1.bf16.msra.mxu1 %v16367_v28 }
  0x9e   : > { %v16352_v30 = vcombine.high %v690_v25, %v698_v26  ;;  %v418_v31 = vld [vmem:[%s18790_s11 + $0x180] sm:$0xff]  ;;  %12744 = vmatprep.subr.bf16.mxu0 %v16096_v29  ;;  %v16351_v36 = vcombine.low %v690_v25, %v698_v26 }
  0x9f   : > { %v426_v32 = vld [vmem:[%s18790_s11 + $0x1c0] sm:$0xff]  ;;  %12745 = vmatpush1.bf16.msra.mxu0 %v16095_v35 }
  0xa0   : > { %v674_v33 = vld [vmem:[%s18790_s11 + $0x980] sm:$0xff]  ;;  %v16080_v37 = vcombine.high %v418_v31, %v426_v32  ;;  %12787 = vmatprep.subr.bf16.mxu1 %v16352_v30  ;;  %v16079_v43 = vcombine.low %v418_v31, %v426_v32 }
  0xa1   : > { %v682_v34 = vld [vmem:[%s18790_s11 + $0x9c0] sm:$0xff]  ;;  %12788 = vmatpush1.bf16.msra.mxu1 %v16351_v36 }
  0xa2   : > { %v16336_v38 = vcombine.high %v674_v33, %v682_v34  ;;  %v402_v39 = vld [vmem:[%s18790_s11 + $0x100] sm:$0xff]  ;;  %12746 = vmatprep.subr.bf16.mxu0 %v16080_v37  ;;  %v16335_v44 = vcombine.low %v674_v33, %v682_v34 }
  0xa3   : > { %v410_v40 = vld [vmem:[%s18790_s11 + $0x140] sm:$0xff]  ;;  %12747 = vmatpush1.bf16.msra.mxu0 %v16079_v43 }
  0xa4   : > { %v658_v41 = vld [vmem:[%s18790_s11 + $0x900] sm:$0xff]  ;;  %v16064_v45 = vcombine.high %v402_v39, %v410_v40  ;;  %12789 = vmatprep.subr.bf16.mxu1 %v16336_v38  ;;  %v16063_v51 = vcombine.low %v402_v39, %v410_v40 }
  0xa5   : > { %v666_v42 = vld [vmem:[%s18790_s11 + $0x940] sm:$0xff]  ;;  %12790 = vmatpush1.bf16.msra.mxu1 %v16335_v44 }
  0xa6   : > { %v16320_v46 = vcombine.high %v658_v41, %v666_v42  ;;  %v386_v47 = vld [vmem:[%s18790_s11 + $0x80] sm:$0xff]  ;;  %12748 = vmatprep.subr.bf16.mxu0 %v16064_v45  ;;  %v16319_v52 = vcombine.low %v658_v41, %v666_v42 }
  0xa7   : > { %v394_v48 = vld [vmem:[%s18790_s11 + $0xc0] sm:$0xff]  ;;  %12749 = vmatpush1.bf16.msra.mxu0 %v16063_v51 }
  0xa8   : > { %v642_v49 = vld [vmem:[%s18790_s11 + $0x880] sm:$0xff]  ;;  %v16048_v53 = vcombine.high %v386_v47, %v394_v48  ;;  %12791 = vmatprep.subr.bf16.mxu1 %v16320_v46  ;;  %v16047_v1 = vcombine.low %v386_v47, %v394_v48 }
  0xa9   : > { %v650_v50 = vld [vmem:[%s18790_s11 + $0x8c0] sm:$0xff]  ;;  %12792 = vmatpush1.bf16.msra.mxu1 %v16319_v52 }
  0xaa   : > { %v370_v54 = vld [vmem:[%s18790_s11] sm:$0xff]  ;;  %v16304_v57 = vcombine.high %v642_v49, %v650_v50  ;;  %12750 = vmatprep.subr.bf16.mxu0 %v16048_v53  ;;  %v16303_v2 = vcombine.low %v642_v49, %v650_v50 }
  0xab   : > { %v18840_v55 = vld [vmem:[%s18782_s4] sm:$0xff]  ;;  %12751 = vmatpush1.bf16.msra.mxu0 %v16047_v1 }
  0xac   : > { %v18843_v56 = vld [vmem:[%s18782_s4 + $0x40] sm:$0xff]  ;;  %12793 = vmatprep.subr.bf16.mxu1 %v16304_v57 }
  0xad   : > { %v378_v58 = vld [vmem:[%s18790_s11 + $0x40] sm:$0xff]  ;;  %v18848_v59 = vcombine.high %v18840_v55, %v18843_v56  ;;  %12794 = vmatpush1.bf16.msra.mxu1 %v16303_v2 }
  0xae   : > { %v626_v62 = vld [vmem:[%s18790_s11 + $0x800] sm:$0xff]  ;;  %v16032_v3 = vcombine.high %v370_v54, %v378_v58  ;;  %v16031_v9 = vcombine.low %v370_v54, %v378_v58 }
  0xaf   : > { %v634_v63 = vld [vmem:[%s18790_s11 + $0x840] sm:$0xff]  ;;  %12770 = vmatprep.mubr.bf16.mxu0 %v18848_v59 }
  0xb0   : > { %v16288_v4 = vcombine.high %v626_v62, %v634_v63  ;;  %v610_v5 = vld [vmem:[%s18790_s11 + $0x780] sm:$0xff]  ;;  %12752 = vmatprep.subr.bf16.mxu0 %v16032_v3  ;;  %v16287_v10 = vcombine.low %v626_v62, %v634_v63 }
  0xb1   : > { %v618_v6 = vld [vmem:[%s18790_s11 + $0x7c0] sm:$0xff]  ;;  %12753 = vmatpush1.bf16.msra.mxu0 %v16031_v9 }
  0xb2   : > { %v866_v7 = vld [vmem:[%s18790_s11 + $0xf80] sm:$0xff]  ;;  %v16272_v11 = vcombine.high %v610_v5, %v618_v6  ;;  %12795 = vmatprep.subr.bf16.mxu1 %v16288_v4  ;;  %v16271_v17 = vcombine.low %v610_v5, %v618_v6 }
  0xb3   : > { %v874_v8 = vld [vmem:[%s18790_s11 + $0xfc0] sm:$0xff]  ;;  %12796 = vmatpush1.bf16.msra.mxu1 %v16287_v10 }
  0xb4   : > { %v16528_v12 = vcombine.high %v866_v7, %v874_v8  ;;  %v594_v13 = vld [vmem:[%s18790_s11 + $0x700] sm:$0xff]  ;;  %12754 = vmatprep.subr.bf16.mxu0 %v16272_v11  ;;  %v16527_v18 = vcombine.low %v866_v7, %v874_v8 }
  0xb5   : > { %v602_v14 = vld [vmem:[%s18790_s11 + $0x740] sm:$0xff]  ;;  %12755 = vmatpush2.bf16.msra.mxu0 %v16271_v17 }
  0xb6   : > { %v850_v15 = vld [vmem:[%s18790_s11 + $0xf00] sm:$0xff]  ;;  %v16256_v19 = vcombine.high %v594_v13, %v602_v14  ;;  %12797 = vmatprep.subr.bf16.mxu1 %v16528_v12  ;;  %v16255_v25 = vcombine.low %v594_v13, %v602_v14 }
  0xb7   : > { %v858_v16 = vld [vmem:[%s18790_s11 + $0xf40] sm:$0xff]  ;;  %12798 = vmatpush2.bf16.msra.mxu1 %v16527_v18 }
  0xb8   : > { %v16512_v20 = vcombine.high %v850_v15, %v858_v16  ;;  %v578_v21 = vld [vmem:[%s18790_s11 + $0x680] sm:$0xff]  ;;  %12756 = vmatprep.subr.bf16.mxu0 %v16256_v19  ;;  %v16511_v26 = vcombine.low %v850_v15, %v858_v16 }
  0xb9   : > { %v586_v22 = vld [vmem:[%s18790_s11 + $0x6c0] sm:$0xff]  ;;  %12757 = vmatpush2.bf16.msra.mxu0 %v16255_v25  ;;  %v18912_v25 = vld [vmem:[%s18782_s4 + $0x50] sm:$0xff] }
  0xba   : > { %v834_v23 = vld [vmem:[%s18790_s11 + $0xe80] sm:$0xff]  ;;  %v16240_v27 = vcombine.high %v578_v21, %v586_v22  ;;  %12799 = vmatprep.subr.bf16.mxu1 %v16512_v20  ;;  %v16239_v33 = vcombine.low %v578_v21, %v586_v22  ;;  %v18905_v22 = vcombine.low %v18840_v55, %v18843_v56 }
  0xbb   : > { %v842_v24 = vld [vmem:[%s18790_s11 + $0xec0] sm:$0xff]  ;;  %12800 = vmatpush2.bf16.msra.mxu1 %v16511_v26  ;;  %v18916_v26 = vcombine.low %v18851_v60, %v18854_v61 }
  0xbc   : > { %v16496_v28 = vcombine.high %v834_v23, %v842_v24  ;;  %v562_v29 = vld [vmem:[%s18790_s11 + $0x600] sm:$0xff]  ;;  %12758 = vmatprep.subr.bf16.mxu0 %v16240_v27  ;;  %v16495_v34 = vcombine.low %v834_v23, %v842_v24  ;;  %v18909_v24 = vld [vmem:[%s18782_s4 + $0x10] sm:$0xff] }
  0xbd   : > { %v570_v30 = vld [vmem:[%s18790_s11 + $0x640] sm:$0xff]  ;;  %12759 = vmatpush2.bf16.msra.mxu0 %v16239_v33  ;;  %v18928_v33 = vcombine.high %v18909_v24, %v18912_v25 }
  0xbe   : > { %v818_v31 = vld [vmem:[%s18790_s11 + $0xe00] sm:$0xff]  ;;  %v16224_v35 = vcombine.high %v562_v29, %v570_v30  ;;  %12801 = vmatprep.subr.bf16.mxu1 %v16496_v28  ;;  %v16223_v41 = vcombine.low %v562_v29, %v570_v30  ;;  %v18919_v28 = vld [vmem:[%s18782_s4 + $0x18] sm:$0xff] }
  0xbf   : > { %v826_v32 = vld [vmem:[%s18790_s11 + $0xe40] sm:$0xff]  ;;  %12802 = vmatpush2.bf16.msra.mxu1 %v16495_v34  ;;  %v18922_v29 = vld [vmem:[%s18782_s4 + $0x58] sm:$0xff] }
  0xc0   : > { %v16480_v36 = vcombine.high %v818_v31, %v826_v32  ;;  %v546_v37 = vld [vmem:[%s18790_s11 + $0x580] sm:$0xff]  ;;  %12760 = vmatprep.subr.bf16.mxu0 %v16224_v35  ;;  %v16479_v42 = vcombine.low %v818_v31, %v826_v32  ;;  %v18935_v34 = vcombine.high %v18919_v28, %v18922_v29 }
  0xc1   : > { %v554_v38 = vld [vmem:[%s18790_s11 + $0x5c0] sm:$0xff]  ;;  %12761 = vmatpush2.bf16.msra.mxu0 %v16223_v41 }
  0xc2   : > { %v802_v39 = vld [vmem:[%s18790_s11 + $0xd80] sm:$0xff]  ;;  %v16208_v43 = vcombine.high %v546_v37, %v554_v38  ;;  %12803 = vmatprep.subr.bf16.mxu1 %v16480_v36  ;;  %v16207_v49 = vcombine.low %v546_v37, %v554_v38 }
  0xc3   : > { %v810_v40 = vld [vmem:[%s18790_s11 + $0xdc0] sm:$0xff]  ;;  %12804 = vmatpush2.bf16.msra.mxu1 %v16479_v42 }
  0xc4   : > { %v16464_v44 = vcombine.high %v802_v39, %v810_v40  ;;  %v530_v45 = vld [vmem:[%s18790_s11 + $0x500] sm:$0xff]  ;;  %12762 = vmatprep.subr.bf16.mxu0 %v16208_v43  ;;  %v16463_v50 = vcombine.low %v802_v39, %v810_v40 }
  0xc5   : > { %v538_v46 = vld [vmem:[%s18790_s11 + $0x540] sm:$0xff]  ;;  %12763 = vmatpush2.bf16.msra.mxu0 %v16207_v49 }
  0xc6   : > { %v786_v47 = vld [vmem:[%s18790_s11 + $0xd00] sm:$0xff]  ;;  %v16192_v51 = vcombine.high %v530_v45, %v538_v46  ;;  %12805 = vmatprep.subr.bf16.mxu1 %v16464_v44  ;;  %v16191_v62 = vcombine.low %v530_v45, %v538_v46 }
  0xc7   : > { %v794_v48 = vld [vmem:[%s18790_s11 + $0xd40] sm:$0xff]  ;;  %12806 = vmatpush2.bf16.msra.mxu1 %v16463_v50 }
  0xc8   : > { %v16448_v52 = vcombine.high %v786_v47, %v794_v48  ;;  %v514_v53 = vld [vmem:[%s18790_s11 + $0x480] sm:$0xff]  ;;  %12764 = vmatprep.subr.bf16.mxu0 %v16192_v51  ;;  %v16447_v63 = vcombine.low %v786_v47, %v794_v48 }
  0xc9   : > { %v522_v54 = vld [vmem:[%s18790_s11 + $0x4c0] sm:$0xff]  ;;  %12765 = vmatpush2.bf16.msra.mxu0 %v16191_v62 }
  0xca   : > { %v770_v57 = vld [vmem:[%s18790_s11 + $0xc80] sm:$0xff]  ;;  %v16176_v1 = vcombine.high %v514_v53, %v522_v54  ;;  %12807 = vmatprep.subr.bf16.mxu1 %v16448_v52  ;;  %v16175_v7 = vcombine.low %v514_v53, %v522_v54 }
  0xcb   : > { %v778_v58 = vld [vmem:[%s18790_s11 + $0xcc0] sm:$0xff]  ;;  %12808 = vmatpush2.bf16.msra.mxu1 %v16447_v63 }
  0xcc   : > { %v16432_v2 = vcombine.high %v770_v57, %v778_v58  ;;  %v498_v3 = vld [vmem:[%s18790_s11 + $0x400] sm:$0xff]  ;;  %12766 = vmatprep.subr.bf16.mxu0 %v16176_v1  ;;  %v16431_v8 = vcombine.low %v770_v57, %v778_v58 }
  0xcd   : > { %v506_v4 = vld [vmem:[%s18790_s11 + $0x440] sm:$0xff]  ;;  %12767 = vmatpush2.bf16.msra.mxu0 %v16175_v7 }
  0xce   : > { %v754_v5 = vld [vmem:[%s18790_s11 + $0xc00] sm:$0xff]  ;;  %v16160_v9 = vcombine.high %v498_v3, %v506_v4  ;;  %12809 = vmatprep.subr.bf16.mxu1 %v16432_v2  ;;  %v16159_v15 = vcombine.low %v498_v3, %v506_v4 }
  0xcf   : > { %v762_v6 = vld [vmem:[%s18790_s11 + $0xc40] sm:$0xff]  ;;  %12810 = vmatpush2.bf16.msra.mxu1 %v16431_v8 }
  0xd0   : > { %v16416_v10 = vcombine.high %v754_v5, %v762_v6  ;;  %v994_v11 = vld [vmem:[%s18790_s11 + $0x1380] sm:$0xff]  ;;  %12768 = vmatprep.subr.bf16.mxu0 %v16160_v9  ;;  %v16415_v16 = vcombine.low %v754_v5, %v762_v6 }
  0xd1   : > { %v1002_v12 = vld [vmem:[%s18790_s11 + $0x13c0] sm:$0xff]  ;;  %12769 = vmatpush2.bf16.msra.mxu0 %v16159_v15 }
  0xd2   : > { %v1250_v13 = vld [vmem:[%s18790_s11 + $0x1b80] sm:$0xff]  ;;  %v16656_v17 = vcombine.high %v994_v11, %v1002_v12  ;;  %12811 = vmatprep.subr.bf16.mxu1 %v16416_v10  ;;  %v16655_v27 = vcombine.low %v994_v11, %v1002_v12 }
  0xd3   : > { %v1258_v14 = vld [vmem:[%s18790_s11 + $0x1bc0] sm:$0xff]  ;;  %12812 = vmatpush2.bf16.msra.mxu1 %v16415_v16 }
  0xd4   : > { %v16912_v18 = vcombine.high %v1250_v13, %v1258_v14  ;;  %v978_v19 = vld [vmem:[%s18790_s11 + $0x1300] sm:$0xff]  ;;  %12824 = vmatprep.subr.bf16.mxu0 %v16656_v17  ;;  %v16911_v55 = vcombine.low %v1250_v13, %v1258_v14  ;;  %12771 = vmatmul.mubr.bf16.vlgmr.msra.gmra.mxu0 %v18905_v22 }
  0xd5   : > { %v986_v20 = vld [vmem:[%s18790_s11 + $0x1340] sm:$0xff]  ;;  %12825 = vmatpush1.bf16.msra.mxu0 %v16655_v27  ;;  %12856 = vmatprep.mubr.bf16.mxu0 %v18928_v33 }
  0xd6   : > { %v1234_v21 = vld [vmem:[%s18790_s11 + $0x1b00] sm:$0xff]  ;;  %v16640_v56 = vcombine.high %v978_v19, %v986_v20  ;;  %12867 = vmatprep.subr.bf16.mxu1 %v16912_v18  ;;  %12814 = vmatmul.mubr.bf16.vlgmr.msra.gmra.mxu1 %v18916_v26  ;;  %v16639_v35 = vcombine.low %v978_v19, %v986_v20 }
  0xd7   : > { %v1242_v23 = vld [vmem:[%s18790_s11 + $0x1b40] sm:$0xff]  ;;  %12868 = vmatpush1.bf16.msra.mxu1 %v16911_v55  ;;  %12899 = vmatprep.mubr.bf16.mxu1 %v18935_v34 }
  0xd8   : > { %v16896_v30 = vcombine.high %v1234_v21, %v1242_v23  ;;  %v962_v31 = vld [vmem:[%s18790_s11 + $0x1280] sm:$0xff]  ;;  %12826 = vmatprep.subr.bf16.mxu0 %v16640_v56  ;;  %v16895_v36 = vcombine.low %v1234_v21, %v1242_v23 }
  0xd9   : > { %v970_v32 = vld [vmem:[%s18790_s11 + $0x12c0] sm:$0xff]  ;;  %12827 = vmatpush1.bf16.msra.mxu0 %v16639_v35 }
  0xda   : > { %v1218_v60 = vld [vmem:[%s18790_s11 + $0x1a80] sm:$0xff]  ;;  %v16624_v37 = vcombine.high %v962_v31, %v970_v32  ;;  %12869 = vmatprep.subr.bf16.mxu1 %v16896_v30  ;;  %v16623_v43 = vcombine.low %v962_v31, %v970_v32 }
  0xdb   : > { %v1226_v61 = vld [vmem:[%s18790_s11 + $0x1ac0] sm:$0xff]  ;;  %12870 = vmatpush1.bf16.msra.mxu1 %v16895_v36 }
  0xdc   : > { %v16880_v38 = vcombine.high %v1218_v60, %v1226_v61  ;;  %v946_v39 = vld [vmem:[%s18790_s11 + $0x1200] sm:$0xff]  ;;  %12828 = vmatprep.subr.bf16.mxu0 %v16624_v37  ;;  %v16879_v44 = vcombine.low %v1218_v60, %v1226_v61 }
  0xdd   : > { %v954_v40 = vld [vmem:[%s18790_s11 + $0x1240] sm:$0xff]  ;;  %12829 = vmatpush1.bf16.msra.mxu0 %v16623_v43 }
  0xde   : > { %v1202_v41 = vld [vmem:[%s18790_s11 + $0x1a00] sm:$0xff]  ;;  %v16608_v45 = vcombine.high %v946_v39, %v954_v40  ;;  %12871 = vmatprep.subr.bf16.mxu1 %v16880_v38  ;;  %v16607_v51 = vcombine.low %v946_v39, %v954_v40 }
  0xdf   : > { %v1210_v42 = vld [vmem:[%s18790_s11 + $0x1a40] sm:$0xff]  ;;  %12872 = vmatpush1.bf16.msra.mxu1 %v16879_v44 }
  0xe0   : > { %v16864_v46 = vcombine.high %v1202_v41, %v1210_v42  ;;  %v930_v47 = vld [vmem:[%s18790_s11 + $0x1180] sm:$0xff]  ;;  %12830 = vmatprep.subr.bf16.mxu0 %v16608_v45  ;;  %v16863_v52 = vcombine.low %v1202_v41, %v1210_v42 }
  0xe1   : > { %v938_v48 = vld [vmem:[%s18790_s11 + $0x11c0] sm:$0xff]  ;;  %12831 = vmatpush1.bf16.msra.mxu0 %v16607_v51 }
  0xe2   : > { %v1186_v49 = vld [vmem:[%s18790_s11 + $0x1980] sm:$0xff]  ;;  %v16592_v53 = vcombine.high %v930_v47, %v938_v48  ;;  %12873 = vmatprep.subr.bf16.mxu1 %v16864_v46  ;;  %v16591_v1 = vcombine.low %v930_v47, %v938_v48 }
  0xe3   : > { %v1194_v50 = vld [vmem:[%s18790_s11 + $0x19c0] sm:$0xff]  ;;  %12874 = vmatpush1.bf16.msra.mxu1 %v16863_v52 }
  0xe4   : > { %v16848_v54 = vcombine.high %v1186_v49, %v1194_v50  ;;  %v914_v57 = vld [vmem:[%s18790_s11 + $0x1100] sm:$0xff]  ;;  %12832 = vmatprep.subr.bf16.mxu0 %v16592_v53  ;;  %v16847_v2 = vcombine.low %v1186_v49, %v1194_v50 }
  0xe5   : > { %v922_v58 = vld [vmem:[%s18790_s11 + $0x1140] sm:$0xff]  ;;  %12833 = vmatpush1.bf16.msra.mxu0 %v16591_v1 }
  0xe6   : > { %v1170_v62 = vld [vmem:[%s18790_s11 + $0x1900] sm:$0xff]  ;;  %v16576_v3 = vcombine.high %v914_v57, %v922_v58  ;;  %12875 = vmatprep.subr.bf16.mxu1 %v16848_v54  ;;  %v16575_v9 = vcombine.low %v914_v57, %v922_v58 }
  0xe7   : > { %v1178_v63 = vld [vmem:[%s18790_s11 + $0x1940] sm:$0xff]  ;;  %12876 = vmatpush1.bf16.msra.mxu1 %v16847_v2 }
  0xe8   : > { %v16832_v4 = vcombine.high %v1170_v62, %v1178_v63  ;;  %v898_v5 = vld [vmem:[%s18790_s11 + $0x1080] sm:$0xff]  ;;  %12834 = vmatprep.subr.bf16.mxu0 %v16576_v3  ;;  %v16831_v10 = vcombine.low %v1170_v62, %v1178_v63 }
  0xe9   : > { %v906_v6 = vld [vmem:[%s18790_s11 + $0x10c0] sm:$0xff]  ;;  %12835 = vmatpush1.bf16.msra.mxu0 %v16575_v9 }
  0xea   : > { %v1154_v7 = vld [vmem:[%s18790_s11 + $0x1880] sm:$0xff]  ;;  %v16560_v11 = vcombine.high %v898_v5, %v906_v6  ;;  %12877 = vmatprep.subr.bf16.mxu1 %v16832_v4  ;;  %v16559_v17 = vcombine.low %v898_v5, %v906_v6 }
  0xeb   : > { %v1162_v8 = vld [vmem:[%s18790_s11 + $0x18c0] sm:$0xff]  ;;  %12878 = vmatpush1.bf16.msra.mxu1 %v16831_v10 }
  0xec   : > { %v16816_v12 = vcombine.high %v1154_v7, %v1162_v8  ;;  %v882_v13 = vld [vmem:[%s18790_s11 + $0x1000] sm:$0xff]  ;;  %12836 = vmatprep.subr.bf16.mxu0 %v16560_v11  ;;  %v16815_v18 = vcombine.low %v1154_v7, %v1162_v8 }
  0xed   : > { %v890_v14 = vld [vmem:[%s18790_s11 + $0x1040] sm:$0xff]  ;;  %12837 = vmatpush1.bf16.msra.mxu0 %v16559_v17 }
  0xee   : > { %v1138_v15 = vld [vmem:[%s18790_s11 + $0x1800] sm:$0xff]  ;;  %v16544_v19 = vcombine.high %v882_v13, %v890_v14  ;;  %12879 = vmatprep.subr.bf16.mxu1 %v16816_v12  ;;  %v16543_v56 = vcombine.low %v882_v13, %v890_v14 }
  0xef   : > { %v1146_v16 = vld [vmem:[%s18790_s11 + $0x1840] sm:$0xff]  ;;  %12880 = vmatpush1.bf16.msra.mxu1 %v16815_v18 }
  0xf0   : > { %v16800_v20 = vcombine.high %v1138_v15, %v1146_v16  ;;  %v1122_v21 = vld [vmem:[%s18790_s11 + $0x1780] sm:$0xff]  ;;  %12838 = vmatprep.subr.bf16.mxu0 %v16544_v19  ;;  %v16799_v30 = vcombine.low %v1138_v15, %v1146_v16 }
  0xf1   : > { %v1130_v23 = vld [vmem:[%s18790_s11 + $0x17c0] sm:$0xff]  ;;  %12839 = vmatpush1.bf16.msra.mxu0 %v16543_v56 }
  0xf2   : > { %v1378_v27 = vld [vmem:[%s18790_s11 + $0x1f80] sm:$0xff]  ;;  %v16784_v31 = vcombine.high %v1122_v21, %v1130_v23  ;;  %12881 = vmatprep.subr.bf16.mxu1 %v16800_v20  ;;  %v16783_v37 = vcombine.low %v1122_v21, %v1130_v23 }
  0xf3   : > { %v1386_v55 = vld [vmem:[%s18790_s11 + $0x1fc0] sm:$0xff]  ;;  %12882 = vmatpush1.bf16.msra.mxu1 %v16799_v30 }
  0xf4   : > { %v17040_v32 = vcombine.high %v1378_v27, %v1386_v55  ;;  %v1106_v60 = vld [vmem:[%s18790_s11 + $0x1700] sm:$0xff]  ;;  %12840 = vmatprep.subr.bf16.mxu0 %v16784_v31  ;;  %v17039_v38 = vcombine.low %v1378_v27, %v1386_v55 }
  0xf5   : > { %v1114_v61 = vld [vmem:[%s18790_s11 + $0x1740] sm:$0xff]  ;;  %12841 = vmatpush2.bf16.msra.mxu0 %v16783_v37 }
  0xf6   : > { %v1362_v35 = vld [vmem:[%s18790_s11 + $0x1f00] sm:$0xff]  ;;  %v16768_v39 = vcombine.high %v1106_v60, %v1114_v61  ;;  %12883 = vmatprep.subr.bf16.mxu1 %v17040_v32  ;;  %v16767_v45 = vcombine.low %v1106_v60, %v1114_v61 }
  0xf7   : > { %v1370_v36 = vld [vmem:[%s18790_s11 + $0x1f40] sm:$0xff]  ;;  %12884 = vmatpush2.bf16.msra.mxu1 %v17039_v38 }
  0xf8   : > { %v17024_v40 = vcombine.high %v1362_v35, %v1370_v36  ;;  %v1090_v41 = vld [vmem:[%s18790_s11 + $0x1680] sm:$0xff]  ;;  %12842 = vmatprep.subr.bf16.mxu0 %v16768_v39  ;;  %v17023_v46 = vcombine.low %v1362_v35, %v1370_v36 }
  0xf9   : > { %v1098_v42 = vld [vmem:[%s18790_s11 + $0x16c0] sm:$0xff]  ;;  %12843 = vmatpush2.bf16.msra.mxu0 %v16767_v45 }
  0xfa   : > { %v1346_v43 = vld [vmem:[%s18790_s11 + $0x1e80] sm:$0xff]  ;;  %v16752_v47 = vcombine.high %v1090_v41, %v1098_v42  ;;  %12885 = vmatprep.subr.bf16.mxu1 %v17024_v40  ;;  %v16751_v53 = vcombine.low %v1090_v41, %v1098_v42 }
  0xfb   : > { %v1354_v44 = vld [vmem:[%s18790_s11 + $0x1ec0] sm:$0xff]  ;;  %12886 = vmatpush2.bf16.msra.mxu1 %v17023_v46  ;;  %v19001_v46 = vcombine.low %v18909_v24, %v18912_v25 }
  0xfc   : > { %v17008_v48 = vcombine.high %v1346_v43, %v1354_v44  ;;  %v1074_v49 = vld [vmem:[%s18790_s11 + $0x1600] sm:$0xff]  ;;  %12844 = vmatprep.subr.bf16.mxu0 %v16752_v47  ;;  %v17007_v54 = vcombine.low %v1346_v43, %v1354_v44 }
  0xfd   : > { %v1082_v50 = vld [vmem:[%s18790_s11 + $0x1640] sm:$0xff]  ;;  %12845 = vmatpush2.bf16.msra.mxu0 %v16751_v53  ;;  %v19018_v53 = vld [vmem:[%s18782_s4 + $0x68] sm:$0xff] }
  0xfe   : > { %v1330_v51 = vld [vmem:[%s18790_s11 + $0x1e00] sm:$0xff]  ;;  %v16736_v57 = vcombine.high %v1074_v49, %v1082_v50  ;;  %12887 = vmatprep.subr.bf16.mxu1 %v17008_v48  ;;  %v16735_v3 = vcombine.low %v1074_v49, %v1082_v50  ;;  %v19012_v50 = vcombine.low %v18919_v28, %v18922_v29 }
  0xff   : > { %v1338_v52 = vld [vmem:[%s18790_s11 + $0x1e40] sm:$0xff]  ;;  %12888 = vmatpush2.bf16.msra.mxu1 %v17007_v54 }
 0x100   : > { %v16992_v58 = vcombine.high %v1330_v51, %v1338_v52  ;;  %v1058_v62 = vld [vmem:[%s18790_s11 + $0x1580] sm:$0xff]  ;;  %12846 = vmatprep.subr.bf16.mxu0 %v16736_v57  ;;  %v16991_v4 = vcombine.low %v1330_v51, %v1338_v52  ;;  %v19015_v52 = vld [vmem:[%s18782_s4 + $0x28] sm:$0xff] }
 0x101   : > { %v1066_v63 = vld [vmem:[%s18790_s11 + $0x15c0] sm:$0xff]  ;;  %12847 = vmatpush2.bf16.msra.mxu0 %v16735_v3 }
 0x102   : > { %v1314_v1 = vld [vmem:[%s18790_s11 + $0x1d80] sm:$0xff]  ;;  %v16720_v5 = vcombine.high %v1058_v62, %v1066_v63  ;;  %12889 = vmatprep.subr.bf16.mxu1 %v16992_v58  ;;  %v16719_v11 = vcombine.low %v1058_v62, %v1066_v63  ;;  %v19031_v63 = vcombine.high %v19015_v52, %v19018_v53 }
 0x103   : > { %v1322_v2 = vld [vmem:[%s18790_s11 + $0x1dc0] sm:$0xff]  ;;  %12890 = vmatpush2.bf16.msra.mxu1 %v16991_v4 }
 0x104   : > { %v16976_v6 = vcombine.high %v1314_v1, %v1322_v2  ;;  %v1042_v7 = vld [vmem:[%s18790_s11 + $0x1500] sm:$0xff]  ;;  %12848 = vmatprep.subr.bf16.mxu0 %v16720_v5  ;;  %v16975_v12 = vcombine.low %v1314_v1, %v1322_v2 }
 0x105   : > { %v1050_v8 = vld [vmem:[%s18790_s11 + $0x1540] sm:$0xff]  ;;  %12849 = vmatpush2.bf16.msra.mxu0 %v16719_v11 }
 0x106   : > { %v1298_v9 = vld [vmem:[%s18790_s11 + $0x1d00] sm:$0xff]  ;;  %v16704_v13 = vcombine.high %v1042_v7, %v1050_v8  ;;  %12891 = vmatprep.subr.bf16.mxu1 %v16976_v6  ;;  %v16703_v19 = vcombine.low %v1042_v7, %v1050_v8 }
 0x107   : > { %v1306_v10 = vld [vmem:[%s18790_s11 + $0x1d40] sm:$0xff]  ;;  %12892 = vmatpush2.bf16.msra.mxu1 %v16975_v12 }
 0x108   : > { %v16960_v14 = vcombine.high %v1298_v9, %v1306_v10  ;;  %v1026_v15 = vld [vmem:[%s18790_s11 + $0x1480] sm:$0xff]  ;;  %12850 = vmatprep.subr.bf16.mxu0 %v16704_v13  ;;  %v16959_v20 = vcombine.low %v1298_v9, %v1306_v10 }
 0x109   : > { %v1034_v16 = vld [vmem:[%s18790_s11 + $0x14c0] sm:$0xff]  ;;  %12851 = vmatpush2.bf16.msra.mxu0 %v16703_v19 }
 0x10a   : > { %v1282_v17 = vld [vmem:[%s18790_s11 + $0x1c80] sm:$0xff]  ;;  %v16688_v21 = vcombine.high %v1026_v15, %v1034_v16  ;;  %12893 = vmatprep.subr.bf16.mxu1 %v16960_v14  ;;  %v16687_v31 = vcombine.low %v1026_v15, %v1034_v16 }
 0x10b   : > { %v1290_v18 = vld [vmem:[%s18790_s11 + $0x1cc0] sm:$0xff]  ;;  %12894 = vmatpush2.bf16.msra.mxu1 %v16959_v20 }
 0x10c   : > { %v16944_v23 = vcombine.high %v1282_v17, %v1290_v18  ;;  %v1010_v27 = vld [vmem:[%s18790_s11 + $0x1400] sm:$0xff]  ;;  %12852 = vmatprep.subr.bf16.mxu0 %v16688_v21  ;;  %v16943_v32 = vcombine.low %v1282_v17, %v1290_v18 }
 0x10d   : > { %v1018_v55 = vld [vmem:[%s18790_s11 + $0x1440] sm:$0xff]  ;;  %12853 = vmatpush2.bf16.msra.mxu0 %v16687_v31 }
 0x10e   : > { %v1266_v56 = vld [vmem:[%s18790_s11 + $0x1c00] sm:$0xff]  ;;  %v16672_v60 = vcombine.high %v1010_v27, %v1018_v55  ;;  %12895 = vmatprep.subr.bf16.mxu1 %v16944_v23  ;;  %v16671_v39 = vcombine.low %v1010_v27, %v1018_v55 }
 0x10f   : > { %v1274_v30 = vld [vmem:[%s18790_s11 + $0x1c40] sm:$0xff]  ;;  %12896 = vmatpush2.bf16.msra.mxu1 %v16943_v32 }
 0x110   : > { %v16928_v61 = vcombine.high %v1266_v56, %v1274_v30  ;;  %v1506_v35 = vld [vmem:[%s18790_s11 + $0x2380] sm:$0xff]  ;;  %12854 = vmatprep.subr.bf16.mxu0 %v16672_v60  ;;  %v16927_v40 = vcombine.low %v1266_v56, %v1274_v30 }
 0x111   : > { %v1514_v36 = vld [vmem:[%s18790_s11 + $0x23c0] sm:$0xff]  ;;  %12855 = vmatpush2.bf16.msra.mxu0 %v16671_v39 }
 0x112   : > { %v1762_v37 = vld [vmem:[%s18790_s11 + $0x2b80] sm:$0xff]  ;;  %v17168_v41 = vcombine.high %v1506_v35, %v1514_v36  ;;  %12897 = vmatprep.subr.bf16.mxu1 %v16928_v61  ;;  %v17167_v51 = vcombine.low %v1506_v35, %v1514_v36 }
 0x113   : > { %v1770_v38 = vld [vmem:[%s18790_s11 + $0x2bc0] sm:$0xff]  ;;  %12898 = vmatpush2.bf16.msra.mxu1 %v16927_v40 }
 0x114   : > { %v17424_v42 = vcombine.high %v1762_v37, %v1770_v38  ;;  %v1490_v43 = vld [vmem:[%s18790_s11 + $0x2300] sm:$0xff]  ;;  %12910 = vmatprep.subr.bf16.mxu0 %v17168_v41  ;;  %v17423_v24 = vcombine.low %v1762_v37, %v1770_v38  ;;  %12857 = vmatmul.mubr.bf16.vlgmr.msra.gmra.mxu0 %v19001_v46 }
 0x115   : > { %v1498_v44 = vld [vmem:[%s18790_s11 + $0x2340] sm:$0xff]  ;;  %12911 = vmatpush1.bf16.msra.mxu0 %v17167_v51 }
 0x116   : > { %v1746_v45 = vld [vmem:[%s18790_s11 + $0x2b00] sm:$0xff]  ;;  %v17152_v25 = vcombine.high %v1490_v43, %v1498_v44  ;;  %12953 = vmatprep.subr.bf16.mxu1 %v17424_v42  ;;  %12900 = vmatmul.mubr.bf16.vlgmr.msra.gmra.mxu1 %v19012_v50  ;;  %v17151_v1 = vcombine.low %v1490_v43, %v1498_v44 }
 0x117   : > { %v1754_v47 = vld [vmem:[%s18790_s11 + $0x2b40] sm:$0xff]  ;;  %12954 = vmatpush1.bf16.msra.mxu1 %v17423_v24  ;;  %12985 = vmatprep.mubr.bf16.mxu1 %v19031_v63 }
 0x118   : > { %v19005_v48 = vld [vmem:[%s18782_s4 + $0x20] sm:$0xff]  ;;  %v17408_v54 = vcombine.high %v1746_v45, %v1754_v47  ;;  %12912 = vmatprep.subr.bf16.mxu0 %v17152_v25  ;;  %v17407_v2 = vcombine.low %v1746_v45, %v1754_v47 }
 0x119   : > { %v19008_v49 = vld [vmem:[%s18782_s4 + $0x60] sm:$0xff]  ;;  %12913 = vmatpush1.bf16.msra.mxu0 %v17151_v1 }
 0x11a   : > { %v1474_v57 = vld [vmem:[%s18790_s11 + $0x2280] sm:$0xff]  ;;  %v19024_v62 = vcombine.high %v19005_v48, %v19008_v49  ;;  %12955 = vmatprep.subr.bf16.mxu1 %v17408_v54 }
 0x11b   : > { %v1482_v58 = vld [vmem:[%s18790_s11 + $0x22c0] sm:$0xff]  ;;  %12956 = vmatpush1.bf16.msra.mxu1 %v17407_v2 }
 0x11c   : > { %v1730_v28 = vld [vmem:[%s18790_s11 + $0x2a80] sm:$0xff]  ;;  %v17136_v3 = vcombine.high %v1474_v57, %v1482_v58  ;;  %12942 = vmatprep.mubr.bf16.mxu0 %v19024_v62  ;;  %v17135_v9 = vcombine.low %v1474_v57, %v1482_v58 }
 0x11d   : > { %v1738_v29 = vld [vmem:[%s18790_s11 + $0x2ac0] sm:$0xff] }
 0x11e   : > { %v17392_v4 = vcombine.high %v1730_v28, %v1738_v29  ;;  %v1458_v5 = vld [vmem:[%s18790_s11 + $0x2200] sm:$0xff]  ;;  %12914 = vmatprep.subr.bf16.mxu0 %v17136_v3  ;;  %v17391_v10 = vcombine.low %v1730_v28, %v1738_v29 }
 0x11f   : > { %v1466_v6 = vld [vmem:[%s18790_s11 + $0x2240] sm:$0xff]  ;;  %12915 = vmatpush1.bf16.msra.mxu0 %v17135_v9 }
 0x120   : > { %v1714_v7 = vld [vmem:[%s18790_s11 + $0x2a00] sm:$0xff]  ;;  %v17120_v11 = vcombine.high %v1458_v5, %v1466_v6  ;;  %12957 = vmatprep.subr.bf16.mxu1 %v17392_v4  ;;  %v17119_v17 = vcombine.low %v1458_v5, %v1466_v6 }
 0x121   : > { %v1722_v8 = vld [vmem:[%s18790_s11 + $0x2a40] sm:$0xff]  ;;  %12958 = vmatpush1.bf16.msra.mxu1 %v17391_v10 }
 0x122   : > { %v17376_v12 = vcombine.high %v1714_v7, %v1722_v8  ;;  %v1442_v13 = vld [vmem:[%s18790_s11 + $0x2180] sm:$0xff]  ;;  %12916 = vmatprep.subr.bf16.mxu0 %v17120_v11  ;;  %v17375_v18 = vcombine.low %v1714_v7, %v1722_v8 }
 0x123   : > { %v1450_v14 = vld [vmem:[%s18790_s11 + $0x21c0] sm:$0xff]  ;;  %12917 = vmatpush1.bf16.msra.mxu0 %v17119_v17 }
 0x124   : > { %v1698_v15 = vld [vmem:[%s18790_s11 + $0x2980] sm:$0xff]  ;;  %v17104_v19 = vcombine.high %v1442_v13, %v1450_v14  ;;  %12959 = vmatprep.subr.bf16.mxu1 %v17376_v12  ;;  %v17103_v56 = vcombine.low %v1442_v13, %v1450_v14 }
 0x125   : > { %v1706_v16 = vld [vmem:[%s18790_s11 + $0x29c0] sm:$0xff]  ;;  %12960 = vmatpush1.bf16.msra.mxu1 %v17375_v18 }
 0x126   : > { %v17360_v20 = vcombine.high %v1698_v15, %v1706_v16  ;;  %v1426_v21 = vld [vmem:[%s18790_s11 + $0x2100] sm:$0xff]  ;;  %12918 = vmatprep.subr.bf16.mxu0 %v17104_v19  ;;  %v17359_v30 = vcombine.low %v1698_v15, %v1706_v16 }
 0x127   : > { %v1434_v23 = vld [vmem:[%s18790_s11 + $0x2140] sm:$0xff]  ;;  %12919 = vmatpush1.bf16.msra.mxu0 %v17103_v56 }
 0x128   : > { %v1682_v27 = vld [vmem:[%s18790_s11 + $0x2900] sm:$0xff]  ;;  %v17088_v31 = vcombine.high %v1426_v21, %v1434_v23  ;;  %12961 = vmatprep.subr.bf16.mxu1 %v17360_v20  ;;  %v17087_v37 = vcombine.low %v1426_v21, %v1434_v23 }
 0x129   : > { %v1690_v55 = vld [vmem:[%s18790_s11 + $0x2940] sm:$0xff]  ;;  %12962 = vmatpush1.bf16.msra.mxu1 %v17359_v30 }
 0x12a   : > { %v17344_v32 = vcombine.high %v1682_v27, %v1690_v55  ;;  %v1410_v60 = vld [vmem:[%s18790_s11 + $0x2080] sm:$0xff]  ;;  %12920 = vmatprep.subr.bf16.mxu0 %v17088_v31  ;;  %v17343_v38 = vcombine.low %v1682_v27, %v1690_v55 }
 0x12b   : > { %v1418_v61 = vld [vmem:[%s18790_s11 + $0x20c0] sm:$0xff]  ;;  %12921 = vmatpush1.bf16.msra.mxu0 %v17087_v37 }
 0x12c   : > { %v1666_v35 = vld [vmem:[%s18790_s11 + $0x2880] sm:$0xff]  ;;  %v17072_v39 = vcombine.high %v1410_v60, %v1418_v61  ;;  %12963 = vmatprep.subr.bf16.mxu1 %v17344_v32  ;;  %v17071_v45 = vcombine.low %v1410_v60, %v1418_v61 }
 0x12d   : > { %v1674_v36 = vld [vmem:[%s18790_s11 + $0x28c0] sm:$0xff]  ;;  %12964 = vmatpush1.bf16.msra.mxu1 %v17343_v38 }
 0x12e   : > { %v17328_v40 = vcombine.high %v1666_v35, %v1674_v36  ;;  %v1394_v41 = vld [vmem:[%s18790_s11 + $0x2000] sm:$0xff]  ;;  %12922 = vmatprep.subr.bf16.mxu0 %v17072_v39  ;;  %v17327_v47 = vcombine.low %v1666_v35, %v1674_v36 }
 0x12f   : > { %v1402_v42 = vld [vmem:[%s18790_s11 + $0x2040] sm:$0xff]  ;;  %12923 = vmatpush1.bf16.msra.mxu0 %v17071_v45 }
 0x130   : > { %v1650_v43 = vld [vmem:[%s18790_s11 + $0x2800] sm:$0xff]  ;;  %v17056_v51 = vcombine.high %v1394_v41, %v1402_v42  ;;  %12965 = vmatprep.subr.bf16.mxu1 %v17328_v40  ;;  %v17055_v28 = vcombine.low %v1394_v41, %v1402_v42 }
 0x131   : > { %v1658_v44 = vld [vmem:[%s18790_s11 + $0x2840] sm:$0xff]  ;;  %12966 = vmatpush1.bf16.msra.mxu1 %v17327_v47 }
 0x132   : > { %v17312_v24 = vcombine.high %v1650_v43, %v1658_v44  ;;  %v1634_v25 = vld [vmem:[%s18790_s11 + $0x2780] sm:$0xff]  ;;  %12924 = vmatprep.subr.bf16.mxu0 %v17056_v51  ;;  %v17311_v29 = vcombine.low %v1650_v43, %v1658_v44 }
 0x133   : > { %v1642_v54 = vld [vmem:[%s18790_s11 + $0x27c0] sm:$0xff]  ;;  %12925 = vmatpush1.bf16.msra.mxu0 %v17055_v28 }
 0x134   : > { %v1890_v57 = vld [vmem:[%s18790_s11 + $0x2f80] sm:$0xff]  ;;  %v17296_v1 = vcombine.high %v1634_v25, %v1642_v54  ;;  %12967 = vmatprep.subr.bf16.mxu1 %v17312_v24  ;;  %v17295_v7 = vcombine.low %v1634_v25, %v1642_v54 }
 0x135   : > { %v1898_v58 = vld [vmem:[%s18790_s11 + $0x2fc0] sm:$0xff]  ;;  %12968 = vmatpush1.bf16.msra.mxu1 %v17311_v29 }
 0x136   : > { %v17552_v2 = vcombine.high %v1890_v57, %v1898_v58  ;;  %v1618_v3 = vld [vmem:[%s18790_s11 + $0x2700] sm:$0xff]  ;;  %12926 = vmatprep.subr.bf16.mxu0 %v17296_v1  ;;  %v17551_v8 = vcombine.low %v1890_v57, %v1898_v58 }
 0x137   : > { %v1626_v4 = vld [vmem:[%s18790_s11 + $0x2740] sm:$0xff]  ;;  %12927 = vmatpush2.bf16.msra.mxu0 %v17295_v7 }
 0x138   : > { %v1874_v5 = vld [vmem:[%s18790_s11 + $0x2f00] sm:$0xff]  ;;  %v17280_v9 = vcombine.high %v1618_v3, %v1626_v4  ;;  %12969 = vmatprep.subr.bf16.mxu1 %v17552_v2  ;;  %v17279_v15 = vcombine.low %v1618_v3, %v1626_v4 }
 0x139   : > { %v1882_v6 = vld [vmem:[%s18790_s11 + $0x2f40] sm:$0xff]  ;;  %12970 = vmatpush2.bf16.msra.mxu1 %v17551_v8 }
 0x13a   : > { %v17536_v10 = vcombine.high %v1874_v5, %v1882_v6  ;;  %v1602_v11 = vld [vmem:[%s18790_s11 + $0x2680] sm:$0xff]  ;;  %12928 = vmatprep.subr.bf16.mxu0 %v17280_v9  ;;  %v17535_v16 = vcombine.low %v1874_v5, %v1882_v6 }
 0x13b   : > { %v1610_v12 = vld [vmem:[%s18790_s11 + $0x26c0] sm:$0xff]  ;;  %12929 = vmatpush2.bf16.msra.mxu0 %v17279_v15 }
 0x13c   : > { %v1858_v13 = vld [vmem:[%s18790_s11 + $0x2e80] sm:$0xff]  ;;  %v17264_v17 = vcombine.high %v1602_v11, %v1610_v12  ;;  %12971 = vmatprep.subr.bf16.mxu1 %v17536_v10  ;;  %v17263_v27 = vcombine.low %v1602_v11, %v1610_v12 }
 0x13d   : > { %v1866_v14 = vld [vmem:[%s18790_s11 + $0x2ec0] sm:$0xff]  ;;  %12972 = vmatpush2.bf16.msra.mxu1 %v17535_v16 }
 0x13e   : > { %v17520_v18 = vcombine.high %v1858_v13, %v1866_v14  ;;  %v1586_v19 = vld [vmem:[%s18790_s11 + $0x2600] sm:$0xff]  ;;  %12930 = vmatprep.subr.bf16.mxu0 %v17264_v17  ;;  %v17519_v55 = vcombine.low %v1858_v13, %v1866_v14 }
 0x13f   : > { %v1594_v20 = vld [vmem:[%s18790_s11 + $0x2640] sm:$0xff]  ;;  %12931 = vmatpush2.bf16.msra.mxu0 %v17263_v27  ;;  %v19104_v27 = vld [vmem:[%s18782_s4 + $0x70] sm:$0xff] }
 0x140   : > { %v1842_v21 = vld [vmem:[%s18790_s11 + $0x2e00] sm:$0xff]  ;;  %v17248_v56 = vcombine.high %v1586_v19, %v1594_v20  ;;  %12973 = vmatprep.subr.bf16.mxu1 %v17520_v18  ;;  %v17247_v35 = vcombine.low %v1586_v19, %v1594_v20  ;;  %v19097_v20 = vcombine.low %v19005_v48, %v19008_v49 }
 0x141   : > { %v1850_v23 = vld [vmem:[%s18790_s11 + $0x2e40] sm:$0xff]  ;;  %12974 = vmatpush2.bf16.msra.mxu1 %v17519_v55  ;;  %v19108_v55 = vcombine.low %v19015_v52, %v19018_v53 }
 0x142   : > { %v17504_v30 = vcombine.high %v1842_v21, %v1850_v23  ;;  %v1570_v31 = vld [vmem:[%s18790_s11 + $0x2580] sm:$0xff]  ;;  %12932 = vmatprep.subr.bf16.mxu0 %v17248_v56  ;;  %v17503_v36 = vcombine.low %v1842_v21, %v1850_v23  ;;  %v19101_v23 = vld [vmem:[%s18782_s4 + $0x30] sm:$0xff] }
 0x143   : > { %v1578_v32 = vld [vmem:[%s18790_s11 + $0x25c0] sm:$0xff]  ;;  %12933 = vmatpush2.bf16.msra.mxu0 %v17247_v35  ;;  %v19120_v35 = vcombine.high %v19101_v23, %v19104_v27 }
 0x144   : > { %v1826_v60 = vld [vmem:[%s18790_s11 + $0x2d80] sm:$0xff]  ;;  %v17232_v37 = vcombine.high %v1570_v31, %v1578_v32  ;;  %12975 = vmatprep.subr.bf16.mxu1 %v17504_v30  ;;  %v17231_v43 = vcombine.low %v1570_v31, %v1578_v32  ;;  %v19111_v30 = vld [vmem:[%s18782_s4 + $0x38] sm:$0xff] }
 0x145   : > { %v1834_v61 = vld [vmem:[%s18790_s11 + $0x2dc0] sm:$0xff]  ;;  %12976 = vmatpush2.bf16.msra.mxu1 %v17503_v36  ;;  %v19114_v31 = vld [vmem:[%s18782_s4 + $0x78] sm:$0xff] }
 0x146   : > { %v17488_v38 = vcombine.high %v1826_v60, %v1834_v61  ;;  %v1554_v39 = vld [vmem:[%s18790_s11 + $0x2500] sm:$0xff]  ;;  %12934 = vmatprep.subr.bf16.mxu0 %v17232_v37  ;;  %v17487_v44 = vcombine.low %v1826_v60, %v1834_v61  ;;  %v19127_v36 = vcombine.high %v19111_v30, %v19114_v31 }
 0x147   : > { %v1562_v40 = vld [vmem:[%s18790_s11 + $0x2540] sm:$0xff]  ;;  %12935 = vmatpush2.bf16.msra.mxu0 %v17231_v43 }
 0x148   : > { %v1810_v41 = vld [vmem:[%s18790_s11 + $0x2d00] sm:$0xff]  ;;  %v17216_v45 = vcombine.high %v1554_v39, %v1562_v40  ;;  %12977 = vmatprep.subr.bf16.mxu1 %v17488_v38  ;;  %v17215_v57 = vcombine.low %v1554_v39, %v1562_v40 }
 0x149   : > { %v1818_v42 = vld [vmem:[%s18790_s11 + $0x2d40] sm:$0xff]  ;;  %12978 = vmatpush2.bf16.msra.mxu1 %v17487_v44 }
 0x14a   : > { %v17472_v47 = vcombine.high %v1810_v41, %v1818_v42  ;;  %v1538_v51 = vld [vmem:[%s18790_s11 + $0x2480] sm:$0xff]  ;;  %12936 = vmatprep.subr.bf16.mxu0 %v17216_v45  ;;  %v17471_v58 = vcombine.low %v1810_v41, %v1818_v42 }
 0x14b   : > { %v1546_v24 = vld [vmem:[%s18790_s11 + $0x24c0] sm:$0xff]  ;;  %12937 = vmatpush2.bf16.msra.mxu0 %v17215_v57 }
 0x14c   : > { %v1794_v25 = vld [vmem:[%s18790_s11 + $0x2c80] sm:$0xff]  ;;  %v17200_v28 = vcombine.high %v1538_v51, %v1546_v24  ;;  %12979 = vmatprep.subr.bf16.mxu1 %v17472_v47  ;;  %v17199_v5 = vcombine.low %v1538_v51, %v1546_v24 }
 0x14d   : > { %v1802_v54 = vld [vmem:[%s18790_s11 + $0x2cc0] sm:$0xff]  ;;  %12980 = vmatpush2.bf16.msra.mxu1 %v17471_v58 }
 0x14e   : > { %v17456_v29 = vcombine.high %v1794_v25, %v1802_v54  ;;  %v1522_v1 = vld [vmem:[%s18790_s11 + $0x2400] sm:$0xff]  ;;  %12938 = vmatprep.subr.bf16.mxu0 %v17200_v28  ;;  %v17455_v6 = vcombine.low %v1794_v25, %v1802_v54 }
 0x14f   : > { %v1530_v2 = vld [vmem:[%s18790_s11 + $0x2440] sm:$0xff]  ;;  %12939 = vmatpush2.bf16.msra.mxu0 %v17199_v5 }
 0x150   : > { %v1778_v3 = vld [vmem:[%s18790_s11 + $0x2c00] sm:$0xff]  ;;  %v17184_v7 = vcombine.high %v1522_v1, %v1530_v2  ;;  %12981 = vmatprep.subr.bf16.mxu1 %v17456_v29  ;;  %v17183_v13 = vcombine.low %v1522_v1, %v1530_v2 }
 0x151   : > { %v1786_v4 = vld [vmem:[%s18790_s11 + $0x2c40] sm:$0xff]  ;;  %12982 = vmatpush2.bf16.msra.mxu1 %v17455_v6 }
 0x152   : > { %v17440_v8 = vcombine.high %v1778_v3, %v1786_v4  ;;  %v2018_v9 = vld [vmem:[%s18790_s11 + $0x3380] sm:$0xff]  ;;  %12940 = vmatprep.subr.bf16.mxu0 %v17184_v7  ;;  %v17439_v14 = vcombine.low %v1778_v3, %v1786_v4 }
 0x153   : > { %v2026_v10 = vld [vmem:[%s18790_s11 + $0x33c0] sm:$0xff]  ;;  %12941 = vmatpush2.bf16.msra.mxu0 %v17183_v13 }
 0x154   : > { %v2274_v11 = vld [vmem:[%s18790_s11 + $0x3b80] sm:$0xff]  ;;  %v17680_v15 = vcombine.high %v2018_v9, %v2026_v10  ;;  %12983 = vmatprep.subr.bf16.mxu1 %v17440_v8  ;;  %v17679_v56 = vcombine.low %v2018_v9, %v2026_v10 }
 0x155   : > { %v2282_v12 = vld [vmem:[%s18790_s11 + $0x3bc0] sm:$0xff]  ;;  %12984 = vmatpush2.bf16.msra.mxu1 %v17439_v14 }
 0x156   : > { %v17936_v16 = vcombine.high %v2274_v11, %v2282_v12  ;;  %v2002_v17 = vld [vmem:[%s18790_s11 + $0x3300] sm:$0xff]  ;;  %12996 = vmatprep.subr.bf16.mxu0 %v17680_v15  ;;  %v17935_v48 = vcombine.low %v2274_v11, %v2282_v12  ;;  %12943 = vmatmul.mubr.bf16.vlgmr.msra.gmra.mxu0 %v19097_v20 }
 0x157   : > { %v2010_v18 = vld [vmem:[%s18790_s11 + $0x3340] sm:$0xff]  ;;  %12997 = vmatpush1.bf16.msra.mxu0 %v17679_v56  ;;  %13028 = vmatprep.mubr.bf16.mxu0 %v19120_v35 }
 0x158   : > { %v2258_v19 = vld [vmem:[%s18790_s11 + $0x3b00] sm:$0xff]  ;;  %v17664_v49 = vcombine.high %v2002_v17, %v2010_v18  ;;  %13039 = vmatprep.subr.bf16.mxu1 %v17936_v16  ;;  %12986 = vmatmul.mubr.bf16.vlgmr.msra.gmra.mxu1 %v19108_v55  ;;  %v17663_v37 = vcombine.low %v2002_v17, %v2010_v18 }
 0x159   : > { %v2266_v21 = vld [vmem:[%s18790_s11 + $0x3b40] sm:$0xff]  ;;  %13040 = vmatpush1.bf16.msra.mxu1 %v17935_v48  ;;  %13071 = vmatprep.mubr.bf16.mxu1 %v19127_v36 }
 0x15a   : > { %v17920_v32 = vcombine.high %v2258_v19, %v2266_v21  ;;  %v1986_v60 = vld [vmem:[%s18790_s11 + $0x3280] sm:$0xff]  ;;  %12998 = vmatprep.subr.bf16.mxu0 %v17664_v49  ;;  %v17919_v38 = vcombine.low %v2258_v19, %v2266_v21 }
 0x15b   : > { %v1994_v61 = vld [vmem:[%s18790_s11 + $0x32c0] sm:$0xff]  ;;  %12999 = vmatpush1.bf16.msra.mxu0 %v17663_v37 }
 0x15c   : > { %v2242_v52 = vld [vmem:[%s18790_s11 + $0x3a80] sm:$0xff]  ;;  %v17648_v39 = vcombine.high %v1986_v60, %v1994_v61  ;;  %13041 = vmatprep.subr.bf16.mxu1 %v17920_v32  ;;  %v17647_v45 = vcombine.low %v1986_v60, %v1994_v61 }
 0x15d   : > { %v2250_v53 = vld [vmem:[%s18790_s11 + $0x3ac0] sm:$0xff]  ;;  %13042 = vmatpush1.bf16.msra.mxu1 %v17919_v38 }
 0x15e   : > { %v17904_v40 = vcombine.high %v2242_v52, %v2250_v53  ;;  %v1970_v41 = vld [vmem:[%s18790_s11 + $0x3200] sm:$0xff]  ;;  %13000 = vmatprep.subr.bf16.mxu0 %v17648_v39  ;;  %v17903_v47 = vcombine.low %v2242_v52, %v2250_v53 }
 0x15f   : > { %v1978_v42 = vld [vmem:[%s18790_s11 + $0x3240] sm:$0xff]  ;;  %13001 = vmatpush1.bf16.msra.mxu0 %v17647_v45 }
 0x160   : > { %v2226_v43 = vld [vmem:[%s18790_s11 + $0x3a00] sm:$0xff]  ;;  %v17632_v51 = vcombine.high %v1970_v41, %v1978_v42  ;;  %13043 = vmatprep.subr.bf16.mxu1 %v17904_v40  ;;  %v17631_v28 = vcombine.low %v1970_v41, %v1978_v42 }
 0x161   : > { %v2234_v44 = vld [vmem:[%s18790_s11 + $0x3a40] sm:$0xff]  ;;  %13044 = vmatpush1.bf16.msra.mxu1 %v17903_v47 }
 0x162   : > { %v17888_v24 = vcombine.high %v2226_v43, %v2234_v44  ;;  %v1954_v25 = vld [vmem:[%s18790_s11 + $0x3180] sm:$0xff]  ;;  %13002 = vmatprep.subr.bf16.mxu0 %v17632_v51  ;;  %v17887_v29 = vcombine.low %v2226_v43, %v2234_v44 }
 0x163   : > { %v1962_v54 = vld [vmem:[%s18790_s11 + $0x31c0] sm:$0xff]  ;;  %13003 = vmatpush1.bf16.msra.mxu0 %v17631_v28 }
 0x164   : > { %v2210_v57 = vld [vmem:[%s18790_s11 + $0x3980] sm:$0xff]  ;;  %v17616_v1 = vcombine.high %v1954_v25, %v1962_v54  ;;  %13045 = vmatprep.subr.bf16.mxu1 %v17888_v24  ;;  %v17615_v7 = vcombine.low %v1954_v25, %v1962_v54 }
 0x165   : > { %v2218_v58 = vld [vmem:[%s18790_s11 + $0x39c0] sm:$0xff]  ;;  %13046 = vmatpush1.bf16.msra.mxu1 %v17887_v29 }
 0x166   : > { %v17872_v2 = vcombine.high %v2210_v57, %v2218_v58  ;;  %v1938_v3 = vld [vmem:[%s18790_s11 + $0x3100] sm:$0xff]  ;;  %13004 = vmatprep.subr.bf16.mxu0 %v17616_v1  ;;  %v17871_v8 = vcombine.low %v2210_v57, %v2218_v58 }
 0x167   : > { %v1946_v4 = vld [vmem:[%s18790_s11 + $0x3140] sm:$0xff]  ;;  %13005 = vmatpush1.bf16.msra.mxu0 %v17615_v7 }
 0x168   : > { %v2194_v5 = vld [vmem:[%s18790_s11 + $0x3900] sm:$0xff]  ;;  %v17600_v9 = vcombine.high %v1938_v3, %v1946_v4  ;;  %13047 = vmatprep.subr.bf16.mxu1 %v17872_v2  ;;  %v17599_v15 = vcombine.low %v1938_v3, %v1946_v4 }
 0x169   : > { %v2202_v6 = vld [vmem:[%s18790_s11 + $0x3940] sm:$0xff]  ;;  %13048 = vmatpush1.bf16.msra.mxu1 %v17871_v8 }
 0x16a   : > { %v17856_v10 = vcombine.high %v2194_v5, %v2202_v6  ;;  %v1922_v11 = vld [vmem:[%s18790_s11 + $0x3080] sm:$0xff]  ;;  %13006 = vmatprep.subr.bf16.mxu0 %v17600_v9  ;;  %v17855_v16 = vcombine.low %v2194_v5, %v2202_v6 }
 0x16b   : > { %v1930_v12 = vld [vmem:[%s18790_s11 + $0x30c0] sm:$0xff]  ;;  %13007 = vmatpush1.bf16.msra.mxu0 %v17599_v15 }
 0x16c   : > { %v2178_v13 = vld [vmem:[%s18790_s11 + $0x3880] sm:$0xff]  ;;  %v17584_v17 = vcombine.high %v1922_v11, %v1930_v12  ;;  %13049 = vmatprep.subr.bf16.mxu1 %v17856_v10  ;;  %v17583_v49 = vcombine.low %v1922_v11, %v1930_v12 }
 0x16d   : > { %v2186_v14 = vld [vmem:[%s18790_s11 + $0x38c0] sm:$0xff]  ;;  %13050 = vmatpush1.bf16.msra.mxu1 %v17855_v16 }
 0x16e   : > { %v17840_v18 = vcombine.high %v2178_v13, %v2186_v14  ;;  %v1906_v19 = vld [vmem:[%s18790_s11 + $0x3000] sm:$0xff]  ;;  %13008 = vmatprep.subr.bf16.mxu0 %v17584_v17  ;;  %v17839_v32 = vcombine.low %v2178_v13, %v2186_v14 }
 0x16f   : > { %v1914_v21 = vld [vmem:[%s18790_s11 + $0x3040] sm:$0xff]  ;;  %13009 = vmatpush1.bf16.msra.mxu0 %v17583_v49 }
 0x170   : > { %v2162_v56 = vld [vmem:[%s18790_s11 + $0x3800] sm:$0xff]  ;;  %v17568_v60 = vcombine.high %v1906_v19, %v1914_v21  ;;  %13051 = vmatprep.subr.bf16.mxu1 %v17840_v18  ;;  %v17567_v39 = vcombine.low %v1906_v19, %v1914_v21 }
 0x171   : > { %v2170_v48 = vld [vmem:[%s18790_s11 + $0x3840] sm:$0xff]  ;;  %13052 = vmatpush1.bf16.msra.mxu1 %v17839_v32 }
 0x172   : > { %v17824_v61 = vcombine.high %v2162_v56, %v2170_v48  ;;  %v2146_v52 = vld [vmem:[%s18790_s11 + $0x3780] sm:$0xff]  ;;  %13010 = vmatprep.subr.bf16.mxu0 %v17568_v60  ;;  %v17823_v40 = vcombine.low %v2162_v56, %v2170_v48 }
 0x173   : > { %v2154_v53 = vld [vmem:[%s18790_s11 + $0x37c0] sm:$0xff]  ;;  %13011 = vmatpush1.bf16.msra.mxu0 %v17567_v39 }
 0x174   : > { %v2402_v37 = vld [vmem:[%s18790_s11 + $0x3f80] sm:$0xff]  ;;  %v17808_v41 = vcombine.high %v2146_v52, %v2154_v53  ;;  %13053 = vmatprep.subr.bf16.mxu1 %v17824_v61  ;;  %v17807_v51 = vcombine.low %v2146_v52, %v2154_v53 }
 0x175   : > { %v2410_v38 = vld [vmem:[%s18790_s11 + $0x3fc0] sm:$0xff]  ;;  %13054 = vmatpush1.bf16.msra.mxu1 %v17823_v40 }
 0x176   : > { %v18064_v42 = vcombine.high %v2402_v37, %v2410_v38  ;;  %v2130_v43 = vld [vmem:[%s18790_s11 + $0x3700] sm:$0xff]  ;;  %13012 = vmatprep.subr.bf16.mxu0 %v17808_v41  ;;  %v18063_v24 = vcombine.low %v2402_v37, %v2410_v38 }
 0x177   : > { %v2138_v44 = vld [vmem:[%s18790_s11 + $0x3740] sm:$0xff]  ;;  %13013 = vmatpush2.bf16.msra.mxu0 %v17807_v51 }
 0x178   : > { %v2386_v45 = vld [vmem:[%s18790_s11 + $0x3f00] sm:$0xff]  ;;  %v17792_v25 = vcombine.high %v2130_v43, %v2138_v44  ;;  %13055 = vmatprep.subr.bf16.mxu1 %v18064_v42  ;;  %v17791_v1 = vcombine.low %v2130_v43, %v2138_v44 }
 0x179   : > { %v2394_v47 = vld [vmem:[%s18790_s11 + $0x3f40] sm:$0xff]  ;;  %13056 = vmatpush2.bf16.msra.mxu1 %v18063_v24 }
 0x17a   : > { %v18048_v54 = vcombine.high %v2386_v45, %v2394_v47  ;;  %v2114_v57 = vld [vmem:[%s18790_s11 + $0x3680] sm:$0xff]  ;;  %13014 = vmatprep.subr.bf16.mxu0 %v17792_v25  ;;  %v18047_v2 = vcombine.low %v2386_v45, %v2394_v47 }
 0x17b   : > { %v2122_v58 = vld [vmem:[%s18790_s11 + $0x36c0] sm:$0xff]  ;;  %13015 = vmatpush2.bf16.msra.mxu0 %v17791_v1  ;;  %v739_v1 = vld [vmem:[%s18790_s11 + $0xb88] sm:$0xff] }
 0x17c   : > { %v2370_v28 = vld [vmem:[%s18790_s11 + $0x3e80] sm:$0xff]  ;;  %v17776_v3 = vcombine.high %v2114_v57, %v2122_v58  ;;  %13057 = vmatprep.subr.bf16.mxu1 %v18048_v54  ;;  %v17775_v9 = vcombine.low %v2114_v57, %v2122_v58 }
 0x17d   : > { %v2378_v29 = vld [vmem:[%s18790_s11 + $0x3ec0] sm:$0xff]  ;;  %13058 = vmatpush2.bf16.msra.mxu1 %v18047_v2  ;;  %v747_v2 = vld [vmem:[%s18790_s11 + $0xbc8] sm:$0xff] }
 0x17e   : > { %v18032_v4 = vcombine.high %v2370_v28, %v2378_v29  ;;  %v2098_v5 = vld [vmem:[%s18790_s11 + $0x3600] sm:$0xff]  ;;  %13016 = vmatprep.subr.bf16.mxu0 %v17776_v3  ;;  %v18031_v10 = vcombine.low %v2370_v28, %v2378_v29  ;;  %v483_v28 = vld [vmem:[%s18790_s11 + $0x388] sm:$0xff] }
 0x17f   : > { %v2106_v6 = vld [vmem:[%s18790_s11 + $0x3640] sm:$0xff]  ;;  %13017 = vmatpush2.bf16.msra.mxu0 %v17775_v9  ;;  %v491_v29 = vld [vmem:[%s18790_s11 + $0x3c8] sm:$0xff]  ;;  %v19192_v9 = vcombine.low %v19101_v23, %v19104_v27 }
 0x180   : > { %v2354_v7 = vld [vmem:[%s18790_s11 + $0x3e00] sm:$0xff]  ;;  %v17760_v11 = vcombine.high %v2098_v5, %v2106_v6  ;;  %13059 = vmatprep.subr.bf16.mxu1 %v18032_v4  ;;  %v17759_v17 = vcombine.low %v2098_v5, %v2106_v6  ;;  %v16146_v5 = vcombine.high %v483_v28, %v491_v29  ;;  %v16402_v6 = vcombine.high %v739_v1, %v747_v2  ;;  %v459_v23 = vld [vmem:[%s18790_s11 + $0x2c8] sm:$0xff] }
 0x181   : > { %v2362_v8 = vld [vmem:[%s18790_s11 + $0x3e40] sm:$0xff]  ;;  %13060 = vmatpush2.bf16.msra.mxu1 %v18031_v10  ;;  %v723_v10 = vld [vmem:[%s18790_s11 + $0xb08] sm:$0xff] }
 0x182   : > { %v18016_v12 = vcombine.high %v2354_v7, %v2362_v8  ;;  %v2082_v13 = vld [vmem:[%s18790_s11 + $0x3580] sm:$0xff]  ;;  %13018 = vmatprep.subr.bf16.mxu0 %v17760_v11  ;;  %v18015_v18 = vcombine.low %v2354_v7, %v2362_v8  ;;  %v467_v7 = vld [vmem:[%s18790_s11 + $0x308] sm:$0xff] }
 0x183   : > { %v2090_v14 = vld [vmem:[%s18790_s11 + $0x35c0] sm:$0xff]  ;;  %13019 = vmatpush2.bf16.msra.mxu0 %v17759_v17  ;;  %v475_v8 = vld [vmem:[%s18790_s11 + $0x348] sm:$0xff] }
 0x184   : > { %v2338_v15 = vld [vmem:[%s18790_s11 + $0x3d80] sm:$0xff]  ;;  %v17744_v19 = vcombine.high %v2082_v13, %v2090_v14  ;;  %13061 = vmatprep.subr.bf16.mxu1 %v18016_v12  ;;  %v17743_v60 = vcombine.low %v2082_v13, %v2090_v14  ;;  %v731_v11 = vld [vmem:[%s18790_s11 + $0xb48] sm:$0xff]  ;;  %v19198_v12 = vcombine.low %v19111_v30, %v19114_v31  ;;  %v16145_v13 = vcombine.low %v483_v28, %v491_v29 }
 0x185   : > { %v2346_v16 = vld [vmem:[%s18790_s11 + $0x3dc0] sm:$0xff]  ;;  %13062 = vmatpush2.bf16.msra.mxu1 %v18015_v18  ;;  %v16401_v14 = vcombine.low %v739_v1, %v747_v2  ;;  %v451_v17 = vld [vmem:[%s18790_s11 + $0x288] sm:$0xff]  ;;  %v16129_v30 = vcombine.low %v467_v7, %v475_v8  ;;  %v16385_v31 = vcombine.low %v723_v10, %v731_v11 }
 0x186   : > { %v18000_v21 = vcombine.high %v2338_v15, %v2346_v16  ;;  %v2066_v56 = vld [vmem:[%s18790_s11 + $0x3500] sm:$0xff]  ;;  %13020 = vmatprep.subr.bf16.mxu0 %v17744_v19  ;;  %v17999_v61 = vcombine.low %v2338_v15, %v2346_v16  ;;  %v16130_v15 = vcombine.high %v467_v7, %v475_v8  ;;  %v16386_v16 = vcombine.high %v723_v10, %v731_v11  ;;  %v707_v27 = vld [vmem:[%s18790_s11 + $0xa88] sm:$0xff] }
 0x187   : > { %v2074_v48 = vld [vmem:[%s18790_s11 + $0x3540] sm:$0xff]  ;;  %13021 = vmatpush2.bf16.msra.mxu0 %v17743_v60  ;;  %v715_v18 = vld [vmem:[%s18790_s11 + $0xac8] sm:$0xff]  ;;  %v16114_v19 = vcombine.high %v451_v17, %v459_v23  ;;  %v16113_v60 = vcombine.low %v451_v17, %v459_v23 }
 0x188   : > { %v2322_v49 = vld [vmem:[%s18790_s11 + $0x3d00] sm:$0xff]  ;;  %v17728_v52 = vcombine.high %v2066_v56, %v2074_v48  ;;  %13063 = vmatprep.subr.bf16.mxu1 %v18000_v21  ;;  %v17727_v41 = vcombine.low %v2066_v56, %v2074_v48  ;;  %v16370_v21 = vcombine.high %v707_v27, %v715_v18  ;;  %v435_v56 = vld [vmem:[%s18790_s11 + $0x208] sm:$0xff] }
 0x189   : > { %v2330_v32 = vld [vmem:[%s18790_s11 + $0x3d40] sm:$0xff]  ;;  %13064 = vmatpush2.bf16.msra.mxu1 %v17999_v61  ;;  %v443_v48 = vld [vmem:[%s18790_s11 + $0x248] sm:$0xff]  ;;  %v16369_v61 = vcombine.low %v707_v27, %v715_v18 }
 0x18a   : > { %v17984_v53 = vcombine.high %v2322_v49, %v2330_v32  ;;  %v2050_v37 = vld [vmem:[%s18790_s11 + $0x3480] sm:$0xff]  ;;  %13022 = vmatprep.subr.bf16.mxu0 %v17728_v52  ;;  %v17983_v42 = vcombine.low %v2322_v49, %v2330_v32  ;;  %v691_v49 = vld [vmem:[%s18790_s11 + $0xa08] sm:$0xff]  ;;  %v16098_v52 = vcombine.high %v435_v56, %v443_v48 }
 0x18b   : > { %v2058_v38 = vld [vmem:[%s18790_s11 + $0x34c0] sm:$0xff]  ;;  %13023 = vmatpush2.bf16.msra.mxu0 %v17727_v41  ;;  %v699_v32 = vld [vmem:[%s18790_s11 + $0xa48] sm:$0xff]  ;;  %v16097_v41 = vcombine.low %v435_v56, %v443_v48 }
 0x18c   : > { %v2306_v39 = vld [vmem:[%s18790_s11 + $0x3c80] sm:$0xff]  ;;  %v17712_v43 = vcombine.high %v2050_v37, %v2058_v38  ;;  %13065 = vmatprep.subr.bf16.mxu1 %v17984_v53  ;;  %v17711_v25 = vcombine.low %v2050_v37, %v2058_v38  ;;  %v16354_v53 = vcombine.high %v691_v49, %v699_v32  ;;  %v419_v37 = vld [vmem:[%s18790_s11 + $0x188] sm:$0xff] }
 0x18d   : > { %v2314_v40 = vld [vmem:[%s18790_s11 + $0x3cc0] sm:$0xff]  ;;  %13066 = vmatpush2.bf16.msra.mxu1 %v17983_v42  ;;  %v427_v38 = vld [vmem:[%s18790_s11 + $0x1c8] sm:$0xff]  ;;  %v16353_v42 = vcombine.low %v691_v49, %v699_v32 }
 0x18e   : > { %v17968_v44 = vcombine.high %v2306_v39, %v2314_v40  ;;  %v2034_v45 = vld [vmem:[%s18790_s11 + $0x3400] sm:$0xff]  ;;  %13024 = vmatprep.subr.bf16.mxu0 %v17712_v43  ;;  %v17967_v54 = vcombine.low %v2306_v39, %v2314_v40  ;;  %v675_v39 = vld [vmem:[%s18790_s11 + $0x988] sm:$0xff]  ;;  %v16082_v43 = vcombine.high %v419_v37, %v427_v38 }
 0x18f   : > { %v2042_v47 = vld [vmem:[%s18790_s11 + $0x3440] sm:$0xff]  ;;  %13025 = vmatpush2.bf16.msra.mxu0 %v17711_v25  ;;  %v683_v40 = vld [vmem:[%s18790_s11 + $0x9c8] sm:$0xff]  ;;  %v16081_v25 = vcombine.low %v419_v37, %v427_v38 }
 0x190   : > { %v2290_v51 = vld [vmem:[%s18790_s11 + $0x3c00] sm:$0xff]  ;;  %v17696_v57 = vcombine.high %v2034_v45, %v2042_v47  ;;  %13067 = vmatprep.subr.bf16.mxu1 %v17968_v44  ;;  %v17695_v3 = vcombine.low %v2034_v45, %v2042_v47  ;;  %v16338_v44 = vcombine.high %v675_v39, %v683_v40  ;;  %v403_v45 = vld [vmem:[%s18790_s11 + $0x108] sm:$0xff] }
 0x191   : > { %v2298_v24 = vld [vmem:[%s18790_s11 + $0x3c40] sm:$0xff]  ;;  %13068 = vmatpush2.bf16.msra.mxu1 %v17967_v54  ;;  %v411_v47 = vld [vmem:[%s18790_s11 + $0x148] sm:$0xff]  ;;  %v16337_v54 = vcombine.low %v675_v39, %v683_v40 }
 0x192   : > { %v17952_v58 = vcombine.high %v2290_v51, %v2298_v24  ;;  %13026 = vmatprep.subr.bf16.mxu0 %v17696_v57  ;;  %v17951_v4 = vcombine.low %v2290_v51, %v2298_v24  ;;  %v659_v51 = vld [vmem:[%s18790_s11 + $0x908] sm:$0xff]  ;;  %v16066_v57 = vcombine.high %v403_v45, %v411_v47 }
 0x193   : > { %13027 = vmatpush2.bf16.msra.mxu0 %v17695_v3  ;;  %v667_v24 = vld [vmem:[%s18790_s11 + $0x948] sm:$0xff]  ;;  %v16065_v3 = vcombine.low %v403_v45, %v411_v47 }
 0x194   : > { %13069 = vmatprep.subr.bf16.mxu1 %v17952_v58  ;;  %13082 = vmatprep.subr.bf16.mxu0 %v16146_v5  ;;  %v16322_v58 = vcombine.high %v659_v51, %v667_v24  ;;  %v387_v28 = vld [vmem:[%s18790_s11 + $0x88] sm:$0xff] }
 0x195   : > { %13070 = vmatpush2.bf16.msra.mxu1 %v17951_v4  ;;  %v395_v29 = vld [vmem:[%s18790_s11 + $0xc8] sm:$0xff]  ;;  %v16321_v4 = vcombine.low %v659_v51, %v667_v24 }
 0x196   : > { %13125 = vmatprep.subr.bf16.mxu1 %v16402_v6  ;;  %13029 = vmatmul.mubr.bf16.vlgmr.msra.gmra.mxu0 %v19192_v9  ;;  %v643_v1 = vld [vmem:[%s18790_s11 + $0x888] sm:$0xff]  ;;  %v16050_v5 = vcombine.high %v387_v28, %v395_v29 }
 0x197   : > { %13083 = vmatpush1.bf16.msra.mxu0 %v16145_v13  ;;  %13114 = vmatprep.mubr.bf16.mxu0 %v18848_v59  ;;  %v651_v2 = vld [vmem:[%s18790_s11 + $0x8c8] sm:$0xff]  ;;  %v16049_v13 = vcombine.low %v387_v28, %v395_v29 }
 0x198   : > { %13072 = vmatmul.mubr.bf16.vlgmr.msra.gmra.mxu1 %v19198_v12  ;;  %13084 = vmatprep.subr.bf16.mxu0 %v16130_v15  ;;  %v16306_v6 = vcombine.high %v643_v1, %v651_v2  ;;  %v371_v7 = vld [vmem:[%s18790_s11 + $0x8] sm:$0xff] }
 0x199   : > { %13126 = vmatpush1.bf16.msra.mxu1 %v16401_v14  ;;  %13157 = vmatprep.mubr.bf16.mxu1 %v18860_v0  ;;  %v379_v8 = vld [vmem:[%s18790_s11 + $0x48] sm:$0xff]  ;;  %v16305_v14 = vcombine.low %v643_v1, %v651_v2 }
 0x19a   : > { %13127 = vmatprep.subr.bf16.mxu1 %v16386_v16  ;;  %v627_v10 = vld [vmem:[%s18790_s11 + $0x808] sm:$0xff]  ;;  %v16034_v15 = vcombine.high %v371_v7, %v379_v8 }
 0x19b   : > { %13085 = vmatpush1.bf16.msra.mxu0 %v16129_v30  ;;  %v635_v11 = vld [vmem:[%s18790_s11 + $0x848] sm:$0xff]  ;;  %v16033_v30 = vcombine.low %v371_v7, %v379_v8 }
 0x19c   : > { %13086 = vmatprep.subr.bf16.mxu0 %v16114_v19  ;;  %v16290_v16 = vcombine.high %v627_v10, %v635_v11  ;;  %v611_v17 = vld [vmem:[%s18790_s11 + $0x788] sm:$0xff] }
 0x19d   : > { %13128 = vmatpush1.bf16.msra.mxu1 %v16385_v31  ;;  %v619_v23 = vld [vmem:[%s18790_s11 + $0x7c8] sm:$0xff]  ;;  %v16289_v31 = vcombine.low %v627_v10, %v635_v11 }
 0x19e   : > { %13129 = vmatprep.subr.bf16.mxu1 %v16370_v21  ;;  %v867_v27 = vld [vmem:[%s18790_s11 + $0xf88] sm:$0xff]  ;;  %v16274_v19 = vcombine.high %v611_v17, %v619_v23 }
 0x19f   : > { %13087 = vmatpush1.bf16.msra.mxu0 %v16113_v60  ;;  %v875_v18 = vld [vmem:[%s18790_s11 + $0xfc8] sm:$0xff]  ;;  %v16273_v60 = vcombine.low %v611_v17, %v619_v23 }
 0x1a0   : > { %13088 = vmatprep.subr.bf16.mxu0 %v16098_v52  ;;  %v16530_v21 = vcombine.high %v867_v27, %v875_v18  ;;  %v595_v56 = vld [vmem:[%s18790_s11 + $0x708] sm:$0xff] }
 0x1a1   : > { %13130 = vmatpush1.bf16.msra.mxu1 %v16369_v61  ;;  %v603_v48 = vld [vmem:[%s18790_s11 + $0x748] sm:$0xff]  ;;  %v16529_v61 = vcombine.low %v867_v27, %v875_v18 }
 0x1a2   : > { %13131 = vmatprep.subr.bf16.mxu1 %v16354_v53  ;;  %v851_v49 = vld [vmem:[%s18790_s11 + $0xf08] sm:$0xff]  ;;  %v16258_v52 = vcombine.high %v595_v56, %v603_v48 }
 0x1a3   : > { %13089 = vmatpush1.bf16.msra.mxu0 %v16097_v41  ;;  %v859_v32 = vld [vmem:[%s18790_s11 + $0xf48] sm:$0xff]  ;;  %v16257_v41 = vcombine.low %v595_v56, %v603_v48 }
 0x1a4   : > { %13090 = vmatprep.subr.bf16.mxu0 %v16082_v43  ;;  %v16514_v53 = vcombine.high %v851_v49, %v859_v32  ;;  %v579_v37 = vld [vmem:[%s18790_s11 + $0x688] sm:$0xff] }
 0x1a5   : > { %13132 = vmatpush1.bf16.msra.mxu1 %v16353_v42  ;;  %v587_v38 = vld [vmem:[%s18790_s11 + $0x6c8] sm:$0xff]  ;;  %v16513_v42 = vcombine.low %v851_v49, %v859_v32 }
 0x1a6   : > { %13133 = vmatprep.subr.bf16.mxu1 %v16338_v44  ;;  %v835_v39 = vld [vmem:[%s18790_s11 + $0xe88] sm:$0xff]  ;;  %v16242_v43 = vcombine.high %v579_v37, %v587_v38 }
 0x1a7   : > { %13091 = vmatpush1.bf16.msra.mxu0 %v16081_v25  ;;  %v843_v40 = vld [vmem:[%s18790_s11 + $0xec8] sm:$0xff]  ;;  %v16241_v25 = vcombine.low %v579_v37, %v587_v38 }
 0x1a8   : > { %13092 = vmatprep.subr.bf16.mxu0 %v16066_v57  ;;  %v16498_v44 = vcombine.high %v835_v39, %v843_v40  ;;  %v563_v45 = vld [vmem:[%s18790_s11 + $0x608] sm:$0xff] }
 0x1a9   : > { %13134 = vmatpush1.bf16.msra.mxu1 %v16337_v54  ;;  %v571_v47 = vld [vmem:[%s18790_s11 + $0x648] sm:$0xff]  ;;  %v16497_v54 = vcombine.low %v835_v39, %v843_v40 }
 0x1aa   : > { %13135 = vmatprep.subr.bf16.mxu1 %v16322_v58  ;;  %v819_v51 = vld [vmem:[%s18790_s11 + $0xe08] sm:$0xff]  ;;  %v16226_v57 = vcombine.high %v563_v45, %v571_v47 }
 0x1ab   : > { %13093 = vmatpush1.bf16.msra.mxu0 %v16065_v3  ;;  %v827_v24 = vld [vmem:[%s18790_s11 + $0xe48] sm:$0xff]  ;;  %v16225_v3 = vcombine.low %v563_v45, %v571_v47 }
 0x1ac   : > { %13094 = vmatprep.subr.bf16.mxu0 %v16050_v5  ;;  %v16482_v58 = vcombine.high %v819_v51, %v827_v24  ;;  %v547_v28 = vld [vmem:[%s18790_s11 + $0x588] sm:$0xff] }
 0x1ad   : > { %13136 = vmatpush1.bf16.msra.mxu1 %v16321_v4  ;;  %v555_v29 = vld [vmem:[%s18790_s11 + $0x5c8] sm:$0xff]  ;;  %v16481_v4 = vcombine.low %v819_v51, %v827_v24 }
 0x1ae   : > { %13137 = vmatprep.subr.bf16.mxu1 %v16306_v6  ;;  %v803_v1 = vld [vmem:[%s18790_s11 + $0xd88] sm:$0xff]  ;;  %v16210_v5 = vcombine.high %v547_v28, %v555_v29 }
 0x1af   : > { %13095 = vmatpush1.bf16.msra.mxu0 %v16049_v13  ;;  %v811_v2 = vld [vmem:[%s18790_s11 + $0xdc8] sm:$0xff]  ;;  %v16209_v13 = vcombine.low %v547_v28, %v555_v29 }
 0x1b0   : > { %13096 = vmatprep.subr.bf16.mxu0 %v16034_v15  ;;  %v16466_v6 = vcombine.high %v803_v1, %v811_v2  ;;  %v531_v7 = vld [vmem:[%s18790_s11 + $0x508] sm:$0xff] }
 0x1b1   : > { %13138 = vmatpush1.bf16.msra.mxu1 %v16305_v14  ;;  %v539_v8 = vld [vmem:[%s18790_s11 + $0x548] sm:$0xff]  ;;  %v16465_v14 = vcombine.low %v803_v1, %v811_v2 }
 0x1b2   : > { %13139 = vmatprep.subr.bf16.mxu1 %v16290_v16  ;;  %v787_v10 = vld [vmem:[%s18790_s11 + $0xd08] sm:$0xff]  ;;  %v16194_v15 = vcombine.high %v531_v7, %v539_v8 }
 0x1b3   : > { %13097 = vmatpush1.bf16.msra.mxu0 %v16033_v30  ;;  %v795_v11 = vld [vmem:[%s18790_s11 + $0xd48] sm:$0xff]  ;;  %v16193_v30 = vcombine.low %v531_v7, %v539_v8 }
 0x1b4   : > { %13098 = vmatprep.subr.bf16.mxu0 %v16274_v19  ;;  %v16450_v16 = vcombine.high %v787_v10, %v795_v11  ;;  %v515_v17 = vld [vmem:[%s18790_s11 + $0x488] sm:$0xff] }
 0x1b5   : > { %13140 = vmatpush1.bf16.msra.mxu1 %v16289_v31  ;;  %v523_v23 = vld [vmem:[%s18790_s11 + $0x4c8] sm:$0xff]  ;;  %v16449_v31 = vcombine.low %v787_v10, %v795_v11 }
 0x1b6   : > { %13141 = vmatprep.subr.bf16.mxu1 %v16530_v21  ;;  %v771_v27 = vld [vmem:[%s18790_s11 + $0xc88] sm:$0xff]  ;;  %v16178_v19 = vcombine.high %v515_v17, %v523_v23 }
 0x1b7   : > { %13099 = vmatpush2.bf16.msra.mxu0 %v16273_v60  ;;  %v779_v18 = vld [vmem:[%s18790_s11 + $0xcc8] sm:$0xff]  ;;  %v16177_v60 = vcombine.low %v515_v17, %v523_v23 }
 0x1b8   : > { %13100 = vmatprep.subr.bf16.mxu0 %v16258_v52  ;;  %v16434_v21 = vcombine.high %v771_v27, %v779_v18  ;;  %v499_v56 = vld [vmem:[%s18790_s11 + $0x408] sm:$0xff] }
 0x1b9   : > { %13142 = vmatpush2.bf16.msra.mxu1 %v16529_v61  ;;  %v507_v48 = vld [vmem:[%s18790_s11 + $0x448] sm:$0xff]  ;;  %v16433_v61 = vcombine.low %v771_v27, %v779_v18 }
 0x1ba   : > { %13143 = vmatprep.subr.bf16.mxu1 %v16514_v53  ;;  %v755_v49 = vld [vmem:[%s18790_s11 + $0xc08] sm:$0xff]  ;;  %v16162_v52 = vcombine.high %v499_v56, %v507_v48 }
 0x1bb   : > { %13101 = vmatpush2.bf16.msra.mxu0 %v16257_v41  ;;  %v763_v32 = vld [vmem:[%s18790_s11 + $0xc48] sm:$0xff]  ;;  %v16161_v41 = vcombine.low %v499_v56, %v507_v48 }
 0x1bc   : > { %13102 = vmatprep.subr.bf16.mxu0 %v16242_v43  ;;  %v16418_v53 = vcombine.high %v755_v49, %v763_v32  ;;  %v995_v37 = vld [vmem:[%s18790_s11 + $0x1388] sm:$0xff] }
 0x1bd   : > { %13144 = vmatpush2.bf16.msra.mxu1 %v16513_v42  ;;  %v1003_v38 = vld [vmem:[%s18790_s11 + $0x13c8] sm:$0xff]  ;;  %v16417_v42 = vcombine.low %v755_v49, %v763_v32 }
 0x1be   : > { %13145 = vmatprep.subr.bf16.mxu1 %v16498_v44  ;;  %v1251_v39 = vld [vmem:[%s18790_s11 + $0x1b88] sm:$0xff]  ;;  %v16658_v43 = vcombine.high %v995_v37, %v1003_v38 }
 0x1bf   : > { %13103 = vmatpush2.bf16.msra.mxu0 %v16241_v25  ;;  %v1259_v40 = vld [vmem:[%s18790_s11 + $0x1bc8] sm:$0xff]  ;;  %v16657_v25 = vcombine.low %v995_v37, %v1003_v38 }
 0x1c0   : > { %13104 = vmatprep.subr.bf16.mxu0 %v16226_v57  ;;  %v16914_v44 = vcombine.high %v1251_v39, %v1259_v40  ;;  %v979_v45 = vld [vmem:[%s18790_s11 + $0x1308] sm:$0xff] }
 0x1c1   : > { %13146 = vmatpush2.bf16.msra.mxu1 %v16497_v54  ;;  %v987_v47 = vld [vmem:[%s18790_s11 + $0x1348] sm:$0xff]  ;;  %v16913_v54 = vcombine.low %v1251_v39, %v1259_v40 }
 0x1c2   : > { %13147 = vmatprep.subr.bf16.mxu1 %v16482_v58  ;;  %v1235_v51 = vld [vmem:[%s18790_s11 + $0x1b08] sm:$0xff]  ;;  %v16642_v57 = vcombine.high %v979_v45, %v987_v47 }
 0x1c3   : > { %13105 = vmatpush2.bf16.msra.mxu0 %v16225_v3  ;;  %v1243_v24 = vld [vmem:[%s18790_s11 + $0x1b48] sm:$0xff]  ;;  %v16641_v3 = vcombine.low %v979_v45, %v987_v47 }
 0x1c4   : > { %13106 = vmatprep.subr.bf16.mxu0 %v16210_v5  ;;  %v16898_v58 = vcombine.high %v1235_v51, %v1243_v24  ;;  %v963_v28 = vld [vmem:[%s18790_s11 + $0x1288] sm:$0xff] }
 0x1c5   : > { %13148 = vmatpush2.bf16.msra.mxu1 %v16481_v4  ;;  %v971_v29 = vld [vmem:[%s18790_s11 + $0x12c8] sm:$0xff]  ;;  %v16897_v4 = vcombine.low %v1235_v51, %v1243_v24 }
 0x1c6   : > { %13149 = vmatprep.subr.bf16.mxu1 %v16466_v6  ;;  %v1219_v1 = vld [vmem:[%s18790_s11 + $0x1a88] sm:$0xff]  ;;  %v16626_v5 = vcombine.high %v963_v28, %v971_v29 }
 0x1c7   : > { %13107 = vmatpush2.bf16.msra.mxu0 %v16209_v13  ;;  %v1227_v2 = vld [vmem:[%s18790_s11 + $0x1ac8] sm:$0xff]  ;;  %v16625_v13 = vcombine.low %v963_v28, %v971_v29 }
 0x1c8   : > { %13108 = vmatprep.subr.bf16.mxu0 %v16194_v15  ;;  %v16882_v6 = vcombine.high %v1219_v1, %v1227_v2  ;;  %v947_v7 = vld [vmem:[%s18790_s11 + $0x1208] sm:$0xff] }
 0x1c9   : > { %13150 = vmatpush2.bf16.msra.mxu1 %v16465_v14  ;;  %v955_v8 = vld [vmem:[%s18790_s11 + $0x1248] sm:$0xff]  ;;  %v16881_v14 = vcombine.low %v1219_v1, %v1227_v2 }
 0x1ca   : > { %13151 = vmatprep.subr.bf16.mxu1 %v16450_v16  ;;  %v1203_v10 = vld [vmem:[%s18790_s11 + $0x1a08] sm:$0xff]  ;;  %v16610_v15 = vcombine.high %v947_v7, %v955_v8 }
 0x1cb   : > { %13109 = vmatpush2.bf16.msra.mxu0 %v16193_v30  ;;  %v1211_v11 = vld [vmem:[%s18790_s11 + $0x1a48] sm:$0xff]  ;;  %v16609_v30 = vcombine.low %v947_v7, %v955_v8 }
 0x1cc   : > { %13110 = vmatprep.subr.bf16.mxu0 %v16178_v19  ;;  %v16866_v16 = vcombine.high %v1203_v10, %v1211_v11  ;;  %v931_v17 = vld [vmem:[%s18790_s11 + $0x1188] sm:$0xff] }
 0x1cd   : > { %13152 = vmatpush2.bf16.msra.mxu1 %v16449_v31  ;;  %v939_v23 = vld [vmem:[%s18790_s11 + $0x11c8] sm:$0xff]  ;;  %v16865_v31 = vcombine.low %v1203_v10, %v1211_v11 }
 0x1ce   : > { %13153 = vmatprep.subr.bf16.mxu1 %v16434_v21  ;;  %v1187_v27 = vld [vmem:[%s18790_s11 + $0x1988] sm:$0xff]  ;;  %v16594_v19 = vcombine.high %v931_v17, %v939_v23 }
 0x1cf   : > { %13111 = vmatpush2.bf16.msra.mxu0 %v16177_v60  ;;  %v1195_v18 = vld [vmem:[%s18790_s11 + $0x19c8] sm:$0xff]  ;;  %v16593_v60 = vcombine.low %v931_v17, %v939_v23 }
 0x1d0   : > { %13112 = vmatprep.subr.bf16.mxu0 %v16162_v52  ;;  %v16850_v21 = vcombine.high %v1187_v27, %v1195_v18  ;;  %v915_v56 = vld [vmem:[%s18790_s11 + $0x1108] sm:$0xff] }
 0x1d1   : > { %13154 = vmatpush2.bf16.msra.mxu1 %v16433_v61  ;;  %v923_v48 = vld [vmem:[%s18790_s11 + $0x1148] sm:$0xff]  ;;  %v16849_v61 = vcombine.low %v1187_v27, %v1195_v18 }
 0x1d2   : > { %13155 = vmatprep.subr.bf16.mxu1 %v16418_v53  ;;  %v1171_v49 = vld [vmem:[%s18790_s11 + $0x1908] sm:$0xff]  ;;  %v16578_v52 = vcombine.high %v915_v56, %v923_v48 }
 0x1d3   : > { %13113 = vmatpush2.bf16.msra.mxu0 %v16161_v41  ;;  %v1179_v32 = vld [vmem:[%s18790_s11 + $0x1948] sm:$0xff]  ;;  %v16577_v41 = vcombine.low %v915_v56, %v923_v48 }
 0x1d4   : > { %13168 = vmatprep.subr.bf16.mxu0 %v16658_v43  ;;  %v16834_v53 = vcombine.high %v1171_v49, %v1179_v32  ;;  %v899_v37 = vld [vmem:[%s18790_s11 + $0x1088] sm:$0xff] }
 0x1d5   : > { %13156 = vmatpush2.bf16.msra.mxu1 %v16417_v42  ;;  %v907_v38 = vld [vmem:[%s18790_s11 + $0x10c8] sm:$0xff]  ;;  %v16833_v42 = vcombine.low %v1171_v49, %v1179_v32 }
 0x1d6   : > { %13211 = vmatprep.subr.bf16.mxu1 %v16914_v44  ;;  %13115 = vmatmul.mubr.bf16.vlgmr.msra.gmra.mxu0 %v18905_v22  ;;  %v1155_v39 = vld [vmem:[%s18790_s11 + $0x1888] sm:$0xff]  ;;  %v16562_v43 = vcombine.high %v899_v37, %v907_v38 }
 0x1d7   : > { %13169 = vmatpush1.bf16.msra.mxu0 %v16657_v25  ;;  %13200 = vmatprep.mubr.bf16.mxu0 %v18928_v33  ;;  %v1163_v40 = vld [vmem:[%s18790_s11 + $0x18c8] sm:$0xff]  ;;  %v16561_v25 = vcombine.low %v899_v37, %v907_v38 }
 0x1d8   : > { %13158 = vmatmul.mubr.bf16.vlgmr.msra.gmra.mxu1 %v18916_v26  ;;  %13170 = vmatprep.subr.bf16.mxu0 %v16642_v57  ;;  %v16818_v44 = vcombine.high %v1155_v39, %v1163_v40  ;;  %v883_v45 = vld [vmem:[%s18790_s11 + $0x1008] sm:$0xff] }
 0x1d9   : > { %13212 = vmatpush1.bf16.msra.mxu1 %v16913_v54  ;;  %13243 = vmatprep.mubr.bf16.mxu1 %v18935_v34  ;;  %v891_v47 = vld [vmem:[%s18790_s11 + $0x1048] sm:$0xff]  ;;  %v16817_v54 = vcombine.low %v1155_v39, %v1163_v40 }
 0x1da   : > { %13213 = vmatprep.subr.bf16.mxu1 %v16898_v58  ;;  %v1139_v51 = vld [vmem:[%s18790_s11 + $0x1808] sm:$0xff]  ;;  %v16546_v57 = vcombine.high %v883_v45, %v891_v47 }
 0x1db   : > { %13171 = vmatpush1.bf16.msra.mxu0 %v16641_v3  ;;  %v1147_v24 = vld [vmem:[%s18790_s11 + $0x1848] sm:$0xff]  ;;  %v16545_v3 = vcombine.low %v883_v45, %v891_v47 }
 0x1dc   : > { %13172 = vmatprep.subr.bf16.mxu0 %v16626_v5  ;;  %v16802_v58 = vcombine.high %v1139_v51, %v1147_v24  ;;  %v1123_v28 = vld [vmem:[%s18790_s11 + $0x1788] sm:$0xff] }
 0x1dd   : > { %13214 = vmatpush1.bf16.msra.mxu1 %v16897_v4  ;;  %v1131_v29 = vld [vmem:[%s18790_s11 + $0x17c8] sm:$0xff]  ;;  %v16801_v4 = vcombine.low %v1139_v51, %v1147_v24 }
 0x1de   : > { %13215 = vmatprep.subr.bf16.mxu1 %v16882_v6  ;;  %v1379_v1 = vld [vmem:[%s18790_s11 + $0x1f88] sm:$0xff]  ;;  %v16786_v5 = vcombine.high %v1123_v28, %v1131_v29 }
 0x1df   : > { %13173 = vmatpush1.bf16.msra.mxu0 %v16625_v13  ;;  %v1387_v2 = vld [vmem:[%s18790_s11 + $0x1fc8] sm:$0xff]  ;;  %v16785_v13 = vcombine.low %v1123_v28, %v1131_v29 }
 0x1e0   : > { %13174 = vmatprep.subr.bf16.mxu0 %v16610_v15  ;;  %v17042_v6 = vcombine.high %v1379_v1, %v1387_v2  ;;  %v1107_v7 = vld [vmem:[%s18790_s11 + $0x1708] sm:$0xff] }
 0x1e1   : > { %13216 = vmatpush1.bf16.msra.mxu1 %v16881_v14  ;;  %v1115_v8 = vld [vmem:[%s18790_s11 + $0x1748] sm:$0xff]  ;;  %v17041_v14 = vcombine.low %v1379_v1, %v1387_v2 }
 0x1e2   : > { %13217 = vmatprep.subr.bf16.mxu1 %v16866_v16  ;;  %v1363_v10 = vld [vmem:[%s18790_s11 + $0x1f08] sm:$0xff]  ;;  %v16770_v15 = vcombine.high %v1107_v7, %v1115_v8 }
 0x1e3   : > { %13175 = vmatpush1.bf16.msra.mxu0 %v16609_v30  ;;  %v1371_v11 = vld [vmem:[%s18790_s11 + $0x1f48] sm:$0xff]  ;;  %v16769_v30 = vcombine.low %v1107_v7, %v1115_v8 }
 0x1e4   : > { %13176 = vmatprep.subr.bf16.mxu0 %v16594_v19  ;;  %v17026_v16 = vcombine.high %v1363_v10, %v1371_v11  ;;  %v1091_v17 = vld [vmem:[%s18790_s11 + $0x1688] sm:$0xff] }
 0x1e5   : > { %13218 = vmatpush1.bf16.msra.mxu1 %v16865_v31  ;;  %v1099_v23 = vld [vmem:[%s18790_s11 + $0x16c8] sm:$0xff]  ;;  %v17025_v31 = vcombine.low %v1363_v10, %v1371_v11 }
 0x1e6   : > { %13219 = vmatprep.subr.bf16.mxu1 %v16850_v21  ;;  %v1347_v27 = vld [vmem:[%s18790_s11 + $0x1e88] sm:$0xff]  ;;  %v16754_v19 = vcombine.high %v1091_v17, %v1099_v23 }
 0x1e7   : > { %13177 = vmatpush1.bf16.msra.mxu0 %v16593_v60  ;;  %v1355_v18 = vld [vmem:[%s18790_s11 + $0x1ec8] sm:$0xff]  ;;  %v16753_v60 = vcombine.low %v1091_v17, %v1099_v23 }
 0x1e8   : > { %13178 = vmatprep.subr.bf16.mxu0 %v16578_v52  ;;  %v17010_v21 = vcombine.high %v1347_v27, %v1355_v18  ;;  %v1075_v56 = vld [vmem:[%s18790_s11 + $0x1608] sm:$0xff] }
 0x1e9   : > { %13220 = vmatpush1.bf16.msra.mxu1 %v16849_v61  ;;  %v1083_v48 = vld [vmem:[%s18790_s11 + $0x1648] sm:$0xff]  ;;  %v17009_v61 = vcombine.low %v1347_v27, %v1355_v18 }
 0x1ea   : > { %13221 = vmatprep.subr.bf16.mxu1 %v16834_v53  ;;  %v1331_v49 = vld [vmem:[%s18790_s11 + $0x1e08] sm:$0xff]  ;;  %v16738_v52 = vcombine.high %v1075_v56, %v1083_v48 }
 0x1eb   : > { %13179 = vmatpush1.bf16.msra.mxu0 %v16577_v41  ;;  %v1339_v32 = vld [vmem:[%s18790_s11 + $0x1e48] sm:$0xff]  ;;  %v16737_v41 = vcombine.low %v1075_v56, %v1083_v48 }
 0x1ec   : > { %13180 = vmatprep.subr.bf16.mxu0 %v16562_v43  ;;  %v16994_v53 = vcombine.high %v1331_v49, %v1339_v32  ;;  %v1059_v37 = vld [vmem:[%s18790_s11 + $0x1588] sm:$0xff] }
 0x1ed   : > { %13222 = vmatpush1.bf16.msra.mxu1 %v16833_v42  ;;  %v1067_v38 = vld [vmem:[%s18790_s11 + $0x15c8] sm:$0xff]  ;;  %v16993_v42 = vcombine.low %v1331_v49, %v1339_v32 }
 0x1ee   : > { %13223 = vmatprep.subr.bf16.mxu1 %v16818_v44  ;;  %v1315_v39 = vld [vmem:[%s18790_s11 + $0x1d88] sm:$0xff]  ;;  %v16722_v43 = vcombine.high %v1059_v37, %v1067_v38 }
 0x1ef   : > { %13181 = vmatpush1.bf16.msra.mxu0 %v16561_v25  ;;  %v1323_v40 = vld [vmem:[%s18790_s11 + $0x1dc8] sm:$0xff]  ;;  %v16721_v25 = vcombine.low %v1059_v37, %v1067_v38 }
 0x1f0   : > { %13182 = vmatprep.subr.bf16.mxu0 %v16546_v57  ;;  %v16978_v44 = vcombine.high %v1315_v39, %v1323_v40  ;;  %v1043_v45 = vld [vmem:[%s18790_s11 + $0x1508] sm:$0xff] }
 0x1f1   : > { %13224 = vmatpush1.bf16.msra.mxu1 %v16817_v54  ;;  %v1051_v47 = vld [vmem:[%s18790_s11 + $0x1548] sm:$0xff]  ;;  %v16977_v54 = vcombine.low %v1315_v39, %v1323_v40 }
 0x1f2   : > { %13225 = vmatprep.subr.bf16.mxu1 %v16802_v58  ;;  %v1299_v51 = vld [vmem:[%s18790_s11 + $0x1d08] sm:$0xff]  ;;  %v16706_v57 = vcombine.high %v1043_v45, %v1051_v47 }
 0x1f3   : > { %13183 = vmatpush1.bf16.msra.mxu0 %v16545_v3  ;;  %v1307_v24 = vld [vmem:[%s18790_s11 + $0x1d48] sm:$0xff]  ;;  %v16705_v3 = vcombine.low %v1043_v45, %v1051_v47 }
 0x1f4   : > { %13184 = vmatprep.subr.bf16.mxu0 %v16786_v5  ;;  %v16962_v58 = vcombine.high %v1299_v51, %v1307_v24  ;;  %v1027_v28 = vld [vmem:[%s18790_s11 + $0x1488] sm:$0xff] }
 0x1f5   : > { %13226 = vmatpush1.bf16.msra.mxu1 %v16801_v4  ;;  %v1035_v29 = vld [vmem:[%s18790_s11 + $0x14c8] sm:$0xff]  ;;  %v16961_v4 = vcombine.low %v1299_v51, %v1307_v24 }
 0x1f6   : > { %13227 = vmatprep.subr.bf16.mxu1 %v17042_v6  ;;  %v1283_v1 = vld [vmem:[%s18790_s11 + $0x1c88] sm:$0xff]  ;;  %v16690_v5 = vcombine.high %v1027_v28, %v1035_v29 }
 0x1f7   : > { %13185 = vmatpush2.bf16.msra.mxu0 %v16785_v13  ;;  %v1291_v2 = vld [vmem:[%s18790_s11 + $0x1cc8] sm:$0xff]  ;;  %v16689_v13 = vcombine.low %v1027_v28, %v1035_v29 }
 0x1f8   : > { %13186 = vmatprep.subr.bf16.mxu0 %v16770_v15  ;;  %v16946_v6 = vcombine.high %v1283_v1, %v1291_v2  ;;  %v1011_v7 = vld [vmem:[%s18790_s11 + $0x1408] sm:$0xff] }
 0x1f9   : > { %13228 = vmatpush2.bf16.msra.mxu1 %v17041_v14  ;;  %v1019_v8 = vld [vmem:[%s18790_s11 + $0x1448] sm:$0xff]  ;;  %v16945_v14 = vcombine.low %v1283_v1, %v1291_v2 }
 0x1fa   : > { %13229 = vmatprep.subr.bf16.mxu1 %v17026_v16  ;;  %v1267_v10 = vld [vmem:[%s18790_s11 + $0x1c08] sm:$0xff]  ;;  %v16674_v15 = vcombine.high %v1011_v7, %v1019_v8 }
 0x1fb   : > { %13187 = vmatpush2.bf16.msra.mxu0 %v16769_v30  ;;  %v1275_v11 = vld [vmem:[%s18790_s11 + $0x1c48] sm:$0xff]  ;;  %v16673_v30 = vcombine.low %v1011_v7, %v1019_v8 }
 0x1fc   : > { %13188 = vmatprep.subr.bf16.mxu0 %v16754_v19  ;;  %v16930_v16 = vcombine.high %v1267_v10, %v1275_v11  ;;  %v1507_v17 = vld [vmem:[%s18790_s11 + $0x2388] sm:$0xff] }
 0x1fd   : > { %13230 = vmatpush2.bf16.msra.mxu1 %v17025_v31  ;;  %v1515_v23 = vld [vmem:[%s18790_s11 + $0x23c8] sm:$0xff]  ;;  %v16929_v31 = vcombine.low %v1267_v10, %v1275_v11 }
 0x1fe   : > { %13231 = vmatprep.subr.bf16.mxu1 %v17010_v21  ;;  %v1763_v27 = vld [vmem:[%s18790_s11 + $0x2b88] sm:$0xff]  ;;  %v17170_v19 = vcombine.high %v1507_v17, %v1515_v23 }
 0x1ff   : > { %13189 = vmatpush2.bf16.msra.mxu0 %v16753_v60  ;;  %v1771_v18 = vld [vmem:[%s18790_s11 + $0x2bc8] sm:$0xff]  ;;  %v17169_v60 = vcombine.low %v1507_v17, %v1515_v23 }
 0x200   : > { %13190 = vmatprep.subr.bf16.mxu0 %v16738_v52  ;;  %v17426_v21 = vcombine.high %v1763_v27, %v1771_v18  ;;  %v1491_v56 = vld [vmem:[%s18790_s11 + $0x2308] sm:$0xff] }
 0x201   : > { %13232 = vmatpush2.bf16.msra.mxu1 %v17009_v61  ;;  %v1499_v48 = vld [vmem:[%s18790_s11 + $0x2348] sm:$0xff]  ;;  %v17425_v61 = vcombine.low %v1763_v27, %v1771_v18 }
 0x202   : > { %13233 = vmatprep.subr.bf16.mxu1 %v16994_v53  ;;  %v1747_v49 = vld [vmem:[%s18790_s11 + $0x2b08] sm:$0xff]  ;;  %v17154_v52 = vcombine.high %v1491_v56, %v1499_v48 }
 0x203   : > { %13191 = vmatpush2.bf16.msra.mxu0 %v16737_v41  ;;  %v1755_v32 = vld [vmem:[%s18790_s11 + $0x2b48] sm:$0xff]  ;;  %v17153_v41 = vcombine.low %v1491_v56, %v1499_v48 }
 0x204   : > { %13192 = vmatprep.subr.bf16.mxu0 %v16722_v43  ;;  %v17410_v53 = vcombine.high %v1747_v49, %v1755_v32  ;;  %v1475_v37 = vld [vmem:[%s18790_s11 + $0x2288] sm:$0xff] }
 0x205   : > { %13234 = vmatpush2.bf16.msra.mxu1 %v16993_v42  ;;  %v1483_v38 = vld [vmem:[%s18790_s11 + $0x22c8] sm:$0xff]  ;;  %v17409_v42 = vcombine.low %v1747_v49, %v1755_v32 }
 0x206   : > { %13235 = vmatprep.subr.bf16.mxu1 %v16978_v44  ;;  %v1731_v39 = vld [vmem:[%s18790_s11 + $0x2a88] sm:$0xff]  ;;  %v17138_v43 = vcombine.high %v1475_v37, %v1483_v38 }
 0x207   : > { %13193 = vmatpush2.bf16.msra.mxu0 %v16721_v25  ;;  %v1739_v40 = vld [vmem:[%s18790_s11 + $0x2ac8] sm:$0xff]  ;;  %v17137_v25 = vcombine.low %v1475_v37, %v1483_v38  ;;  %v19366_v37 = vpop.f32.mrf.mxu1 }
 0x208   : > { %13194 = vmatprep.subr.bf16.mxu0 %v16706_v57  ;;  %v17394_v44 = vcombine.high %v1731_v39, %v1739_v40  ;;  %v1459_v45 = vld [vmem:[%s18790_s11 + $0x2208] sm:$0xff] }
 0x209   : > { %13236 = vmatpush2.bf16.msra.mxu1 %v16977_v54  ;;  %v1467_v47 = vld [vmem:[%s18790_s11 + $0x2248] sm:$0xff]  ;;  %v17393_v54 = vcombine.low %v1731_v39, %v1739_v40 }
 0x20a   : > { %13237 = vmatprep.subr.bf16.mxu1 %v16962_v58  ;;  %v1715_v51 = vld [vmem:[%s18790_s11 + $0x2a08] sm:$0xff]  ;;  %v17122_v57 = vcombine.high %v1459_v45, %v1467_v47 }
 0x20b   : > { %13195 = vmatpush2.bf16.msra.mxu0 %v16705_v3  ;;  %v1723_v24 = vld [vmem:[%s18790_s11 + $0x2a48] sm:$0xff]  ;;  %v17121_v3 = vcombine.low %v1459_v45, %v1467_v47 }
 0x20c   : > { %13196 = vmatprep.subr.bf16.mxu0 %v16690_v5  ;;  %v17378_v58 = vcombine.high %v1715_v51, %v1723_v24  ;;  %v1443_v28 = vld [vmem:[%s18790_s11 + $0x2188] sm:$0xff] }
 0x20d   : > { %13238 = vmatpush2.bf16.msra.mxu1 %v16961_v4  ;;  %v1451_v29 = vld [vmem:[%s18790_s11 + $0x21c8] sm:$0xff]  ;;  %v17377_v4 = vcombine.low %v1715_v51, %v1723_v24  ;;  %v19374_v51 = vpop.f32.mrf.mxu1 }
 0x20e   : > { %13239 = vmatprep.subr.bf16.mxu1 %v16946_v6  ;;  %v1699_v1 = vld [vmem:[%s18790_s11 + $0x2988] sm:$0xff]  ;;  %v17106_v5 = vcombine.high %v1443_v28, %v1451_v29 }
 0x20f   : > { %13197 = vmatpush2.bf16.msra.mxu0 %v16689_v13  ;;  %v1707_v2 = vld [vmem:[%s18790_s11 + $0x29c8] sm:$0xff]  ;;  %v17105_v13 = vcombine.low %v1443_v28, %v1451_v29 }
 0x210   : > { %13198 = vmatprep.subr.bf16.mxu0 %v16674_v15  ;;  %v17362_v6 = vcombine.high %v1699_v1, %v1707_v2  ;;  %v1427_v7 = vld [vmem:[%s18790_s11 + $0x2108] sm:$0xff] }
 0x211   : > { %13240 = vmatpush2.bf16.msra.mxu1 %v16945_v14  ;;  %v1435_v8 = vld [vmem:[%s18790_s11 + $0x2148] sm:$0xff]  ;;  %v17361_v14 = vcombine.low %v1699_v1, %v1707_v2 }
 0x212   : > { %13241 = vmatprep.subr.bf16.mxu1 %v16930_v16  ;;  %v1683_v10 = vld [vmem:[%s18790_s11 + $0x2908] sm:$0xff]  ;;  %v17090_v15 = vcombine.high %v1427_v7, %v1435_v8 }
 0x213   : > { %13199 = vmatpush2.bf16.msra.mxu0 %v16673_v30  ;;  %v1691_v11 = vld [vmem:[%s18790_s11 + $0x2948] sm:$0xff]  ;;  %v17089_v30 = vcombine.low %v1427_v7, %v1435_v8 }
 0x214   : > { %13254 = vmatprep.subr.bf16.mxu0 %v17170_v19  ;;  %v17346_v16 = vcombine.high %v1683_v10, %v1691_v11  ;;  %v1411_v17 = vld [vmem:[%s18790_s11 + $0x2088] sm:$0xff] }
 0x215   : > { %13242 = vmatpush2.bf16.msra.mxu1 %v16929_v31  ;;  %v1419_v23 = vld [vmem:[%s18790_s11 + $0x20c8] sm:$0xff]  ;;  %v17345_v31 = vcombine.low %v1683_v10, %v1691_v11 }
 0x216   : > { %13297 = vmatprep.subr.bf16.mxu1 %v17426_v21  ;;  %13201 = vmatmul.mubr.bf16.vlgmr.msra.gmra.mxu0 %v19001_v46  ;;  %v1667_v27 = vld [vmem:[%s18790_s11 + $0x2888] sm:$0xff]  ;;  %v17074_v19 = vcombine.high %v1411_v17, %v1419_v23 }
 0x217   : > { %13255 = vmatpush1.bf16.msra.mxu0 %v17169_v60  ;;  %13286 = vmatprep.mubr.bf16.mxu0 %v19024_v62  ;;  %v1675_v18 = vld [vmem:[%s18790_s11 + $0x28c8] sm:$0xff]  ;;  %v17073_v60 = vcombine.low %v1411_v17, %v1419_v23 }
 0x218   : > { %13244 = vmatmul.mubr.bf16.vlgmr.msra.gmra.mxu1 %v19012_v50  ;;  %13256 = vmatprep.subr.bf16.mxu0 %v17154_v52  ;;  %v17330_v21 = vcombine.high %v1667_v27, %v1675_v18  ;;  %v1395_v56 = vld [vmem:[%s18790_s11 + $0x2008] sm:$0xff]  ;;  %v17329_v52 = vcombine.low %v1667_v27, %v1675_v18 }
 0x219   : > { %13298 = vmatpush1.bf16.msra.mxu1 %v17425_v61  ;;  %13329 = vmatprep.mubr.bf16.mxu1 %v19031_v63  ;;  %v1403_v48 = vld [vmem:[%s18790_s11 + $0x2048] sm:$0xff]  ;;  %v19364_v61 = vpop.f32.mrf.mxu0 }
 0x21a   : > { %13299 = vmatprep.subr.bf16.mxu1 %v17410_v53  ;;  %v1651_v49 = vld [vmem:[%s18790_s11 + $0x2808] sm:$0xff]  ;;  %v17058_v53 = vcombine.high %v1395_v56, %v1403_v48 }
 0x21b   : > { %13257 = vmatpush1.bf16.msra.mxu0 %v17153_v41  ;;  %v1659_v32 = vld [vmem:[%s18790_s11 + $0x2848] sm:$0xff] }
 0x21c   : > { %13258 = vmatprep.subr.bf16.mxu0 %v17138_v43  ;;  %v17314_v38 = vcombine.high %v1651_v49, %v1659_v32  ;;  %v1635_v39 = vld [vmem:[%s18790_s11 + $0x2788] sm:$0xff]  ;;  %v17057_v43 = vcombine.low %v1395_v56, %v1403_v48  ;;  %v17313_v45 = vcombine.low %v1651_v49, %v1659_v32 }
 0x21d   : > { %13300 = vmatpush1.bf16.msra.mxu1 %v17409_v42  ;;  %v1643_v40 = vld [vmem:[%s18790_s11 + $0x27c8] sm:$0xff] }
 0x21e   : > { %13301 = vmatprep.subr.bf16.mxu1 %v17394_v44  ;;  %v1891_v41 = vld [vmem:[%s18790_s11 + $0x2f88] sm:$0xff]  ;;  %v19372_v44 = vpop.f32.mrf.mxu0  ;;  %v17298_v47 = vcombine.high %v1635_v39, %v1643_v40  ;;  %v17297_v28 = vcombine.low %v1635_v39, %v1643_v40 }
 0x21f   : > { %13259 = vmatpush1.bf16.msra.mxu0 %v17137_v25  ;;  %v1899_v42 = vld [vmem:[%s18790_s11 + $0x2fc8] sm:$0xff] }
 0x220   : > { %13260 = vmatprep.subr.bf16.mxu0 %v17122_v57  ;;  %v17554_v24 = vcombine.high %v1891_v41, %v1899_v42  ;;  %v1619_v25 = vld [vmem:[%s18790_s11 + $0x2708] sm:$0xff]  ;;  %v19380_v29 = vpop.f32.mrf.mxu0  ;;  %v17553_v1 = vcombine.low %v1891_v41, %v1899_v42 }
 0x221   : > { %13302 = vmatpush1.bf16.msra.mxu1 %v17393_v54  ;;  %v1627_v54 = vld [vmem:[%s18790_s11 + $0x2748] sm:$0xff] }
 0x222   : > { %13303 = vmatprep.subr.bf16.mxu1 %v17378_v58  ;;  %v1875_v57 = vld [vmem:[%s18790_s11 + $0x2f08] sm:$0xff]  ;;  %v17282_v2 = vcombine.high %v1619_v25, %v1627_v54  ;;  %v17281_v10 = vcombine.low %v1619_v25, %v1627_v54  ;;  %v19388_v11 = vpop.f32.mrf.mxu0 }
 0x223   : > { %13261 = vmatpush1.bf16.msra.mxu0 %v17121_v3  ;;  %v1883_v58 = vld [vmem:[%s18790_s11 + $0x2f48] sm:$0xff]  ;;  %v19382_v3 = vpop.f32.mrf.mxu1 }
 0x224   : > { %13262 = vmatprep.subr.bf16.mxu0 %v17106_v5  ;;  %v1603_v5 = vld [vmem:[%s18790_s11 + $0x2688] sm:$0xff]  ;;  %v12858_v27 = vpop.f32.mrf.mxu0 }
 0x225   : > { %13304 = vmatpush1.bf16.msra.mxu1 %v17377_v4  ;;  %v17538_v4 = vcombine.high %v1875_v57, %v1883_v58  ;;  %v1859_v7 = vld [vmem:[%s18790_s11 + $0x2e88] sm:$0xff] }
 0x226   : > { %13305 = vmatprep.subr.bf16.mxu1 %v17362_v6  ;;  %v1611_v6 = vld [vmem:[%s18790_s11 + $0x26c8] sm:$0xff] }
 0x227   : > { %13263 = vmatpush1.bf16.msra.mxu0 %v17105_v13  ;;  %v1867_v8 = vld [vmem:[%s18790_s11 + $0x2ec8] sm:$0xff]  ;;  %v17537_v13 = vcombine.low %v1875_v57, %v1883_v58 }
 0x228   : > { %13264 = vmatprep.subr.bf16.mxu0 %v17090_v15  ;;  %v19390_v15 = vpop.f32.mrf.mxu1  ;;  %v1587_v17 = vld [vmem:[%s18790_s11 + $0x2608] sm:$0xff] }
 0x229   : > { %13306 = vmatpush1.bf16.msra.mxu1 %v17361_v14  ;;  %v17266_v14 = vcombine.high %v1603_v5, %v1611_v6  ;;  %v1595_v23 = vld [vmem:[%s18790_s11 + $0x2648] sm:$0xff] }
 0x22a   : > { %13307 = vmatprep.subr.bf16.mxu1 %v17346_v16  ;;  %v17522_v16 = vcombine.high %v1859_v7, %v1867_v8  ;;  %v1843_v18 = vld [vmem:[%s18790_s11 + $0x2e08] sm:$0xff]  ;;  %v17250_v56 = vcombine.high %v1587_v17, %v1595_v23  ;;  %v17249_v39 = vcombine.low %v1587_v17, %v1595_v23  ;;  %v12816_v17 = vadd.f32 %v19366_v37, %v19364_v61 }
 0x22b   : > { %13265 = vmatpush1.bf16.msra.mxu0 %v17089_v30  ;;  %v1851_v30 = vld [vmem:[%s18790_s11 + $0x2e48] sm:$0xff] }
 0x22c   : > { %13266 = vmatprep.subr.bf16.mxu0 %v17074_v19  ;;  %v17265_v19 = vcombine.low %v1603_v5, %v1611_v6  ;;  %v17506_v48 = vcombine.high %v1843_v18, %v1851_v30  ;;  %v1571_v49 = vld [vmem:[%s18790_s11 + $0x2588] sm:$0xff]  ;;  %v17505_v40 = vcombine.low %v1843_v18, %v1851_v30 }
 0x22d   : > { %13308 = vmatpush1.bf16.msra.mxu1 %v17345_v31  ;;  %v19396_v31 = vpop.f32.mrf.mxu1  ;;  %v1579_v32 = vld [vmem:[%s18790_s11 + $0x25c8] sm:$0xff] }
 0x22e   : > { %13309 = vmatprep.subr.bf16.mxu1 %v17330_v21  ;;  %v17521_v21 = vcombine.low %v1859_v7, %v1867_v8  ;;  %v17234_v41 = vcombine.high %v1571_v49, %v1579_v32  ;;  %v1819_v25 = vld [vmem:[%s18790_s11 + $0x2d48] sm:$0xff]  ;;  %v17233_v57 = vcombine.low %v1571_v49, %v1579_v32  ;;  %v12859_v49 = vadd.f32 %v12858_v27, %v12816_v17 }
 0x22f   : > { %13267 = vmatpush1.bf16.msra.mxu0 %v17073_v60  ;;  %v12860_v60 = vpop.f32.mrf.mxu0  ;;  %v1795_v6 = vld [vmem:[%s18790_s11 + $0x2c88] sm:$0xff]  ;;  %v12822_v27 = vadd.f32 %v19390_v15, %v19388_v11 }
 0x230   : > { %13268 = vmatprep.subr.bf16.mxu0 %v17058_v53  ;;  %v1835_v53 = vld [vmem:[%s18790_s11 + $0x2dc8] sm:$0xff] }
 0x231   : > { %13310 = vmatpush1.bf16.msra.mxu1 %v17329_v52  ;;  %v1827_v52 = vld [vmem:[%s18790_s11 + $0x2d88] sm:$0xff] }
 0x232   : > { %13311 = vmatprep.subr.bf16.mxu1 %v17314_v38  ;;  %v19402_v38 = vpop.f32.mrf.mxu1  ;;  %v17490_v42 = vcombine.high %v1827_v52, %v1835_v53  ;;  %v17489_v58 = vcombine.low %v1827_v52, %v1835_v53  ;;  %v1803_v7 = vld [vmem:[%s18790_s11 + $0x2cc8] sm:$0xff]  ;;  %v12820_v53 = vadd.f32 %v19382_v3, %v19380_v29 }
 0x233   : > { %13269 = vmatpush1.bf16.msra.mxu0 %v17057_v43  ;;  %v1555_v43 = vld [vmem:[%s18790_s11 + $0x2508] sm:$0xff]  ;;  %v17458_v18 = vcombine.high %v1795_v6, %v1803_v7  ;;  %v17457_v61 = vcombine.low %v1795_v6, %v1803_v7 }
 0x234   : > { %13270 = vmatprep.subr.bf16.mxu0 %v17298_v47  ;;  %v12862_v47 = vpop.f32.mrf.mxu0  ;;  %v19408_v54 = vpop.f32.mrf.mxu1  ;;  %v1523_v30 = vld [vmem:[%s18790_s11 + $0x2408] sm:$0xff] }
 0x235   : > { %13312 = vmatpush1.bf16.msra.mxu1 %v17313_v45  ;;  %v1563_v45 = vld [vmem:[%s18790_s11 + $0x2548] sm:$0xff] }
 0x236   : > { %13313 = vmatprep.subr.bf16.mxu1 %v17554_v24  ;;  %v1811_v24 = vld [vmem:[%s18790_s11 + $0x2d08] sm:$0xff]  ;;  %v12864_v5 = vpop.f32.mrf.mxu0  ;;  %v19414_v8 = vpop.f32.mrf.mxu1 }
 0x237   : > { %13271 = vmatpush2.bf16.msra.mxu0 %v17297_v28  ;;  %v17218_v28 = vcombine.high %v1555_v43, %v1563_v45  ;;  %v2003_v15 = vld [vmem:[%s18790_s11 + $0x3308] sm:$0xff] }
 0x238   : > { %13272 = vmatprep.subr.bf16.mxu0 %v17282_v2  ;;  %v1539_v2 = vld [vmem:[%s18790_s11 + $0x2488] sm:$0xff]  ;;  %v12987_v23 = vpop.f32.mrf.mxu1 }
 0x239   : > { %13314 = vmatpush2.bf16.msra.mxu1 %v17553_v1  ;;  %v17474_v1 = vcombine.high %v1811_v24, %v1819_v25 }
 0x23a   : > { %13315 = vmatprep.subr.bf16.mxu1 %v17538_v4  ;;  %v1547_v4 = vld [vmem:[%s18790_s11 + $0x24c8] sm:$0xff] }
 0x23b   : > { %13273 = vmatpush2.bf16.msra.mxu0 %v17281_v10  ;;  %v17217_v10 = vcombine.low %v1555_v43, %v1563_v45  ;;  %v17201_v32 = vcombine.low %v1539_v2, %v1547_v4  ;;  %v2027_v43 = vld [vmem:[%s18790_s11 + $0x33c8] sm:$0xff]  ;;  %v12902_v45 = vadd.f32 %v19396_v31, %v12859_v49 }
 0x23c   : > { %13274 = vmatprep.subr.bf16.mxu0 %v17266_v14  ;;  %v17473_v14 = vcombine.low %v1811_v24, %v1819_v25  ;;  %v12863_v24 = vadd.f32 %v12862_v47, %v12820_v53  ;;  %v2011_v31 = vld [vmem:[%s18790_s11 + $0x3348] sm:$0xff] }
 0x23d   : > { %13316 = vmatpush2.bf16.msra.mxu1 %v17537_v13  ;;  %v12944_v13 = vpop.f32.mrf.mxu0  ;;  %v2259_v47 = vld [vmem:[%s18790_s11 + $0x3b08] sm:$0xff] }
 0x23e   : > { %13317 = vmatprep.subr.bf16.mxu1 %v17522_v16  ;;  %v17202_v16 = vcombine.high %v1539_v2, %v1547_v4  ;;  %v2267_v2 = vld [vmem:[%s18790_s11 + $0x3b48] sm:$0xff]  ;;  %v12906_v4 = vadd.f32 %v19408_v54, %v12863_v24 }
 0x23f   : > { %13275 = vmatpush2.bf16.msra.mxu0 %v17265_v19  ;;  %v1531_v19 = vld [vmem:[%s18790_s11 + $0x2448] sm:$0xff]  ;;  %v12946_v52 = vpop.f32.mrf.mxu0  ;;  %v17922_v54 = vcombine.high %v2259_v47, %v2267_v2 }
 0x240   : > { %13276 = vmatprep.subr.bf16.mxu0 %v17250_v56  ;;  %v1787_v56 = vld [vmem:[%s18790_s11 + $0x2c48] sm:$0xff]  ;;  %v17186_v37 = vcombine.high %v1523_v30, %v1531_v19  ;;  %v17185_v29 = vcombine.low %v1523_v30, %v1531_v19 }
 0x241   : > { %13318 = vmatpush2.bf16.msra.mxu1 %v17521_v21  ;;  %v1779_v21 = vld [vmem:[%s18790_s11 + $0x2c08] sm:$0xff]  ;;  %v12948_v3 = vpop.f32.mrf.mxu0 }
 0x242   : > { %13319 = vmatprep.subr.bf16.mxu1 %v17506_v48  ;;  %v12818_v48 = vadd.f32 %v19374_v51, %v19372_v44  ;;  %v2275_v44 = vld [vmem:[%s18790_s11 + $0x3b88] sm:$0xff]  ;;  %v12949_v17 = vadd.f32 %v12948_v3, %v12906_v4 }
 0x243   : > { %13277 = vmatpush2.bf16.msra.mxu0 %v17249_v39  ;;  %v2283_v51 = vld [vmem:[%s18790_s11 + $0x3bc8] sm:$0xff] }
 0x244   : > { %13278 = vmatprep.subr.bf16.mxu0 %v17234_v41  ;;  %v12861_v39 = vadd.f32 %v12860_v60, %v12818_v48  ;;  %v17442_v41 = vcombine.high %v1779_v21, %v1787_v56  ;;  %v17441_v60 = vcombine.low %v1779_v21, %v1787_v56  ;;  %v17938_v11 = vcombine.high %v2275_v44, %v2283_v51  ;;  %v1995_v30 = vld [vmem:[%s18790_s11 + $0x32c8] sm:$0xff] }
 0x245   : > { %13320 = vmatpush2.bf16.msra.mxu1 %v17505_v40  ;;  %v12989_v40 = vpop.f32.mrf.mxu1  ;;  %v2243_v19 = vld [vmem:[%s18790_s11 + $0x3a88] sm:$0xff]  ;;  %v17665_v48 = vcombine.low %v2003_v15, %v2011_v31 }
 0x246   : > { %13321 = vmatprep.subr.bf16.mxu1 %v17490_v42  ;;  %v2019_v42 = vld [vmem:[%s18790_s11 + $0x3388] sm:$0xff] }
 0x247   : > { %13279 = vmatpush2.bf16.msra.mxu0 %v17233_v57  ;;  %v17682_v25 = vcombine.high %v2019_v42, %v2027_v43  ;;  %v12904_v57 = vadd.f32 %v19402_v38, %v12861_v39  ;;  %v17681_v7 = vcombine.low %v2019_v42, %v2027_v43  ;;  %v17937_v38 = vcombine.low %v2275_v44, %v2283_v51  ;;  %v2251_v21 = vld [vmem:[%s18790_s11 + $0x3ac8] sm:$0xff] }
 0x248   : > { %13280 = vmatprep.subr.bf16.mxu0 %v17218_v28  ;;  %v12945_v28 = vadd.f32 %v12944_v13, %v12902_v45  ;;  %v19440_v13 = vld [vmem:[%s18790_s11 + $0x3288] sm:$0xff]  ;;  %v17906_v39 = vcombine.high %v2243_v19, %v2251_v21 }
 0x249   : > { %13322 = vmatpush2.bf16.msra.mxu1 %v17489_v58  ;;  %v12865_v58 = vadd.f32 %v12864_v5, %v12822_v27  ;;  %v12947_v6 = vadd.f32 %v12946_v52, %v12904_v57  ;;  %v17666_v5 = vcombine.high %v2003_v15, %v2011_v31  ;;  %v17650_v53 = vcombine.high %v19440_v13, %v1995_v30  ;;  %v1971_v44 = vld [vmem:[%s18790_s11 + $0x3208] sm:$0xff]  ;;  %v323_v27 = vld [vmem:[#allocation2] sm:$0xff] }
 0x24a   : > { %13323 = vmatprep.subr.bf16.mxu1 %v17474_v1  ;;  %v12991_v1 = vpop.f32.mrf.mxu1  ;;  %v1979_v51 = vld [vmem:[%s18790_s11 + $0x3248] sm:$0xff]  ;;  %v17649_v24 = vcombine.low %v19440_v13, %v1995_v30  ;;  %v17905_v15 = vcombine.low %v2243_v19, %v2251_v21 }
 0x24b   : > { %13281 = vmatpush2.bf16.msra.mxu0 %v17217_v10  ;;  %v12950_v10 = vpop.f32.mrf.mxu0  ;;  %v12990_v49 = vadd.f32 %v12989_v40, %v12947_v6  ;;  %v2235_v3 = vld [vmem:[%s18790_s11 + $0x3a48] sm:$0xff]  ;;  %v17634_v31 = vcombine.high %v1971_v44, %v1979_v51 }
 0x24c   : > { %13282 = vmatprep.subr.bf16.mxu0 %v17202_v16  ;;  %v12988_v16 = vadd.f32 %v12987_v23, %v12945_v28  ;;  %v2211_v13 = vld [vmem:[%s18790_s11 + $0x3988] sm:$0xff] }
 0x24d   : > { %13324 = vmatpush2.bf16.msra.mxu1 %v17473_v14  ;;  %v12908_v14 = vadd.f32 %v19414_v8, %v12865_v58  ;;  %v322_v8 = vld [vmem:[#allocation2 + $0xb0] sm:$0xff] }
 0x24e   : > { %13325 = vmatprep.subr.bf16.mxu1 %v17458_v18  ;;  %v12993_v18 = vpop.f32.mrf.mxu1 }
 0x24f   : > { %13283 = vmatpush2.bf16.msra.mxu0 %v17201_v32  ;;  %v12951_v32 = vadd.f32 %v12950_v10, %v12908_v14  ;;  %v1963_v10 = vld [vmem:[%s18790_s11 + $0x31c8] sm:$0xff] }
 0x250   : > { %13284 = vmatprep.subr.bf16.mxu0 %v17186_v37  ;;  %v17921_v37 = vcombine.low %v2259_v47, %v2267_v2  ;;  %v2219_v14 = vld [vmem:[%s18790_s11 + $0x39c8] sm:$0xff] }
 0x251   : > { %13326 = vmatpush2.bf16.msra.mxu1 %v17457_v61  ;;  %v17874_v21 = vcombine.high %v2211_v13, %v2219_v14 }
 0x252   : > { %13327 = vmatprep.subr.bf16.mxu1 %v17442_v41  ;;  %v12992_v41 = vadd.f32 %v12991_v1, %v12949_v17  ;;  %v338_v1 = vld [vmem:[#allocation2 + $0x38] sm:$0xff] }
 0x253   : > { %13285 = vmatpush2.bf16.msra.mxu0 %v17185_v29  ;;  %v2227_v29 = vld [vmem:[%s18790_s11 + $0x3a08] sm:$0xff] }
 0x254   : > { %13340 = vmatprep.subr.bf16.mxu0 %v17682_v25  ;;  %v17890_v6 = vcombine.high %v2227_v29, %v2235_v3 }
 0x255   : > { %13328 = vmatpush2.bf16.msra.mxu1 %v17441_v60  ;;  %v12994_v60 = vadd.f32 %v12993_v18, %v12951_v32  ;;  %v17633_v18 = vcombine.low %v1971_v44, %v1979_v51  ;;  %v2203_v32 = vld [vmem:[%s18790_s11 + $0x3948] sm:$0xff] }
 0x256   : > { %13383 = vmatprep.subr.bf16.mxu1 %v17938_v11  ;;  %v13030_v56 = vpop.f32.mrf.mxu0  ;;  %13287 = vmatmul.mubr.bf16.vlgmr.msra.gmra.mxu0 %v19097_v20  ;;  %v1907_v51 = vld [vmem:[%s18790_s11 + $0x3008] sm:$0xff] }
 0x257   : > { %v13031_v52 = vadd.f32 %v13030_v56, %v12988_v16  ;;  %13341 = vmatpush1.bf16.msra.mxu0 %v17681_v7  ;;  %13372 = vmatprep.mubr.bf16.mxu0 %v19120_v35  ;;  %v1955_v7 = vld [vmem:[%s18790_s11 + $0x3188] sm:$0xff] }
 0x258   : > { %v13073_v61 = vpop.f32.mrf.mxu1  ;;  %13330 = vmatmul.mubr.bf16.vlgmr.msra.gmra.mxu1 %v19108_v55  ;;  %v13032_v23 = vpop.f32.mrf.mxu0  ;;  %13342 = vmatprep.subr.bf16.mxu0 %v17666_v5  ;;  %v17618_v30 = vcombine.high %v1955_v7, %v1963_v10  ;;  %v1939_v56 = vld [vmem:[%s18790_s11 + $0x3108] sm:$0xff] }
 0x259   : > { %13384 = vmatpush1.bf16.msra.mxu1 %v17937_v38  ;;  %v13074_v40 = vadd.f32 %v13073_v61, %v13031_v52  ;;  %v13033_v42 = vadd.f32 %v13032_v23, %v12990_v49  ;;  %13415 = vmatprep.mubr.bf16.mxu1 %v19127_v36  ;;  %v339_v38 = vld [vmem:[#allocation2 + $0x58] sm:$0xff]  ;;  %v2195_v49 = vld [vmem:[%s18790_s11 + $0x3908] sm:$0xff]  ;;  %v17617_v52 = vcombine.low %v1955_v7, %v1963_v10 }
 0x25a   : > { %v13075_v43 = vpop.f32.mrf.mxu1  ;;  %13385 = vmatprep.subr.bf16.mxu1 %v17922_v54  ;;  %v13034_v45 = vpop.f32.mrf.mxu0  ;;  %v17889_v54 = vcombine.low %v2227_v29, %v2235_v3  ;;  %v17873_v61 = vcombine.low %v2211_v13, %v2219_v14  ;;  %v17858_v23 = vcombine.high %v2195_v49, %v2203_v32  ;;  %v2395_v7 = vld [vmem:[%s18790_s11 + $0x3f48] sm:$0xff] }
 0x25b   : > { %v15490_v25 = vadd.f32 %v13074_v40, %v322_v8  ;;  %v13076_v57 = vadd.f32 %v13075_v43, %v13033_v42  ;;  %v13035_v58 = vadd.f32 %v13034_v45, %v12992_v41  ;;  %13343 = vmatpush1.bf16.msra.mxu0 %v17665_v48  ;;  %v1947_v48 = vld [vmem:[%s18790_s11 + $0x3148] sm:$0xff]  ;;  %v17857_v42 = vcombine.low %v2195_v49, %v2203_v32 }
 0x25c   : > { %v13077_v28 = vpop.f32.mrf.mxu1  ;;  %v13036_v11 = vpop.f32.mrf.mxu0  ;;  %13344 = vmatprep.subr.bf16.mxu0 %v17650_v53  ;;  %v17602_v8 = vcombine.high %v1939_v56, %v1947_v48  ;;  %v1931_v53 = vld [vmem:[%s18790_s11 + $0x30c8] sm:$0xff]  ;;  %v17601_v40 = vcombine.low %v1939_v56, %v1947_v48 }
 0x25d   : > { %13386 = vmatpush1.bf16.msra.mxu1 %v17921_v37  ;;  %15522 = vst [vmem:[#allocation2 + $0xb0] sm:$0xff] %v15490_v25  ;;  %v15491_v47 = vadd.f32 %v13076_v57, %v323_v27  ;;  %v13078_v2 = vadd.f32 %v13077_v28, %v13035_v58  ;;  %v13037_v4 = vadd.f32 %v13036_v11, %v12994_v60  ;;  %v1923_v37 = vld [vmem:[%s18790_s11 + $0x3088] sm:$0xff] }
 0x25e   : > { %13387 = vmatprep.subr.bf16.mxu1 %v17906_v39  ;;  %v13079_v5 = vpop.f32.mrf.mxu1  ;;  %v2179_v39 = vld [vmem:[%s18790_s11 + $0x3888] sm:$0xff]  ;;  %v17586_v43 = vcombine.high %v1923_v37, %v1931_v53  ;;  %v17585_v29 = vcombine.low %v1923_v37, %v1931_v53 }
 0x25f   : > { %15523 = vst [vmem:[#allocation2] sm:$0xff] %v15491_v47  ;;  %v15506_v16 = vadd.f32 %v13078_v2, %v338_v1  ;;  %v13080_v17 = vadd.f32 %v13079_v5, %v13037_v4  ;;  %13345 = vmatpush1.bf16.msra.mxu0 %v17649_v24  ;;  %v2187_v41 = vld [vmem:[%s18790_s11 + $0x38c8] sm:$0xff] }
 0x260   : > { %13346 = vmatprep.subr.bf16.mxu0 %v17634_v31  ;;  %v17842_v44 = vcombine.high %v2179_v39, %v2187_v41  ;;  %v1915_v27 = vld [vmem:[%s18790_s11 + $0x3048] sm:$0xff]  ;;  %v17841_v3 = vcombine.low %v2179_v39, %v2187_v41 }
 0x261   : > { %13388 = vmatpush1.bf16.msra.mxu1 %v17905_v15  ;;  %15538 = vst [vmem:[#allocation2 + $0x38] sm:$0xff] %v15506_v16  ;;  %v15507_v19 = vadd.f32 %v13080_v17, %v339_v38  ;;  %v2163_v45 = vld [vmem:[%s18790_s11 + $0x3808] sm:$0xff]  ;;  %v17570_v60 = vcombine.high %v1907_v51, %v1915_v27  ;;  %v17569_v11 = vcombine.low %v1907_v51, %v1915_v27 }
 0x262   : > { %13389 = vmatprep.subr.bf16.mxu1 %v17890_v6  ;;  %v2171_v24 = vld [vmem:[%s18790_s11 + $0x3848] sm:$0xff] }
 0x263   : > { %15539 = vst [vmem:[#allocation2 + $0x58] sm:$0xff] %v15507_v19  ;;  %13347 = vmatpush1.bf16.msra.mxu0 %v17633_v18  ;;  %v17826_v25 = vcombine.high %v2163_v45, %v2171_v24  ;;  %v2147_v57 = vld [vmem:[%s18790_s11 + $0x3788] sm:$0xff]  ;;  %v17825_v15 = vcombine.low %v2163_v45, %v2171_v24 }
 0x264   : > { %13348 = vmatprep.subr.bf16.mxu0 %v17618_v30  ;;  %v2155_v58 = vld [vmem:[%s18790_s11 + $0x37c8] sm:$0xff] }
 0x265   : > { %13390 = vmatpush1.bf16.msra.mxu1 %v17889_v54  ;;  %v2403_v28 = vld [vmem:[%s18790_s11 + $0x3f88] sm:$0xff]  ;;  %v17810_v31 = vcombine.high %v2147_v57, %v2155_v58  ;;  %v17809_v10 = vcombine.low %v2147_v57, %v2155_v58 }
 0x266   : > { %13391 = vmatprep.subr.bf16.mxu1 %v17874_v21  ;;  %v2411_v1 = vld [vmem:[%s18790_s11 + $0x3fc8] sm:$0xff] }
 0x267   : > { %13349 = vmatpush1.bf16.msra.mxu0 %v17617_v52  ;;  %v18066_v47 = vcombine.high %v2403_v28, %v2411_v1  ;;  %v2131_v2 = vld [vmem:[%s18790_s11 + $0x3708] sm:$0xff]  ;;  %v18065_v38 = vcombine.low %v2403_v28, %v2411_v1 }
 0x268   : > { %13350 = vmatprep.subr.bf16.mxu0 %v17602_v8  ;;  %v2139_v4 = vld [vmem:[%s18790_s11 + $0x3748] sm:$0xff] }
 0x269   : > { %13392 = vmatpush1.bf16.msra.mxu1 %v17873_v61  ;;  %v2387_v6 = vld [vmem:[%s18790_s11 + $0x3f08] sm:$0xff]  ;;  %v17794_v5 = vcombine.high %v2131_v2, %v2139_v4  ;;  %v17793_v54 = vcombine.low %v2131_v2, %v2139_v4 }
 0x26a   : > { %13393 = vmatprep.subr.bf16.mxu1 %v17858_v23  ;;  %v18050_v13 = vcombine.high %v2387_v6, %v2395_v7  ;;  %v2115_v14 = vld [vmem:[%s18790_s11 + $0x3688] sm:$0xff]  ;;  %v18049_v30 = vcombine.low %v2387_v6, %v2395_v7 }
 0x26b   : > { %13351 = vmatpush1.bf16.msra.mxu0 %v17601_v40  ;;  %v2123_v16 = vld [vmem:[%s18790_s11 + $0x36c8] sm:$0xff] }
 0x26c   : > { %13352 = vmatprep.subr.bf16.mxu0 %v17586_v43  ;;  %v2371_v17 = vld [vmem:[%s18790_s11 + $0x3e88] sm:$0xff]  ;;  %v17778_v19 = vcombine.high %v2115_v14, %v2123_v16  ;;  %v17777_v52 = vcombine.low %v2115_v14, %v2123_v16  ;;  %v484_v14 = vld [vmem:[%s18790_s11 + $0x390] sm:$0xff] }
 0x26d   : > { %13394 = vmatpush1.bf16.msra.mxu1 %v17857_v42  ;;  %v2379_v18 = vld [vmem:[%s18790_s11 + $0x3ec8] sm:$0xff]  ;;  %v492_v16 = vld [vmem:[%s18790_s11 + $0x3d0] sm:$0xff] }
 0x26e   : > { %13395 = vmatprep.subr.bf16.mxu1 %v17842_v44  ;;  %v18034_v21 = vcombine.high %v2371_v17, %v2379_v18  ;;  %v2099_v56 = vld [vmem:[%s18790_s11 + $0x3608] sm:$0xff]  ;;  %v18033_v61 = vcombine.low %v2371_v17, %v2379_v18  ;;  %v740_v17 = vld [vmem:[%s18790_s11 + $0xb90] sm:$0xff] }
 0x26f   : > { %13353 = vmatpush1.bf16.msra.mxu0 %v17585_v29  ;;  %v2107_v48 = vld [vmem:[%s18790_s11 + $0x3648] sm:$0xff]  ;;  %v748_v18 = vld [vmem:[%s18790_s11 + $0xbd0] sm:$0xff] }
 0x270   : > { %13354 = vmatprep.subr.bf16.mxu0 %v17570_v60  ;;  %v2355_v49 = vld [vmem:[%s18790_s11 + $0x3e08] sm:$0xff]  ;;  %v17762_v8 = vcombine.high %v2099_v56, %v2107_v48  ;;  %v17761_v40 = vcombine.low %v2099_v56, %v2107_v48  ;;  %v468_v56 = vld [vmem:[%s18790_s11 + $0x310] sm:$0xff] }
 0x271   : > { %13396 = vmatpush1.bf16.msra.mxu1 %v17841_v3  ;;  %v2363_v32 = vld [vmem:[%s18790_s11 + $0x3e48] sm:$0xff]  ;;  %v476_v48 = vld [vmem:[%s18790_s11 + $0x350] sm:$0xff] }
 0x272   : > { %13397 = vmatprep.subr.bf16.mxu1 %v17826_v25  ;;  %v18018_v23 = vcombine.high %v2355_v49, %v2363_v32  ;;  %v2083_v37 = vld [vmem:[%s18790_s11 + $0x3588] sm:$0xff]  ;;  %v18017_v42 = vcombine.low %v2355_v49, %v2363_v32  ;;  %v724_v49 = vld [vmem:[%s18790_s11 + $0xb10] sm:$0xff] }
 0x273   : > { %13355 = vmatpush1.bf16.msra.mxu0 %v17569_v11  ;;  %v2091_v53 = vld [vmem:[%s18790_s11 + $0x35c8] sm:$0xff]  ;;  %v732_v32 = vld [vmem:[%s18790_s11 + $0xb50] sm:$0xff] }
 0x274   : > { %13356 = vmatprep.subr.bf16.mxu0 %v17810_v31  ;;  %v2339_v39 = vld [vmem:[%s18790_s11 + $0x3d88] sm:$0xff]  ;;  %v17746_v43 = vcombine.high %v2083_v37, %v2091_v53  ;;  %v17745_v29 = vcombine.low %v2083_v37, %v2091_v53  ;;  %v452_v37 = vld [vmem:[%s18790_s11 + $0x290] sm:$0xff] }
 0x275   : > { %13398 = vmatpush1.bf16.msra.mxu1 %v17825_v15  ;;  %v2347_v41 = vld [vmem:[%s18790_s11 + $0x3dc8] sm:$0xff]  ;;  %v460_v53 = vld [vmem:[%s18790_s11 + $0x2d0] sm:$0xff] }
 0x276   : > { %13399 = vmatprep.subr.bf16.mxu1 %v18066_v47  ;;  %v18002_v44 = vcombine.high %v2339_v39, %v2347_v41  ;;  %v2067_v51 = vld [vmem:[%s18790_s11 + $0x3508] sm:$0xff]  ;;  %v18001_v3 = vcombine.low %v2339_v39, %v2347_v41  ;;  %v708_v39 = vld [vmem:[%s18790_s11 + $0xa90] sm:$0xff] }
 0x277   : > { %13357 = vmatpush2.bf16.msra.mxu0 %v17809_v10  ;;  %v2075_v27 = vld [vmem:[%s18790_s11 + $0x3548] sm:$0xff]  ;;  %v716_v41 = vld [vmem:[%s18790_s11 + $0xad0] sm:$0xff] }
 0x278   : > { %13358 = vmatprep.subr.bf16.mxu0 %v17794_v5  ;;  %v2323_v45 = vld [vmem:[%s18790_s11 + $0x3d08] sm:$0xff]  ;;  %v17730_v60 = vcombine.high %v2067_v51, %v2075_v27  ;;  %v17729_v11 = vcombine.low %v2067_v51, %v2075_v27  ;;  %v436_v51 = vld [vmem:[%s18790_s11 + $0x210] sm:$0xff] }
 0x279   : > { %13400 = vmatpush2.bf16.msra.mxu1 %v18065_v38  ;;  %v2331_v24 = vld [vmem:[%s18790_s11 + $0x3d48] sm:$0xff]  ;;  %v444_v27 = vld [vmem:[%s18790_s11 + $0x250] sm:$0xff] }
 0x27a   : > { %13401 = vmatprep.subr.bf16.mxu1 %v18050_v13  ;;  %v17986_v25 = vcombine.high %v2323_v45, %v2331_v24  ;;  %v2051_v57 = vld [vmem:[%s18790_s11 + $0x3488] sm:$0xff]  ;;  %v17985_v15 = vcombine.low %v2323_v45, %v2331_v24  ;;  %v692_v45 = vld [vmem:[%s18790_s11 + $0xa10] sm:$0xff] }
 0x27b   : > { %13359 = vmatpush2.bf16.msra.mxu0 %v17793_v54  ;;  %v2059_v58 = vld [vmem:[%s18790_s11 + $0x34c8] sm:$0xff]  ;;  %v700_v24 = vld [vmem:[%s18790_s11 + $0xa50] sm:$0xff] }
 0x27c   : > { %13360 = vmatprep.subr.bf16.mxu0 %v17778_v19  ;;  %v2307_v28 = vld [vmem:[%s18790_s11 + $0x3c88] sm:$0xff]  ;;  %v17714_v31 = vcombine.high %v2051_v57, %v2059_v58  ;;  %v17713_v10 = vcombine.low %v2051_v57, %v2059_v58  ;;  %v16148_v19 = vcombine.high %v484_v14, %v492_v16  ;;  %v420_v57 = vld [vmem:[%s18790_s11 + $0x190] sm:$0xff] }
 0x27d   : > { %13402 = vmatpush2.bf16.msra.mxu1 %v18049_v30  ;;  %v2315_v1 = vld [vmem:[%s18790_s11 + $0x3cc8] sm:$0xff]  ;;  %v428_v58 = vld [vmem:[%s18790_s11 + $0x1d0] sm:$0xff] }
 0x27e   : > { %13403 = vmatprep.subr.bf16.mxu1 %v18034_v21  ;;  %v17970_v47 = vcombine.high %v2307_v28, %v2315_v1  ;;  %v2035_v2 = vld [vmem:[%s18790_s11 + $0x3408] sm:$0xff]  ;;  %v17969_v38 = vcombine.low %v2307_v28, %v2315_v1  ;;  %v16404_v21 = vcombine.high %v740_v17, %v748_v18  ;;  %v676_v28 = vld [vmem:[%s18790_s11 + $0x990] sm:$0xff] }
 0x27f   : > { %13361 = vmatpush2.bf16.msra.mxu0 %v17777_v52  ;;  %v2043_v4 = vld [vmem:[%s18790_s11 + $0x3448] sm:$0xff]  ;;  %v16147_v52 = vcombine.low %v484_v14, %v492_v16  ;;  %v684_v1 = vld [vmem:[%s18790_s11 + $0x9d0] sm:$0xff] }
 0x280   : > { %13362 = vmatprep.subr.bf16.mxu0 %v17762_v8  ;;  %v2291_v6 = vld [vmem:[%s18790_s11 + $0x3c08] sm:$0xff]  ;;  %v17698_v5 = vcombine.high %v2035_v2, %v2043_v4  ;;  %v17697_v54 = vcombine.low %v2035_v2, %v2043_v4  ;;  %v16132_v8 = vcombine.high %v468_v56, %v476_v48  ;;  %v404_v2 = vld [vmem:[%s18790_s11 + $0x110] sm:$0xff] }
 0x281   : > { %13404 = vmatpush2.bf16.msra.mxu1 %v18033_v61  ;;  %v2299_v7 = vld [vmem:[%s18790_s11 + $0x3c48] sm:$0xff]  ;;  %v16403_v61 = vcombine.low %v740_v17, %v748_v18  ;;  %v412_v4 = vld [vmem:[%s18790_s11 + $0x150] sm:$0xff] }
 0x282   : > { %13405 = vmatprep.subr.bf16.mxu1 %v18018_v23  ;;  %v17954_v13 = vcombine.high %v2291_v6, %v2299_v7  ;;  %v17953_v30 = vcombine.low %v2291_v6, %v2299_v7  ;;  %v16388_v23 = vcombine.high %v724_v49, %v732_v32  ;;  %v660_v6 = vld [vmem:[%s18790_s11 + $0x910] sm:$0xff] }
 0x283   : > { %13363 = vmatpush2.bf16.msra.mxu0 %v17761_v40  ;;  %v16131_v40 = vcombine.low %v468_v56, %v476_v48  ;;  %v668_v7 = vld [vmem:[%s18790_s11 + $0x950] sm:$0xff] }
 0x284   : > { %13364 = vmatprep.subr.bf16.mxu0 %v17746_v43  ;;  %v16116_v43 = vcombine.high %v452_v37, %v460_v53  ;;  %v388_v14 = vld [vmem:[%s18790_s11 + $0x90] sm:$0xff] }
 0x285   : > { %13406 = vmatpush2.bf16.msra.mxu1 %v18017_v42  ;;  %v16387_v42 = vcombine.low %v724_v49, %v732_v32  ;;  %v396_v16 = vld [vmem:[%s18790_s11 + $0xd0] sm:$0xff] }
 0x286   : > { %13407 = vmatprep.subr.bf16.mxu1 %v18002_v44  ;;  %v16372_v44 = vcombine.high %v708_v39, %v716_v41  ;;  %v644_v17 = vld [vmem:[%s18790_s11 + $0x890] sm:$0xff] }
 0x287   : > { %13365 = vmatpush2.bf16.msra.mxu0 %v17745_v29  ;;  %v16115_v29 = vcombine.low %v452_v37, %v460_v53  ;;  %v652_v18 = vld [vmem:[%s18790_s11 + $0x8d0] sm:$0xff] }
 0x288   : > { %13366 = vmatprep.subr.bf16.mxu0 %v17730_v60  ;;  %v16100_v60 = vcombine.high %v436_v51, %v444_v27  ;;  %v372_v56 = vld [vmem:[%s18790_s11 + $0x10] sm:$0xff] }
 0x289   : > { %13408 = vmatpush2.bf16.msra.mxu1 %v18001_v3  ;;  %v16371_v3 = vcombine.low %v708_v39, %v716_v41  ;;  %v380_v48 = vld [vmem:[%s18790_s11 + $0x50] sm:$0xff] }
 0x28a   : > { %13409 = vmatprep.subr.bf16.mxu1 %v17986_v25  ;;  %v16356_v25 = vcombine.high %v692_v45, %v700_v24  ;;  %v628_v49 = vld [vmem:[%s18790_s11 + $0x810] sm:$0xff] }
 0x28b   : > { %13367 = vmatpush2.bf16.msra.mxu0 %v17729_v11  ;;  %v16099_v11 = vcombine.low %v436_v51, %v444_v27  ;;  %v636_v32 = vld [vmem:[%s18790_s11 + $0x850] sm:$0xff] }
 0x28c   : > { %13368 = vmatprep.subr.bf16.mxu0 %v17714_v31  ;;  %v16084_v31 = vcombine.high %v420_v57, %v428_v58  ;;  %v612_v37 = vld [vmem:[%s18790_s11 + $0x790] sm:$0xff] }
 0x28d   : > { %13410 = vmatpush2.bf16.msra.mxu1 %v17985_v15  ;;  %v16355_v15 = vcombine.low %v692_v45, %v700_v24  ;;  %v620_v53 = vld [vmem:[%s18790_s11 + $0x7d0] sm:$0xff] }
 0x28e   : > { %13411 = vmatprep.subr.bf16.mxu1 %v17970_v47  ;;  %v16340_v47 = vcombine.high %v676_v28, %v684_v1  ;;  %v868_v39 = vld [vmem:[%s18790_s11 + $0xf90] sm:$0xff] }
 0x28f   : > { %13369 = vmatpush2.bf16.msra.mxu0 %v17713_v10  ;;  %v16083_v10 = vcombine.low %v420_v57, %v428_v58  ;;  %v876_v41 = vld [vmem:[%s18790_s11 + $0xfd0] sm:$0xff] }
 0x290   : > { %13370 = vmatprep.subr.bf16.mxu0 %v17698_v5  ;;  %v16068_v5 = vcombine.high %v404_v2, %v412_v4  ;;  %v596_v51 = vld [vmem:[%s18790_s11 + $0x710] sm:$0xff] }
 0x291   : > { %13412 = vmatpush2.bf16.msra.mxu1 %v17969_v38  ;;  %v16339_v38 = vcombine.low %v676_v28, %v684_v1  ;;  %v604_v27 = vld [vmem:[%s18790_s11 + $0x750] sm:$0xff] }
 0x292   : > { %13413 = vmatprep.subr.bf16.mxu1 %v17954_v13  ;;  %v16324_v13 = vcombine.high %v660_v6, %v668_v7  ;;  %v852_v45 = vld [vmem:[%s18790_s11 + $0xf10] sm:$0xff] }
 0x293   : > { %13371 = vmatpush2.bf16.msra.mxu0 %v17697_v54  ;;  %v16067_v54 = vcombine.low %v404_v2, %v412_v4  ;;  %v860_v24 = vld [vmem:[%s18790_s11 + $0xf50] sm:$0xff] }
 0x294   : > { %13426 = vmatprep.subr.bf16.mxu0 %v16148_v19  ;;  %v16052_v19 = vcombine.high %v388_v14, %v396_v16  ;;  %v580_v57 = vld [vmem:[%s18790_s11 + $0x690] sm:$0xff] }
 0x295   : > { %13414 = vmatpush2.bf16.msra.mxu1 %v17953_v30  ;;  %v16323_v30 = vcombine.low %v660_v6, %v668_v7  ;;  %v588_v58 = vld [vmem:[%s18790_s11 + $0x6d0] sm:$0xff] }
 0x296   : > { %13469 = vmatprep.subr.bf16.mxu1 %v16404_v21  ;;  %13373 = vmatmul.mubr.bf16.vlgmr.msra.gmra.mxu0 %v19192_v9  ;;  %v16308_v21 = vcombine.high %v644_v17, %v652_v18  ;;  %v836_v28 = vld [vmem:[%s18790_s11 + $0xe90] sm:$0xff] }
 0x297   : > { %13427 = vmatpush1.bf16.msra.mxu0 %v16147_v52  ;;  %13458 = vmatprep.mubr.bf16.mxu0 %v18848_v59  ;;  %v16051_v52 = vcombine.low %v388_v14, %v396_v16  ;;  %v844_v1 = vld [vmem:[%s18790_s11 + $0xed0] sm:$0xff] }
 0x298   : > { %13416 = vmatmul.mubr.bf16.vlgmr.msra.gmra.mxu1 %v19198_v12  ;;  %13428 = vmatprep.subr.bf16.mxu0 %v16132_v8  ;;  %v16036_v8 = vcombine.high %v372_v56, %v380_v48  ;;  %v564_v2 = vld [vmem:[%s18790_s11 + $0x610] sm:$0xff] }
 0x299   : > { %13470 = vmatpush1.bf16.msra.mxu1 %v16403_v61  ;;  %13501 = vmatprep.mubr.bf16.mxu1 %v18860_v0  ;;  %v16307_v61 = vcombine.low %v644_v17, %v652_v18  ;;  %v572_v4 = vld [vmem:[%s18790_s11 + $0x650] sm:$0xff] }
 0x29a   : > { %13471 = vmatprep.subr.bf16.mxu1 %v16388_v23  ;;  %v16292_v23 = vcombine.high %v628_v49, %v636_v32  ;;  %v820_v6 = vld [vmem:[%s18790_s11 + $0xe10] sm:$0xff] }
 0x29b   : > { %13429 = vmatpush1.bf16.msra.mxu0 %v16131_v40  ;;  %v16035_v40 = vcombine.low %v372_v56, %v380_v48  ;;  %v828_v7 = vld [vmem:[%s18790_s11 + $0xe50] sm:$0xff] }
 0x29c   : > { %13430 = vmatprep.subr.bf16.mxu0 %v16116_v43  ;;  %v16276_v43 = vcombine.high %v612_v37, %v620_v53  ;;  %v548_v14 = vld [vmem:[%s18790_s11 + $0x590] sm:$0xff] }
 0x29d   : > { %13472 = vmatpush1.bf16.msra.mxu1 %v16387_v42  ;;  %v16291_v42 = vcombine.low %v628_v49, %v636_v32  ;;  %v556_v16 = vld [vmem:[%s18790_s11 + $0x5d0] sm:$0xff] }
 0x29e   : > { %13473 = vmatprep.subr.bf16.mxu1 %v16372_v44  ;;  %v16532_v44 = vcombine.high %v868_v39, %v876_v41  ;;  %v804_v17 = vld [vmem:[%s18790_s11 + $0xd90] sm:$0xff] }
 0x29f   : > { %13431 = vmatpush1.bf16.msra.mxu0 %v16115_v29  ;;  %v16275_v29 = vcombine.low %v612_v37, %v620_v53  ;;  %v812_v18 = vld [vmem:[%s18790_s11 + $0xdd0] sm:$0xff] }
 0x2a0   : > { %13432 = vmatprep.subr.bf16.mxu0 %v16100_v60  ;;  %v16260_v60 = vcombine.high %v596_v51, %v604_v27  ;;  %v532_v56 = vld [vmem:[%s18790_s11 + $0x510] sm:$0xff] }
 0x2a1   : > { %13474 = vmatpush1.bf16.msra.mxu1 %v16371_v3  ;;  %v16531_v3 = vcombine.low %v868_v39, %v876_v41  ;;  %v540_v48 = vld [vmem:[%s18790_s11 + $0x550] sm:$0xff] }
 0x2a2   : > { %13475 = vmatprep.subr.bf16.mxu1 %v16356_v25  ;;  %v16516_v25 = vcombine.high %v852_v45, %v860_v24  ;;  %v788_v49 = vld [vmem:[%s18790_s11 + $0xd10] sm:$0xff] }
 0x2a3   : > { %13433 = vmatpush1.bf16.msra.mxu0 %v16099_v11  ;;  %v16259_v11 = vcombine.low %v596_v51, %v604_v27  ;;  %v796_v32 = vld [vmem:[%s18790_s11 + $0xd50] sm:$0xff] }
 0x2a4   : > { %13434 = vmatprep.subr.bf16.mxu0 %v16084_v31  ;;  %v16244_v31 = vcombine.high %v580_v57, %v588_v58  ;;  %v516_v37 = vld [vmem:[%s18790_s11 + $0x490] sm:$0xff] }
 0x2a5   : > { %13476 = vmatpush1.bf16.msra.mxu1 %v16355_v15  ;;  %v16515_v15 = vcombine.low %v852_v45, %v860_v24  ;;  %v524_v53 = vld [vmem:[%s18790_s11 + $0x4d0] sm:$0xff] }
 0x2a6   : > { %13477 = vmatprep.subr.bf16.mxu1 %v16340_v47  ;;  %v16500_v47 = vcombine.high %v836_v28, %v844_v1  ;;  %v772_v39 = vld [vmem:[%s18790_s11 + $0xc90] sm:$0xff] }
 0x2a7   : > { %13435 = vmatpush1.bf16.msra.mxu0 %v16083_v10  ;;  %v16243_v10 = vcombine.low %v580_v57, %v588_v58  ;;  %v780_v41 = vld [vmem:[%s18790_s11 + $0xcd0] sm:$0xff] }
 0x2a8   : > { %13436 = vmatprep.subr.bf16.mxu0 %v16068_v5  ;;  %v16228_v5 = vcombine.high %v564_v2, %v572_v4  ;;  %v500_v51 = vld [vmem:[%s18790_s11 + $0x410] sm:$0xff] }
 0x2a9   : > { %13478 = vmatpush1.bf16.msra.mxu1 %v16339_v38  ;;  %v16499_v38 = vcombine.low %v836_v28, %v844_v1  ;;  %v508_v27 = vld [vmem:[%s18790_s11 + $0x450] sm:$0xff] }
 0x2aa   : > { %13479 = vmatprep.subr.bf16.mxu1 %v16324_v13  ;;  %v16484_v13 = vcombine.high %v820_v6, %v828_v7  ;;  %v756_v45 = vld [vmem:[%s18790_s11 + $0xc10] sm:$0xff] }
 0x2ab   : > { %13437 = vmatpush1.bf16.msra.mxu0 %v16067_v54  ;;  %v16227_v54 = vcombine.low %v564_v2, %v572_v4  ;;  %v764_v24 = vld [vmem:[%s18790_s11 + $0xc50] sm:$0xff] }
 0x2ac   : > { %13438 = vmatprep.subr.bf16.mxu0 %v16052_v19  ;;  %v16212_v19 = vcombine.high %v548_v14, %v556_v16  ;;  %v996_v57 = vld [vmem:[%s18790_s11 + $0x1390] sm:$0xff] }
 0x2ad   : > { %13480 = vmatpush1.bf16.msra.mxu1 %v16323_v30  ;;  %v16483_v30 = vcombine.low %v820_v6, %v828_v7  ;;  %v1004_v58 = vld [vmem:[%s18790_s11 + $0x13d0] sm:$0xff] }
 0x2ae   : > { %13481 = vmatprep.subr.bf16.mxu1 %v16308_v21  ;;  %v16468_v21 = vcombine.high %v804_v17, %v812_v18  ;;  %v1252_v28 = vld [vmem:[%s18790_s11 + $0x1b90] sm:$0xff] }
 0x2af   : > { %13439 = vmatpush1.bf16.msra.mxu0 %v16051_v52  ;;  %v16211_v52 = vcombine.low %v548_v14, %v556_v16  ;;  %v1260_v1 = vld [vmem:[%s18790_s11 + $0x1bd0] sm:$0xff] }
 0x2b0   : > { %13440 = vmatprep.subr.bf16.mxu0 %v16036_v8  ;;  %v16196_v8 = vcombine.high %v532_v56, %v540_v48  ;;  %v980_v2 = vld [vmem:[%s18790_s11 + $0x1310] sm:$0xff] }
 0x2b1   : > { %13482 = vmatpush1.bf16.msra.mxu1 %v16307_v61  ;;  %v16467_v61 = vcombine.low %v804_v17, %v812_v18  ;;  %v988_v4 = vld [vmem:[%s18790_s11 + $0x1350] sm:$0xff] }
 0x2b2   : > { %13483 = vmatprep.subr.bf16.mxu1 %v16292_v23  ;;  %v16452_v23 = vcombine.high %v788_v49, %v796_v32  ;;  %v1236_v6 = vld [vmem:[%s18790_s11 + $0x1b10] sm:$0xff] }
 0x2b3   : > { %13441 = vmatpush1.bf16.msra.mxu0 %v16035_v40  ;;  %v16195_v40 = vcombine.low %v532_v56, %v540_v48  ;;  %v1244_v7 = vld [vmem:[%s18790_s11 + $0x1b50] sm:$0xff] }
 0x2b4   : > { %13442 = vmatprep.subr.bf16.mxu0 %v16276_v43  ;;  %v16180_v43 = vcombine.high %v516_v37, %v524_v53  ;;  %v964_v14 = vld [vmem:[%s18790_s11 + $0x1290] sm:$0xff] }
 0x2b5   : > { %13484 = vmatpush1.bf16.msra.mxu1 %v16291_v42  ;;  %v16451_v42 = vcombine.low %v788_v49, %v796_v32  ;;  %v972_v16 = vld [vmem:[%s18790_s11 + $0x12d0] sm:$0xff] }
 0x2b6   : > { %13485 = vmatprep.subr.bf16.mxu1 %v16532_v44  ;;  %v16436_v44 = vcombine.high %v772_v39, %v780_v41  ;;  %v1220_v17 = vld [vmem:[%s18790_s11 + $0x1a90] sm:$0xff] }
 0x2b7   : > { %13443 = vmatpush2.bf16.msra.mxu0 %v16275_v29  ;;  %v16179_v29 = vcombine.low %v516_v37, %v524_v53  ;;  %v1228_v18 = vld [vmem:[%s18790_s11 + $0x1ad0] sm:$0xff] }
 0x2b8   : > { %13444 = vmatprep.subr.bf16.mxu0 %v16260_v60  ;;  %v16164_v60 = vcombine.high %v500_v51, %v508_v27  ;;  %v948_v56 = vld [vmem:[%s18790_s11 + $0x1210] sm:$0xff] }
 0x2b9   : > { %13486 = vmatpush2.bf16.msra.mxu1 %v16531_v3  ;;  %v16435_v3 = vcombine.low %v772_v39, %v780_v41  ;;  %v956_v48 = vld [vmem:[%s18790_s11 + $0x1250] sm:$0xff] }
 0x2ba   : > { %13487 = vmatprep.subr.bf16.mxu1 %v16516_v25  ;;  %v16420_v25 = vcombine.high %v756_v45, %v764_v24  ;;  %v1204_v49 = vld [vmem:[%s18790_s11 + $0x1a10] sm:$0xff] }
 0x2bb   : > { %13445 = vmatpush2.bf16.msra.mxu0 %v16259_v11  ;;  %v16163_v11 = vcombine.low %v500_v51, %v508_v27  ;;  %v1212_v32 = vld [vmem:[%s18790_s11 + $0x1a50] sm:$0xff] }
 0x2bc   : > { %13446 = vmatprep.subr.bf16.mxu0 %v16244_v31  ;;  %v16660_v31 = vcombine.high %v996_v57, %v1004_v58  ;;  %v932_v37 = vld [vmem:[%s18790_s11 + $0x1190] sm:$0xff] }
 0x2bd   : > { %13488 = vmatpush2.bf16.msra.mxu1 %v16515_v15  ;;  %v16419_v15 = vcombine.low %v756_v45, %v764_v24  ;;  %v940_v53 = vld [vmem:[%s18790_s11 + $0x11d0] sm:$0xff] }
 0x2be   : > { %13489 = vmatprep.subr.bf16.mxu1 %v16500_v47  ;;  %v16916_v47 = vcombine.high %v1252_v28, %v1260_v1  ;;  %v1188_v39 = vld [vmem:[%s18790_s11 + $0x1990] sm:$0xff] }
 0x2bf   : > { %13447 = vmatpush2.bf16.msra.mxu0 %v16243_v10  ;;  %v16659_v10 = vcombine.low %v996_v57, %v1004_v58  ;;  %v1196_v41 = vld [vmem:[%s18790_s11 + $0x19d0] sm:$0xff] }
 0x2c0   : > { %13448 = vmatprep.subr.bf16.mxu0 %v16228_v5  ;;  %v16644_v5 = vcombine.high %v980_v2, %v988_v4  ;;  %v916_v51 = vld [vmem:[%s18790_s11 + $0x1110] sm:$0xff] }
 0x2c1   : > { %13490 = vmatpush2.bf16.msra.mxu1 %v16499_v38  ;;  %v16915_v38 = vcombine.low %v1252_v28, %v1260_v1  ;;  %v924_v27 = vld [vmem:[%s18790_s11 + $0x1150] sm:$0xff] }
 0x2c2   : > { %13491 = vmatprep.subr.bf16.mxu1 %v16484_v13  ;;  %v16900_v13 = vcombine.high %v1236_v6, %v1244_v7  ;;  %v1172_v45 = vld [vmem:[%s18790_s11 + $0x1910] sm:$0xff] }
 0x2c3   : > { %13449 = vmatpush2.bf16.msra.mxu0 %v16227_v54  ;;  %v16643_v54 = vcombine.low %v980_v2, %v988_v4  ;;  %v1180_v24 = vld [vmem:[%s18790_s11 + $0x1950] sm:$0xff] }
 0x2c4   : > { %13450 = vmatprep.subr.bf16.mxu0 %v16212_v19  ;;  %v16628_v19 = vcombine.high %v964_v14, %v972_v16  ;;  %v900_v57 = vld [vmem:[%s18790_s11 + $0x1090] sm:$0xff] }
 0x2c5   : > { %13492 = vmatpush2.bf16.msra.mxu1 %v16483_v30  ;;  %v16899_v30 = vcombine.low %v1236_v6, %v1244_v7  ;;  %v908_v58 = vld [vmem:[%s18790_s11 + $0x10d0] sm:$0xff] }
 0x2c6   : > { %13493 = vmatprep.subr.bf16.mxu1 %v16468_v21  ;;  %v16884_v21 = vcombine.high %v1220_v17, %v1228_v18  ;;  %v1156_v28 = vld [vmem:[%s18790_s11 + $0x1890] sm:$0xff] }
 0x2c7   : > { %13451 = vmatpush2.bf16.msra.mxu0 %v16211_v52  ;;  %v16627_v52 = vcombine.low %v964_v14, %v972_v16  ;;  %v1164_v1 = vld [vmem:[%s18790_s11 + $0x18d0] sm:$0xff] }
 0x2c8   : > { %13452 = vmatprep.subr.bf16.mxu0 %v16196_v8  ;;  %v16612_v8 = vcombine.high %v948_v56, %v956_v48  ;;  %v884_v2 = vld [vmem:[%s18790_s11 + $0x1010] sm:$0xff] }
 0x2c9   : > { %13494 = vmatpush2.bf16.msra.mxu1 %v16467_v61  ;;  %v16883_v61 = vcombine.low %v1220_v17, %v1228_v18  ;;  %v892_v4 = vld [vmem:[%s18790_s11 + $0x1050] sm:$0xff] }
 0x2ca   : > { %13495 = vmatprep.subr.bf16.mxu1 %v16452_v23  ;;  %v16868_v23 = vcombine.high %v1204_v49, %v1212_v32  ;;  %v1140_v6 = vld [vmem:[%s18790_s11 + $0x1810] sm:$0xff] }
 0x2cb   : > { %13453 = vmatpush2.bf16.msra.mxu0 %v16195_v40  ;;  %v16611_v40 = vcombine.low %v948_v56, %v956_v48  ;;  %v1148_v7 = vld [vmem:[%s18790_s11 + $0x1850] sm:$0xff] }
 0x2cc   : > { %13454 = vmatprep.subr.bf16.mxu0 %v16180_v43  ;;  %v16596_v43 = vcombine.high %v932_v37, %v940_v53  ;;  %v1124_v14 = vld [vmem:[%s18790_s11 + $0x1790] sm:$0xff] }
 0x2cd   : > { %13496 = vmatpush2.bf16.msra.mxu1 %v16451_v42  ;;  %v16867_v42 = vcombine.low %v1204_v49, %v1212_v32  ;;  %v1132_v16 = vld [vmem:[%s18790_s11 + $0x17d0] sm:$0xff] }
 0x2ce   : > { %13497 = vmatprep.subr.bf16.mxu1 %v16436_v44  ;;  %v16852_v44 = vcombine.high %v1188_v39, %v1196_v41  ;;  %v1380_v17 = vld [vmem:[%s18790_s11 + $0x1f90] sm:$0xff] }
 0x2cf   : > { %13455 = vmatpush2.bf16.msra.mxu0 %v16179_v29  ;;  %v16595_v29 = vcombine.low %v932_v37, %v940_v53  ;;  %v1388_v18 = vld [vmem:[%s18790_s11 + $0x1fd0] sm:$0xff] }
 0x2d0   : > { %13456 = vmatprep.subr.bf16.mxu0 %v16164_v60  ;;  %v16580_v60 = vcombine.high %v916_v51, %v924_v27  ;;  %v1108_v56 = vld [vmem:[%s18790_s11 + $0x1710] sm:$0xff] }
 0x2d1   : > { %13498 = vmatpush2.bf16.msra.mxu1 %v16435_v3  ;;  %v16851_v3 = vcombine.low %v1188_v39, %v1196_v41  ;;  %v1116_v48 = vld [vmem:[%s18790_s11 + $0x1750] sm:$0xff] }
 0x2d2   : > { %13499 = vmatprep.subr.bf16.mxu1 %v16420_v25  ;;  %v16836_v25 = vcombine.high %v1172_v45, %v1180_v24  ;;  %v1364_v49 = vld [vmem:[%s18790_s11 + $0x1f10] sm:$0xff] }
 0x2d3   : > { %13457 = vmatpush2.bf16.msra.mxu0 %v16163_v11  ;;  %v16579_v11 = vcombine.low %v916_v51, %v924_v27  ;;  %v1372_v32 = vld [vmem:[%s18790_s11 + $0x1f50] sm:$0xff] }
 0x2d4   : > { %13512 = vmatprep.subr.bf16.mxu0 %v16660_v31  ;;  %v16564_v31 = vcombine.high %v900_v57, %v908_v58  ;;  %v1092_v37 = vld [vmem:[%s18790_s11 + $0x1690] sm:$0xff] }
 0x2d5   : > { %13500 = vmatpush2.bf16.msra.mxu1 %v16419_v15  ;;  %v16835_v15 = vcombine.low %v1172_v45, %v1180_v24  ;;  %v1100_v53 = vld [vmem:[%s18790_s11 + $0x16d0] sm:$0xff] }
 0x2d6   : > { %13555 = vmatprep.subr.bf16.mxu1 %v16916_v47  ;;  %13459 = vmatmul.mubr.bf16.vlgmr.msra.gmra.mxu0 %v18905_v22  ;;  %v16820_v47 = vcombine.high %v1156_v28, %v1164_v1  ;;  %v1348_v39 = vld [vmem:[%s18790_s11 + $0x1e90] sm:$0xff] }
 0x2d7   : > { %13513 = vmatpush1.bf16.msra.mxu0 %v16659_v10  ;;  %13544 = vmatprep.mubr.bf16.mxu0 %v18928_v33  ;;  %v16563_v10 = vcombine.low %v900_v57, %v908_v58  ;;  %v1356_v41 = vld [vmem:[%s18790_s11 + $0x1ed0] sm:$0xff] }
 0x2d8   : > { %13502 = vmatmul.mubr.bf16.vlgmr.msra.gmra.mxu1 %v18916_v26  ;;  %13514 = vmatprep.subr.bf16.mxu0 %v16644_v5  ;;  %v16548_v5 = vcombine.high %v884_v2, %v892_v4  ;;  %v1076_v51 = vld [vmem:[%s18790_s11 + $0x1610] sm:$0xff] }
 0x2d9   : > { %13556 = vmatpush1.bf16.msra.mxu1 %v16915_v38  ;;  %13587 = vmatprep.mubr.bf16.mxu1 %v18935_v34  ;;  %v16819_v38 = vcombine.low %v1156_v28, %v1164_v1  ;;  %v1084_v27 = vld [vmem:[%s18790_s11 + $0x1650] sm:$0xff] }
 0x2da   : > { %13557 = vmatprep.subr.bf16.mxu1 %v16900_v13  ;;  %v16804_v13 = vcombine.high %v1140_v6, %v1148_v7  ;;  %v1332_v45 = vld [vmem:[%s18790_s11 + $0x1e10] sm:$0xff] }
 0x2db   : > { %13515 = vmatpush1.bf16.msra.mxu0 %v16643_v54  ;;  %v16547_v54 = vcombine.low %v884_v2, %v892_v4  ;;  %v1340_v24 = vld [vmem:[%s18790_s11 + $0x1e50] sm:$0xff] }
 0x2dc   : > { %13516 = vmatprep.subr.bf16.mxu0 %v16628_v19  ;;  %v16788_v19 = vcombine.high %v1124_v14, %v1132_v16  ;;  %v1060_v57 = vld [vmem:[%s18790_s11 + $0x1590] sm:$0xff] }
 0x2dd   : > { %13558 = vmatpush1.bf16.msra.mxu1 %v16899_v30  ;;  %v16803_v30 = vcombine.low %v1140_v6, %v1148_v7  ;;  %v1068_v58 = vld [vmem:[%s18790_s11 + $0x15d0] sm:$0xff] }
 0x2de   : > { %13559 = vmatprep.subr.bf16.mxu1 %v16884_v21  ;;  %v17044_v21 = vcombine.high %v1380_v17, %v1388_v18  ;;  %v1316_v28 = vld [vmem:[%s18790_s11 + $0x1d90] sm:$0xff] }
 0x2df   : > { %13517 = vmatpush1.bf16.msra.mxu0 %v16627_v52  ;;  %v16787_v52 = vcombine.low %v1124_v14, %v1132_v16  ;;  %v1324_v1 = vld [vmem:[%s18790_s11 + $0x1dd0] sm:$0xff] }
 0x2e0   : > { %13518 = vmatprep.subr.bf16.mxu0 %v16612_v8  ;;  %v16772_v8 = vcombine.high %v1108_v56, %v1116_v48  ;;  %v1044_v2 = vld [vmem:[%s18790_s11 + $0x1510] sm:$0xff] }
 0x2e1   : > { %13560 = vmatpush1.bf16.msra.mxu1 %v16883_v61  ;;  %v17043_v61 = vcombine.low %v1380_v17, %v1388_v18  ;;  %v1052_v4 = vld [vmem:[%s18790_s11 + $0x1550] sm:$0xff] }
 0x2e2   : > { %13561 = vmatprep.subr.bf16.mxu1 %v16868_v23  ;;  %v17028_v23 = vcombine.high %v1364_v49, %v1372_v32  ;;  %v1300_v6 = vld [vmem:[%s18790_s11 + $0x1d10] sm:$0xff] }
 0x2e3   : > { %13519 = vmatpush1.bf16.msra.mxu0 %v16611_v40  ;;  %v16771_v40 = vcombine.low %v1108_v56, %v1116_v48  ;;  %v1308_v7 = vld [vmem:[%s18790_s11 + $0x1d50] sm:$0xff] }
 0x2e4   : > { %13520 = vmatprep.subr.bf16.mxu0 %v16596_v43  ;;  %v16756_v43 = vcombine.high %v1092_v37, %v1100_v53  ;;  %v1028_v14 = vld [vmem:[%s18790_s11 + $0x1490] sm:$0xff] }
 0x2e5   : > { %13562 = vmatpush1.bf16.msra.mxu1 %v16867_v42  ;;  %v17027_v42 = vcombine.low %v1364_v49, %v1372_v32  ;;  %v1036_v16 = vld [vmem:[%s18790_s11 + $0x14d0] sm:$0xff] }
 0x2e6   : > { %13563 = vmatprep.subr.bf16.mxu1 %v16852_v44  ;;  %v17012_v44 = vcombine.high %v1348_v39, %v1356_v41  ;;  %v1284_v17 = vld [vmem:[%s18790_s11 + $0x1c90] sm:$0xff] }
 0x2e7   : > { %13521 = vmatpush1.bf16.msra.mxu0 %v16595_v29  ;;  %v16755_v29 = vcombine.low %v1092_v37, %v1100_v53  ;;  %v1292_v18 = vld [vmem:[%s18790_s11 + $0x1cd0] sm:$0xff] }
 0x2e8   : > { %13522 = vmatprep.subr.bf16.mxu0 %v16580_v60  ;;  %v16740_v60 = vcombine.high %v1076_v51, %v1084_v27  ;;  %v1012_v56 = vld [vmem:[%s18790_s11 + $0x1410] sm:$0xff] }
 0x2e9   : > { %13564 = vmatpush1.bf16.msra.mxu1 %v16851_v3  ;;  %v17011_v3 = vcombine.low %v1348_v39, %v1356_v41  ;;  %v1020_v48 = vld [vmem:[%s18790_s11 + $0x1450] sm:$0xff] }
 0x2ea   : > { %13565 = vmatprep.subr.bf16.mxu1 %v16836_v25  ;;  %v16996_v25 = vcombine.high %v1332_v45, %v1340_v24  ;;  %v1268_v49 = vld [vmem:[%s18790_s11 + $0x1c10] sm:$0xff] }
 0x2eb   : > { %13523 = vmatpush1.bf16.msra.mxu0 %v16579_v11  ;;  %v16739_v11 = vcombine.low %v1076_v51, %v1084_v27  ;;  %v1276_v32 = vld [vmem:[%s18790_s11 + $0x1c50] sm:$0xff] }
 0x2ec   : > { %13524 = vmatprep.subr.bf16.mxu0 %v16564_v31  ;;  %v16724_v31 = vcombine.high %v1060_v57, %v1068_v58  ;;  %v1508_v37 = vld [vmem:[%s18790_s11 + $0x2390] sm:$0xff] }
 0x2ed   : > { %13566 = vmatpush1.bf16.msra.mxu1 %v16835_v15  ;;  %v16995_v15 = vcombine.low %v1332_v45, %v1340_v24  ;;  %v1516_v53 = vld [vmem:[%s18790_s11 + $0x23d0] sm:$0xff] }
 0x2ee   : > { %13567 = vmatprep.subr.bf16.mxu1 %v16820_v47  ;;  %v16980_v47 = vcombine.high %v1316_v28, %v1324_v1  ;;  %v1764_v39 = vld [vmem:[%s18790_s11 + $0x2b90] sm:$0xff] }
 0x2ef   : > { %13525 = vmatpush1.bf16.msra.mxu0 %v16563_v10  ;;  %v16723_v10 = vcombine.low %v1060_v57, %v1068_v58  ;;  %v1772_v41 = vld [vmem:[%s18790_s11 + $0x2bd0] sm:$0xff] }
 0x2f0   : > { %13526 = vmatprep.subr.bf16.mxu0 %v16548_v5  ;;  %v16708_v5 = vcombine.high %v1044_v2, %v1052_v4  ;;  %v1492_v51 = vld [vmem:[%s18790_s11 + $0x2310] sm:$0xff] }
 0x2f1   : > { %13568 = vmatpush1.bf16.msra.mxu1 %v16819_v38  ;;  %v16979_v38 = vcombine.low %v1316_v28, %v1324_v1  ;;  %v1500_v27 = vld [vmem:[%s18790_s11 + $0x2350] sm:$0xff] }
 0x2f2   : > { %13569 = vmatprep.subr.bf16.mxu1 %v16804_v13  ;;  %v16964_v13 = vcombine.high %v1300_v6, %v1308_v7  ;;  %v1748_v45 = vld [vmem:[%s18790_s11 + $0x2b10] sm:$0xff] }
 0x2f3   : > { %13527 = vmatpush1.bf16.msra.mxu0 %v16547_v54  ;;  %v16707_v54 = vcombine.low %v1044_v2, %v1052_v4  ;;  %v1756_v24 = vld [vmem:[%s18790_s11 + $0x2b50] sm:$0xff] }
 0x2f4   : > { %13528 = vmatprep.subr.bf16.mxu0 %v16788_v19  ;;  %v16692_v19 = vcombine.high %v1028_v14, %v1036_v16  ;;  %v1476_v57 = vld [vmem:[%s18790_s11 + $0x2290] sm:$0xff] }
 0x2f5   : > { %13570 = vmatpush1.bf16.msra.mxu1 %v16803_v30  ;;  %v16963_v30 = vcombine.low %v1300_v6, %v1308_v7  ;;  %v1484_v58 = vld [vmem:[%s18790_s11 + $0x22d0] sm:$0xff] }
 0x2f6   : > { %13571 = vmatprep.subr.bf16.mxu1 %v17044_v21  ;;  %v16948_v21 = vcombine.high %v1284_v17, %v1292_v18  ;;  %v1732_v28 = vld [vmem:[%s18790_s11 + $0x2a90] sm:$0xff] }
 0x2f7   : > { %13529 = vmatpush2.bf16.msra.mxu0 %v16787_v52  ;;  %v16691_v52 = vcombine.low %v1028_v14, %v1036_v16  ;;  %v1740_v1 = vld [vmem:[%s18790_s11 + $0x2ad0] sm:$0xff] }
 0x2f8   : > { %13530 = vmatprep.subr.bf16.mxu0 %v16772_v8  ;;  %v16676_v8 = vcombine.high %v1012_v56, %v1020_v48  ;;  %v1460_v2 = vld [vmem:[%s18790_s11 + $0x2210] sm:$0xff] }
 0x2f9   : > { %13572 = vmatpush2.bf16.msra.mxu1 %v17043_v61  ;;  %v16947_v61 = vcombine.low %v1284_v17, %v1292_v18  ;;  %v1468_v4 = vld [vmem:[%s18790_s11 + $0x2250] sm:$0xff] }
 0x2fa   : > { %13573 = vmatprep.subr.bf16.mxu1 %v17028_v23  ;;  %v16932_v23 = vcombine.high %v1268_v49, %v1276_v32  ;;  %v1716_v6 = vld [vmem:[%s18790_s11 + $0x2a10] sm:$0xff] }
 0x2fb   : > { %13531 = vmatpush2.bf16.msra.mxu0 %v16771_v40  ;;  %v16675_v40 = vcombine.low %v1012_v56, %v1020_v48  ;;  %v1724_v7 = vld [vmem:[%s18790_s11 + $0x2a50] sm:$0xff] }
 0x2fc   : > { %13532 = vmatprep.subr.bf16.mxu0 %v16756_v43  ;;  %v17172_v43 = vcombine.high %v1508_v37, %v1516_v53  ;;  %v1444_v14 = vld [vmem:[%s18790_s11 + $0x2190] sm:$0xff] }
 0x2fd   : > { %13574 = vmatpush2.bf16.msra.mxu1 %v17027_v42  ;;  %v16931_v42 = vcombine.low %v1268_v49, %v1276_v32  ;;  %v1452_v16 = vld [vmem:[%s18790_s11 + $0x21d0] sm:$0xff] }
 0x2fe   : > { %13575 = vmatprep.subr.bf16.mxu1 %v17012_v44  ;;  %v17428_v44 = vcombine.high %v1764_v39, %v1772_v41  ;;  %v1700_v17 = vld [vmem:[%s18790_s11 + $0x2990] sm:$0xff] }
 0x2ff   : > { %13533 = vmatpush2.bf16.msra.mxu0 %v16755_v29  ;;  %v17171_v29 = vcombine.low %v1508_v37, %v1516_v53  ;;  %v1708_v18 = vld [vmem:[%s18790_s11 + $0x29d0] sm:$0xff] }
 0x300   : > { %13534 = vmatprep.subr.bf16.mxu0 %v16740_v60  ;;  %v17156_v60 = vcombine.high %v1492_v51, %v1500_v27  ;;  %v1428_v56 = vld [vmem:[%s18790_s11 + $0x2110] sm:$0xff] }
 0x301   : > { %13576 = vmatpush2.bf16.msra.mxu1 %v17011_v3  ;;  %v17427_v3 = vcombine.low %v1764_v39, %v1772_v41  ;;  %v1436_v48 = vld [vmem:[%s18790_s11 + $0x2150] sm:$0xff] }
 0x302   : > { %13577 = vmatprep.subr.bf16.mxu1 %v16996_v25  ;;  %v17412_v25 = vcombine.high %v1748_v45, %v1756_v24  ;;  %v1684_v49 = vld [vmem:[%s18790_s11 + $0x2910] sm:$0xff] }
 0x303   : > { %13535 = vmatpush2.bf16.msra.mxu0 %v16739_v11  ;;  %v17155_v11 = vcombine.low %v1492_v51, %v1500_v27  ;;  %v1692_v32 = vld [vmem:[%s18790_s11 + $0x2950] sm:$0xff] }
 0x304   : > { %13536 = vmatprep.subr.bf16.mxu0 %v16724_v31  ;;  %v17140_v31 = vcombine.high %v1476_v57, %v1484_v58  ;;  %v1412_v37 = vld [vmem:[%s18790_s11 + $0x2090] sm:$0xff] }
 0x305   : > { %13578 = vmatpush2.bf16.msra.mxu1 %v16995_v15  ;;  %v17411_v15 = vcombine.low %v1748_v45, %v1756_v24  ;;  %v1420_v53 = vld [vmem:[%s18790_s11 + $0x20d0] sm:$0xff] }
 0x306   : > { %13579 = vmatprep.subr.bf16.mxu1 %v16980_v47  ;;  %v17396_v47 = vcombine.high %v1732_v28, %v1740_v1  ;;  %v1668_v39 = vld [vmem:[%s18790_s11 + $0x2890] sm:$0xff] }
 0x307   : > { %13537 = vmatpush2.bf16.msra.mxu0 %v16723_v10  ;;  %v17139_v10 = vcombine.low %v1476_v57, %v1484_v58  ;;  %v1676_v41 = vld [vmem:[%s18790_s11 + $0x28d0] sm:$0xff]  ;;  %v19678_v57 = vpop.f32.mrf.mxu1 }
 0x308   : > { %13538 = vmatprep.subr.bf16.mxu0 %v16708_v5  ;;  %v17124_v5 = vcombine.high %v1460_v2, %v1468_v4  ;;  %v1396_v51 = vld [vmem:[%s18790_s11 + $0x2010] sm:$0xff] }
 0x309   : > { %13580 = vmatpush2.bf16.msra.mxu1 %v16979_v38  ;;  %v17395_v38 = vcombine.low %v1732_v28, %v1740_v1  ;;  %v1404_v27 = vld [vmem:[%s18790_s11 + $0x2050] sm:$0xff] }
 0x30a   : > { %13581 = vmatprep.subr.bf16.mxu1 %v16964_v13  ;;  %v17380_v13 = vcombine.high %v1716_v6, %v1724_v7  ;;  %v1652_v45 = vld [vmem:[%s18790_s11 + $0x2810] sm:$0xff] }
 0x30b   : > { %13539 = vmatpush2.bf16.msra.mxu0 %v16707_v54  ;;  %v17123_v54 = vcombine.low %v1460_v2, %v1468_v4  ;;  %v1660_v24 = vld [vmem:[%s18790_s11 + $0x2850] sm:$0xff] }
 0x30c   : > { %13540 = vmatprep.subr.bf16.mxu0 %v16692_v19  ;;  %v17108_v19 = vcombine.high %v1444_v14, %v1452_v16  ;;  %v17316_v58 = vcombine.high %v1652_v45, %v1660_v24  ;;  %v1636_v28 = vld [vmem:[%s18790_s11 + $0x2790] sm:$0xff]  ;;  %v17315_v2 = vcombine.low %v1652_v45, %v1660_v24 }
 0x30d   : > { %13582 = vmatpush2.bf16.msra.mxu1 %v16963_v30  ;;  %v17379_v30 = vcombine.low %v1716_v6, %v1724_v7  ;;  %v1644_v1 = vld [vmem:[%s18790_s11 + $0x27d0] sm:$0xff]  ;;  %v19686_v6 = vpop.f32.mrf.mxu1 }
 0x30e   : > { %13583 = vmatprep.subr.bf16.mxu1 %v16948_v21  ;;  %v17364_v21 = vcombine.high %v1700_v17, %v1708_v18  ;;  %v17300_v4 = vcombine.high %v1636_v28, %v1644_v1  ;;  %v1572_v45 = vld [vmem:[%s18790_s11 + $0x2590] sm:$0xff] }
 0x30f   : > { %13541 = vmatpush2.bf16.msra.mxu0 %v16691_v52  ;;  %v17107_v52 = vcombine.low %v1444_v14, %v1452_v16  ;;  %v17299_v14 = vcombine.low %v1636_v28, %v1644_v1  ;;  %v1580_v24 = vld [vmem:[%s18790_s11 + $0x25d0] sm:$0xff] }
 0x310   : > { %13542 = vmatprep.subr.bf16.mxu0 %v16676_v8  ;;  %v17092_v8 = vcombine.high %v1428_v56, %v1436_v48 }
 0x311   : > { %13584 = vmatpush2.bf16.msra.mxu1 %v16947_v61  ;;  %v17363_v61 = vcombine.low %v1700_v17, %v1708_v18 }
 0x312   : > { %13585 = vmatprep.subr.bf16.mxu1 %v16932_v23  ;;  %v17348_v23 = vcombine.high %v1684_v49, %v1692_v32 }
 0x313   : > { %13543 = vmatpush2.bf16.msra.mxu0 %v16675_v40  ;;  %v17091_v40 = vcombine.low %v1428_v56, %v1436_v48  ;;  %v1860_v56 = vld [vmem:[%s18790_s11 + $0x2e90] sm:$0xff] }
 0x314   : > { %13598 = vmatprep.subr.bf16.mxu0 %v17172_v43  ;;  %v17076_v43 = vcombine.high %v1412_v37, %v1420_v53  ;;  %v1868_v48 = vld [vmem:[%s18790_s11 + $0x2ed0] sm:$0xff] }
 0x315   : > { %13586 = vmatpush2.bf16.msra.mxu1 %v16931_v42  ;;  %v17347_v42 = vcombine.low %v1684_v49, %v1692_v32 }
 0x316   : > { %13641 = vmatprep.subr.bf16.mxu1 %v17428_v44  ;;  %13545 = vmatmul.mubr.bf16.vlgmr.msra.gmra.mxu0 %v19001_v46  ;;  %v17332_v44 = vcombine.high %v1668_v39, %v1676_v41 }
 0x317   : > { %13599 = vmatpush1.bf16.msra.mxu0 %v17171_v29  ;;  %13630 = vmatprep.mubr.bf16.mxu0 %v19024_v62  ;;  %v17075_v29 = vcombine.low %v1412_v37, %v1420_v53  ;;  %v1588_v37 = vld [vmem:[%s18790_s11 + $0x2610] sm:$0xff] }
 0x318   : > { %13588 = vmatmul.mubr.bf16.vlgmr.msra.gmra.mxu1 %v19012_v50  ;;  %13600 = vmatprep.subr.bf16.mxu0 %v17156_v60  ;;  %v17331_v60 = vcombine.low %v1668_v39, %v1676_v41  ;;  %v1596_v53 = vld [vmem:[%s18790_s11 + $0x2650] sm:$0xff] }
 0x319   : > { %13642 = vmatpush1.bf16.msra.mxu1 %v17427_v3  ;;  %13673 = vmatprep.mubr.bf16.mxu1 %v19031_v63  ;;  %v19676_v3 = vpop.f32.mrf.mxu0  ;;  %v1844_v41 = vld [vmem:[%s18790_s11 + $0x2e10] sm:$0xff]  ;;  %v17251_v28 = vcombine.low %v1588_v37, %v1596_v53 }
 0x31a   : > { %13643 = vmatprep.subr.bf16.mxu1 %v17412_v25  ;;  %v17060_v25 = vcombine.high %v1396_v51, %v1404_v27 }
 0x31b   : > { %13601 = vmatpush1.bf16.msra.mxu0 %v17155_v11  ;;  %v1892_v11 = vld [vmem:[%s18790_s11 + $0x2f90] sm:$0xff] }
 0x31c   : > { %13602 = vmatprep.subr.bf16.mxu0 %v17140_v31  ;;  %v17059_v31 = vcombine.low %v1396_v51, %v1404_v27  ;;  %v17252_v51 = vcombine.high %v1588_v37, %v1596_v53  ;;  %v13160_v37 = vadd.f32 %v19678_v57, %v19676_v3 }
 0x31d   : > { %13644 = vmatpush1.bf16.msra.mxu1 %v17411_v15  ;;  %v1900_v15 = vld [vmem:[%s18790_s11 + $0x2fd0] sm:$0xff] }
 0x31e   : > { %13645 = vmatprep.subr.bf16.mxu1 %v17396_v47  ;;  %v19684_v47 = vpop.f32.mrf.mxu0  ;;  %v17556_v7 = vcombine.high %v1892_v11, %v1900_v15  ;;  %v17555_v17 = vcombine.low %v1892_v11, %v1900_v15  ;;  %v17236_v11 = vcombine.high %v1572_v45, %v1580_v24 }
 0x31f   : > { %13603 = vmatpush1.bf16.msra.mxu0 %v17139_v10  ;;  %v1620_v10 = vld [vmem:[%s18790_s11 + $0x2710] sm:$0xff] }
 0x320   : > { %13604 = vmatprep.subr.bf16.mxu0 %v17124_v5  ;;  %v1876_v5 = vld [vmem:[%s18790_s11 + $0x2f10] sm:$0xff]  ;;  %v19692_v16 = vpop.f32.mrf.mxu0 }
 0x321   : > { %13646 = vmatpush1.bf16.msra.mxu1 %v17395_v38  ;;  %v1628_v38 = vld [vmem:[%s18790_s11 + $0x2750] sm:$0xff] }
 0x322   : > { %13647 = vmatprep.subr.bf16.mxu1 %v17380_v13  ;;  %v1884_v13 = vld [vmem:[%s18790_s11 + $0x2f50] sm:$0xff]  ;;  %v17284_v18 = vcombine.high %v1620_v10, %v1628_v38  ;;  %v17283_v49 = vcombine.low %v1620_v10, %v1628_v38  ;;  %v19700_v32 = vpop.f32.mrf.mxu0 }
 0x323   : > { %13605 = vmatpush1.bf16.msra.mxu0 %v17123_v54  ;;  %v19694_v54 = vpop.f32.mrf.mxu1  ;;  %v1820_v10 = vld [vmem:[%s18790_s11 + $0x2d50] sm:$0xff] }
 0x324   : > { %13606 = vmatprep.subr.bf16.mxu0 %v17108_v19  ;;  %v1604_v19 = vld [vmem:[%s18790_s11 + $0x2690] sm:$0xff]  ;;  %v13202_v39 = vpop.f32.mrf.mxu0 }
 0x325   : > { %13648 = vmatpush1.bf16.msra.mxu1 %v17379_v30  ;;  %v17540_v30 = vcombine.high %v1876_v5, %v1884_v13 }
 0x326   : > { %13649 = vmatprep.subr.bf16.mxu1 %v17364_v21  ;;  %v1612_v21 = vld [vmem:[%s18790_s11 + $0x26d0] sm:$0xff] }
 0x327   : > { %13607 = vmatpush1.bf16.msra.mxu0 %v17107_v52  ;;  %v17539_v52 = vcombine.low %v1876_v5, %v1884_v13  ;;  %v17235_v5 = vcombine.low %v1572_v45, %v1580_v24  ;;  %v13203_v45 = vadd.f32 %v13202_v39, %v13160_v37 }
 0x328   : > { %13608 = vmatprep.subr.bf16.mxu0 %v17092_v8  ;;  %v19702_v8 = vpop.f32.mrf.mxu1 }
 0x329   : > { %13650 = vmatpush1.bf16.msra.mxu1 %v17363_v61  ;;  %v17268_v61 = vcombine.high %v1604_v19, %v1612_v21  ;;  %v13166_v39 = vadd.f32 %v19702_v8, %v19700_v32  ;;  %v2004_v8 = vld [vmem:[%s18790_s11 + $0x3310] sm:$0xff] }
 0x32a   : > { %13651 = vmatprep.subr.bf16.mxu1 %v17348_v23  ;;  %v17524_v23 = vcombine.high %v1860_v56, %v1868_v48 }
 0x32b   : > { %13609 = vmatpush1.bf16.msra.mxu0 %v17091_v40  ;;  %v1852_v40 = vld [vmem:[%s18790_s11 + $0x2e50] sm:$0xff] }
 0x32c   : > { %13610 = vmatprep.subr.bf16.mxu0 %v17076_v43  ;;  %v17267_v43 = vcombine.low %v1604_v19, %v1612_v21  ;;  %v17508_v27 = vcombine.high %v1844_v41, %v1852_v40  ;;  %v17507_v1 = vcombine.low %v1844_v41, %v1852_v40  ;;  %v1796_v21 = vld [vmem:[%s18790_s11 + $0x2c90] sm:$0xff] }
 0x32d   : > { %13652 = vmatpush1.bf16.msra.mxu1 %v17347_v42  ;;  %v19708_v42 = vpop.f32.mrf.mxu1  ;;  %v1524_v40 = vld [vmem:[%s18790_s11 + $0x2410] sm:$0xff] }
 0x32e   : > { %13653 = vmatprep.subr.bf16.mxu1 %v17332_v44  ;;  %v17523_v44 = vcombine.low %v1860_v56, %v1868_v48  ;;  %v1804_v56 = vld [vmem:[%s18790_s11 + $0x2cd0] sm:$0xff] }
 0x32f   : > { %13611 = vmatpush1.bf16.msra.mxu0 %v17075_v29  ;;  %v13204_v29 = vpop.f32.mrf.mxu0  ;;  %v17460_v41 = vcombine.high %v1796_v21, %v1804_v56  ;;  %v17459_v3 = vcombine.low %v1796_v21, %v1804_v56 }
 0x330   : > { %13612 = vmatprep.subr.bf16.mxu0 %v17060_v25  ;;  %v1836_v25 = vld [vmem:[%s18790_s11 + $0x2dd0] sm:$0xff] }
 0x331   : > { %13654 = vmatpush1.bf16.msra.mxu1 %v17331_v60  ;;  %v1828_v60 = vld [vmem:[%s18790_s11 + $0x2d90] sm:$0xff] }
 0x332   : > { %13655 = vmatprep.subr.bf16.mxu1 %v17316_v58  ;;  %v19714_v58 = vpop.f32.mrf.mxu1  ;;  %v17492_v15 = vcombine.high %v1828_v60, %v1836_v25  ;;  %v17491_v13 = vcombine.low %v1828_v60, %v1836_v25  ;;  %v13164_v25 = vadd.f32 %v19694_v54, %v19692_v16 }
 0x333   : > { %13613 = vmatpush1.bf16.msra.mxu0 %v17059_v31  ;;  %v1556_v31 = vld [vmem:[%s18790_s11 + $0x2510] sm:$0xff] }
 0x334   : > { %13614 = vmatprep.subr.bf16.mxu0 %v17300_v4  ;;  %v13206_v4 = vpop.f32.mrf.mxu0  ;;  %v19720_v38 = vpop.f32.mrf.mxu1 }
 0x335   : > { %13656 = vmatpush1.bf16.msra.mxu1 %v17315_v2  ;;  %v1564_v2 = vld [vmem:[%s18790_s11 + $0x2550] sm:$0xff] }
 0x336   : > { %13657 = vmatprep.subr.bf16.mxu1 %v17556_v7  ;;  %v1812_v7 = vld [vmem:[%s18790_s11 + $0x2d10] sm:$0xff]  ;;  %v13208_v19 = vpop.f32.mrf.mxu0  ;;  %v19726_v48 = vpop.f32.mrf.mxu1 }
 0x337   : > { %13615 = vmatpush2.bf16.msra.mxu0 %v17299_v14  ;;  %v17220_v14 = vcombine.high %v1556_v31, %v1564_v2 }
 0x338   : > { %13616 = vmatprep.subr.bf16.mxu0 %v17284_v18  ;;  %v1540_v18 = vld [vmem:[%s18790_s11 + $0x2490] sm:$0xff]  ;;  %v13331_v53 = vpop.f32.mrf.mxu1 }
 0x339   : > { %13658 = vmatpush2.bf16.msra.mxu1 %v17555_v17  ;;  %v17476_v17 = vcombine.high %v1812_v7, %v1820_v10 }
 0x33a   : > { %13659 = vmatprep.subr.bf16.mxu1 %v17540_v30  ;;  %v1548_v30 = vld [vmem:[%s18790_s11 + $0x24d0] sm:$0xff] }
 0x33b   : > { %13617 = vmatpush2.bf16.msra.mxu0 %v17283_v49  ;;  %v17219_v49 = vcombine.low %v1556_v31, %v1564_v2  ;;  %v17203_v24 = vcombine.low %v1540_v18, %v1548_v30  ;;  %v2028_v31 = vld [vmem:[%s18790_s11 + $0x33d0] sm:$0xff]  ;;  %v13246_v2 = vadd.f32 %v19708_v42, %v13203_v45 }
 0x33c   : > { %13618 = vmatprep.subr.bf16.mxu0 %v17268_v61  ;;  %v17475_v61 = vcombine.low %v1812_v7, %v1820_v10  ;;  %v13207_v7 = vadd.f32 %v13206_v4, %v13164_v25  ;;  %v2012_v42 = vld [vmem:[%s18790_s11 + $0x3350] sm:$0xff] }
 0x33d   : > { %13660 = vmatpush2.bf16.msra.mxu1 %v17539_v52  ;;  %v13288_v52 = vpop.f32.mrf.mxu0  ;;  %v2260_v4 = vld [vmem:[%s18790_s11 + $0x3b10] sm:$0xff] }
 0x33e   : > { %13661 = vmatprep.subr.bf16.mxu1 %v17524_v23  ;;  %v17204_v23 = vcombine.high %v1540_v18, %v1548_v30  ;;  %v2268_v18 = vld [vmem:[%s18790_s11 + $0x3b50] sm:$0xff]  ;;  %v13250_v30 = vadd.f32 %v19720_v38, %v13207_v7 }
 0x33f   : > { %13619 = vmatpush2.bf16.msra.mxu0 %v17267_v43  ;;  %v1532_v43 = vld [vmem:[%s18790_s11 + $0x2450] sm:$0xff]  ;;  %v13290_v60 = vpop.f32.mrf.mxu0  ;;  %v17924_v38 = vcombine.high %v2260_v4, %v2268_v18 }
 0x340   : > { %13620 = vmatprep.subr.bf16.mxu0 %v17252_v51  ;;  %v1788_v51 = vld [vmem:[%s18790_s11 + $0x2c50] sm:$0xff]  ;;  %v17188_v57 = vcombine.high %v1524_v40, %v1532_v43  ;;  %v17187_v16 = vcombine.low %v1524_v40, %v1532_v43 }
 0x341   : > { %13662 = vmatpush2.bf16.msra.mxu1 %v17523_v44  ;;  %v1780_v44 = vld [vmem:[%s18790_s11 + $0x2c10] sm:$0xff]  ;;  %v13292_v54 = vpop.f32.mrf.mxu0 }
 0x342   : > { %13663 = vmatprep.subr.bf16.mxu1 %v17508_v27  ;;  %v13162_v27 = vadd.f32 %v19686_v6, %v19684_v47  ;;  %v2276_v47 = vld [vmem:[%s18790_s11 + $0x3b90] sm:$0xff]  ;;  %v13293_v37 = vadd.f32 %v13292_v54, %v13250_v30 }
 0x343   : > { %13621 = vmatpush2.bf16.msra.mxu0 %v17251_v28  ;;  %v2284_v6 = vld [vmem:[%s18790_s11 + $0x3bd0] sm:$0xff] }
 0x344   : > { %13622 = vmatprep.subr.bf16.mxu0 %v17236_v11  ;;  %v13205_v28 = vadd.f32 %v13204_v29, %v13162_v27  ;;  %v17444_v11 = vcombine.high %v1780_v44, %v1788_v51  ;;  %v17443_v29 = vcombine.low %v1780_v44, %v1788_v51  ;;  %v17940_v32 = vcombine.high %v2276_v47, %v2284_v6  ;;  %v1996_v40 = vld [vmem:[%s18790_s11 + $0x32d0] sm:$0xff] }
 0x345   : > { %13664 = vmatpush2.bf16.msra.mxu1 %v17507_v1  ;;  %v13333_v1 = vpop.f32.mrf.mxu1  ;;  %v2244_v43 = vld [vmem:[%s18790_s11 + $0x3a90] sm:$0xff]  ;;  %v17667_v27 = vcombine.low %v2004_v8, %v2012_v42 }
 0x346   : > { %13665 = vmatprep.subr.bf16.mxu1 %v17492_v15  ;;  %v2020_v15 = vld [vmem:[%s18790_s11 + $0x3390] sm:$0xff] }
 0x347   : > { %13623 = vmatpush2.bf16.msra.mxu0 %v17235_v5  ;;  %v17684_v10 = vcombine.high %v2020_v15, %v2028_v31  ;;  %v13248_v5 = vadd.f32 %v19714_v58, %v13205_v28  ;;  %v17683_v56 = vcombine.low %v2020_v15, %v2028_v31  ;;  %v17939_v58 = vcombine.low %v2276_v47, %v2284_v6  ;;  %v2252_v44 = vld [vmem:[%s18790_s11 + $0x3ad0] sm:$0xff] }
 0x348   : > { %13624 = vmatprep.subr.bf16.mxu0 %v17220_v14  ;;  %v13289_v14 = vadd.f32 %v13288_v52, %v13246_v2  ;;  %v19752_v52 = vld [vmem:[%s18790_s11 + $0x3290] sm:$0xff]  ;;  %v17908_v28 = vcombine.high %v2244_v43, %v2252_v44 }
 0x349   : > { %13666 = vmatpush2.bf16.msra.mxu1 %v17491_v13  ;;  %v13209_v13 = vadd.f32 %v13208_v19, %v13166_v39  ;;  %v13291_v21 = vadd.f32 %v13290_v60, %v13248_v5  ;;  %v17668_v19 = vcombine.high %v2004_v8, %v2012_v42  ;;  %v17652_v25 = vcombine.high %v19752_v52, %v1996_v40  ;;  %v1972_v47 = vld [vmem:[%s18790_s11 + $0x3210] sm:$0xff]  ;;  %v325_v39 = vld [vmem:[#allocation2 + $0x18] sm:$0xff] }
 0x34a   : > { %13667 = vmatprep.subr.bf16.mxu1 %v17476_v17  ;;  %v13335_v17 = vpop.f32.mrf.mxu1  ;;  %v1980_v6 = vld [vmem:[%s18790_s11 + $0x3250] sm:$0xff]  ;;  %v17651_v7 = vcombine.low %v19752_v52, %v1996_v40  ;;  %v17907_v8 = vcombine.low %v2244_v43, %v2252_v44 }
 0x34b   : > { %13625 = vmatpush2.bf16.msra.mxu0 %v17219_v49  ;;  %v13294_v49 = vpop.f32.mrf.mxu0  ;;  %v13334_v45 = vadd.f32 %v13333_v1, %v13291_v21  ;;  %v2236_v54 = vld [vmem:[%s18790_s11 + $0x3a50] sm:$0xff]  ;;  %v17636_v42 = vcombine.high %v1972_v47, %v1980_v6 }
 0x34c   : > { %13626 = vmatprep.subr.bf16.mxu0 %v17204_v23  ;;  %v13332_v23 = vadd.f32 %v13331_v53, %v13289_v14  ;;  %v2212_v52 = vld [vmem:[%s18790_s11 + $0x3990] sm:$0xff] }
 0x34d   : > { %13668 = vmatpush2.bf16.msra.mxu1 %v17475_v61  ;;  %v13252_v61 = vadd.f32 %v19726_v48, %v13209_v13  ;;  %v324_v48 = vld [vmem:[#allocation2 + $0xd8] sm:$0xff] }
 0x34e   : > { %13669 = vmatprep.subr.bf16.mxu1 %v17460_v41  ;;  %v13337_v41 = vpop.f32.mrf.mxu1 }
 0x34f   : > { %13627 = vmatpush2.bf16.msra.mxu0 %v17203_v24  ;;  %v13295_v24 = vadd.f32 %v13294_v49, %v13252_v61  ;;  %v1964_v49 = vld [vmem:[%s18790_s11 + $0x31d0] sm:$0xff] }
 0x350   : > { %13628 = vmatprep.subr.bf16.mxu0 %v17188_v57  ;;  %v17923_v57 = vcombine.low %v2260_v4, %v2268_v18  ;;  %v2220_v61 = vld [vmem:[%s18790_s11 + $0x39d0] sm:$0xff] }
 0x351   : > { %13670 = vmatpush2.bf16.msra.mxu1 %v17459_v3  ;;  %v17876_v44 = vcombine.high %v2212_v52, %v2220_v61 }
 0x352   : > { %13671 = vmatprep.subr.bf16.mxu1 %v17444_v11  ;;  %v13336_v11 = vadd.f32 %v13335_v17, %v13293_v37  ;;  %v340_v17 = vld [vmem:[#allocation2 + $0x40] sm:$0xff] }
 0x353   : > { %13629 = vmatpush2.bf16.msra.mxu0 %v17187_v16  ;;  %v2228_v16 = vld [vmem:[%s18790_s11 + $0x3a10] sm:$0xff] }
 0x354   : > { %13684 = vmatprep.subr.bf16.mxu0 %v17684_v10  ;;  %v17892_v21 = vcombine.high %v2228_v16, %v2236_v54 }
 0x355   : > { %13672 = vmatpush2.bf16.msra.mxu1 %v17443_v29  ;;  %v13338_v29 = vadd.f32 %v13337_v41, %v13295_v24  ;;  %v17635_v41 = vcombine.low %v1972_v47, %v1980_v6  ;;  %v2204_v24 = vld [vmem:[%s18790_s11 + $0x3950] sm:$0xff] }
 0x356   : > { %13727 = vmatprep.subr.bf16.mxu1 %v17940_v32  ;;  %v13374_v51 = vpop.f32.mrf.mxu0  ;;  %13631 = vmatmul.mubr.bf16.vlgmr.msra.gmra.mxu0 %v19097_v20  ;;  %v1908_v6 = vld [vmem:[%s18790_s11 + $0x3010] sm:$0xff] }
 0x357   : > { %v13375_v60 = vadd.f32 %v13374_v51, %v13332_v23  ;;  %13685 = vmatpush1.bf16.msra.mxu0 %v17683_v56  ;;  %13716 = vmatprep.mubr.bf16.mxu0 %v19120_v35  ;;  %v1956_v56 = vld [vmem:[%s18790_s11 + $0x3190] sm:$0xff] }
 0x358   : > { %v13417_v3 = vpop.f32.mrf.mxu1  ;;  %13674 = vmatmul.mubr.bf16.vlgmr.msra.gmra.mxu1 %v19108_v55  ;;  %v13376_v53 = vpop.f32.mrf.mxu0  ;;  %13686 = vmatprep.subr.bf16.mxu0 %v17668_v19  ;;  %v17620_v40 = vcombine.high %v1956_v56, %v1964_v49  ;;  %v1940_v51 = vld [vmem:[%s18790_s11 + $0x3110] sm:$0xff] }
 0x359   : > { %13728 = vmatpush1.bf16.msra.mxu1 %v17939_v58  ;;  %v13418_v1 = vadd.f32 %v13417_v3, %v13375_v60  ;;  %v13377_v15 = vadd.f32 %v13376_v53, %v13334_v45  ;;  %13759 = vmatprep.mubr.bf16.mxu1 %v19127_v36  ;;  %v341_v58 = vld [vmem:[#allocation2 + $0xc8] sm:$0xff]  ;;  %v2196_v45 = vld [vmem:[%s18790_s11 + $0x3910] sm:$0xff]  ;;  %v17619_v60 = vcombine.low %v1956_v56, %v1964_v49 }
 0x35a   : > { %v13419_v31 = vpop.f32.mrf.mxu1  ;;  %13729 = vmatprep.subr.bf16.mxu1 %v17924_v38  ;;  %v13378_v2 = vpop.f32.mrf.mxu0  ;;  %v17891_v38 = vcombine.low %v2228_v16, %v2236_v54  ;;  %v17875_v3 = vcombine.low %v2212_v52, %v2220_v61  ;;  %v17860_v53 = vcombine.high %v2196_v45, %v2204_v24  ;;  %v2396_v56 = vld [vmem:[%s18790_s11 + $0x3f50] sm:$0xff] }
 0x35b   : > { %v15492_v10 = vadd.f32 %v13418_v1, %v324_v48  ;;  %v13420_v5 = vadd.f32 %v13419_v31, %v13377_v15  ;;  %v13379_v13 = vadd.f32 %v13378_v2, %v13336_v11  ;;  %13687 = vmatpush1.bf16.msra.mxu0 %v17667_v27  ;;  %v1948_v27 = vld [vmem:[%s18790_s11 + $0x3150] sm:$0xff]  ;;  %v17859_v15 = vcombine.low %v2196_v45, %v2204_v24 }
 0x35c   : > { %v13421_v14 = vpop.f32.mrf.mxu1  ;;  %v13380_v32 = vpop.f32.mrf.mxu0  ;;  %13688 = vmatprep.subr.bf16.mxu0 %v17652_v25  ;;  %v17604_v48 = vcombine.high %v1940_v51, %v1948_v27  ;;  %v1932_v25 = vld [vmem:[%s18790_s11 + $0x30d0] sm:$0xff]  ;;  %v17603_v1 = vcombine.low %v1940_v51, %v1948_v27 }
 0x35d   : > { %13730 = vmatpush1.bf16.msra.mxu1 %v17923_v57  ;;  %15524 = vst [vmem:[#allocation2 + $0xd8] sm:$0xff] %v15492_v10  ;;  %v15493_v4 = vadd.f32 %v13420_v5, %v325_v39  ;;  %v13422_v18 = vadd.f32 %v13421_v14, %v13379_v13  ;;  %v13381_v30 = vadd.f32 %v13380_v32, %v13338_v29  ;;  %v1924_v57 = vld [vmem:[%s18790_s11 + $0x3090] sm:$0xff] }
 0x35e   : > { %13731 = vmatprep.subr.bf16.mxu1 %v17908_v28  ;;  %v13423_v19 = vpop.f32.mrf.mxu1  ;;  %v2180_v28 = vld [vmem:[%s18790_s11 + $0x3890] sm:$0xff]  ;;  %v17588_v31 = vcombine.high %v1924_v57, %v1932_v25  ;;  %v17587_v16 = vcombine.low %v1924_v57, %v1932_v25 }
 0x35f   : > { %15525 = vst [vmem:[#allocation2 + $0x18] sm:$0xff] %v15493_v4  ;;  %v15508_v23 = vadd.f32 %v13422_v18, %v340_v17  ;;  %v13424_v37 = vadd.f32 %v13423_v19, %v13381_v30  ;;  %13689 = vmatpush1.bf16.msra.mxu0 %v17651_v7  ;;  %v2188_v11 = vld [vmem:[%s18790_s11 + $0x38d0] sm:$0xff] }
 0x360   : > { %13690 = vmatprep.subr.bf16.mxu0 %v17636_v42  ;;  %v17844_v47 = vcombine.high %v2180_v28, %v2188_v11  ;;  %v1916_v39 = vld [vmem:[%s18790_s11 + $0x3050] sm:$0xff]  ;;  %v17843_v54 = vcombine.low %v2180_v28, %v2188_v11 }
 0x361   : > { %13732 = vmatpush1.bf16.msra.mxu1 %v17907_v8  ;;  %15540 = vst [vmem:[#allocation2 + $0x40] sm:$0xff] %v15508_v23  ;;  %v15509_v43 = vadd.f32 %v13424_v37, %v341_v58  ;;  %v2164_v2 = vld [vmem:[%s18790_s11 + $0x3810] sm:$0xff]  ;;  %v17572_v29 = vcombine.high %v1908_v6, %v1916_v39  ;;  %v17571_v32 = vcombine.low %v1908_v6, %v1916_v39 }
 0x362   : > { %13733 = vmatprep.subr.bf16.mxu1 %v17892_v21  ;;  %v2172_v7 = vld [vmem:[%s18790_s11 + $0x3850] sm:$0xff] }
 0x363   : > { %15541 = vst [vmem:[#allocation2 + $0xc8] sm:$0xff] %v15509_v43  ;;  %13691 = vmatpush1.bf16.msra.mxu0 %v17635_v41  ;;  %v17828_v10 = vcombine.high %v2164_v2, %v2172_v7  ;;  %v2148_v5 = vld [vmem:[%s18790_s11 + $0x3790] sm:$0xff]  ;;  %v17827_v8 = vcombine.low %v2164_v2, %v2172_v7 }
 0x364   : > { %13692 = vmatprep.subr.bf16.mxu0 %v17620_v40  ;;  %v2156_v13 = vld [vmem:[%s18790_s11 + $0x37d0] sm:$0xff] }
 0x365   : > { %13734 = vmatpush1.bf16.msra.mxu1 %v17891_v38  ;;  %v2404_v14 = vld [vmem:[%s18790_s11 + $0x3f90] sm:$0xff]  ;;  %v17812_v42 = vcombine.high %v2148_v5, %v2156_v13  ;;  %v17811_v49 = vcombine.low %v2148_v5, %v2156_v13 }
 0x366   : > { %13735 = vmatprep.subr.bf16.mxu1 %v17876_v44  ;;  %v2412_v17 = vld [vmem:[%s18790_s11 + $0x3fd0] sm:$0xff] }
 0x367   : > { %13693 = vmatpush1.bf16.msra.mxu0 %v17619_v60  ;;  %v18068_v4 = vcombine.high %v2404_v14, %v2412_v17  ;;  %v2132_v18 = vld [vmem:[%s18790_s11 + $0x3710] sm:$0xff]  ;;  %v18067_v58 = vcombine.low %v2404_v14, %v2412_v17 }
 0x368   : > { %13694 = vmatprep.subr.bf16.mxu0 %v17604_v48  ;;  %v2140_v30 = vld [vmem:[%s18790_s11 + $0x3750] sm:$0xff] }
 0x369   : > { %13736 = vmatpush1.bf16.msra.mxu1 %v17875_v3  ;;  %v2388_v21 = vld [vmem:[%s18790_s11 + $0x3f10] sm:$0xff]  ;;  %v17796_v19 = vcombine.high %v2132_v18, %v2140_v30  ;;  %v17795_v38 = vcombine.low %v2132_v18, %v2140_v30 }
 0x36a   : > { %13737 = vmatprep.subr.bf16.mxu1 %v17860_v53  ;;  %v18052_v52 = vcombine.high %v2388_v21, %v2396_v56  ;;  %v2116_v61 = vld [vmem:[%s18790_s11 + $0x3690] sm:$0xff]  ;;  %v18051_v40 = vcombine.low %v2388_v21, %v2396_v56 }
 0x36b   : > { %13695 = vmatpush1.bf16.msra.mxu0 %v17603_v1  ;;  %v2124_v23 = vld [vmem:[%s18790_s11 + $0x36d0] sm:$0xff] }
 0x36c   : > { %13696 = vmatprep.subr.bf16.mxu0 %v17588_v31  ;;  %v2372_v37 = vld [vmem:[%s18790_s11 + $0x3e90] sm:$0xff]  ;;  %v17780_v43 = vcombine.high %v2116_v61, %v2124_v23  ;;  %v17779_v60 = vcombine.low %v2116_v61, %v2124_v23  ;;  %v485_v61 = vld [vmem:[%s18790_s11 + $0x398] sm:$0xff] }
 0x36d   : > { %13738 = vmatpush1.bf16.msra.mxu1 %v17859_v15  ;;  %v2380_v41 = vld [vmem:[%s18790_s11 + $0x3ed0] sm:$0xff]  ;;  %v493_v23 = vld [vmem:[%s18790_s11 + $0x3d8] sm:$0xff] }
 0x36e   : > { %13739 = vmatprep.subr.bf16.mxu1 %v17844_v47  ;;  %v18036_v44 = vcombine.high %v2372_v37, %v2380_v41  ;;  %v2100_v51 = vld [vmem:[%s18790_s11 + $0x3610] sm:$0xff]  ;;  %v18035_v3 = vcombine.low %v2372_v37, %v2380_v41  ;;  %v741_v37 = vld [vmem:[%s18790_s11 + $0xb98] sm:$0xff] }
 0x36f   : > { %13697 = vmatpush1.bf16.msra.mxu0 %v17587_v16  ;;  %v2108_v27 = vld [vmem:[%s18790_s11 + $0x3650] sm:$0xff]  ;;  %v749_v41 = vld [vmem:[%s18790_s11 + $0xbd8] sm:$0xff] }
 0x370   : > { %13698 = vmatprep.subr.bf16.mxu0 %v17572_v29  ;;  %v2356_v45 = vld [vmem:[%s18790_s11 + $0x3e10] sm:$0xff]  ;;  %v17764_v48 = vcombine.high %v2100_v51, %v2108_v27  ;;  %v17763_v1 = vcombine.low %v2100_v51, %v2108_v27  ;;  %v469_v51 = vld [vmem:[%s18790_s11 + $0x318] sm:$0xff] }
 0x371   : > { %13740 = vmatpush1.bf16.msra.mxu1 %v17843_v54  ;;  %v2364_v24 = vld [vmem:[%s18790_s11 + $0x3e50] sm:$0xff]  ;;  %v477_v27 = vld [vmem:[%s18790_s11 + $0x358] sm:$0xff] }
 0x372   : > { %13741 = vmatprep.subr.bf16.mxu1 %v17828_v10  ;;  %v18020_v53 = vcombine.high %v2356_v45, %v2364_v24  ;;  %v2084_v57 = vld [vmem:[%s18790_s11 + $0x3590] sm:$0xff]  ;;  %v18019_v15 = vcombine.low %v2356_v45, %v2364_v24  ;;  %v725_v45 = vld [vmem:[%s18790_s11 + $0xb18] sm:$0xff] }
 0x373   : > { %13699 = vmatpush1.bf16.msra.mxu0 %v17571_v32  ;;  %v2092_v25 = vld [vmem:[%s18790_s11 + $0x35d0] sm:$0xff]  ;;  %v733_v24 = vld [vmem:[%s18790_s11 + $0xb58] sm:$0xff] }
 0x374   : > { %13700 = vmatprep.subr.bf16.mxu0 %v17812_v42  ;;  %v2340_v28 = vld [vmem:[%s18790_s11 + $0x3d90] sm:$0xff]  ;;  %v17748_v31 = vcombine.high %v2084_v57, %v2092_v25  ;;  %v17747_v16 = vcombine.low %v2084_v57, %v2092_v25  ;;  %v453_v57 = vld [vmem:[%s18790_s11 + $0x298] sm:$0xff] }
 0x375   : > { %13742 = vmatpush1.bf16.msra.mxu1 %v17827_v8  ;;  %v2348_v11 = vld [vmem:[%s18790_s11 + $0x3dd0] sm:$0xff]  ;;  %v461_v25 = vld [vmem:[%s18790_s11 + $0x2d8] sm:$0xff] }
 0x376   : > { %13743 = vmatprep.subr.bf16.mxu1 %v18068_v4  ;;  %v18004_v47 = vcombine.high %v2340_v28, %v2348_v11  ;;  %v2068_v6 = vld [vmem:[%s18790_s11 + $0x3510] sm:$0xff]  ;;  %v18003_v54 = vcombine.low %v2340_v28, %v2348_v11  ;;  %v709_v28 = vld [vmem:[%s18790_s11 + $0xa98] sm:$0xff] }
 0x377   : > { %13701 = vmatpush2.bf16.msra.mxu0 %v17811_v49  ;;  %v2076_v39 = vld [vmem:[%s18790_s11 + $0x3550] sm:$0xff]  ;;  %v717_v11 = vld [vmem:[%s18790_s11 + $0xad8] sm:$0xff] }
 0x378   : > { %13702 = vmatprep.subr.bf16.mxu0 %v17796_v19  ;;  %v2324_v2 = vld [vmem:[%s18790_s11 + $0x3d10] sm:$0xff]  ;;  %v17732_v29 = vcombine.high %v2068_v6, %v2076_v39  ;;  %v17731_v32 = vcombine.low %v2068_v6, %v2076_v39  ;;  %v437_v6 = vld [vmem:[%s18790_s11 + $0x218] sm:$0xff] }
 0x379   : > { %13744 = vmatpush2.bf16.msra.mxu1 %v18067_v58  ;;  %v2332_v7 = vld [vmem:[%s18790_s11 + $0x3d50] sm:$0xff]  ;;  %v445_v39 = vld [vmem:[%s18790_s11 + $0x258] sm:$0xff] }
 0x37a   : > { %13745 = vmatprep.subr.bf16.mxu1 %v18052_v52  ;;  %v17988_v10 = vcombine.high %v2324_v2, %v2332_v7  ;;  %v2052_v5 = vld [vmem:[%s18790_s11 + $0x3490] sm:$0xff]  ;;  %v17987_v8 = vcombine.low %v2324_v2, %v2332_v7  ;;  %v693_v2 = vld [vmem:[%s18790_s11 + $0xa18] sm:$0xff] }
 0x37b   : > { %13703 = vmatpush2.bf16.msra.mxu0 %v17795_v38  ;;  %v2060_v13 = vld [vmem:[%s18790_s11 + $0x34d0] sm:$0xff]  ;;  %v701_v7 = vld [vmem:[%s18790_s11 + $0xa58] sm:$0xff] }
 0x37c   : > { %13704 = vmatprep.subr.bf16.mxu0 %v17780_v43  ;;  %v2308_v14 = vld [vmem:[%s18790_s11 + $0x3c90] sm:$0xff]  ;;  %v17716_v42 = vcombine.high %v2052_v5, %v2060_v13  ;;  %v17715_v49 = vcombine.low %v2052_v5, %v2060_v13  ;;  %v16150_v43 = vcombine.high %v485_v61, %v493_v23  ;;  %v421_v5 = vld [vmem:[%s18790_s11 + $0x198] sm:$0xff] }
 0x37d   : > { %13746 = vmatpush2.bf16.msra.mxu1 %v18051_v40  ;;  %v2316_v17 = vld [vmem:[%s18790_s11 + $0x3cd0] sm:$0xff]  ;;  %v429_v13 = vld [vmem:[%s18790_s11 + $0x1d8] sm:$0xff] }
 0x37e   : > { %13747 = vmatprep.subr.bf16.mxu1 %v18036_v44  ;;  %v17972_v4 = vcombine.high %v2308_v14, %v2316_v17  ;;  %v2036_v18 = vld [vmem:[%s18790_s11 + $0x3410] sm:$0xff]  ;;  %v17971_v58 = vcombine.low %v2308_v14, %v2316_v17  ;;  %v16406_v44 = vcombine.high %v741_v37, %v749_v41  ;;  %v677_v14 = vld [vmem:[%s18790_s11 + $0x998] sm:$0xff] }
 0x37f   : > { %13705 = vmatpush2.bf16.msra.mxu0 %v17779_v60  ;;  %v2044_v30 = vld [vmem:[%s18790_s11 + $0x3450] sm:$0xff]  ;;  %v16149_v60 = vcombine.low %v485_v61, %v493_v23  ;;  %v685_v17 = vld [vmem:[%s18790_s11 + $0x9d8] sm:$0xff] }
 0x380   : > { %13706 = vmatprep.subr.bf16.mxu0 %v17764_v48  ;;  %v2292_v21 = vld [vmem:[%s18790_s11 + $0x3c10] sm:$0xff]  ;;  %v17700_v19 = vcombine.high %v2036_v18, %v2044_v30  ;;  %v17699_v38 = vcombine.low %v2036_v18, %v2044_v30  ;;  %v16134_v48 = vcombine.high %v469_v51, %v477_v27  ;;  %v405_v18 = vld [vmem:[%s18790_s11 + $0x118] sm:$0xff] }
 0x381   : > { %13748 = vmatpush2.bf16.msra.mxu1 %v18035_v3  ;;  %v2300_v56 = vld [vmem:[%s18790_s11 + $0x3c50] sm:$0xff]  ;;  %v16405_v3 = vcombine.low %v741_v37, %v749_v41  ;;  %v413_v30 = vld [vmem:[%s18790_s11 + $0x158] sm:$0xff] }
 0x382   : > { %13749 = vmatprep.subr.bf16.mxu1 %v18020_v53  ;;  %v17956_v52 = vcombine.high %v2292_v21, %v2300_v56  ;;  %v17955_v40 = vcombine.low %v2292_v21, %v2300_v56  ;;  %v16390_v53 = vcombine.high %v725_v45, %v733_v24  ;;  %v661_v21 = vld [vmem:[%s18790_s11 + $0x918] sm:$0xff] }
 0x383   : > { %13707 = vmatpush2.bf16.msra.mxu0 %v17763_v1  ;;  %v16133_v1 = vcombine.low %v469_v51, %v477_v27  ;;  %v669_v56 = vld [vmem:[%s18790_s11 + $0x958] sm:$0xff] }
 0x384   : > { %13708 = vmatprep.subr.bf16.mxu0 %v17748_v31  ;;  %v16118_v31 = vcombine.high %v453_v57, %v461_v25  ;;  %v389_v61 = vld [vmem:[%s18790_s11 + $0x98] sm:$0xff] }
 0x385   : > { %13750 = vmatpush2.bf16.msra.mxu1 %v18019_v15  ;;  %v16389_v15 = vcombine.low %v725_v45, %v733_v24  ;;  %v397_v23 = vld [vmem:[%s18790_s11 + $0xd8] sm:$0xff] }
 0x386   : > { %13751 = vmatprep.subr.bf16.mxu1 %v18004_v47  ;;  %v16374_v47 = vcombine.high %v709_v28, %v717_v11  ;;  %v645_v37 = vld [vmem:[%s18790_s11 + $0x898] sm:$0xff] }
 0x387   : > { %13709 = vmatpush2.bf16.msra.mxu0 %v17747_v16  ;;  %v16117_v16 = vcombine.low %v453_v57, %v461_v25  ;;  %v653_v41 = vld [vmem:[%s18790_s11 + $0x8d8] sm:$0xff] }
 0x388   : > { %13710 = vmatprep.subr.bf16.mxu0 %v17732_v29  ;;  %v16102_v29 = vcombine.high %v437_v6, %v445_v39  ;;  %v373_v51 = vld [vmem:[%s18790_s11 + $0x18] sm:$0xff] }
 0x389   : > { %13752 = vmatpush2.bf16.msra.mxu1 %v18003_v54  ;;  %v16373_v54 = vcombine.low %v709_v28, %v717_v11  ;;  %v381_v27 = vld [vmem:[%s18790_s11 + $0x58] sm:$0xff] }
 0x38a   : > { %13753 = vmatprep.subr.bf16.mxu1 %v17988_v10  ;;  %v16358_v10 = vcombine.high %v693_v2, %v701_v7  ;;  %v629_v45 = vld [vmem:[%s18790_s11 + $0x818] sm:$0xff] }
 0x38b   : > { %13711 = vmatpush2.bf16.msra.mxu0 %v17731_v32  ;;  %v16101_v32 = vcombine.low %v437_v6, %v445_v39  ;;  %v637_v24 = vld [vmem:[%s18790_s11 + $0x858] sm:$0xff] }
 0x38c   : > { %13712 = vmatprep.subr.bf16.mxu0 %v17716_v42  ;;  %v16086_v42 = vcombine.high %v421_v5, %v429_v13  ;;  %v613_v57 = vld [vmem:[%s18790_s11 + $0x798] sm:$0xff] }
 0x38d   : > { %13754 = vmatpush2.bf16.msra.mxu1 %v17987_v8  ;;  %v16357_v8 = vcombine.low %v693_v2, %v701_v7  ;;  %v621_v25 = vld [vmem:[%s18790_s11 + $0x7d8] sm:$0xff] }
 0x38e   : > { %13755 = vmatprep.subr.bf16.mxu1 %v17972_v4  ;;  %v16342_v4 = vcombine.high %v677_v14, %v685_v17  ;;  %v869_v28 = vld [vmem:[%s18790_s11 + $0xf98] sm:$0xff] }
 0x38f   : > { %13713 = vmatpush2.bf16.msra.mxu0 %v17715_v49  ;;  %v16085_v49 = vcombine.low %v421_v5, %v429_v13  ;;  %v877_v11 = vld [vmem:[%s18790_s11 + $0xfd8] sm:$0xff] }
 0x390   : > { %13714 = vmatprep.subr.bf16.mxu0 %v17700_v19  ;;  %v16070_v19 = vcombine.high %v405_v18, %v413_v30  ;;  %v597_v6 = vld [vmem:[%s18790_s11 + $0x718] sm:$0xff] }
 0x391   : > { %13756 = vmatpush2.bf16.msra.mxu1 %v17971_v58  ;;  %v16341_v58 = vcombine.low %v677_v14, %v685_v17  ;;  %v605_v39 = vld [vmem:[%s18790_s11 + $0x758] sm:$0xff] }
 0x392   : > { %13757 = vmatprep.subr.bf16.mxu1 %v17956_v52  ;;  %v16326_v52 = vcombine.high %v661_v21, %v669_v56  ;;  %v853_v2 = vld [vmem:[%s18790_s11 + $0xf18] sm:$0xff] }
 0x393   : > { %13715 = vmatpush2.bf16.msra.mxu0 %v17699_v38  ;;  %v16069_v38 = vcombine.low %v405_v18, %v413_v30  ;;  %v861_v7 = vld [vmem:[%s18790_s11 + $0xf58] sm:$0xff] }
 0x394   : > { %13770 = vmatprep.subr.bf16.mxu0 %v16150_v43  ;;  %v16054_v43 = vcombine.high %v389_v61, %v397_v23  ;;  %v581_v5 = vld [vmem:[%s18790_s11 + $0x698] sm:$0xff] }
 0x395   : > { %13758 = vmatpush2.bf16.msra.mxu1 %v17955_v40  ;;  %v16325_v40 = vcombine.low %v661_v21, %v669_v56  ;;  %v589_v13 = vld [vmem:[%s18790_s11 + $0x6d8] sm:$0xff] }
 0x396   : > { %13813 = vmatprep.subr.bf16.mxu1 %v16406_v44  ;;  %13717 = vmatmul.mubr.bf16.vlgmr.msra.gmra.mxu0 %v19192_v9  ;;  %v16310_v44 = vcombine.high %v645_v37, %v653_v41  ;;  %v837_v14 = vld [vmem:[%s18790_s11 + $0xe98] sm:$0xff] }
 0x397   : > { %13771 = vmatpush1.bf16.msra.mxu0 %v16149_v60  ;;  %13802 = vmatprep.mubr.bf16.mxu0 %v18848_v59  ;;  %v16053_v60 = vcombine.low %v389_v61, %v397_v23  ;;  %v845_v17 = vld [vmem:[%s18790_s11 + $0xed8] sm:$0xff] }
 0x398   : > { %13760 = vmatmul.mubr.bf16.vlgmr.msra.gmra.mxu1 %v19198_v12  ;;  %13772 = vmatprep.subr.bf16.mxu0 %v16134_v48  ;;  %v16038_v48 = vcombine.high %v373_v51, %v381_v27  ;;  %v565_v18 = vld [vmem:[%s18790_s11 + $0x618] sm:$0xff] }
 0x399   : > { %13814 = vmatpush1.bf16.msra.mxu1 %v16405_v3  ;;  %13845 = vmatprep.mubr.bf16.mxu1 %v18860_v0  ;;  %v16309_v3 = vcombine.low %v645_v37, %v653_v41  ;;  %v573_v30 = vld [vmem:[%s18790_s11 + $0x658] sm:$0xff] }
 0x39a   : > { %13815 = vmatprep.subr.bf16.mxu1 %v16390_v53  ;;  %v16294_v53 = vcombine.high %v629_v45, %v637_v24  ;;  %v821_v21 = vld [vmem:[%s18790_s11 + $0xe18] sm:$0xff] }
 0x39b   : > { %13773 = vmatpush1.bf16.msra.mxu0 %v16133_v1  ;;  %v16037_v1 = vcombine.low %v373_v51, %v381_v27  ;;  %v829_v56 = vld [vmem:[%s18790_s11 + $0xe58] sm:$0xff] }
 0x39c   : > { %13774 = vmatprep.subr.bf16.mxu0 %v16118_v31  ;;  %v16278_v31 = vcombine.high %v613_v57, %v621_v25  ;;  %v549_v61 = vld [vmem:[%s18790_s11 + $0x598] sm:$0xff] }
 0x39d   : > { %13816 = vmatpush1.bf16.msra.mxu1 %v16389_v15  ;;  %v16293_v15 = vcombine.low %v629_v45, %v637_v24  ;;  %v557_v23 = vld [vmem:[%s18790_s11 + $0x5d8] sm:$0xff] }
 0x39e   : > { %13817 = vmatprep.subr.bf16.mxu1 %v16374_v47  ;;  %v16534_v47 = vcombine.high %v869_v28, %v877_v11  ;;  %v805_v37 = vld [vmem:[%s18790_s11 + $0xd98] sm:$0xff] }
 0x39f   : > { %13775 = vmatpush1.bf16.msra.mxu0 %v16117_v16  ;;  %v16277_v16 = vcombine.low %v613_v57, %v621_v25  ;;  %v813_v41 = vld [vmem:[%s18790_s11 + $0xdd8] sm:$0xff] }
 0x3a0   : > { %13776 = vmatprep.subr.bf16.mxu0 %v16102_v29  ;;  %v16262_v29 = vcombine.high %v597_v6, %v605_v39  ;;  %v533_v51 = vld [vmem:[%s18790_s11 + $0x518] sm:$0xff] }
 0x3a1   : > { %13818 = vmatpush1.bf16.msra.mxu1 %v16373_v54  ;;  %v16533_v54 = vcombine.low %v869_v28, %v877_v11  ;;  %v541_v27 = vld [vmem:[%s18790_s11 + $0x558] sm:$0xff] }
 0x3a2   : > { %13819 = vmatprep.subr.bf16.mxu1 %v16358_v10  ;;  %v16518_v10 = vcombine.high %v853_v2, %v861_v7  ;;  %v789_v45 = vld [vmem:[%s18790_s11 + $0xd18] sm:$0xff] }
 0x3a3   : > { %13777 = vmatpush1.bf16.msra.mxu0 %v16101_v32  ;;  %v16261_v32 = vcombine.low %v597_v6, %v605_v39  ;;  %v797_v24 = vld [vmem:[%s18790_s11 + $0xd58] sm:$0xff] }
 0x3a4   : > { %13778 = vmatprep.subr.bf16.mxu0 %v16086_v42  ;;  %v16246_v42 = vcombine.high %v581_v5, %v589_v13  ;;  %v517_v57 = vld [vmem:[%s18790_s11 + $0x498] sm:$0xff] }
 0x3a5   : > { %13820 = vmatpush1.bf16.msra.mxu1 %v16357_v8  ;;  %v16517_v8 = vcombine.low %v853_v2, %v861_v7  ;;  %v525_v25 = vld [vmem:[%s18790_s11 + $0x4d8] sm:$0xff] }
 0x3a6   : > { %13821 = vmatprep.subr.bf16.mxu1 %v16342_v4  ;;  %v16502_v4 = vcombine.high %v837_v14, %v845_v17  ;;  %v773_v28 = vld [vmem:[%s18790_s11 + $0xc98] sm:$0xff] }
 0x3a7   : > { %13779 = vmatpush1.bf16.msra.mxu0 %v16085_v49  ;;  %v16245_v49 = vcombine.low %v581_v5, %v589_v13  ;;  %v781_v11 = vld [vmem:[%s18790_s11 + $0xcd8] sm:$0xff] }
 0x3a8   : > { %13780 = vmatprep.subr.bf16.mxu0 %v16070_v19  ;;  %v16230_v19 = vcombine.high %v565_v18, %v573_v30  ;;  %v501_v6 = vld [vmem:[%s18790_s11 + $0x418] sm:$0xff] }
 0x3a9   : > { %13822 = vmatpush1.bf16.msra.mxu1 %v16341_v58  ;;  %v16501_v58 = vcombine.low %v837_v14, %v845_v17  ;;  %v509_v39 = vld [vmem:[%s18790_s11 + $0x458] sm:$0xff] }
 0x3aa   : > { %13823 = vmatprep.subr.bf16.mxu1 %v16326_v52  ;;  %v16486_v52 = vcombine.high %v821_v21, %v829_v56  ;;  %v757_v2 = vld [vmem:[%s18790_s11 + $0xc18] sm:$0xff] }
 0x3ab   : > { %13781 = vmatpush1.bf16.msra.mxu0 %v16069_v38  ;;  %v16229_v38 = vcombine.low %v565_v18, %v573_v30  ;;  %v765_v7 = vld [vmem:[%s18790_s11 + $0xc58] sm:$0xff] }
 0x3ac   : > { %13782 = vmatprep.subr.bf16.mxu0 %v16054_v43  ;;  %v16214_v43 = vcombine.high %v549_v61, %v557_v23  ;;  %v997_v5 = vld [vmem:[%s18790_s11 + $0x1398] sm:$0xff] }
 0x3ad   : > { %13824 = vmatpush1.bf16.msra.mxu1 %v16325_v40  ;;  %v16485_v40 = vcombine.low %v821_v21, %v829_v56  ;;  %v1005_v13 = vld [vmem:[%s18790_s11 + $0x13d8] sm:$0xff] }
 0x3ae   : > { %13825 = vmatprep.subr.bf16.mxu1 %v16310_v44  ;;  %v16470_v44 = vcombine.high %v805_v37, %v813_v41  ;;  %v1253_v14 = vld [vmem:[%s18790_s11 + $0x1b98] sm:$0xff] }
 0x3af   : > { %13783 = vmatpush1.bf16.msra.mxu0 %v16053_v60  ;;  %v16213_v60 = vcombine.low %v549_v61, %v557_v23  ;;  %v1261_v17 = vld [vmem:[%s18790_s11 + $0x1bd8] sm:$0xff] }
 0x3b0   : > { %13784 = vmatprep.subr.bf16.mxu0 %v16038_v48  ;;  %v16198_v48 = vcombine.high %v533_v51, %v541_v27  ;;  %v981_v18 = vld [vmem:[%s18790_s11 + $0x1318] sm:$0xff] }
 0x3b1   : > { %13826 = vmatpush1.bf16.msra.mxu1 %v16309_v3  ;;  %v16469_v3 = vcombine.low %v805_v37, %v813_v41  ;;  %v989_v30 = vld [vmem:[%s18790_s11 + $0x1358] sm:$0xff] }
 0x3b2   : > { %13827 = vmatprep.subr.bf16.mxu1 %v16294_v53  ;;  %v16454_v53 = vcombine.high %v789_v45, %v797_v24  ;;  %v1237_v21 = vld [vmem:[%s18790_s11 + $0x1b18] sm:$0xff] }
 0x3b3   : > { %13785 = vmatpush1.bf16.msra.mxu0 %v16037_v1  ;;  %v16197_v1 = vcombine.low %v533_v51, %v541_v27  ;;  %v1245_v56 = vld [vmem:[%s18790_s11 + $0x1b58] sm:$0xff] }
 0x3b4   : > { %13786 = vmatprep.subr.bf16.mxu0 %v16278_v31  ;;  %v16182_v31 = vcombine.high %v517_v57, %v525_v25  ;;  %v965_v61 = vld [vmem:[%s18790_s11 + $0x1298] sm:$0xff] }
 0x3b5   : > { %13828 = vmatpush1.bf16.msra.mxu1 %v16293_v15  ;;  %v16453_v15 = vcombine.low %v789_v45, %v797_v24  ;;  %v973_v23 = vld [vmem:[%s18790_s11 + $0x12d8] sm:$0xff] }
 0x3b6   : > { %13829 = vmatprep.subr.bf16.mxu1 %v16534_v47  ;;  %v16438_v47 = vcombine.high %v773_v28, %v781_v11  ;;  %v1221_v37 = vld [vmem:[%s18790_s11 + $0x1a98] sm:$0xff] }
 0x3b7   : > { %13787 = vmatpush2.bf16.msra.mxu0 %v16277_v16  ;;  %v16181_v16 = vcombine.low %v517_v57, %v525_v25  ;;  %v1229_v41 = vld [vmem:[%s18790_s11 + $0x1ad8] sm:$0xff] }
 0x3b8   : > { %13788 = vmatprep.subr.bf16.mxu0 %v16262_v29  ;;  %v16166_v29 = vcombine.high %v501_v6, %v509_v39  ;;  %v949_v51 = vld [vmem:[%s18790_s11 + $0x1218] sm:$0xff] }
 0x3b9   : > { %13830 = vmatpush2.bf16.msra.mxu1 %v16533_v54  ;;  %v16437_v54 = vcombine.low %v773_v28, %v781_v11  ;;  %v957_v27 = vld [vmem:[%s18790_s11 + $0x1258] sm:$0xff] }
 0x3ba   : > { %13831 = vmatprep.subr.bf16.mxu1 %v16518_v10  ;;  %v16422_v10 = vcombine.high %v757_v2, %v765_v7  ;;  %v1205_v45 = vld [vmem:[%s18790_s11 + $0x1a18] sm:$0xff] }
 0x3bb   : > { %13789 = vmatpush2.bf16.msra.mxu0 %v16261_v32  ;;  %v16165_v32 = vcombine.low %v501_v6, %v509_v39  ;;  %v1213_v24 = vld [vmem:[%s18790_s11 + $0x1a58] sm:$0xff] }
 0x3bc   : > { %13790 = vmatprep.subr.bf16.mxu0 %v16246_v42  ;;  %v16662_v42 = vcombine.high %v997_v5, %v1005_v13  ;;  %v933_v57 = vld [vmem:[%s18790_s11 + $0x1198] sm:$0xff] }
 0x3bd   : > { %13832 = vmatpush2.bf16.msra.mxu1 %v16517_v8  ;;  %v16421_v8 = vcombine.low %v757_v2, %v765_v7  ;;  %v941_v25 = vld [vmem:[%s18790_s11 + $0x11d8] sm:$0xff] }
 0x3be   : > { %13833 = vmatprep.subr.bf16.mxu1 %v16502_v4  ;;  %v16918_v4 = vcombine.high %v1253_v14, %v1261_v17  ;;  %v1189_v28 = vld [vmem:[%s18790_s11 + $0x1998] sm:$0xff] }
 0x3bf   : > { %13791 = vmatpush2.bf16.msra.mxu0 %v16245_v49  ;;  %v16661_v49 = vcombine.low %v997_v5, %v1005_v13  ;;  %v1197_v11 = vld [vmem:[%s18790_s11 + $0x19d8] sm:$0xff] }
 0x3c0   : > { %13792 = vmatprep.subr.bf16.mxu0 %v16230_v19  ;;  %v16646_v19 = vcombine.high %v981_v18, %v989_v30  ;;  %v917_v6 = vld [vmem:[%s18790_s11 + $0x1118] sm:$0xff] }
 0x3c1   : > { %13834 = vmatpush2.bf16.msra.mxu1 %v16501_v58  ;;  %v16917_v58 = vcombine.low %v1253_v14, %v1261_v17  ;;  %v925_v39 = vld [vmem:[%s18790_s11 + $0x1158] sm:$0xff] }
 0x3c2   : > { %13835 = vmatprep.subr.bf16.mxu1 %v16486_v52  ;;  %v16902_v52 = vcombine.high %v1237_v21, %v1245_v56  ;;  %v1173_v2 = vld [vmem:[%s18790_s11 + $0x1918] sm:$0xff] }
 0x3c3   : > { %13793 = vmatpush2.bf16.msra.mxu0 %v16229_v38  ;;  %v16645_v38 = vcombine.low %v981_v18, %v989_v30  ;;  %v1181_v7 = vld [vmem:[%s18790_s11 + $0x1958] sm:$0xff] }
 0x3c4   : > { %13794 = vmatprep.subr.bf16.mxu0 %v16214_v43  ;;  %v16630_v43 = vcombine.high %v965_v61, %v973_v23  ;;  %v901_v5 = vld [vmem:[%s18790_s11 + $0x1098] sm:$0xff] }
 0x3c5   : > { %13836 = vmatpush2.bf16.msra.mxu1 %v16485_v40  ;;  %v16901_v40 = vcombine.low %v1237_v21, %v1245_v56  ;;  %v909_v13 = vld [vmem:[%s18790_s11 + $0x10d8] sm:$0xff] }
 0x3c6   : > { %13837 = vmatprep.subr.bf16.mxu1 %v16470_v44  ;;  %v16886_v44 = vcombine.high %v1221_v37, %v1229_v41  ;;  %v1157_v14 = vld [vmem:[%s18790_s11 + $0x1898] sm:$0xff] }
 0x3c7   : > { %13795 = vmatpush2.bf16.msra.mxu0 %v16213_v60  ;;  %v16629_v60 = vcombine.low %v965_v61, %v973_v23  ;;  %v1165_v17 = vld [vmem:[%s18790_s11 + $0x18d8] sm:$0xff] }
 0x3c8   : > { %13796 = vmatprep.subr.bf16.mxu0 %v16198_v48  ;;  %v16614_v48 = vcombine.high %v949_v51, %v957_v27  ;;  %v885_v18 = vld [vmem:[%s18790_s11 + $0x1018] sm:$0xff] }
 0x3c9   : > { %13838 = vmatpush2.bf16.msra.mxu1 %v16469_v3  ;;  %v16885_v3 = vcombine.low %v1221_v37, %v1229_v41  ;;  %v893_v30 = vld [vmem:[%s18790_s11 + $0x1058] sm:$0xff] }
 0x3ca   : > { %13839 = vmatprep.subr.bf16.mxu1 %v16454_v53  ;;  %v16870_v53 = vcombine.high %v1205_v45, %v1213_v24  ;;  %v1141_v21 = vld [vmem:[%s18790_s11 + $0x1818] sm:$0xff] }
 0x3cb   : > { %13797 = vmatpush2.bf16.msra.mxu0 %v16197_v1  ;;  %v16613_v1 = vcombine.low %v949_v51, %v957_v27  ;;  %v1149_v56 = vld [vmem:[%s18790_s11 + $0x1858] sm:$0xff] }
 0x3cc   : > { %13798 = vmatprep.subr.bf16.mxu0 %v16182_v31  ;;  %v16598_v31 = vcombine.high %v933_v57, %v941_v25  ;;  %v1125_v61 = vld [vmem:[%s18790_s11 + $0x1798] sm:$0xff] }
 0x3cd   : > { %13840 = vmatpush2.bf16.msra.mxu1 %v16453_v15  ;;  %v16869_v15 = vcombine.low %v1205_v45, %v1213_v24  ;;  %v1133_v23 = vld [vmem:[%s18790_s11 + $0x17d8] sm:$0xff] }
 0x3ce   : > { %13841 = vmatprep.subr.bf16.mxu1 %v16438_v47  ;;  %v16854_v47 = vcombine.high %v1189_v28, %v1197_v11  ;;  %v1381_v37 = vld [vmem:[%s18790_s11 + $0x1f98] sm:$0xff] }
 0x3cf   : > { %13799 = vmatpush2.bf16.msra.mxu0 %v16181_v16  ;;  %v16597_v16 = vcombine.low %v933_v57, %v941_v25  ;;  %v1389_v41 = vld [vmem:[%s18790_s11 + $0x1fd8] sm:$0xff] }
 0x3d0   : > { %13800 = vmatprep.subr.bf16.mxu0 %v16166_v29  ;;  %v16582_v29 = vcombine.high %v917_v6, %v925_v39  ;;  %v1109_v51 = vld [vmem:[%s18790_s11 + $0x1718] sm:$0xff] }
 0x3d1   : > { %13842 = vmatpush2.bf16.msra.mxu1 %v16437_v54  ;;  %v16853_v54 = vcombine.low %v1189_v28, %v1197_v11  ;;  %v1117_v27 = vld [vmem:[%s18790_s11 + $0x1758] sm:$0xff] }
 0x3d2   : > { %13843 = vmatprep.subr.bf16.mxu1 %v16422_v10  ;;  %v16838_v10 = vcombine.high %v1173_v2, %v1181_v7  ;;  %v1365_v45 = vld [vmem:[%s18790_s11 + $0x1f18] sm:$0xff] }
 0x3d3   : > { %13801 = vmatpush2.bf16.msra.mxu0 %v16165_v32  ;;  %v16581_v32 = vcombine.low %v917_v6, %v925_v39  ;;  %v1373_v24 = vld [vmem:[%s18790_s11 + $0x1f58] sm:$0xff] }
 0x3d4   : > { %13856 = vmatprep.subr.bf16.mxu0 %v16662_v42  ;;  %v16566_v42 = vcombine.high %v901_v5, %v909_v13  ;;  %v1093_v57 = vld [vmem:[%s18790_s11 + $0x1698] sm:$0xff] }
 0x3d5   : > { %13844 = vmatpush2.bf16.msra.mxu1 %v16421_v8  ;;  %v16837_v8 = vcombine.low %v1173_v2, %v1181_v7  ;;  %v1101_v25 = vld [vmem:[%s18790_s11 + $0x16d8] sm:$0xff] }
 0x3d6   : > { %13899 = vmatprep.subr.bf16.mxu1 %v16918_v4  ;;  %13803 = vmatmul.mubr.bf16.vlgmr.msra.gmra.mxu0 %v18905_v22  ;;  %v16822_v4 = vcombine.high %v1157_v14, %v1165_v17  ;;  %v1349_v28 = vld [vmem:[%s18790_s11 + $0x1e98] sm:$0xff] }
 0x3d7   : > { %13857 = vmatpush1.bf16.msra.mxu0 %v16661_v49  ;;  %13888 = vmatprep.mubr.bf16.mxu0 %v18928_v33  ;;  %v16565_v49 = vcombine.low %v901_v5, %v909_v13  ;;  %v1357_v11 = vld [vmem:[%s18790_s11 + $0x1ed8] sm:$0xff] }
 0x3d8   : > { %13846 = vmatmul.mubr.bf16.vlgmr.msra.gmra.mxu1 %v18916_v26  ;;  %13858 = vmatprep.subr.bf16.mxu0 %v16646_v19  ;;  %v16550_v19 = vcombine.high %v885_v18, %v893_v30  ;;  %v1077_v6 = vld [vmem:[%s18790_s11 + $0x1618] sm:$0xff] }
 0x3d9   : > { %13900 = vmatpush1.bf16.msra.mxu1 %v16917_v58  ;;  %13931 = vmatprep.mubr.bf16.mxu1 %v18935_v34  ;;  %v16821_v58 = vcombine.low %v1157_v14, %v1165_v17  ;;  %v1085_v39 = vld [vmem:[%s18790_s11 + $0x1658] sm:$0xff] }
 0x3da   : > { %13901 = vmatprep.subr.bf16.mxu1 %v16902_v52  ;;  %v16806_v52 = vcombine.high %v1141_v21, %v1149_v56  ;;  %v1333_v2 = vld [vmem:[%s18790_s11 + $0x1e18] sm:$0xff] }
 0x3db   : > { %13859 = vmatpush1.bf16.msra.mxu0 %v16645_v38  ;;  %v16549_v38 = vcombine.low %v885_v18, %v893_v30  ;;  %v1341_v7 = vld [vmem:[%s18790_s11 + $0x1e58] sm:$0xff] }
 0x3dc   : > { %13860 = vmatprep.subr.bf16.mxu0 %v16630_v43  ;;  %v16790_v43 = vcombine.high %v1125_v61, %v1133_v23  ;;  %v1061_v5 = vld [vmem:[%s18790_s11 + $0x1598] sm:$0xff] }
 0x3dd   : > { %13902 = vmatpush1.bf16.msra.mxu1 %v16901_v40  ;;  %v16805_v40 = vcombine.low %v1141_v21, %v1149_v56  ;;  %v1069_v13 = vld [vmem:[%s18790_s11 + $0x15d8] sm:$0xff] }
 0x3de   : > { %13903 = vmatprep.subr.bf16.mxu1 %v16886_v44  ;;  %v17046_v44 = vcombine.high %v1381_v37, %v1389_v41  ;;  %v1317_v14 = vld [vmem:[%s18790_s11 + $0x1d98] sm:$0xff] }
 0x3df   : > { %13861 = vmatpush1.bf16.msra.mxu0 %v16629_v60  ;;  %v16789_v60 = vcombine.low %v1125_v61, %v1133_v23  ;;  %v1325_v17 = vld [vmem:[%s18790_s11 + $0x1dd8] sm:$0xff] }
 0x3e0   : > { %13862 = vmatprep.subr.bf16.mxu0 %v16614_v48  ;;  %v16774_v48 = vcombine.high %v1109_v51, %v1117_v27  ;;  %v1045_v18 = vld [vmem:[%s18790_s11 + $0x1518] sm:$0xff] }
 0x3e1   : > { %13904 = vmatpush1.bf16.msra.mxu1 %v16885_v3  ;;  %v17045_v3 = vcombine.low %v1381_v37, %v1389_v41  ;;  %v1053_v30 = vld [vmem:[%s18790_s11 + $0x1558] sm:$0xff] }
 0x3e2   : > { %13905 = vmatprep.subr.bf16.mxu1 %v16870_v53  ;;  %v17030_v53 = vcombine.high %v1365_v45, %v1373_v24  ;;  %v1301_v21 = vld [vmem:[%s18790_s11 + $0x1d18] sm:$0xff] }
 0x3e3   : > { %13863 = vmatpush1.bf16.msra.mxu0 %v16613_v1  ;;  %v16773_v1 = vcombine.low %v1109_v51, %v1117_v27  ;;  %v1309_v56 = vld [vmem:[%s18790_s11 + $0x1d58] sm:$0xff] }
 0x3e4   : > { %13864 = vmatprep.subr.bf16.mxu0 %v16598_v31  ;;  %v16758_v31 = vcombine.high %v1093_v57, %v1101_v25  ;;  %v1029_v61 = vld [vmem:[%s18790_s11 + $0x1498] sm:$0xff] }
 0x3e5   : > { %13906 = vmatpush1.bf16.msra.mxu1 %v16869_v15  ;;  %v17029_v15 = vcombine.low %v1365_v45, %v1373_v24  ;;  %v1037_v23 = vld [vmem:[%s18790_s11 + $0x14d8] sm:$0xff] }
 0x3e6   : > { %13907 = vmatprep.subr.bf16.mxu1 %v16854_v47  ;;  %v17014_v47 = vcombine.high %v1349_v28, %v1357_v11  ;;  %v1285_v37 = vld [vmem:[%s18790_s11 + $0x1c98] sm:$0xff] }
 0x3e7   : > { %13865 = vmatpush1.bf16.msra.mxu0 %v16597_v16  ;;  %v16757_v16 = vcombine.low %v1093_v57, %v1101_v25  ;;  %v1293_v41 = vld [vmem:[%s18790_s11 + $0x1cd8] sm:$0xff] }
 0x3e8   : > { %13866 = vmatprep.subr.bf16.mxu0 %v16582_v29  ;;  %v16742_v29 = vcombine.high %v1077_v6, %v1085_v39  ;;  %v1013_v51 = vld [vmem:[%s18790_s11 + $0x1418] sm:$0xff] }
 0x3e9   : > { %13908 = vmatpush1.bf16.msra.mxu1 %v16853_v54  ;;  %v17013_v54 = vcombine.low %v1349_v28, %v1357_v11  ;;  %v1021_v27 = vld [vmem:[%s18790_s11 + $0x1458] sm:$0xff] }
 0x3ea   : > { %13909 = vmatprep.subr.bf16.mxu1 %v16838_v10  ;;  %v16998_v10 = vcombine.high %v1333_v2, %v1341_v7  ;;  %v1269_v45 = vld [vmem:[%s18790_s11 + $0x1c18] sm:$0xff] }
 0x3eb   : > { %13867 = vmatpush1.bf16.msra.mxu0 %v16581_v32  ;;  %v16741_v32 = vcombine.low %v1077_v6, %v1085_v39  ;;  %v1277_v24 = vld [vmem:[%s18790_s11 + $0x1c58] sm:$0xff] }
 0x3ec   : > { %13868 = vmatprep.subr.bf16.mxu0 %v16566_v42  ;;  %v16726_v42 = vcombine.high %v1061_v5, %v1069_v13  ;;  %v1509_v57 = vld [vmem:[%s18790_s11 + $0x2398] sm:$0xff] }
 0x3ed   : > { %13910 = vmatpush1.bf16.msra.mxu1 %v16837_v8  ;;  %v16997_v8 = vcombine.low %v1333_v2, %v1341_v7  ;;  %v1517_v25 = vld [vmem:[%s18790_s11 + $0x23d8] sm:$0xff] }
 0x3ee   : > { %13911 = vmatprep.subr.bf16.mxu1 %v16822_v4  ;;  %v16982_v4 = vcombine.high %v1317_v14, %v1325_v17  ;;  %v1765_v28 = vld [vmem:[%s18790_s11 + $0x2b98] sm:$0xff] }
 0x3ef   : > { %13869 = vmatpush1.bf16.msra.mxu0 %v16565_v49  ;;  %v16725_v49 = vcombine.low %v1061_v5, %v1069_v13  ;;  %v1773_v11 = vld [vmem:[%s18790_s11 + $0x2bd8] sm:$0xff] }
 0x3f0   : > { %13870 = vmatprep.subr.bf16.mxu0 %v16550_v19  ;;  %v16710_v19 = vcombine.high %v1045_v18, %v1053_v30  ;;  %v1493_v6 = vld [vmem:[%s18790_s11 + $0x2318] sm:$0xff] }
 0x3f1   : > { %13912 = vmatpush1.bf16.msra.mxu1 %v16821_v58  ;;  %v16981_v58 = vcombine.low %v1317_v14, %v1325_v17  ;;  %v1501_v39 = vld [vmem:[%s18790_s11 + $0x2358] sm:$0xff] }
 0x3f2   : > { %13913 = vmatprep.subr.bf16.mxu1 %v16806_v52  ;;  %v16966_v52 = vcombine.high %v1301_v21, %v1309_v56  ;;  %v1749_v2 = vld [vmem:[%s18790_s11 + $0x2b18] sm:$0xff] }
 0x3f3   : > { %13871 = vmatpush1.bf16.msra.mxu0 %v16549_v38  ;;  %v16709_v38 = vcombine.low %v1045_v18, %v1053_v30  ;;  %v1757_v7 = vld [vmem:[%s18790_s11 + $0x2b58] sm:$0xff] }
 0x3f4   : > { %13872 = vmatprep.subr.bf16.mxu0 %v16790_v43  ;;  %v16694_v43 = vcombine.high %v1029_v61, %v1037_v23  ;;  %v1477_v5 = vld [vmem:[%s18790_s11 + $0x2298] sm:$0xff] }
 0x3f5   : > { %13914 = vmatpush1.bf16.msra.mxu1 %v16805_v40  ;;  %v16965_v40 = vcombine.low %v1301_v21, %v1309_v56  ;;  %v1485_v13 = vld [vmem:[%s18790_s11 + $0x22d8] sm:$0xff] }
 0x3f6   : > { %13915 = vmatprep.subr.bf16.mxu1 %v17046_v44  ;;  %v16950_v44 = vcombine.high %v1285_v37, %v1293_v41  ;;  %v1733_v14 = vld [vmem:[%s18790_s11 + $0x2a98] sm:$0xff] }
 0x3f7   : > { %13873 = vmatpush2.bf16.msra.mxu0 %v16789_v60  ;;  %v16693_v60 = vcombine.low %v1029_v61, %v1037_v23  ;;  %v1741_v17 = vld [vmem:[%s18790_s11 + $0x2ad8] sm:$0xff] }
 0x3f8   : > { %13874 = vmatprep.subr.bf16.mxu0 %v16774_v48  ;;  %v16678_v48 = vcombine.high %v1013_v51, %v1021_v27  ;;  %v1461_v18 = vld [vmem:[%s18790_s11 + $0x2218] sm:$0xff] }
 0x3f9   : > { %13916 = vmatpush2.bf16.msra.mxu1 %v17045_v3  ;;  %v16949_v3 = vcombine.low %v1285_v37, %v1293_v41  ;;  %v1469_v30 = vld [vmem:[%s18790_s11 + $0x2258] sm:$0xff] }
 0x3fa   : > { %13917 = vmatprep.subr.bf16.mxu1 %v17030_v53  ;;  %v16934_v53 = vcombine.high %v1269_v45, %v1277_v24  ;;  %v1717_v21 = vld [vmem:[%s18790_s11 + $0x2a18] sm:$0xff] }
 0x3fb   : > { %13875 = vmatpush2.bf16.msra.mxu0 %v16773_v1  ;;  %v16677_v1 = vcombine.low %v1013_v51, %v1021_v27  ;;  %v1725_v56 = vld [vmem:[%s18790_s11 + $0x2a58] sm:$0xff] }
 0x3fc   : > { %13876 = vmatprep.subr.bf16.mxu0 %v16758_v31  ;;  %v17174_v31 = vcombine.high %v1509_v57, %v1517_v25  ;;  %v1445_v61 = vld [vmem:[%s18790_s11 + $0x2198] sm:$0xff] }
 0x3fd   : > { %13918 = vmatpush2.bf16.msra.mxu1 %v17029_v15  ;;  %v16933_v15 = vcombine.low %v1269_v45, %v1277_v24  ;;  %v1453_v23 = vld [vmem:[%s18790_s11 + $0x21d8] sm:$0xff] }
 0x3fe   : > { %13919 = vmatprep.subr.bf16.mxu1 %v17014_v47  ;;  %v17430_v47 = vcombine.high %v1765_v28, %v1773_v11  ;;  %v1701_v37 = vld [vmem:[%s18790_s11 + $0x2998] sm:$0xff] }
 0x3ff   : > { %13877 = vmatpush2.bf16.msra.mxu0 %v16757_v16  ;;  %v17173_v16 = vcombine.low %v1509_v57, %v1517_v25  ;;  %v1709_v41 = vld [vmem:[%s18790_s11 + $0x29d8] sm:$0xff] }
 0x400   : > { %13878 = vmatprep.subr.bf16.mxu0 %v16742_v29  ;;  %v17158_v29 = vcombine.high %v1493_v6, %v1501_v39  ;;  %v1429_v51 = vld [vmem:[%s18790_s11 + $0x2118] sm:$0xff] }
 0x401   : > { %13920 = vmatpush2.bf16.msra.mxu1 %v17013_v54  ;;  %v17429_v54 = vcombine.low %v1765_v28, %v1773_v11  ;;  %v1437_v27 = vld [vmem:[%s18790_s11 + $0x2158] sm:$0xff] }
 0x402   : > { %13921 = vmatprep.subr.bf16.mxu1 %v16998_v10  ;;  %v17414_v10 = vcombine.high %v1749_v2, %v1757_v7  ;;  %v1685_v45 = vld [vmem:[%s18790_s11 + $0x2918] sm:$0xff] }
 0x403   : > { %13879 = vmatpush2.bf16.msra.mxu0 %v16741_v32  ;;  %v17157_v32 = vcombine.low %v1493_v6, %v1501_v39  ;;  %v1693_v24 = vld [vmem:[%s18790_s11 + $0x2958] sm:$0xff] }
 0x404   : > { %13880 = vmatprep.subr.bf16.mxu0 %v16726_v42  ;;  %v17142_v42 = vcombine.high %v1477_v5, %v1485_v13  ;;  %v1413_v57 = vld [vmem:[%s18790_s11 + $0x2098] sm:$0xff] }
 0x405   : > { %13922 = vmatpush2.bf16.msra.mxu1 %v16997_v8  ;;  %v17413_v8 = vcombine.low %v1749_v2, %v1757_v7  ;;  %v1421_v25 = vld [vmem:[%s18790_s11 + $0x20d8] sm:$0xff] }
 0x406   : > { %13923 = vmatprep.subr.bf16.mxu1 %v16982_v4  ;;  %v17398_v4 = vcombine.high %v1733_v14, %v1741_v17  ;;  %v1669_v28 = vld [vmem:[%s18790_s11 + $0x2898] sm:$0xff] }
 0x407   : > { %13881 = vmatpush2.bf16.msra.mxu0 %v16725_v49  ;;  %v17141_v49 = vcombine.low %v1477_v5, %v1485_v13  ;;  %v1677_v11 = vld [vmem:[%s18790_s11 + $0x28d8] sm:$0xff]  ;;  %v19990_v5 = vpop.f32.mrf.mxu1 }
 0x408   : > { %13882 = vmatprep.subr.bf16.mxu0 %v16710_v19  ;;  %v17126_v19 = vcombine.high %v1461_v18, %v1469_v30  ;;  %v1397_v6 = vld [vmem:[%s18790_s11 + $0x2018] sm:$0xff] }
 0x409   : > { %13924 = vmatpush2.bf16.msra.mxu1 %v16981_v58  ;;  %v17397_v58 = vcombine.low %v1733_v14, %v1741_v17  ;;  %v1405_v39 = vld [vmem:[%s18790_s11 + $0x2058] sm:$0xff] }
 0x40a   : > { %13925 = vmatprep.subr.bf16.mxu1 %v16966_v52  ;;  %v17382_v52 = vcombine.high %v1717_v21, %v1725_v56  ;;  %v1653_v2 = vld [vmem:[%s18790_s11 + $0x2818] sm:$0xff] }
 0x40b   : > { %13883 = vmatpush2.bf16.msra.mxu0 %v16709_v38  ;;  %v17125_v38 = vcombine.low %v1461_v18, %v1469_v30  ;;  %v1661_v7 = vld [vmem:[%s18790_s11 + $0x2858] sm:$0xff] }
 0x40c   : > { %13884 = vmatprep.subr.bf16.mxu0 %v16694_v43  ;;  %v17110_v43 = vcombine.high %v1445_v61, %v1453_v23  ;;  %v17318_v13 = vcombine.high %v1653_v2, %v1661_v7  ;;  %v1637_v14 = vld [vmem:[%s18790_s11 + $0x2798] sm:$0xff]  ;;  %v17317_v18 = vcombine.low %v1653_v2, %v1661_v7 }
 0x40d   : > { %13926 = vmatpush2.bf16.msra.mxu1 %v16965_v40  ;;  %v17381_v40 = vcombine.low %v1717_v21, %v1725_v56  ;;  %v1645_v17 = vld [vmem:[%s18790_s11 + $0x27d8] sm:$0xff]  ;;  %v19998_v21 = vpop.f32.mrf.mxu1 }
 0x40e   : > { %13927 = vmatprep.subr.bf16.mxu1 %v16950_v44  ;;  %v17366_v44 = vcombine.high %v1701_v37, %v1709_v41  ;;  %v17302_v30 = vcombine.high %v1637_v14, %v1645_v17  ;;  %v1573_v2 = vld [vmem:[%s18790_s11 + $0x2598] sm:$0xff] }
 0x40f   : > { %13885 = vmatpush2.bf16.msra.mxu0 %v16693_v60  ;;  %v17109_v60 = vcombine.low %v1445_v61, %v1453_v23  ;;  %v17301_v61 = vcombine.low %v1637_v14, %v1645_v17  ;;  %v1581_v7 = vld [vmem:[%s18790_s11 + $0x25d8] sm:$0xff] }
 0x410   : > { %13886 = vmatprep.subr.bf16.mxu0 %v16678_v48  ;;  %v17094_v48 = vcombine.high %v1429_v51, %v1437_v27 }
 0x411   : > { %13928 = vmatpush2.bf16.msra.mxu1 %v16949_v3  ;;  %v17365_v3 = vcombine.low %v1701_v37, %v1709_v41 }
 0x412   : > { %13929 = vmatprep.subr.bf16.mxu1 %v16934_v53  ;;  %v17350_v53 = vcombine.high %v1685_v45, %v1693_v24 }
 0x413   : > { %13887 = vmatpush2.bf16.msra.mxu0 %v16677_v1  ;;  %v17093_v1 = vcombine.low %v1429_v51, %v1437_v27  ;;  %v1861_v51 = vld [vmem:[%s18790_s11 + $0x2e98] sm:$0xff] }
 0x414   : > { %13942 = vmatprep.subr.bf16.mxu0 %v17174_v31  ;;  %v17078_v31 = vcombine.high %v1413_v57, %v1421_v25  ;;  %v1869_v27 = vld [vmem:[%s18790_s11 + $0x2ed8] sm:$0xff] }
 0x415   : > { %13930 = vmatpush2.bf16.msra.mxu1 %v16933_v15  ;;  %v17349_v15 = vcombine.low %v1685_v45, %v1693_v24 }
 0x416   : > { %13985 = vmatprep.subr.bf16.mxu1 %v17430_v47  ;;  %13889 = vmatmul.mubr.bf16.vlgmr.msra.gmra.mxu0 %v19001_v46  ;;  %v17334_v47 = vcombine.high %v1669_v28, %v1677_v11 }
 0x417   : > { %13943 = vmatpush1.bf16.msra.mxu0 %v17173_v16  ;;  %13974 = vmatprep.mubr.bf16.mxu0 %v19024_v62  ;;  %v17077_v16 = vcombine.low %v1413_v57, %v1421_v25  ;;  %v1589_v57 = vld [vmem:[%s18790_s11 + $0x2618] sm:$0xff] }
 0x418   : > { %13932 = vmatmul.mubr.bf16.vlgmr.msra.gmra.mxu1 %v19012_v50  ;;  %13944 = vmatprep.subr.bf16.mxu0 %v17158_v29  ;;  %v17333_v29 = vcombine.low %v1669_v28, %v1677_v11  ;;  %v1597_v25 = vld [vmem:[%s18790_s11 + $0x2658] sm:$0xff] }
 0x419   : > { %13986 = vmatpush1.bf16.msra.mxu1 %v17429_v54  ;;  %14017 = vmatprep.mubr.bf16.mxu1 %v19031_v63  ;;  %v19988_v54 = vpop.f32.mrf.mxu0  ;;  %v1845_v11 = vld [vmem:[%s18790_s11 + $0x2e18] sm:$0xff]  ;;  %v17253_v14 = vcombine.low %v1589_v57, %v1597_v25 }
 0x41a   : > { %13987 = vmatprep.subr.bf16.mxu1 %v17414_v10  ;;  %v17062_v10 = vcombine.high %v1397_v6, %v1405_v39 }
 0x41b   : > { %13945 = vmatpush1.bf16.msra.mxu0 %v17157_v32  ;;  %v1893_v32 = vld [vmem:[%s18790_s11 + $0x2f98] sm:$0xff] }
 0x41c   : > { %13946 = vmatprep.subr.bf16.mxu0 %v17142_v42  ;;  %v17061_v42 = vcombine.low %v1397_v6, %v1405_v39  ;;  %v17254_v6 = vcombine.high %v1589_v57, %v1597_v25  ;;  %v13504_v57 = vadd.f32 %v19990_v5, %v19988_v54 }
 0x41d   : > { %13988 = vmatpush1.bf16.msra.mxu1 %v17413_v8  ;;  %v1901_v8 = vld [vmem:[%s18790_s11 + $0x2fd8] sm:$0xff] }
 0x41e   : > { %13989 = vmatprep.subr.bf16.mxu1 %v17398_v4  ;;  %v19996_v4 = vpop.f32.mrf.mxu0  ;;  %v17558_v56 = vcombine.high %v1893_v32, %v1901_v8  ;;  %v17557_v37 = vcombine.low %v1893_v32, %v1901_v8  ;;  %v17238_v32 = vcombine.high %v1573_v2, %v1581_v7 }
 0x41f   : > { %13947 = vmatpush1.bf16.msra.mxu0 %v17141_v49  ;;  %v1621_v49 = vld [vmem:[%s18790_s11 + $0x2718] sm:$0xff] }
 0x420   : > { %13948 = vmatprep.subr.bf16.mxu0 %v17126_v19  ;;  %v1877_v19 = vld [vmem:[%s18790_s11 + $0x2f18] sm:$0xff]  ;;  %v20004_v23 = vpop.f32.mrf.mxu0 }
 0x421   : > { %13990 = vmatpush1.bf16.msra.mxu1 %v17397_v58  ;;  %v1629_v58 = vld [vmem:[%s18790_s11 + $0x2758] sm:$0xff] }
 0x422   : > { %13991 = vmatprep.subr.bf16.mxu1 %v17382_v52  ;;  %v1885_v52 = vld [vmem:[%s18790_s11 + $0x2f58] sm:$0xff]  ;;  %v17286_v41 = vcombine.high %v1621_v49, %v1629_v58  ;;  %v17285_v45 = vcombine.low %v1621_v49, %v1629_v58  ;;  %v20012_v24 = vpop.f32.mrf.mxu0 }
 0x423   : > { %13949 = vmatpush1.bf16.msra.mxu0 %v17125_v38  ;;  %v20006_v38 = vpop.f32.mrf.mxu1  ;;  %v1821_v49 = vld [vmem:[%s18790_s11 + $0x2d58] sm:$0xff] }
 0x424   : > { %13950 = vmatprep.subr.bf16.mxu0 %v17110_v43  ;;  %v1605_v43 = vld [vmem:[%s18790_s11 + $0x2698] sm:$0xff]  ;;  %v13546_v28 = vpop.f32.mrf.mxu0 }
 0x425   : > { %13992 = vmatpush1.bf16.msra.mxu1 %v17381_v40  ;;  %v17542_v40 = vcombine.high %v1877_v19, %v1885_v52 }
 0x426   : > { %13993 = vmatprep.subr.bf16.mxu1 %v17366_v44  ;;  %v1613_v44 = vld [vmem:[%s18790_s11 + $0x26d8] sm:$0xff] }
 0x427   : > { %13951 = vmatpush1.bf16.msra.mxu0 %v17109_v60  ;;  %v17541_v60 = vcombine.low %v1877_v19, %v1885_v52  ;;  %v17237_v19 = vcombine.low %v1573_v2, %v1581_v7  ;;  %v13547_v2 = vadd.f32 %v13546_v28, %v13504_v57 }
 0x428   : > { %13952 = vmatprep.subr.bf16.mxu0 %v17094_v48  ;;  %v20014_v48 = vpop.f32.mrf.mxu1 }
 0x429   : > { %13994 = vmatpush1.bf16.msra.mxu1 %v17365_v3  ;;  %v17270_v3 = vcombine.high %v1605_v43, %v1613_v44  ;;  %v13510_v28 = vadd.f32 %v20014_v48, %v20012_v24  ;;  %v2005_v48 = vld [vmem:[%s18790_s11 + $0x3318] sm:$0xff] }
 0x42a   : > { %13995 = vmatprep.subr.bf16.mxu1 %v17350_v53  ;;  %v17526_v53 = vcombine.high %v1861_v51, %v1869_v27 }
 0x42b   : > { %13953 = vmatpush1.bf16.msra.mxu0 %v17093_v1  ;;  %v1853_v1 = vld [vmem:[%s18790_s11 + $0x2e58] sm:$0xff] }
 0x42c   : > { %13954 = vmatprep.subr.bf16.mxu0 %v17078_v31  ;;  %v17269_v31 = vcombine.low %v1605_v43, %v1613_v44  ;;  %v17510_v39 = vcombine.high %v1845_v11, %v1853_v1  ;;  %v17509_v17 = vcombine.low %v1845_v11, %v1853_v1  ;;  %v1797_v44 = vld [vmem:[%s18790_s11 + $0x2c98] sm:$0xff] }
 0x42d   : > { %13996 = vmatpush1.bf16.msra.mxu1 %v17349_v15  ;;  %v20020_v15 = vpop.f32.mrf.mxu1  ;;  %v1525_v1 = vld [vmem:[%s18790_s11 + $0x2418] sm:$0xff] }
 0x42e   : > { %13997 = vmatprep.subr.bf16.mxu1 %v17334_v47  ;;  %v17525_v47 = vcombine.low %v1861_v51, %v1869_v27  ;;  %v1805_v51 = vld [vmem:[%s18790_s11 + $0x2cd8] sm:$0xff] }
 0x42f   : > { %13955 = vmatpush1.bf16.msra.mxu0 %v17077_v16  ;;  %v13548_v16 = vpop.f32.mrf.mxu0  ;;  %v17462_v11 = vcombine.high %v1797_v44, %v1805_v51  ;;  %v17461_v54 = vcombine.low %v1797_v44, %v1805_v51 }
 0x430   : > { %13956 = vmatprep.subr.bf16.mxu0 %v17062_v10  ;;  %v1837_v10 = vld [vmem:[%s18790_s11 + $0x2dd8] sm:$0xff] }
 0x431   : > { %13998 = vmatpush1.bf16.msra.mxu1 %v17333_v29  ;;  %v1829_v29 = vld [vmem:[%s18790_s11 + $0x2d98] sm:$0xff] }
 0x432   : > { %13999 = vmatprep.subr.bf16.mxu1 %v17318_v13  ;;  %v20026_v13 = vpop.f32.mrf.mxu1  ;;  %v17494_v8 = vcombine.high %v1829_v29, %v1837_v10  ;;  %v17493_v52 = vcombine.low %v1829_v29, %v1837_v10  ;;  %v13508_v10 = vadd.f32 %v20006_v38, %v20004_v23 }
 0x433   : > { %13957 = vmatpush1.bf16.msra.mxu0 %v17061_v42  ;;  %v1557_v42 = vld [vmem:[%s18790_s11 + $0x2518] sm:$0xff] }
 0x434   : > { %13958 = vmatprep.subr.bf16.mxu0 %v17302_v30  ;;  %v13550_v30 = vpop.f32.mrf.mxu0  ;;  %v20032_v58 = vpop.f32.mrf.mxu1 }
 0x435   : > { %14000 = vmatpush1.bf16.msra.mxu1 %v17317_v18  ;;  %v1565_v18 = vld [vmem:[%s18790_s11 + $0x2558] sm:$0xff] }
 0x436   : > { %14001 = vmatprep.subr.bf16.mxu1 %v17558_v56  ;;  %v1813_v56 = vld [vmem:[%s18790_s11 + $0x2d18] sm:$0xff]  ;;  %v13552_v43 = vpop.f32.mrf.mxu0  ;;  %v20038_v27 = vpop.f32.mrf.mxu1 }
 0x437   : > { %13959 = vmatpush2.bf16.msra.mxu0 %v17301_v61  ;;  %v17222_v61 = vcombine.high %v1557_v42, %v1565_v18 }
 0x438   : > { %13960 = vmatprep.subr.bf16.mxu0 %v17286_v41  ;;  %v1541_v41 = vld [vmem:[%s18790_s11 + $0x2498] sm:$0xff]  ;;  %v13675_v25 = vpop.f32.mrf.mxu1 }
 0x439   : > { %14002 = vmatpush2.bf16.msra.mxu1 %v17557_v37  ;;  %v17478_v37 = vcombine.high %v1813_v56, %v1821_v49 }
 0x43a   : > { %14003 = vmatprep.subr.bf16.mxu1 %v17542_v40  ;;  %v1549_v40 = vld [vmem:[%s18790_s11 + $0x24d8] sm:$0xff] }
 0x43b   : > { %13961 = vmatpush2.bf16.msra.mxu0 %v17285_v45  ;;  %v17221_v45 = vcombine.low %v1557_v42, %v1565_v18  ;;  %v17205_v7 = vcombine.low %v1541_v41, %v1549_v40  ;;  %v2029_v42 = vld [vmem:[%s18790_s11 + $0x33d8] sm:$0xff]  ;;  %v13590_v18 = vadd.f32 %v20020_v15, %v13547_v2 }
 0x43c   : > { %13962 = vmatprep.subr.bf16.mxu0 %v17270_v3  ;;  %v17477_v3 = vcombine.low %v1813_v56, %v1821_v49  ;;  %v13551_v56 = vadd.f32 %v13550_v30, %v13508_v10  ;;  %v2013_v15 = vld [vmem:[%s18790_s11 + $0x3358] sm:$0xff] }
 0x43d   : > { %14004 = vmatpush2.bf16.msra.mxu1 %v17541_v60  ;;  %v13632_v60 = vpop.f32.mrf.mxu0  ;;  %v2261_v30 = vld [vmem:[%s18790_s11 + $0x3b18] sm:$0xff] }
 0x43e   : > { %14005 = vmatprep.subr.bf16.mxu1 %v17526_v53  ;;  %v17206_v53 = vcombine.high %v1541_v41, %v1549_v40  ;;  %v2269_v41 = vld [vmem:[%s18790_s11 + $0x3b58] sm:$0xff]  ;;  %v13594_v40 = vadd.f32 %v20032_v58, %v13551_v56 }
 0x43f   : > { %13963 = vmatpush2.bf16.msra.mxu0 %v17269_v31  ;;  %v1533_v31 = vld [vmem:[%s18790_s11 + $0x2458] sm:$0xff]  ;;  %v13634_v29 = vpop.f32.mrf.mxu0  ;;  %v17926_v58 = vcombine.high %v2261_v30, %v2269_v41 }
 0x440   : > { %13964 = vmatprep.subr.bf16.mxu0 %v17254_v6  ;;  %v1789_v6 = vld [vmem:[%s18790_s11 + $0x2c58] sm:$0xff]  ;;  %v17190_v5 = vcombine.high %v1525_v1, %v1533_v31  ;;  %v17189_v23 = vcombine.low %v1525_v1, %v1533_v31 }
 0x441   : > { %14006 = vmatpush2.bf16.msra.mxu1 %v17525_v47  ;;  %v1781_v47 = vld [vmem:[%s18790_s11 + $0x2c18] sm:$0xff]  ;;  %v13636_v38 = vpop.f32.mrf.mxu0 }
 0x442   : > { %14007 = vmatprep.subr.bf16.mxu1 %v17510_v39  ;;  %v13506_v39 = vadd.f32 %v19998_v21, %v19996_v4  ;;  %v2277_v4 = vld [vmem:[%s18790_s11 + $0x3b98] sm:$0xff]  ;;  %v13637_v57 = vadd.f32 %v13636_v38, %v13594_v40 }
 0x443   : > { %13965 = vmatpush2.bf16.msra.mxu0 %v17253_v14  ;;  %v2285_v21 = vld [vmem:[%s18790_s11 + $0x3bd8] sm:$0xff] }
 0x444   : > { %13966 = vmatprep.subr.bf16.mxu0 %v17238_v32  ;;  %v13549_v14 = vadd.f32 %v13548_v16, %v13506_v39  ;;  %v17446_v32 = vcombine.high %v1781_v47, %v1789_v6  ;;  %v17445_v16 = vcombine.low %v1781_v47, %v1789_v6  ;;  %v17942_v24 = vcombine.high %v2277_v4, %v2285_v21  ;;  %v1997_v1 = vld [vmem:[%s18790_s11 + $0x32d8] sm:$0xff] }
 0x445   : > { %14008 = vmatpush2.bf16.msra.mxu1 %v17509_v17  ;;  %v13677_v17 = vpop.f32.mrf.mxu1  ;;  %v2245_v31 = vld [vmem:[%s18790_s11 + $0x3a98] sm:$0xff]  ;;  %v17669_v39 = vcombine.low %v2005_v48, %v2013_v15 }
 0x446   : > { %14009 = vmatprep.subr.bf16.mxu1 %v17494_v8  ;;  %v2021_v8 = vld [vmem:[%s18790_s11 + $0x3398] sm:$0xff] }
 0x447   : > { %13967 = vmatpush2.bf16.msra.mxu0 %v17237_v19  ;;  %v17686_v49 = vcombine.high %v2021_v8, %v2029_v42  ;;  %v13592_v19 = vadd.f32 %v20026_v13, %v13549_v14  ;;  %v17685_v51 = vcombine.low %v2021_v8, %v2029_v42  ;;  %v17941_v13 = vcombine.low %v2277_v4, %v2285_v21  ;;  %v2253_v47 = vld [vmem:[%s18790_s11 + $0x3ad8] sm:$0xff] }
 0x448   : > { %13968 = vmatprep.subr.bf16.mxu0 %v17222_v61  ;;  %v13633_v61 = vadd.f32 %v13632_v60, %v13590_v18  ;;  %v20064_v60 = vld [vmem:[%s18790_s11 + $0x3298] sm:$0xff]  ;;  %v17910_v14 = vcombine.high %v2245_v31, %v2253_v47 }
 0x449   : > { %14010 = vmatpush2.bf16.msra.mxu1 %v17493_v52  ;;  %v13553_v52 = vadd.f32 %v13552_v43, %v13510_v28  ;;  %v13635_v44 = vadd.f32 %v13634_v29, %v13592_v19  ;;  %v17670_v43 = vcombine.high %v2005_v48, %v2013_v15  ;;  %v17654_v10 = vcombine.high %v20064_v60, %v1997_v1  ;;  %v1973_v4 = vld [vmem:[%s18790_s11 + $0x3218] sm:$0xff]  ;;  %v327_v28 = vld [vmem:[#allocation2 + $0x68] sm:$0xff] }
 0x44a   : > { %14011 = vmatprep.subr.bf16.mxu1 %v17478_v37  ;;  %v13679_v37 = vpop.f32.mrf.mxu1  ;;  %v1981_v21 = vld [vmem:[%s18790_s11 + $0x3258] sm:$0xff]  ;;  %v17653_v56 = vcombine.low %v20064_v60, %v1997_v1  ;;  %v17909_v48 = vcombine.low %v2245_v31, %v2253_v47 }
 0x44b   : > { %13969 = vmatpush2.bf16.msra.mxu0 %v17221_v45  ;;  %v13638_v45 = vpop.f32.mrf.mxu0  ;;  %v13678_v2 = vadd.f32 %v13677_v17, %v13635_v44  ;;  %v2237_v38 = vld [vmem:[%s18790_s11 + $0x3a58] sm:$0xff]  ;;  %v17638_v15 = vcombine.high %v1973_v4, %v1981_v21 }
 0x44c   : > { %13970 = vmatprep.subr.bf16.mxu0 %v17206_v53  ;;  %v13676_v53 = vadd.f32 %v13675_v25, %v13633_v61  ;;  %v2213_v60 = vld [vmem:[%s18790_s11 + $0x3998] sm:$0xff] }
 0x44d   : > { %14012 = vmatpush2.bf16.msra.mxu1 %v17477_v3  ;;  %v13596_v3 = vadd.f32 %v20038_v27, %v13553_v52  ;;  %v326_v27 = vld [vmem:[#allocation2 + $0x50] sm:$0xff] }
 0x44e   : > { %14013 = vmatprep.subr.bf16.mxu1 %v17462_v11  ;;  %v13681_v11 = vpop.f32.mrf.mxu1 }
 0x44f   : > { %13971 = vmatpush2.bf16.msra.mxu0 %v17205_v7  ;;  %v13639_v7 = vadd.f32 %v13638_v45, %v13596_v3  ;;  %v1965_v45 = vld [vmem:[%s18790_s11 + $0x31d8] sm:$0xff] }
 0x450   : > { %13972 = vmatprep.subr.bf16.mxu0 %v17190_v5  ;;  %v17925_v5 = vcombine.low %v2261_v30, %v2269_v41  ;;  %v2221_v3 = vld [vmem:[%s18790_s11 + $0x39d8] sm:$0xff] }
 0x451   : > { %14014 = vmatpush2.bf16.msra.mxu1 %v17461_v54  ;;  %v17878_v47 = vcombine.high %v2213_v60, %v2221_v3 }
 0x452   : > { %14015 = vmatprep.subr.bf16.mxu1 %v17446_v32  ;;  %v13680_v32 = vadd.f32 %v13679_v37, %v13637_v57  ;;  %v342_v37 = vld [vmem:[#allocation2 + $0xe0] sm:$0xff] }
 0x453   : > { %13973 = vmatpush2.bf16.msra.mxu0 %v17189_v23  ;;  %v2229_v23 = vld [vmem:[%s18790_s11 + $0x3a18] sm:$0xff] }
 0x454   : > { %14028 = vmatprep.subr.bf16.mxu0 %v17686_v49  ;;  %v17894_v44 = vcombine.high %v2229_v23, %v2237_v38 }
 0x455   : > { %14016 = vmatpush2.bf16.msra.mxu1 %v17445_v16  ;;  %v13682_v16 = vadd.f32 %v13681_v11, %v13639_v7  ;;  %v17637_v11 = vcombine.low %v1973_v4, %v1981_v21  ;;  %v2205_v7 = vld [vmem:[%s18790_s11 + $0x3958] sm:$0xff] }
 0x456   : > { %14071 = vmatprep.subr.bf16.mxu1 %v17942_v24  ;;  %v13718_v6 = vpop.f32.mrf.mxu0  ;;  %13975 = vmatmul.mubr.bf16.vlgmr.msra.gmra.mxu0 %v19097_v20  ;;  %v1909_v21 = vld [vmem:[%s18790_s11 + $0x3018] sm:$0xff] }
 0x457   : > { %v13719_v29 = vadd.f32 %v13718_v6, %v13676_v53  ;;  %14029 = vmatpush1.bf16.msra.mxu0 %v17685_v51  ;;  %14060 = vmatprep.mubr.bf16.mxu0 %v19120_v35  ;;  %v1957_v51 = vld [vmem:[%s18790_s11 + $0x3198] sm:$0xff] }
 0x458   : > { %v13761_v54 = vpop.f32.mrf.mxu1  ;;  %14018 = vmatmul.mubr.bf16.vlgmr.msra.gmra.mxu1 %v19108_v55  ;;  %v13720_v25 = vpop.f32.mrf.mxu0  ;;  %14030 = vmatprep.subr.bf16.mxu0 %v17670_v43  ;;  %v17622_v1 = vcombine.high %v1957_v51, %v1965_v45  ;;  %v1941_v6 = vld [vmem:[%s18790_s11 + $0x3118] sm:$0xff] }
 0x459   : > { %14072 = vmatpush1.bf16.msra.mxu1 %v17941_v13  ;;  %v13762_v17 = vadd.f32 %v13761_v54, %v13719_v29  ;;  %v13721_v8 = vadd.f32 %v13720_v25, %v13678_v2  ;;  %14103 = vmatprep.mubr.bf16.mxu1 %v19127_v36  ;;  %v343_v13 = vld [vmem:[#allocation2 + $0x90] sm:$0xff]  ;;  %v2197_v2 = vld [vmem:[%s18790_s11 + $0x3918] sm:$0xff]  ;;  %v17621_v29 = vcombine.low %v1957_v51, %v1965_v45 }
 0x45a   : > { %v13763_v42 = vpop.f32.mrf.mxu1  ;;  %14073 = vmatprep.subr.bf16.mxu1 %v17926_v58  ;;  %v13722_v18 = vpop.f32.mrf.mxu0  ;;  %v17893_v58 = vcombine.low %v2229_v23, %v2237_v38  ;;  %v17877_v54 = vcombine.low %v2213_v60, %v2221_v3  ;;  %v17862_v25 = vcombine.high %v2197_v2, %v2205_v7  ;;  %v2397_v51 = vld [vmem:[%s18790_s11 + $0x3f58] sm:$0xff] }
 0x45b   : > { %v15494_v49 = vadd.f32 %v13762_v17, %v326_v27  ;;  %v13764_v19 = vadd.f32 %v13763_v42, %v13721_v8  ;;  %v13723_v52 = vadd.f32 %v13722_v18, %v13680_v32  ;;  %14031 = vmatpush1.bf16.msra.mxu0 %v17669_v39  ;;  %v1949_v39 = vld [vmem:[%s18790_s11 + $0x3158] sm:$0xff]  ;;  %v17861_v8 = vcombine.low %v2197_v2, %v2205_v7 }
 0x45c   : > { %v13765_v61 = vpop.f32.mrf.mxu1  ;;  %v13724_v24 = vpop.f32.mrf.mxu0  ;;  %14032 = vmatprep.subr.bf16.mxu0 %v17654_v10  ;;  %v17606_v27 = vcombine.high %v1941_v6, %v1949_v39  ;;  %v1933_v10 = vld [vmem:[%s18790_s11 + $0x30d8] sm:$0xff]  ;;  %v17605_v17 = vcombine.low %v1941_v6, %v1949_v39 }
 0x45d   : > { %14074 = vmatpush1.bf16.msra.mxu1 %v17925_v5  ;;  %15526 = vst [vmem:[#allocation2 + $0x50] sm:$0xff] %v15494_v49  ;;  %v15495_v30 = vadd.f32 %v13764_v19, %v327_v28  ;;  %v13766_v41 = vadd.f32 %v13765_v61, %v13723_v52  ;;  %v13725_v40 = vadd.f32 %v13724_v24, %v13682_v16  ;;  %v1925_v5 = vld [vmem:[%s18790_s11 + $0x3098] sm:$0xff] }
 0x45e   : > { %14075 = vmatprep.subr.bf16.mxu1 %v17910_v14  ;;  %v13767_v43 = vpop.f32.mrf.mxu1  ;;  %v2181_v14 = vld [vmem:[%s18790_s11 + $0x3898] sm:$0xff]  ;;  %v17590_v42 = vcombine.high %v1925_v5, %v1933_v10  ;;  %v17589_v23 = vcombine.low %v1925_v5, %v1933_v10 }
 0x45f   : > { %15527 = vst [vmem:[#allocation2 + $0x68] sm:$0xff] %v15495_v30  ;;  %v15510_v53 = vadd.f32 %v13766_v41, %v342_v37  ;;  %v13768_v57 = vadd.f32 %v13767_v43, %v13725_v40  ;;  %14033 = vmatpush1.bf16.msra.mxu0 %v17653_v56  ;;  %v2189_v32 = vld [vmem:[%s18790_s11 + $0x38d8] sm:$0xff] }
 0x460   : > { %14034 = vmatprep.subr.bf16.mxu0 %v17638_v15  ;;  %v17846_v4 = vcombine.high %v2181_v14, %v2189_v32  ;;  %v1917_v28 = vld [vmem:[%s18790_s11 + $0x3058] sm:$0xff]  ;;  %v17845_v38 = vcombine.low %v2181_v14, %v2189_v32 }
 0x461   : > { %14076 = vmatpush1.bf16.msra.mxu1 %v17909_v48  ;;  %15542 = vst [vmem:[#allocation2 + $0xe0] sm:$0xff] %v15510_v53  ;;  %v15511_v31 = vadd.f32 %v13768_v57, %v343_v13  ;;  %v2165_v18 = vld [vmem:[%s18790_s11 + $0x3818] sm:$0xff]  ;;  %v17574_v16 = vcombine.high %v1909_v21, %v1917_v28  ;;  %v17573_v24 = vcombine.low %v1909_v21, %v1917_v28 }
 0x462   : > { %14077 = vmatprep.subr.bf16.mxu1 %v17894_v44  ;;  %v2173_v56 = vld [vmem:[%s18790_s11 + $0x3858] sm:$0xff] }
 0x463   : > { %15543 = vst [vmem:[#allocation2 + $0x90] sm:$0xff] %v15511_v31  ;;  %14035 = vmatpush1.bf16.msra.mxu0 %v17637_v11  ;;  %v17830_v49 = vcombine.high %v2165_v18, %v2173_v56  ;;  %v2149_v19 = vld [vmem:[%s18790_s11 + $0x3798] sm:$0xff]  ;;  %v17829_v48 = vcombine.low %v2165_v18, %v2173_v56 }
 0x464   : > { %14036 = vmatprep.subr.bf16.mxu0 %v17622_v1  ;;  %v2157_v52 = vld [vmem:[%s18790_s11 + $0x37d8] sm:$0xff] }
 0x465   : > { %14078 = vmatpush1.bf16.msra.mxu1 %v17893_v58  ;;  %v2405_v61 = vld [vmem:[%s18790_s11 + $0x3f98] sm:$0xff]  ;;  %v17814_v15 = vcombine.high %v2149_v19, %v2157_v52  ;;  %v17813_v45 = vcombine.low %v2149_v19, %v2157_v52 }
 0x466   : > { %14079 = vmatprep.subr.bf16.mxu1 %v17878_v47  ;;  %v2413_v37 = vld [vmem:[%s18790_s11 + $0x3fd8] sm:$0xff] }
 0x467   : > { %14037 = vmatpush1.bf16.msra.mxu0 %v17621_v29  ;;  %v18070_v30 = vcombine.high %v2405_v61, %v2413_v37  ;;  %v2133_v41 = vld [vmem:[%s18790_s11 + $0x3718] sm:$0xff]  ;;  %v18069_v13 = vcombine.low %v2405_v61, %v2413_v37 }
 0x468   : > { %14038 = vmatprep.subr.bf16.mxu0 %v17606_v27  ;;  %v2141_v40 = vld [vmem:[%s18790_s11 + $0x3758] sm:$0xff] }
 0x469   : > { %14080 = vmatpush1.bf16.msra.mxu1 %v17877_v54  ;;  %v2389_v44 = vld [vmem:[%s18790_s11 + $0x3f18] sm:$0xff]  ;;  %v17798_v43 = vcombine.high %v2133_v41, %v2141_v40  ;;  %v17797_v58 = vcombine.low %v2133_v41, %v2141_v40 }
 0x46a   : > { %14081 = vmatprep.subr.bf16.mxu1 %v17862_v25  ;;  %v18054_v60 = vcombine.high %v2389_v44, %v2397_v51  ;;  %v2117_v3 = vld [vmem:[%s18790_s11 + $0x3698] sm:$0xff]  ;;  %v18053_v1 = vcombine.low %v2389_v44, %v2397_v51 }
 0x46b   : > { %14039 = vmatpush1.bf16.msra.mxu0 %v17605_v17  ;;  %v2125_v53 = vld [vmem:[%s18790_s11 + $0x36d8] sm:$0xff] }
 0x46c   : > { %14040 = vmatprep.subr.bf16.mxu0 %v17590_v42  ;;  %v2373_v57 = vld [vmem:[%s18790_s11 + $0x3e98] sm:$0xff]  ;;  %v17782_v31 = vcombine.high %v2117_v3, %v2125_v53  ;;  %v17781_v29 = vcombine.low %v2117_v3, %v2125_v53  ;;  %v486_v3 = vld [vmem:[%s18790_s11 + $0x3a0] sm:$0xff] }
 0x46d   : > { %14082 = vmatpush1.bf16.msra.mxu1 %v17861_v8  ;;  %v2381_v11 = vld [vmem:[%s18790_s11 + $0x3ed8] sm:$0xff]  ;;  %v494_v53 = vld [vmem:[%s18790_s11 + $0x3e0] sm:$0xff] }
 0x46e   : > { %14083 = vmatprep.subr.bf16.mxu1 %v17846_v4  ;;  %v18038_v47 = vcombine.high %v2373_v57, %v2381_v11  ;;  %v2101_v6 = vld [vmem:[%s18790_s11 + $0x3618] sm:$0xff]  ;;  %v18037_v54 = vcombine.low %v2373_v57, %v2381_v11  ;;  %v742_v57 = vld [vmem:[%s18790_s11 + $0xba0] sm:$0xff] }
 0x46f   : > { %14041 = vmatpush1.bf16.msra.mxu0 %v17589_v23  ;;  %v2109_v39 = vld [vmem:[%s18790_s11 + $0x3658] sm:$0xff]  ;;  %v750_v11 = vld [vmem:[%s18790_s11 + $0xbe0] sm:$0xff] }
 0x470   : > { %14042 = vmatprep.subr.bf16.mxu0 %v17574_v16  ;;  %v2357_v2 = vld [vmem:[%s18790_s11 + $0x3e18] sm:$0xff]  ;;  %v17766_v27 = vcombine.high %v2101_v6, %v2109_v39  ;;  %v17765_v17 = vcombine.low %v2101_v6, %v2109_v39  ;;  %v470_v6 = vld [vmem:[%s18790_s11 + $0x320] sm:$0xff] }
 0x471   : > { %14084 = vmatpush1.bf16.msra.mxu1 %v17845_v38  ;;  %v2365_v7 = vld [vmem:[%s18790_s11 + $0x3e58] sm:$0xff]  ;;  %v478_v39 = vld [vmem:[%s18790_s11 + $0x360] sm:$0xff] }
 0x472   : > { %14085 = vmatprep.subr.bf16.mxu1 %v17830_v49  ;;  %v18022_v25 = vcombine.high %v2357_v2, %v2365_v7  ;;  %v2085_v5 = vld [vmem:[%s18790_s11 + $0x3598] sm:$0xff]  ;;  %v18021_v8 = vcombine.low %v2357_v2, %v2365_v7  ;;  %v726_v2 = vld [vmem:[%s18790_s11 + $0xb20] sm:$0xff] }
 0x473   : > { %14043 = vmatpush1.bf16.msra.mxu0 %v17573_v24  ;;  %v2093_v10 = vld [vmem:[%s18790_s11 + $0x35d8] sm:$0xff]  ;;  %v734_v7 = vld [vmem:[%s18790_s11 + $0xb60] sm:$0xff] }
 0x474   : > { %14044 = vmatprep.subr.bf16.mxu0 %v17814_v15  ;;  %v2341_v14 = vld [vmem:[%s18790_s11 + $0x3d98] sm:$0xff]  ;;  %v17750_v42 = vcombine.high %v2085_v5, %v2093_v10  ;;  %v17749_v23 = vcombine.low %v2085_v5, %v2093_v10  ;;  %v454_v5 = vld [vmem:[%s18790_s11 + $0x2a0] sm:$0xff] }
 0x475   : > { %14086 = vmatpush1.bf16.msra.mxu1 %v17829_v48  ;;  %v2349_v32 = vld [vmem:[%s18790_s11 + $0x3dd8] sm:$0xff]  ;;  %v462_v10 = vld [vmem:[%s18790_s11 + $0x2e0] sm:$0xff] }
 0x476   : > { %14087 = vmatprep.subr.bf16.mxu1 %v18070_v30  ;;  %v18006_v4 = vcombine.high %v2341_v14, %v2349_v32  ;;  %v2069_v21 = vld [vmem:[%s18790_s11 + $0x3518] sm:$0xff]  ;;  %v18005_v38 = vcombine.low %v2341_v14, %v2349_v32  ;;  %v710_v14 = vld [vmem:[%s18790_s11 + $0xaa0] sm:$0xff] }
 0x477   : > { %14045 = vmatpush2.bf16.msra.mxu0 %v17813_v45  ;;  %v2077_v28 = vld [vmem:[%s18790_s11 + $0x3558] sm:$0xff]  ;;  %v718_v32 = vld [vmem:[%s18790_s11 + $0xae0] sm:$0xff] }
 0x478   : > { %14046 = vmatprep.subr.bf16.mxu0 %v17798_v43  ;;  %v2325_v18 = vld [vmem:[%s18790_s11 + $0x3d18] sm:$0xff]  ;;  %v17734_v16 = vcombine.high %v2069_v21, %v2077_v28  ;;  %v17733_v24 = vcombine.low %v2069_v21, %v2077_v28  ;;  %v438_v21 = vld [vmem:[%s18790_s11 + $0x220] sm:$0xff] }
 0x479   : > { %14088 = vmatpush2.bf16.msra.mxu1 %v18069_v13  ;;  %v2333_v56 = vld [vmem:[%s18790_s11 + $0x3d58] sm:$0xff]  ;;  %v446_v28 = vld [vmem:[%s18790_s11 + $0x260] sm:$0xff] }
 0x47a   : > { %14089 = vmatprep.subr.bf16.mxu1 %v18054_v60  ;;  %v17990_v49 = vcombine.high %v2325_v18, %v2333_v56  ;;  %v2053_v19 = vld [vmem:[%s18790_s11 + $0x3498] sm:$0xff]  ;;  %v17989_v48 = vcombine.low %v2325_v18, %v2333_v56  ;;  %v694_v18 = vld [vmem:[%s18790_s11 + $0xa20] sm:$0xff] }
 0x47b   : > { %14047 = vmatpush2.bf16.msra.mxu0 %v17797_v58  ;;  %v2061_v52 = vld [vmem:[%s18790_s11 + $0x34d8] sm:$0xff]  ;;  %v702_v56 = vld [vmem:[%s18790_s11 + $0xa60] sm:$0xff] }
 0x47c   : > { %14048 = vmatprep.subr.bf16.mxu0 %v17782_v31  ;;  %v2309_v61 = vld [vmem:[%s18790_s11 + $0x3c98] sm:$0xff]  ;;  %v17718_v15 = vcombine.high %v2053_v19, %v2061_v52  ;;  %v17717_v45 = vcombine.low %v2053_v19, %v2061_v52  ;;  %v16152_v31 = vcombine.high %v486_v3, %v494_v53  ;;  %v422_v19 = vld [vmem:[%s18790_s11 + $0x1a0] sm:$0xff] }
 0x47d   : > { %14090 = vmatpush2.bf16.msra.mxu1 %v18053_v1  ;;  %v2317_v37 = vld [vmem:[%s18790_s11 + $0x3cd8] sm:$0xff]  ;;  %v430_v52 = vld [vmem:[%s18790_s11 + $0x1e0] sm:$0xff] }
 0x47e   : > { %14091 = vmatprep.subr.bf16.mxu1 %v18038_v47  ;;  %v17974_v30 = vcombine.high %v2309_v61, %v2317_v37  ;;  %v2037_v41 = vld [vmem:[%s18790_s11 + $0x3418] sm:$0xff]  ;;  %v17973_v13 = vcombine.low %v2309_v61, %v2317_v37  ;;  %v16408_v47 = vcombine.high %v742_v57, %v750_v11  ;;  %v678_v61 = vld [vmem:[%s18790_s11 + $0x9a0] sm:$0xff] }
 0x47f   : > { %14049 = vmatpush2.bf16.msra.mxu0 %v17781_v29  ;;  %v2045_v40 = vld [vmem:[%s18790_s11 + $0x3458] sm:$0xff]  ;;  %v16151_v29 = vcombine.low %v486_v3, %v494_v53  ;;  %v686_v37 = vld [vmem:[%s18790_s11 + $0x9e0] sm:$0xff] }
 0x480   : > { %14050 = vmatprep.subr.bf16.mxu0 %v17766_v27  ;;  %v2293_v44 = vld [vmem:[%s18790_s11 + $0x3c18] sm:$0xff]  ;;  %v17702_v43 = vcombine.high %v2037_v41, %v2045_v40  ;;  %v17701_v58 = vcombine.low %v2037_v41, %v2045_v40  ;;  %v16136_v27 = vcombine.high %v470_v6, %v478_v39  ;;  %v406_v41 = vld [vmem:[%s18790_s11 + $0x120] sm:$0xff] }
 0x481   : > { %14092 = vmatpush2.bf16.msra.mxu1 %v18037_v54  ;;  %v2301_v51 = vld [vmem:[%s18790_s11 + $0x3c58] sm:$0xff]  ;;  %v16407_v54 = vcombine.low %v742_v57, %v750_v11  ;;  %v414_v40 = vld [vmem:[%s18790_s11 + $0x160] sm:$0xff] }
 0x482   : > { %14093 = vmatprep.subr.bf16.mxu1 %v18022_v25  ;;  %v17958_v60 = vcombine.high %v2293_v44, %v2301_v51  ;;  %v17957_v1 = vcombine.low %v2293_v44, %v2301_v51  ;;  %v16392_v25 = vcombine.high %v726_v2, %v734_v7  ;;  %v662_v44 = vld [vmem:[%s18790_s11 + $0x920] sm:$0xff] }
 0x483   : > { %14051 = vmatpush2.bf16.msra.mxu0 %v17765_v17  ;;  %v16135_v17 = vcombine.low %v470_v6, %v478_v39  ;;  %v670_v51 = vld [vmem:[%s18790_s11 + $0x960] sm:$0xff] }
 0x484   : > { %14052 = vmatprep.subr.bf16.mxu0 %v17750_v42  ;;  %v16120_v42 = vcombine.high %v454_v5, %v462_v10  ;;  %v390_v3 = vld [vmem:[%s18790_s11 + $0xa0] sm:$0xff] }
 0x485   : > { %14094 = vmatpush2.bf16.msra.mxu1 %v18021_v8  ;;  %v16391_v8 = vcombine.low %v726_v2, %v734_v7  ;;  %v398_v53 = vld [vmem:[%s18790_s11 + $0xe0] sm:$0xff] }
 0x486   : > { %14095 = vmatprep.subr.bf16.mxu1 %v18006_v4  ;;  %v16376_v4 = vcombine.high %v710_v14, %v718_v32  ;;  %v646_v57 = vld [vmem:[%s18790_s11 + $0x8a0] sm:$0xff] }
 0x487   : > { %14053 = vmatpush2.bf16.msra.mxu0 %v17749_v23  ;;  %v16119_v23 = vcombine.low %v454_v5, %v462_v10  ;;  %v654_v11 = vld [vmem:[%s18790_s11 + $0x8e0] sm:$0xff] }
 0x488   : > { %14054 = vmatprep.subr.bf16.mxu0 %v17734_v16  ;;  %v16104_v16 = vcombine.high %v438_v21, %v446_v28  ;;  %v374_v6 = vld [vmem:[%s18790_s11 + $0x20] sm:$0xff] }
 0x489   : > { %14096 = vmatpush2.bf16.msra.mxu1 %v18005_v38  ;;  %v16375_v38 = vcombine.low %v710_v14, %v718_v32  ;;  %v382_v39 = vld [vmem:[%s18790_s11 + $0x60] sm:$0xff] }
 0x48a   : > { %14097 = vmatprep.subr.bf16.mxu1 %v17990_v49  ;;  %v16360_v49 = vcombine.high %v694_v18, %v702_v56  ;;  %v630_v2 = vld [vmem:[%s18790_s11 + $0x820] sm:$0xff] }
 0x48b   : > { %14055 = vmatpush2.bf16.msra.mxu0 %v17733_v24  ;;  %v16103_v24 = vcombine.low %v438_v21, %v446_v28  ;;  %v638_v7 = vld [vmem:[%s18790_s11 + $0x860] sm:$0xff] }
 0x48c   : > { %14056 = vmatprep.subr.bf16.mxu0 %v17718_v15  ;;  %v16088_v15 = vcombine.high %v422_v19, %v430_v52  ;;  %v614_v5 = vld [vmem:[%s18790_s11 + $0x7a0] sm:$0xff] }
 0x48d   : > { %14098 = vmatpush2.bf16.msra.mxu1 %v17989_v48  ;;  %v16359_v48 = vcombine.low %v694_v18, %v702_v56  ;;  %v622_v10 = vld [vmem:[%s18790_s11 + $0x7e0] sm:$0xff] }
 0x48e   : > { %14099 = vmatprep.subr.bf16.mxu1 %v17974_v30  ;;  %v16344_v30 = vcombine.high %v678_v61, %v686_v37  ;;  %v870_v14 = vld [vmem:[%s18790_s11 + $0xfa0] sm:$0xff] }
 0x48f   : > { %14057 = vmatpush2.bf16.msra.mxu0 %v17717_v45  ;;  %v16087_v45 = vcombine.low %v422_v19, %v430_v52  ;;  %v878_v32 = vld [vmem:[%s18790_s11 + $0xfe0] sm:$0xff] }
 0x490   : > { %14058 = vmatprep.subr.bf16.mxu0 %v17702_v43  ;;  %v16072_v43 = vcombine.high %v406_v41, %v414_v40  ;;  %v598_v21 = vld [vmem:[%s18790_s11 + $0x720] sm:$0xff] }
 0x491   : > { %14100 = vmatpush2.bf16.msra.mxu1 %v17973_v13  ;;  %v16343_v13 = vcombine.low %v678_v61, %v686_v37  ;;  %v606_v28 = vld [vmem:[%s18790_s11 + $0x760] sm:$0xff] }
 0x492   : > { %14101 = vmatprep.subr.bf16.mxu1 %v17958_v60  ;;  %v16328_v60 = vcombine.high %v662_v44, %v670_v51  ;;  %v854_v18 = vld [vmem:[%s18790_s11 + $0xf20] sm:$0xff] }
 0x493   : > { %14059 = vmatpush2.bf16.msra.mxu0 %v17701_v58  ;;  %v16071_v58 = vcombine.low %v406_v41, %v414_v40  ;;  %v862_v56 = vld [vmem:[%s18790_s11 + $0xf60] sm:$0xff] }
 0x494   : > { %14114 = vmatprep.subr.bf16.mxu0 %v16152_v31  ;;  %v16056_v31 = vcombine.high %v390_v3, %v398_v53  ;;  %v582_v19 = vld [vmem:[%s18790_s11 + $0x6a0] sm:$0xff] }
 0x495   : > { %14102 = vmatpush2.bf16.msra.mxu1 %v17957_v1  ;;  %v16327_v1 = vcombine.low %v662_v44, %v670_v51  ;;  %v590_v52 = vld [vmem:[%s18790_s11 + $0x6e0] sm:$0xff] }
 0x496   : > { %14157 = vmatprep.subr.bf16.mxu1 %v16408_v47  ;;  %14061 = vmatmul.mubr.bf16.vlgmr.msra.gmra.mxu0 %v19192_v9  ;;  %v16312_v47 = vcombine.high %v646_v57, %v654_v11  ;;  %v838_v61 = vld [vmem:[%s18790_s11 + $0xea0] sm:$0xff] }
 0x497   : > { %14115 = vmatpush1.bf16.msra.mxu0 %v16151_v29  ;;  %14146 = vmatprep.mubr.bf16.mxu0 %v18848_v59  ;;  %v16055_v29 = vcombine.low %v390_v3, %v398_v53  ;;  %v846_v37 = vld [vmem:[%s18790_s11 + $0xee0] sm:$0xff] }
 0x498   : > { %14104 = vmatmul.mubr.bf16.vlgmr.msra.gmra.mxu1 %v19198_v12  ;;  %14116 = vmatprep.subr.bf16.mxu0 %v16136_v27  ;;  %v16040_v27 = vcombine.high %v374_v6, %v382_v39  ;;  %v566_v41 = vld [vmem:[%s18790_s11 + $0x620] sm:$0xff] }
 0x499   : > { %14158 = vmatpush1.bf16.msra.mxu1 %v16407_v54  ;;  %14189 = vmatprep.mubr.bf16.mxu1 %v18860_v0  ;;  %v16311_v54 = vcombine.low %v646_v57, %v654_v11  ;;  %v574_v40 = vld [vmem:[%s18790_s11 + $0x660] sm:$0xff] }
 0x49a   : > { %14159 = vmatprep.subr.bf16.mxu1 %v16392_v25  ;;  %v16296_v25 = vcombine.high %v630_v2, %v638_v7  ;;  %v822_v44 = vld [vmem:[%s18790_s11 + $0xe20] sm:$0xff] }
 0x49b   : > { %14117 = vmatpush1.bf16.msra.mxu0 %v16135_v17  ;;  %v16039_v17 = vcombine.low %v374_v6, %v382_v39  ;;  %v830_v51 = vld [vmem:[%s18790_s11 + $0xe60] sm:$0xff] }
 0x49c   : > { %14118 = vmatprep.subr.bf16.mxu0 %v16120_v42  ;;  %v16280_v42 = vcombine.high %v614_v5, %v622_v10  ;;  %v550_v3 = vld [vmem:[%s18790_s11 + $0x5a0] sm:$0xff] }
 0x49d   : > { %14160 = vmatpush1.bf16.msra.mxu1 %v16391_v8  ;;  %v16295_v8 = vcombine.low %v630_v2, %v638_v7  ;;  %v558_v53 = vld [vmem:[%s18790_s11 + $0x5e0] sm:$0xff] }
 0x49e   : > { %14161 = vmatprep.subr.bf16.mxu1 %v16376_v4  ;;  %v16536_v4 = vcombine.high %v870_v14, %v878_v32  ;;  %v806_v57 = vld [vmem:[%s18790_s11 + $0xda0] sm:$0xff] }
 0x49f   : > { %14119 = vmatpush1.bf16.msra.mxu0 %v16119_v23  ;;  %v16279_v23 = vcombine.low %v614_v5, %v622_v10  ;;  %v814_v11 = vld [vmem:[%s18790_s11 + $0xde0] sm:$0xff] }
 0x4a0   : > { %14120 = vmatprep.subr.bf16.mxu0 %v16104_v16  ;;  %v16264_v16 = vcombine.high %v598_v21, %v606_v28  ;;  %v534_v6 = vld [vmem:[%s18790_s11 + $0x520] sm:$0xff] }
 0x4a1   : > { %14162 = vmatpush1.bf16.msra.mxu1 %v16375_v38  ;;  %v16535_v38 = vcombine.low %v870_v14, %v878_v32  ;;  %v542_v39 = vld [vmem:[%s18790_s11 + $0x560] sm:$0xff] }
 0x4a2   : > { %14163 = vmatprep.subr.bf16.mxu1 %v16360_v49  ;;  %v16520_v49 = vcombine.high %v854_v18, %v862_v56  ;;  %v790_v2 = vld [vmem:[%s18790_s11 + $0xd20] sm:$0xff] }
 0x4a3   : > { %14121 = vmatpush1.bf16.msra.mxu0 %v16103_v24  ;;  %v16263_v24 = vcombine.low %v598_v21, %v606_v28  ;;  %v798_v7 = vld [vmem:[%s18790_s11 + $0xd60] sm:$0xff] }
 0x4a4   : > { %14122 = vmatprep.subr.bf16.mxu0 %v16088_v15  ;;  %v16248_v15 = vcombine.high %v582_v19, %v590_v52  ;;  %v518_v5 = vld [vmem:[%s18790_s11 + $0x4a0] sm:$0xff] }
 0x4a5   : > { %14164 = vmatpush1.bf16.msra.mxu1 %v16359_v48  ;;  %v16519_v48 = vcombine.low %v854_v18, %v862_v56  ;;  %v526_v10 = vld [vmem:[%s18790_s11 + $0x4e0] sm:$0xff] }
 0x4a6   : > { %14165 = vmatprep.subr.bf16.mxu1 %v16344_v30  ;;  %v16504_v30 = vcombine.high %v838_v61, %v846_v37  ;;  %v774_v14 = vld [vmem:[%s18790_s11 + $0xca0] sm:$0xff] }
 0x4a7   : > { %14123 = vmatpush1.bf16.msra.mxu0 %v16087_v45  ;;  %v16247_v45 = vcombine.low %v582_v19, %v590_v52  ;;  %v782_v32 = vld [vmem:[%s18790_s11 + $0xce0] sm:$0xff] }
 0x4a8   : > { %14124 = vmatprep.subr.bf16.mxu0 %v16072_v43  ;;  %v16232_v43 = vcombine.high %v566_v41, %v574_v40  ;;  %v502_v21 = vld [vmem:[%s18790_s11 + $0x420] sm:$0xff] }
 0x4a9   : > { %14166 = vmatpush1.bf16.msra.mxu1 %v16343_v13  ;;  %v16503_v13 = vcombine.low %v838_v61, %v846_v37  ;;  %v510_v28 = vld [vmem:[%s18790_s11 + $0x460] sm:$0xff] }
 0x4aa   : > { %14167 = vmatprep.subr.bf16.mxu1 %v16328_v60  ;;  %v16488_v60 = vcombine.high %v822_v44, %v830_v51  ;;  %v758_v18 = vld [vmem:[%s18790_s11 + $0xc20] sm:$0xff] }
 0x4ab   : > { %14125 = vmatpush1.bf16.msra.mxu0 %v16071_v58  ;;  %v16231_v58 = vcombine.low %v566_v41, %v574_v40  ;;  %v766_v56 = vld [vmem:[%s18790_s11 + $0xc60] sm:$0xff] }
 0x4ac   : > { %14126 = vmatprep.subr.bf16.mxu0 %v16056_v31  ;;  %v16216_v31 = vcombine.high %v550_v3, %v558_v53  ;;  %v998_v19 = vld [vmem:[%s18790_s11 + $0x13a0] sm:$0xff] }
 0x4ad   : > { %14168 = vmatpush1.bf16.msra.mxu1 %v16327_v1  ;;  %v16487_v1 = vcombine.low %v822_v44, %v830_v51  ;;  %v1006_v52 = vld [vmem:[%s18790_s11 + $0x13e0] sm:$0xff] }
 0x4ae   : > { %14169 = vmatprep.subr.bf16.mxu1 %v16312_v47  ;;  %v16472_v47 = vcombine.high %v806_v57, %v814_v11  ;;  %v1254_v61 = vld [vmem:[%s18790_s11 + $0x1ba0] sm:$0xff] }
 0x4af   : > { %14127 = vmatpush1.bf16.msra.mxu0 %v16055_v29  ;;  %v16215_v29 = vcombine.low %v550_v3, %v558_v53  ;;  %v1262_v37 = vld [vmem:[%s18790_s11 + $0x1be0] sm:$0xff] }
 0x4b0   : > { %14128 = vmatprep.subr.bf16.mxu0 %v16040_v27  ;;  %v16200_v27 = vcombine.high %v534_v6, %v542_v39  ;;  %v982_v41 = vld [vmem:[%s18790_s11 + $0x1320] sm:$0xff] }
 0x4b1   : > { %14170 = vmatpush1.bf16.msra.mxu1 %v16311_v54  ;;  %v16471_v54 = vcombine.low %v806_v57, %v814_v11  ;;  %v990_v40 = vld [vmem:[%s18790_s11 + $0x1360] sm:$0xff] }
 0x4b2   : > { %14171 = vmatprep.subr.bf16.mxu1 %v16296_v25  ;;  %v16456_v25 = vcombine.high %v790_v2, %v798_v7  ;;  %v1238_v44 = vld [vmem:[%s18790_s11 + $0x1b20] sm:$0xff] }
 0x4b3   : > { %14129 = vmatpush1.bf16.msra.mxu0 %v16039_v17  ;;  %v16199_v17 = vcombine.low %v534_v6, %v542_v39  ;;  %v1246_v51 = vld [vmem:[%s18790_s11 + $0x1b60] sm:$0xff] }
 0x4b4   : > { %14130 = vmatprep.subr.bf16.mxu0 %v16280_v42  ;;  %v16184_v42 = vcombine.high %v518_v5, %v526_v10  ;;  %v966_v3 = vld [vmem:[%s18790_s11 + $0x12a0] sm:$0xff] }
 0x4b5   : > { %14172 = vmatpush1.bf16.msra.mxu1 %v16295_v8  ;;  %v16455_v8 = vcombine.low %v790_v2, %v798_v7  ;;  %v974_v53 = vld [vmem:[%s18790_s11 + $0x12e0] sm:$0xff] }
 0x4b6   : > { %14173 = vmatprep.subr.bf16.mxu1 %v16536_v4  ;;  %v16440_v4 = vcombine.high %v774_v14, %v782_v32  ;;  %v1222_v57 = vld [vmem:[%s18790_s11 + $0x1aa0] sm:$0xff] }
 0x4b7   : > { %14131 = vmatpush2.bf16.msra.mxu0 %v16279_v23  ;;  %v16183_v23 = vcombine.low %v518_v5, %v526_v10  ;;  %v1230_v11 = vld [vmem:[%s18790_s11 + $0x1ae0] sm:$0xff] }
 0x4b8   : > { %14132 = vmatprep.subr.bf16.mxu0 %v16264_v16  ;;  %v16168_v16 = vcombine.high %v502_v21, %v510_v28  ;;  %v950_v6 = vld [vmem:[%s18790_s11 + $0x1220] sm:$0xff] }
 0x4b9   : > { %14174 = vmatpush2.bf16.msra.mxu1 %v16535_v38  ;;  %v16439_v38 = vcombine.low %v774_v14, %v782_v32  ;;  %v958_v39 = vld [vmem:[%s18790_s11 + $0x1260] sm:$0xff] }
 0x4ba   : > { %14175 = vmatprep.subr.bf16.mxu1 %v16520_v49  ;;  %v16424_v49 = vcombine.high %v758_v18, %v766_v56  ;;  %v1206_v2 = vld [vmem:[%s18790_s11 + $0x1a20] sm:$0xff] }
 0x4bb   : > { %14133 = vmatpush2.bf16.msra.mxu0 %v16263_v24  ;;  %v16167_v24 = vcombine.low %v502_v21, %v510_v28  ;;  %v1214_v7 = vld [vmem:[%s18790_s11 + $0x1a60] sm:$0xff] }
 0x4bc   : > { %14134 = vmatprep.subr.bf16.mxu0 %v16248_v15  ;;  %v16664_v15 = vcombine.high %v998_v19, %v1006_v52  ;;  %v934_v5 = vld [vmem:[%s18790_s11 + $0x11a0] sm:$0xff] }
 0x4bd   : > { %14176 = vmatpush2.bf16.msra.mxu1 %v16519_v48  ;;  %v16423_v48 = vcombine.low %v758_v18, %v766_v56  ;;  %v942_v10 = vld [vmem:[%s18790_s11 + $0x11e0] sm:$0xff] }
 0x4be   : > { %14177 = vmatprep.subr.bf16.mxu1 %v16504_v30  ;;  %v16920_v30 = vcombine.high %v1254_v61, %v1262_v37  ;;  %v1190_v14 = vld [vmem:[%s18790_s11 + $0x19a0] sm:$0xff] }
 0x4bf   : > { %14135 = vmatpush2.bf16.msra.mxu0 %v16247_v45  ;;  %v16663_v45 = vcombine.low %v998_v19, %v1006_v52  ;;  %v1198_v32 = vld [vmem:[%s18790_s11 + $0x19e0] sm:$0xff] }
 0x4c0   : > { %14136 = vmatprep.subr.bf16.mxu0 %v16232_v43  ;;  %v16648_v43 = vcombine.high %v982_v41, %v990_v40  ;;  %v918_v21 = vld [vmem:[%s18790_s11 + $0x1120] sm:$0xff] }
 0x4c1   : > { %14178 = vmatpush2.bf16.msra.mxu1 %v16503_v13  ;;  %v16919_v13 = vcombine.low %v1254_v61, %v1262_v37  ;;  %v926_v28 = vld [vmem:[%s18790_s11 + $0x1160] sm:$0xff] }
 0x4c2   : > { %14179 = vmatprep.subr.bf16.mxu1 %v16488_v60  ;;  %v16904_v60 = vcombine.high %v1238_v44, %v1246_v51  ;;  %v1174_v18 = vld [vmem:[%s18790_s11 + $0x1920] sm:$0xff] }
 0x4c3   : > { %14137 = vmatpush2.bf16.msra.mxu0 %v16231_v58  ;;  %v16647_v58 = vcombine.low %v982_v41, %v990_v40  ;;  %v1182_v56 = vld [vmem:[%s18790_s11 + $0x1960] sm:$0xff] }
 0x4c4   : > { %14138 = vmatprep.subr.bf16.mxu0 %v16216_v31  ;;  %v16632_v31 = vcombine.high %v966_v3, %v974_v53  ;;  %v902_v19 = vld [vmem:[%s18790_s11 + $0x10a0] sm:$0xff] }
 0x4c5   : > { %14180 = vmatpush2.bf16.msra.mxu1 %v16487_v1  ;;  %v16903_v1 = vcombine.low %v1238_v44, %v1246_v51  ;;  %v910_v52 = vld [vmem:[%s18790_s11 + $0x10e0] sm:$0xff] }
 0x4c6   : > { %14181 = vmatprep.subr.bf16.mxu1 %v16472_v47  ;;  %v16888_v47 = vcombine.high %v1222_v57, %v1230_v11  ;;  %v1158_v61 = vld [vmem:[%s18790_s11 + $0x18a0] sm:$0xff] }
 0x4c7   : > { %14139 = vmatpush2.bf16.msra.mxu0 %v16215_v29  ;;  %v16631_v29 = vcombine.low %v966_v3, %v974_v53  ;;  %v1166_v37 = vld [vmem:[%s18790_s11 + $0x18e0] sm:$0xff] }
 0x4c8   : > { %14140 = vmatprep.subr.bf16.mxu0 %v16200_v27  ;;  %v16616_v27 = vcombine.high %v950_v6, %v958_v39  ;;  %v886_v41 = vld [vmem:[%s18790_s11 + $0x1020] sm:$0xff] }
 0x4c9   : > { %14182 = vmatpush2.bf16.msra.mxu1 %v16471_v54  ;;  %v16887_v54 = vcombine.low %v1222_v57, %v1230_v11  ;;  %v894_v40 = vld [vmem:[%s18790_s11 + $0x1060] sm:$0xff] }
 0x4ca   : > { %14183 = vmatprep.subr.bf16.mxu1 %v16456_v25  ;;  %v16872_v25 = vcombine.high %v1206_v2, %v1214_v7  ;;  %v1142_v44 = vld [vmem:[%s18790_s11 + $0x1820] sm:$0xff] }
 0x4cb   : > { %14141 = vmatpush2.bf16.msra.mxu0 %v16199_v17  ;;  %v16615_v17 = vcombine.low %v950_v6, %v958_v39  ;;  %v1150_v51 = vld [vmem:[%s18790_s11 + $0x1860] sm:$0xff] }
 0x4cc   : > { %14142 = vmatprep.subr.bf16.mxu0 %v16184_v42  ;;  %v16600_v42 = vcombine.high %v934_v5, %v942_v10  ;;  %v1126_v3 = vld [vmem:[%s18790_s11 + $0x17a0] sm:$0xff] }
 0x4cd   : > { %14184 = vmatpush2.bf16.msra.mxu1 %v16455_v8  ;;  %v16871_v8 = vcombine.low %v1206_v2, %v1214_v7  ;;  %v1134_v53 = vld [vmem:[%s18790_s11 + $0x17e0] sm:$0xff] }
 0x4ce   : > { %14185 = vmatprep.subr.bf16.mxu1 %v16440_v4  ;;  %v16856_v4 = vcombine.high %v1190_v14, %v1198_v32  ;;  %v1382_v57 = vld [vmem:[%s18790_s11 + $0x1fa0] sm:$0xff] }
 0x4cf   : > { %14143 = vmatpush2.bf16.msra.mxu0 %v16183_v23  ;;  %v16599_v23 = vcombine.low %v934_v5, %v942_v10  ;;  %v1390_v11 = vld [vmem:[%s18790_s11 + $0x1fe0] sm:$0xff] }
 0x4d0   : > { %14144 = vmatprep.subr.bf16.mxu0 %v16168_v16  ;;  %v16584_v16 = vcombine.high %v918_v21, %v926_v28  ;;  %v1110_v6 = vld [vmem:[%s18790_s11 + $0x1720] sm:$0xff] }
 0x4d1   : > { %14186 = vmatpush2.bf16.msra.mxu1 %v16439_v38  ;;  %v16855_v38 = vcombine.low %v1190_v14, %v1198_v32  ;;  %v1118_v39 = vld [vmem:[%s18790_s11 + $0x1760] sm:$0xff] }
 0x4d2   : > { %14187 = vmatprep.subr.bf16.mxu1 %v16424_v49  ;;  %v16840_v49 = vcombine.high %v1174_v18, %v1182_v56  ;;  %v1366_v2 = vld [vmem:[%s18790_s11 + $0x1f20] sm:$0xff] }
 0x4d3   : > { %14145 = vmatpush2.bf16.msra.mxu0 %v16167_v24  ;;  %v16583_v24 = vcombine.low %v918_v21, %v926_v28  ;;  %v1374_v7 = vld [vmem:[%s18790_s11 + $0x1f60] sm:$0xff] }
 0x4d4   : > { %14200 = vmatprep.subr.bf16.mxu0 %v16664_v15  ;;  %v16568_v15 = vcombine.high %v902_v19, %v910_v52  ;;  %v1094_v5 = vld [vmem:[%s18790_s11 + $0x16a0] sm:$0xff] }
 0x4d5   : > { %14188 = vmatpush2.bf16.msra.mxu1 %v16423_v48  ;;  %v16839_v48 = vcombine.low %v1174_v18, %v1182_v56  ;;  %v1102_v10 = vld [vmem:[%s18790_s11 + $0x16e0] sm:$0xff] }
 0x4d6   : > { %14243 = vmatprep.subr.bf16.mxu1 %v16920_v30  ;;  %14147 = vmatmul.mubr.bf16.vlgmr.msra.gmra.mxu0 %v18905_v22  ;;  %v16824_v30 = vcombine.high %v1158_v61, %v1166_v37  ;;  %v1350_v14 = vld [vmem:[%s18790_s11 + $0x1ea0] sm:$0xff] }
 0x4d7   : > { %14201 = vmatpush1.bf16.msra.mxu0 %v16663_v45  ;;  %14232 = vmatprep.mubr.bf16.mxu0 %v18928_v33  ;;  %v16567_v45 = vcombine.low %v902_v19, %v910_v52  ;;  %v1358_v32 = vld [vmem:[%s18790_s11 + $0x1ee0] sm:$0xff] }
 0x4d8   : > { %14190 = vmatmul.mubr.bf16.vlgmr.msra.gmra.mxu1 %v18916_v26  ;;  %14202 = vmatprep.subr.bf16.mxu0 %v16648_v43  ;;  %v16552_v43 = vcombine.high %v886_v41, %v894_v40  ;;  %v1078_v21 = vld [vmem:[%s18790_s11 + $0x1620] sm:$0xff] }
 0x4d9   : > { %14244 = vmatpush1.bf16.msra.mxu1 %v16919_v13  ;;  %14275 = vmatprep.mubr.bf16.mxu1 %v18935_v34  ;;  %v16823_v13 = vcombine.low %v1158_v61, %v1166_v37  ;;  %v1086_v28 = vld [vmem:[%s18790_s11 + $0x1660] sm:$0xff] }
 0x4da   : > { %14245 = vmatprep.subr.bf16.mxu1 %v16904_v60  ;;  %v16808_v60 = vcombine.high %v1142_v44, %v1150_v51  ;;  %v1334_v18 = vld [vmem:[%s18790_s11 + $0x1e20] sm:$0xff] }
 0x4db   : > { %14203 = vmatpush1.bf16.msra.mxu0 %v16647_v58  ;;  %v16551_v58 = vcombine.low %v886_v41, %v894_v40  ;;  %v1342_v56 = vld [vmem:[%s18790_s11 + $0x1e60] sm:$0xff] }
 0x4dc   : > { %14204 = vmatprep.subr.bf16.mxu0 %v16632_v31  ;;  %v16792_v31 = vcombine.high %v1126_v3, %v1134_v53  ;;  %v1062_v19 = vld [vmem:[%s18790_s11 + $0x15a0] sm:$0xff] }
 0x4dd   : > { %14246 = vmatpush1.bf16.msra.mxu1 %v16903_v1  ;;  %v16807_v1 = vcombine.low %v1142_v44, %v1150_v51  ;;  %v1070_v52 = vld [vmem:[%s18790_s11 + $0x15e0] sm:$0xff] }
 0x4de   : > { %14247 = vmatprep.subr.bf16.mxu1 %v16888_v47  ;;  %v17048_v47 = vcombine.high %v1382_v57, %v1390_v11  ;;  %v1318_v61 = vld [vmem:[%s18790_s11 + $0x1da0] sm:$0xff] }
 0x4df   : > { %14205 = vmatpush1.bf16.msra.mxu0 %v16631_v29  ;;  %v16791_v29 = vcombine.low %v1126_v3, %v1134_v53  ;;  %v1326_v37 = vld [vmem:[%s18790_s11 + $0x1de0] sm:$0xff] }
 0x4e0   : > { %14206 = vmatprep.subr.bf16.mxu0 %v16616_v27  ;;  %v16776_v27 = vcombine.high %v1110_v6, %v1118_v39  ;;  %v1046_v41 = vld [vmem:[%s18790_s11 + $0x1520] sm:$0xff] }
 0x4e1   : > { %14248 = vmatpush1.bf16.msra.mxu1 %v16887_v54  ;;  %v17047_v54 = vcombine.low %v1382_v57, %v1390_v11  ;;  %v1054_v40 = vld [vmem:[%s18790_s11 + $0x1560] sm:$0xff] }
 0x4e2   : > { %14249 = vmatprep.subr.bf16.mxu1 %v16872_v25  ;;  %v17032_v25 = vcombine.high %v1366_v2, %v1374_v7  ;;  %v1302_v44 = vld [vmem:[%s18790_s11 + $0x1d20] sm:$0xff] }
 0x4e3   : > { %14207 = vmatpush1.bf16.msra.mxu0 %v16615_v17  ;;  %v16775_v17 = vcombine.low %v1110_v6, %v1118_v39  ;;  %v1310_v51 = vld [vmem:[%s18790_s11 + $0x1d60] sm:$0xff] }
 0x4e4   : > { %14208 = vmatprep.subr.bf16.mxu0 %v16600_v42  ;;  %v16760_v42 = vcombine.high %v1094_v5, %v1102_v10  ;;  %v1030_v3 = vld [vmem:[%s18790_s11 + $0x14a0] sm:$0xff] }
 0x4e5   : > { %14250 = vmatpush1.bf16.msra.mxu1 %v16871_v8  ;;  %v17031_v8 = vcombine.low %v1366_v2, %v1374_v7  ;;  %v1038_v53 = vld [vmem:[%s18790_s11 + $0x14e0] sm:$0xff] }
 0x4e6   : > { %14251 = vmatprep.subr.bf16.mxu1 %v16856_v4  ;;  %v17016_v4 = vcombine.high %v1350_v14, %v1358_v32  ;;  %v1286_v57 = vld [vmem:[%s18790_s11 + $0x1ca0] sm:$0xff] }
 0x4e7   : > { %14209 = vmatpush1.bf16.msra.mxu0 %v16599_v23  ;;  %v16759_v23 = vcombine.low %v1094_v5, %v1102_v10  ;;  %v1294_v11 = vld [vmem:[%s18790_s11 + $0x1ce0] sm:$0xff] }
 0x4e8   : > { %14210 = vmatprep.subr.bf16.mxu0 %v16584_v16  ;;  %v16744_v16 = vcombine.high %v1078_v21, %v1086_v28  ;;  %v1014_v6 = vld [vmem:[%s18790_s11 + $0x1420] sm:$0xff] }
 0x4e9   : > { %14252 = vmatpush1.bf16.msra.mxu1 %v16855_v38  ;;  %v17015_v38 = vcombine.low %v1350_v14, %v1358_v32  ;;  %v1022_v39 = vld [vmem:[%s18790_s11 + $0x1460] sm:$0xff] }
 0x4ea   : > { %14253 = vmatprep.subr.bf16.mxu1 %v16840_v49  ;;  %v17000_v49 = vcombine.high %v1334_v18, %v1342_v56  ;;  %v1270_v2 = vld [vmem:[%s18790_s11 + $0x1c20] sm:$0xff] }
 0x4eb   : > { %14211 = vmatpush1.bf16.msra.mxu0 %v16583_v24  ;;  %v16743_v24 = vcombine.low %v1078_v21, %v1086_v28  ;;  %v1278_v7 = vld [vmem:[%s18790_s11 + $0x1c60] sm:$0xff] }
 0x4ec   : > { %14212 = vmatprep.subr.bf16.mxu0 %v16568_v15  ;;  %v16728_v15 = vcombine.high %v1062_v19, %v1070_v52  ;;  %v1510_v5 = vld [vmem:[%s18790_s11 + $0x23a0] sm:$0xff] }
 0x4ed   : > { %14254 = vmatpush1.bf16.msra.mxu1 %v16839_v48  ;;  %v16999_v48 = vcombine.low %v1334_v18, %v1342_v56  ;;  %v1518_v10 = vld [vmem:[%s18790_s11 + $0x23e0] sm:$0xff] }
 0x4ee   : > { %14255 = vmatprep.subr.bf16.mxu1 %v16824_v30  ;;  %v16984_v30 = vcombine.high %v1318_v61, %v1326_v37  ;;  %v1766_v14 = vld [vmem:[%s18790_s11 + $0x2ba0] sm:$0xff] }
 0x4ef   : > { %14213 = vmatpush1.bf16.msra.mxu0 %v16567_v45  ;;  %v16727_v45 = vcombine.low %v1062_v19, %v1070_v52  ;;  %v1774_v32 = vld [vmem:[%s18790_s11 + $0x2be0] sm:$0xff] }
 0x4f0   : > { %14214 = vmatprep.subr.bf16.mxu0 %v16552_v43  ;;  %v16712_v43 = vcombine.high %v1046_v41, %v1054_v40  ;;  %v1494_v21 = vld [vmem:[%s18790_s11 + $0x2320] sm:$0xff] }
 0x4f1   : > { %14256 = vmatpush1.bf16.msra.mxu1 %v16823_v13  ;;  %v16983_v13 = vcombine.low %v1318_v61, %v1326_v37  ;;  %v1502_v28 = vld [vmem:[%s18790_s11 + $0x2360] sm:$0xff] }
 0x4f2   : > { %14257 = vmatprep.subr.bf16.mxu1 %v16808_v60  ;;  %v16968_v60 = vcombine.high %v1302_v44, %v1310_v51  ;;  %v1750_v18 = vld [vmem:[%s18790_s11 + $0x2b20] sm:$0xff] }
 0x4f3   : > { %14215 = vmatpush1.bf16.msra.mxu0 %v16551_v58  ;;  %v16711_v58 = vcombine.low %v1046_v41, %v1054_v40  ;;  %v1758_v56 = vld [vmem:[%s18790_s11 + $0x2b60] sm:$0xff] }
 0x4f4   : > { %14216 = vmatprep.subr.bf16.mxu0 %v16792_v31  ;;  %v16696_v31 = vcombine.high %v1030_v3, %v1038_v53  ;;  %v1478_v19 = vld [vmem:[%s18790_s11 + $0x22a0] sm:$0xff] }
 0x4f5   : > { %14258 = vmatpush1.bf16.msra.mxu1 %v16807_v1  ;;  %v16967_v1 = vcombine.low %v1302_v44, %v1310_v51  ;;  %v1486_v52 = vld [vmem:[%s18790_s11 + $0x22e0] sm:$0xff] }
 0x4f6   : > { %14259 = vmatprep.subr.bf16.mxu1 %v17048_v47  ;;  %v16952_v47 = vcombine.high %v1286_v57, %v1294_v11  ;;  %v1734_v61 = vld [vmem:[%s18790_s11 + $0x2aa0] sm:$0xff] }
 0x4f7   : > { %14217 = vmatpush2.bf16.msra.mxu0 %v16791_v29  ;;  %v16695_v29 = vcombine.low %v1030_v3, %v1038_v53  ;;  %v1742_v37 = vld [vmem:[%s18790_s11 + $0x2ae0] sm:$0xff] }
 0x4f8   : > { %14218 = vmatprep.subr.bf16.mxu0 %v16776_v27  ;;  %v16680_v27 = vcombine.high %v1014_v6, %v1022_v39  ;;  %v1462_v41 = vld [vmem:[%s18790_s11 + $0x2220] sm:$0xff] }
 0x4f9   : > { %14260 = vmatpush2.bf16.msra.mxu1 %v17047_v54  ;;  %v16951_v54 = vcombine.low %v1286_v57, %v1294_v11  ;;  %v1470_v40 = vld [vmem:[%s18790_s11 + $0x2260] sm:$0xff] }
 0x4fa   : > { %14261 = vmatprep.subr.bf16.mxu1 %v17032_v25  ;;  %v16936_v25 = vcombine.high %v1270_v2, %v1278_v7  ;;  %v1718_v44 = vld [vmem:[%s18790_s11 + $0x2a20] sm:$0xff] }
 0x4fb   : > { %14219 = vmatpush2.bf16.msra.mxu0 %v16775_v17  ;;  %v16679_v17 = vcombine.low %v1014_v6, %v1022_v39  ;;  %v1726_v51 = vld [vmem:[%s18790_s11 + $0x2a60] sm:$0xff] }
 0x4fc   : > { %14220 = vmatprep.subr.bf16.mxu0 %v16760_v42  ;;  %v17176_v42 = vcombine.high %v1510_v5, %v1518_v10  ;;  %v1446_v3 = vld [vmem:[%s18790_s11 + $0x21a0] sm:$0xff] }
 0x4fd   : > { %14262 = vmatpush2.bf16.msra.mxu1 %v17031_v8  ;;  %v16935_v8 = vcombine.low %v1270_v2, %v1278_v7  ;;  %v1454_v53 = vld [vmem:[%s18790_s11 + $0x21e0] sm:$0xff] }
 0x4fe   : > { %14263 = vmatprep.subr.bf16.mxu1 %v17016_v4  ;;  %v17432_v4 = vcombine.high %v1766_v14, %v1774_v32  ;;  %v1702_v57 = vld [vmem:[%s18790_s11 + $0x29a0] sm:$0xff] }
 0x4ff   : > { %14221 = vmatpush2.bf16.msra.mxu0 %v16759_v23  ;;  %v17175_v23 = vcombine.low %v1510_v5, %v1518_v10  ;;  %v1710_v11 = vld [vmem:[%s18790_s11 + $0x29e0] sm:$0xff] }
 0x500   : > { %14222 = vmatprep.subr.bf16.mxu0 %v16744_v16  ;;  %v17160_v16 = vcombine.high %v1494_v21, %v1502_v28  ;;  %v1430_v6 = vld [vmem:[%s18790_s11 + $0x2120] sm:$0xff] }
 0x501   : > { %14264 = vmatpush2.bf16.msra.mxu1 %v17015_v38  ;;  %v17431_v38 = vcombine.low %v1766_v14, %v1774_v32  ;;  %v1438_v39 = vld [vmem:[%s18790_s11 + $0x2160] sm:$0xff] }
 0x502   : > { %14265 = vmatprep.subr.bf16.mxu1 %v17000_v49  ;;  %v17416_v49 = vcombine.high %v1750_v18, %v1758_v56  ;;  %v1686_v2 = vld [vmem:[%s18790_s11 + $0x2920] sm:$0xff] }
 0x503   : > { %14223 = vmatpush2.bf16.msra.mxu0 %v16743_v24  ;;  %v17159_v24 = vcombine.low %v1494_v21, %v1502_v28  ;;  %v1694_v7 = vld [vmem:[%s18790_s11 + $0x2960] sm:$0xff] }
 0x504   : > { %14224 = vmatprep.subr.bf16.mxu0 %v16728_v15  ;;  %v17144_v15 = vcombine.high %v1478_v19, %v1486_v52  ;;  %v1414_v5 = vld [vmem:[%s18790_s11 + $0x20a0] sm:$0xff] }
 0x505   : > { %14266 = vmatpush2.bf16.msra.mxu1 %v16999_v48  ;;  %v17415_v48 = vcombine.low %v1750_v18, %v1758_v56  ;;  %v1422_v10 = vld [vmem:[%s18790_s11 + $0x20e0] sm:$0xff] }
 0x506   : > { %14267 = vmatprep.subr.bf16.mxu1 %v16984_v30  ;;  %v17400_v30 = vcombine.high %v1734_v61, %v1742_v37  ;;  %v1670_v14 = vld [vmem:[%s18790_s11 + $0x28a0] sm:$0xff] }
 0x507   : > { %14225 = vmatpush2.bf16.msra.mxu0 %v16727_v45  ;;  %v17143_v45 = vcombine.low %v1478_v19, %v1486_v52  ;;  %v1678_v32 = vld [vmem:[%s18790_s11 + $0x28e0] sm:$0xff]  ;;  %v20302_v19 = vpop.f32.mrf.mxu1 }
 0x508   : > { %14226 = vmatprep.subr.bf16.mxu0 %v16712_v43  ;;  %v17128_v43 = vcombine.high %v1462_v41, %v1470_v40  ;;  %v1398_v21 = vld [vmem:[%s18790_s11 + $0x2020] sm:$0xff] }
 0x509   : > { %14268 = vmatpush2.bf16.msra.mxu1 %v16983_v13  ;;  %v17399_v13 = vcombine.low %v1734_v61, %v1742_v37  ;;  %v1406_v28 = vld [vmem:[%s18790_s11 + $0x2060] sm:$0xff] }
 0x50a   : > { %14269 = vmatprep.subr.bf16.mxu1 %v16968_v60  ;;  %v17384_v60 = vcombine.high %v1718_v44, %v1726_v51  ;;  %v1654_v18 = vld [vmem:[%s18790_s11 + $0x2820] sm:$0xff] }
 0x50b   : > { %14227 = vmatpush2.bf16.msra.mxu0 %v16711_v58  ;;  %v17127_v58 = vcombine.low %v1462_v41, %v1470_v40  ;;  %v1662_v56 = vld [vmem:[%s18790_s11 + $0x2860] sm:$0xff] }
 0x50c   : > { %14228 = vmatprep.subr.bf16.mxu0 %v16696_v31  ;;  %v17112_v31 = vcombine.high %v1446_v3, %v1454_v53  ;;  %v17320_v52 = vcombine.high %v1654_v18, %v1662_v56  ;;  %v1638_v61 = vld [vmem:[%s18790_s11 + $0x27a0] sm:$0xff]  ;;  %v17319_v41 = vcombine.low %v1654_v18, %v1662_v56 }
 0x50d   : > { %14270 = vmatpush2.bf16.msra.mxu1 %v16967_v1  ;;  %v17383_v1 = vcombine.low %v1718_v44, %v1726_v51  ;;  %v1646_v37 = vld [vmem:[%s18790_s11 + $0x27e0] sm:$0xff]  ;;  %v20310_v44 = vpop.f32.mrf.mxu1 }
 0x50e   : > { %14271 = vmatprep.subr.bf16.mxu1 %v16952_v47  ;;  %v17368_v47 = vcombine.high %v1702_v57, %v1710_v11  ;;  %v17304_v40 = vcombine.high %v1638_v61, %v1646_v37  ;;  %v1574_v18 = vld [vmem:[%s18790_s11 + $0x25a0] sm:$0xff] }
 0x50f   : > { %14229 = vmatpush2.bf16.msra.mxu0 %v16695_v29  ;;  %v17111_v29 = vcombine.low %v1446_v3, %v1454_v53  ;;  %v17303_v3 = vcombine.low %v1638_v61, %v1646_v37  ;;  %v1582_v56 = vld [vmem:[%s18790_s11 + $0x25e0] sm:$0xff] }
 0x510   : > { %14230 = vmatprep.subr.bf16.mxu0 %v16680_v27  ;;  %v17096_v27 = vcombine.high %v1430_v6, %v1438_v39 }
 0x511   : > { %14272 = vmatpush2.bf16.msra.mxu1 %v16951_v54  ;;  %v17367_v54 = vcombine.low %v1702_v57, %v1710_v11 }
 0x512   : > { %14273 = vmatprep.subr.bf16.mxu1 %v16936_v25  ;;  %v17352_v25 = vcombine.high %v1686_v2, %v1694_v7 }
 0x513   : > { %14231 = vmatpush2.bf16.msra.mxu0 %v16679_v17  ;;  %v17095_v17 = vcombine.low %v1430_v6, %v1438_v39  ;;  %v1862_v6 = vld [vmem:[%s18790_s11 + $0x2ea0] sm:$0xff] }
 0x514   : > { %14286 = vmatprep.subr.bf16.mxu0 %v17176_v42  ;;  %v17080_v42 = vcombine.high %v1414_v5, %v1422_v10  ;;  %v1870_v39 = vld [vmem:[%s18790_s11 + $0x2ee0] sm:$0xff] }
 0x515   : > { %14274 = vmatpush2.bf16.msra.mxu1 %v16935_v8  ;;  %v17351_v8 = vcombine.low %v1686_v2, %v1694_v7 }
 0x516   : > { %14329 = vmatprep.subr.bf16.mxu1 %v17432_v4  ;;  %14233 = vmatmul.mubr.bf16.vlgmr.msra.gmra.mxu0 %v19001_v46  ;;  %v17336_v4 = vcombine.high %v1670_v14, %v1678_v32 }
 0x517   : > { %14287 = vmatpush1.bf16.msra.mxu0 %v17175_v23  ;;  %14318 = vmatprep.mubr.bf16.mxu0 %v19024_v62  ;;  %v17079_v23 = vcombine.low %v1414_v5, %v1422_v10  ;;  %v1590_v5 = vld [vmem:[%s18790_s11 + $0x2620] sm:$0xff] }
 0x518   : > { %14276 = vmatmul.mubr.bf16.vlgmr.msra.gmra.mxu1 %v19012_v50  ;;  %14288 = vmatprep.subr.bf16.mxu0 %v17160_v16  ;;  %v17335_v16 = vcombine.low %v1670_v14, %v1678_v32  ;;  %v1598_v10 = vld [vmem:[%s18790_s11 + $0x2660] sm:$0xff] }
 0x519   : > { %14330 = vmatpush1.bf16.msra.mxu1 %v17431_v38  ;;  %14361 = vmatprep.mubr.bf16.mxu1 %v19031_v63  ;;  %v20300_v38 = vpop.f32.mrf.mxu0  ;;  %v1846_v32 = vld [vmem:[%s18790_s11 + $0x2e20] sm:$0xff]  ;;  %v17255_v61 = vcombine.low %v1590_v5, %v1598_v10 }
 0x51a   : > { %14331 = vmatprep.subr.bf16.mxu1 %v17416_v49  ;;  %v17064_v49 = vcombine.high %v1398_v21, %v1406_v28 }
 0x51b   : > { %14289 = vmatpush1.bf16.msra.mxu0 %v17159_v24  ;;  %v1894_v24 = vld [vmem:[%s18790_s11 + $0x2fa0] sm:$0xff] }
 0x51c   : > { %14290 = vmatprep.subr.bf16.mxu0 %v17144_v15  ;;  %v17063_v15 = vcombine.low %v1398_v21, %v1406_v28  ;;  %v17256_v21 = vcombine.high %v1590_v5, %v1598_v10  ;;  %v13848_v5 = vadd.f32 %v20302_v19, %v20300_v38 }
 0x51d   : > { %14332 = vmatpush1.bf16.msra.mxu1 %v17415_v48  ;;  %v1902_v48 = vld [vmem:[%s18790_s11 + $0x2fe0] sm:$0xff] }
 0x51e   : > { %14333 = vmatprep.subr.bf16.mxu1 %v17400_v30  ;;  %v20308_v30 = vpop.f32.mrf.mxu0  ;;  %v17560_v51 = vcombine.high %v1894_v24, %v1902_v48  ;;  %v17559_v57 = vcombine.low %v1894_v24, %v1902_v48  ;;  %v17240_v24 = vcombine.high %v1574_v18, %v1582_v56 }
 0x51f   : > { %14291 = vmatpush1.bf16.msra.mxu0 %v17143_v45  ;;  %v1622_v45 = vld [vmem:[%s18790_s11 + $0x2720] sm:$0xff] }
 0x520   : > { %14292 = vmatprep.subr.bf16.mxu0 %v17128_v43  ;;  %v1878_v43 = vld [vmem:[%s18790_s11 + $0x2f20] sm:$0xff]  ;;  %v20316_v53 = vpop.f32.mrf.mxu0 }
 0x521   : > { %14334 = vmatpush1.bf16.msra.mxu1 %v17399_v13  ;;  %v1630_v13 = vld [vmem:[%s18790_s11 + $0x2760] sm:$0xff] }
 0x522   : > { %14335 = vmatprep.subr.bf16.mxu1 %v17384_v60  ;;  %v1886_v60 = vld [vmem:[%s18790_s11 + $0x2f60] sm:$0xff]  ;;  %v17288_v11 = vcombine.high %v1622_v45, %v1630_v13  ;;  %v17287_v2 = vcombine.low %v1622_v45, %v1630_v13  ;;  %v20324_v7 = vpop.f32.mrf.mxu0 }
 0x523   : > { %14293 = vmatpush1.bf16.msra.mxu0 %v17127_v58  ;;  %v20318_v58 = vpop.f32.mrf.mxu1  ;;  %v1822_v45 = vld [vmem:[%s18790_s11 + $0x2d60] sm:$0xff] }
 0x524   : > { %14294 = vmatprep.subr.bf16.mxu0 %v17112_v31  ;;  %v1606_v31 = vld [vmem:[%s18790_s11 + $0x26a0] sm:$0xff]  ;;  %v13890_v14 = vpop.f32.mrf.mxu0 }
 0x525   : > { %14336 = vmatpush1.bf16.msra.mxu1 %v17383_v1  ;;  %v17544_v1 = vcombine.high %v1878_v43, %v1886_v60 }
 0x526   : > { %14337 = vmatprep.subr.bf16.mxu1 %v17368_v47  ;;  %v1614_v47 = vld [vmem:[%s18790_s11 + $0x26e0] sm:$0xff] }
 0x527   : > { %14295 = vmatpush1.bf16.msra.mxu0 %v17111_v29  ;;  %v17543_v29 = vcombine.low %v1878_v43, %v1886_v60  ;;  %v17239_v43 = vcombine.low %v1574_v18, %v1582_v56  ;;  %v13891_v18 = vadd.f32 %v13890_v14, %v13848_v5 }
 0x528   : > { %14296 = vmatprep.subr.bf16.mxu0 %v17096_v27  ;;  %v20326_v27 = vpop.f32.mrf.mxu1 }
 0x529   : > { %14338 = vmatpush1.bf16.msra.mxu1 %v17367_v54  ;;  %v17272_v54 = vcombine.high %v1606_v31, %v1614_v47  ;;  %v13854_v14 = vadd.f32 %v20326_v27, %v20324_v7  ;;  %v2006_v27 = vld [vmem:[%s18790_s11 + $0x3320] sm:$0xff] }
 0x52a   : > { %14339 = vmatprep.subr.bf16.mxu1 %v17352_v25  ;;  %v17528_v25 = vcombine.high %v1862_v6, %v1870_v39 }
 0x52b   : > { %14297 = vmatpush1.bf16.msra.mxu0 %v17095_v17  ;;  %v1854_v17 = vld [vmem:[%s18790_s11 + $0x2e60] sm:$0xff] }
 0x52c   : > { %14298 = vmatprep.subr.bf16.mxu0 %v17080_v42  ;;  %v17271_v42 = vcombine.low %v1606_v31, %v1614_v47  ;;  %v17512_v28 = vcombine.high %v1846_v32, %v1854_v17  ;;  %v17511_v37 = vcombine.low %v1846_v32, %v1854_v17  ;;  %v1798_v47 = vld [vmem:[%s18790_s11 + $0x2ca0] sm:$0xff] }
 0x52d   : > { %14340 = vmatpush1.bf16.msra.mxu1 %v17351_v8  ;;  %v20332_v8 = vpop.f32.mrf.mxu1  ;;  %v1526_v17 = vld [vmem:[%s18790_s11 + $0x2420] sm:$0xff] }
 0x52e   : > { %14341 = vmatprep.subr.bf16.mxu1 %v17336_v4  ;;  %v17527_v4 = vcombine.low %v1862_v6, %v1870_v39  ;;  %v1806_v6 = vld [vmem:[%s18790_s11 + $0x2ce0] sm:$0xff] }
 0x52f   : > { %14299 = vmatpush1.bf16.msra.mxu0 %v17079_v23  ;;  %v13892_v23 = vpop.f32.mrf.mxu0  ;;  %v17464_v32 = vcombine.high %v1798_v47, %v1806_v6  ;;  %v17463_v38 = vcombine.low %v1798_v47, %v1806_v6 }
 0x530   : > { %14300 = vmatprep.subr.bf16.mxu0 %v17064_v49  ;;  %v1838_v49 = vld [vmem:[%s18790_s11 + $0x2de0] sm:$0xff] }
 0x531   : > { %14342 = vmatpush1.bf16.msra.mxu1 %v17335_v16  ;;  %v1830_v16 = vld [vmem:[%s18790_s11 + $0x2da0] sm:$0xff] }
 0x532   : > { %14343 = vmatprep.subr.bf16.mxu1 %v17320_v52  ;;  %v20338_v52 = vpop.f32.mrf.mxu1  ;;  %v17496_v48 = vcombine.high %v1830_v16, %v1838_v49  ;;  %v17495_v60 = vcombine.low %v1830_v16, %v1838_v49  ;;  %v13852_v49 = vadd.f32 %v20318_v58, %v20316_v53 }
 0x533   : > { %14301 = vmatpush1.bf16.msra.mxu0 %v17063_v15  ;;  %v1558_v15 = vld [vmem:[%s18790_s11 + $0x2520] sm:$0xff] }
 0x534   : > { %14302 = vmatprep.subr.bf16.mxu0 %v17304_v40  ;;  %v13894_v40 = vpop.f32.mrf.mxu0  ;;  %v20344_v13 = vpop.f32.mrf.mxu1 }
 0x535   : > { %14344 = vmatpush1.bf16.msra.mxu1 %v17319_v41  ;;  %v1566_v41 = vld [vmem:[%s18790_s11 + $0x2560] sm:$0xff] }
 0x536   : > { %14345 = vmatprep.subr.bf16.mxu1 %v17560_v51  ;;  %v1814_v51 = vld [vmem:[%s18790_s11 + $0x2d20] sm:$0xff]  ;;  %v13896_v31 = vpop.f32.mrf.mxu0  ;;  %v20350_v39 = vpop.f32.mrf.mxu1 }
 0x537   : > { %14303 = vmatpush2.bf16.msra.mxu0 %v17303_v3  ;;  %v17224_v3 = vcombine.high %v1558_v15, %v1566_v41 }
 0x538   : > { %14304 = vmatprep.subr.bf16.mxu0 %v17288_v11  ;;  %v1542_v11 = vld [vmem:[%s18790_s11 + $0x24a0] sm:$0xff]  ;;  %v14019_v10 = vpop.f32.mrf.mxu1 }
 0x539   : > { %14346 = vmatpush2.bf16.msra.mxu1 %v17559_v57  ;;  %v17480_v57 = vcombine.high %v1814_v51, %v1822_v45 }
 0x53a   : > { %14347 = vmatprep.subr.bf16.mxu1 %v17544_v1  ;;  %v1550_v1 = vld [vmem:[%s18790_s11 + $0x24e0] sm:$0xff] }
 0x53b   : > { %14305 = vmatpush2.bf16.msra.mxu0 %v17287_v2  ;;  %v17223_v2 = vcombine.low %v1558_v15, %v1566_v41  ;;  %v17207_v56 = vcombine.low %v1542_v11, %v1550_v1  ;;  %v2030_v15 = vld [vmem:[%s18790_s11 + $0x33e0] sm:$0xff]  ;;  %v13934_v41 = vadd.f32 %v20332_v8, %v13891_v18 }
 0x53c   : > { %14306 = vmatprep.subr.bf16.mxu0 %v17272_v54  ;;  %v17479_v54 = vcombine.low %v1814_v51, %v1822_v45  ;;  %v13895_v51 = vadd.f32 %v13894_v40, %v13852_v49  ;;  %v2014_v8 = vld [vmem:[%s18790_s11 + $0x3360] sm:$0xff] }
 0x53d   : > { %14348 = vmatpush2.bf16.msra.mxu1 %v17543_v29  ;;  %v13976_v29 = vpop.f32.mrf.mxu0  ;;  %v2262_v40 = vld [vmem:[%s18790_s11 + $0x3b20] sm:$0xff] }
 0x53e   : > { %14349 = vmatprep.subr.bf16.mxu1 %v17528_v25  ;;  %v17208_v25 = vcombine.high %v1542_v11, %v1550_v1  ;;  %v2270_v11 = vld [vmem:[%s18790_s11 + $0x3b60] sm:$0xff]  ;;  %v13938_v1 = vadd.f32 %v20344_v13, %v13895_v51 }
 0x53f   : > { %14307 = vmatpush2.bf16.msra.mxu0 %v17271_v42  ;;  %v1534_v42 = vld [vmem:[%s18790_s11 + $0x2460] sm:$0xff]  ;;  %v13978_v16 = vpop.f32.mrf.mxu0  ;;  %v17928_v13 = vcombine.high %v2262_v40, %v2270_v11 }
 0x540   : > { %14308 = vmatprep.subr.bf16.mxu0 %v17256_v21  ;;  %v1790_v21 = vld [vmem:[%s18790_s11 + $0x2c60] sm:$0xff]  ;;  %v17192_v19 = vcombine.high %v1526_v17, %v1534_v42  ;;  %v17191_v53 = vcombine.low %v1526_v17, %v1534_v42 }
 0x541   : > { %14350 = vmatpush2.bf16.msra.mxu1 %v17527_v4  ;;  %v1782_v4 = vld [vmem:[%s18790_s11 + $0x2c20] sm:$0xff]  ;;  %v13980_v58 = vpop.f32.mrf.mxu0 }
 0x542   : > { %14351 = vmatprep.subr.bf16.mxu1 %v17512_v28  ;;  %v13850_v28 = vadd.f32 %v20310_v44, %v20308_v30  ;;  %v2278_v30 = vld [vmem:[%s18790_s11 + $0x3ba0] sm:$0xff]  ;;  %v13981_v5 = vadd.f32 %v13980_v58, %v13938_v1 }
 0x543   : > { %14309 = vmatpush2.bf16.msra.mxu0 %v17255_v61  ;;  %v2286_v44 = vld [vmem:[%s18790_s11 + $0x3be0] sm:$0xff] }
 0x544   : > { %14310 = vmatprep.subr.bf16.mxu0 %v17240_v24  ;;  %v13893_v61 = vadd.f32 %v13892_v23, %v13850_v28  ;;  %v17448_v24 = vcombine.high %v1782_v4, %v1790_v21  ;;  %v17447_v23 = vcombine.low %v1782_v4, %v1790_v21  ;;  %v17944_v7 = vcombine.high %v2278_v30, %v2286_v44  ;;  %v1998_v17 = vld [vmem:[%s18790_s11 + $0x32e0] sm:$0xff] }
 0x545   : > { %14352 = vmatpush2.bf16.msra.mxu1 %v17511_v37  ;;  %v14021_v37 = vpop.f32.mrf.mxu1  ;;  %v2246_v42 = vld [vmem:[%s18790_s11 + $0x3aa0] sm:$0xff]  ;;  %v17671_v28 = vcombine.low %v2006_v27, %v2014_v8 }
 0x546   : > { %14353 = vmatprep.subr.bf16.mxu1 %v17496_v48  ;;  %v2022_v48 = vld [vmem:[%s18790_s11 + $0x33a0] sm:$0xff] }
 0x547   : > { %14311 = vmatpush2.bf16.msra.mxu0 %v17239_v43  ;;  %v17688_v45 = vcombine.high %v2022_v48, %v2030_v15  ;;  %v13936_v43 = vadd.f32 %v20338_v52, %v13893_v61  ;;  %v17687_v6 = vcombine.low %v2022_v48, %v2030_v15  ;;  %v17943_v52 = vcombine.low %v2278_v30, %v2286_v44  ;;  %v2254_v4 = vld [vmem:[%s18790_s11 + $0x3ae0] sm:$0xff] }
 0x548   : > { %14312 = vmatprep.subr.bf16.mxu0 %v17224_v3  ;;  %v13977_v3 = vadd.f32 %v13976_v29, %v13934_v41  ;;  %v20376_v29 = vld [vmem:[%s18790_s11 + $0x32a0] sm:$0xff]  ;;  %v17912_v61 = vcombine.high %v2246_v42, %v2254_v4 }
 0x549   : > { %14354 = vmatpush2.bf16.msra.mxu1 %v17495_v60  ;;  %v13897_v60 = vadd.f32 %v13896_v31, %v13854_v14  ;;  %v13979_v47 = vadd.f32 %v13978_v16, %v13936_v43  ;;  %v17672_v31 = vcombine.high %v2006_v27, %v2014_v8  ;;  %v17656_v49 = vcombine.high %v20376_v29, %v1998_v17  ;;  %v1974_v30 = vld [vmem:[%s18790_s11 + $0x3220] sm:$0xff]  ;;  %v329_v14 = vld [vmem:[#allocation2 + $0x48] sm:$0xff] }
 0x54a   : > { %14355 = vmatprep.subr.bf16.mxu1 %v17480_v57  ;;  %v14023_v57 = vpop.f32.mrf.mxu1  ;;  %v1982_v44 = vld [vmem:[%s18790_s11 + $0x3260] sm:$0xff]  ;;  %v17655_v51 = vcombine.low %v20376_v29, %v1998_v17  ;;  %v17911_v27 = vcombine.low %v2246_v42, %v2254_v4 }
 0x54b   : > { %14313 = vmatpush2.bf16.msra.mxu0 %v17223_v2  ;;  %v13982_v2 = vpop.f32.mrf.mxu0  ;;  %v14022_v18 = vadd.f32 %v14021_v37, %v13979_v47  ;;  %v2238_v58 = vld [vmem:[%s18790_s11 + $0x3a60] sm:$0xff]  ;;  %v17640_v8 = vcombine.high %v1974_v30, %v1982_v44 }
 0x54c   : > { %14314 = vmatprep.subr.bf16.mxu0 %v17208_v25  ;;  %v14020_v25 = vadd.f32 %v14019_v10, %v13977_v3  ;;  %v2214_v29 = vld [vmem:[%s18790_s11 + $0x39a0] sm:$0xff] }
 0x54d   : > { %14356 = vmatpush2.bf16.msra.mxu1 %v17479_v54  ;;  %v13940_v54 = vadd.f32 %v20350_v39, %v13897_v60  ;;  %v328_v39 = vld [vmem:[#allocation2 + $0x30] sm:$0xff] }
 0x54e   : > { %14357 = vmatprep.subr.bf16.mxu1 %v17464_v32  ;;  %v14025_v32 = vpop.f32.mrf.mxu1 }
 0x54f   : > { %14315 = vmatpush2.bf16.msra.mxu0 %v17207_v56  ;;  %v13983_v56 = vadd.f32 %v13982_v2, %v13940_v54  ;;  %v1966_v2 = vld [vmem:[%s18790_s11 + $0x31e0] sm:$0xff] }
 0x550   : > { %14316 = vmatprep.subr.bf16.mxu0 %v17192_v19  ;;  %v17927_v19 = vcombine.low %v2262_v40, %v2270_v11  ;;  %v2222_v54 = vld [vmem:[%s18790_s11 + $0x39e0] sm:$0xff] }
 0x551   : > { %14358 = vmatpush2.bf16.msra.mxu1 %v17463_v38  ;;  %v17880_v4 = vcombine.high %v2214_v29, %v2222_v54 }
 0x552   : > { %14359 = vmatprep.subr.bf16.mxu1 %v17448_v24  ;;  %v14024_v24 = vadd.f32 %v14023_v57, %v13981_v5  ;;  %v344_v57 = vld [vmem:[#allocation2 + $0x70] sm:$0xff] }
 0x553   : > { %14317 = vmatpush2.bf16.msra.mxu0 %v17191_v53  ;;  %v2230_v53 = vld [vmem:[%s18790_s11 + $0x3a20] sm:$0xff] }
 0x554   : > { %14372 = vmatprep.subr.bf16.mxu0 %v17688_v45  ;;  %v17896_v47 = vcombine.high %v2230_v53, %v2238_v58 }
 0x555   : > { %14360 = vmatpush2.bf16.msra.mxu1 %v17447_v23  ;;  %v14026_v23 = vadd.f32 %v14025_v32, %v13983_v56  ;;  %v17639_v32 = vcombine.low %v1974_v30, %v1982_v44  ;;  %v2206_v56 = vld [vmem:[%s18790_s11 + $0x3960] sm:$0xff] }
 0x556   : > { %14415 = vmatprep.subr.bf16.mxu1 %v17944_v7  ;;  %v14062_v21 = vpop.f32.mrf.mxu0  ;;  %14319 = vmatmul.mubr.bf16.vlgmr.msra.gmra.mxu0 %v19097_v20  ;;  %v1910_v44 = vld [vmem:[%s18790_s11 + $0x3020] sm:$0xff] }
 0x557   : > { %v14063_v16 = vadd.f32 %v14062_v21, %v14020_v25  ;;  %14373 = vmatpush1.bf16.msra.mxu0 %v17687_v6  ;;  %14404 = vmatprep.mubr.bf16.mxu0 %v19120_v35  ;;  %v1958_v6 = vld [vmem:[%s18790_s11 + $0x31a0] sm:$0xff] }
 0x558   : > { %v14105_v38 = vpop.f32.mrf.mxu1  ;;  %14362 = vmatmul.mubr.bf16.vlgmr.msra.gmra.mxu1 %v19108_v55  ;;  %v14064_v10 = vpop.f32.mrf.mxu0  ;;  %14374 = vmatprep.subr.bf16.mxu0 %v17672_v31  ;;  %v17624_v17 = vcombine.high %v1958_v6, %v1966_v2  ;;  %v1942_v21 = vld [vmem:[%s18790_s11 + $0x3120] sm:$0xff] }
 0x559   : > { %14416 = vmatpush1.bf16.msra.mxu1 %v17943_v52  ;;  %v14106_v37 = vadd.f32 %v14105_v38, %v14063_v16  ;;  %v14065_v48 = vadd.f32 %v14064_v10, %v14022_v18  ;;  %14447 = vmatprep.mubr.bf16.mxu1 %v19127_v36  ;;  %v345_v52 = vld [vmem:[#allocation2 + $0xc0] sm:$0xff]  ;;  %v17623_v16 = vcombine.low %v1958_v6, %v1966_v2 }
 0x55a   : > { %v14107_v15 = vpop.f32.mrf.mxu1  ;;  %14417 = vmatprep.subr.bf16.mxu1 %v17928_v13  ;;  %v14066_v41 = vpop.f32.mrf.mxu0  ;;  %v17895_v13 = vcombine.low %v2230_v53, %v2238_v58  ;;  %v2198_v18 = vld [vmem:[%s18790_s11 + $0x3920] sm:$0xff]  ;;  %v17879_v38 = vcombine.low %v2214_v29, %v2222_v54 }
 0x55b   : > { %v15496_v45 = vadd.f32 %v14106_v37, %v328_v39  ;;  %v14108_v43 = vadd.f32 %v14107_v15, %v14065_v48  ;;  %v14067_v60 = vadd.f32 %v14066_v41, %v14024_v24  ;;  %14375 = vmatpush1.bf16.msra.mxu0 %v17671_v28  ;;  %v1950_v28 = vld [vmem:[%s18790_s11 + $0x3160] sm:$0xff]  ;;  %v17864_v10 = vcombine.high %v2198_v18, %v2206_v56 }
 0x55c   : > { %v14109_v3 = vpop.f32.mrf.mxu1  ;;  %v14068_v7 = vpop.f32.mrf.mxu0  ;;  %14376 = vmatprep.subr.bf16.mxu0 %v17656_v49  ;;  %v17608_v39 = vcombine.high %v1942_v21, %v1950_v28  ;;  %v1934_v49 = vld [vmem:[%s18790_s11 + $0x30e0] sm:$0xff]  ;;  %v17607_v37 = vcombine.low %v1942_v21, %v1950_v28  ;;  %v17863_v48 = vcombine.low %v2198_v18, %v2206_v56 }
 0x55d   : > { %14418 = vmatpush1.bf16.msra.mxu1 %v17927_v19  ;;  %15528 = vst [vmem:[#allocation2 + $0x30] sm:$0xff] %v15496_v45  ;;  %v15497_v40 = vadd.f32 %v14108_v43, %v329_v14  ;;  %v14110_v11 = vadd.f32 %v14109_v3, %v14067_v60  ;;  %v14069_v1 = vadd.f32 %v14068_v7, %v14026_v23  ;;  %v1926_v19 = vld [vmem:[%s18790_s11 + $0x30a0] sm:$0xff] }
 0x55e   : > { %14419 = vmatprep.subr.bf16.mxu1 %v17912_v61  ;;  %v14111_v31 = vpop.f32.mrf.mxu1  ;;  %v2182_v61 = vld [vmem:[%s18790_s11 + $0x38a0] sm:$0xff]  ;;  %v17592_v15 = vcombine.high %v1926_v19, %v1934_v49  ;;  %v17591_v53 = vcombine.low %v1926_v19, %v1934_v49 }
 0x55f   : > { %15529 = vst [vmem:[#allocation2 + $0x48] sm:$0xff] %v15497_v40  ;;  %v15512_v25 = vadd.f32 %v14110_v11, %v344_v57  ;;  %v14112_v5 = vadd.f32 %v14111_v31, %v14069_v1  ;;  %14377 = vmatpush1.bf16.msra.mxu0 %v17655_v51  ;;  %v2190_v24 = vld [vmem:[%s18790_s11 + $0x38e0] sm:$0xff] }
 0x560   : > { %14378 = vmatprep.subr.bf16.mxu0 %v17640_v8  ;;  %v17848_v30 = vcombine.high %v2182_v61, %v2190_v24  ;;  %v1918_v14 = vld [vmem:[%s18790_s11 + $0x3060] sm:$0xff]  ;;  %v17847_v58 = vcombine.low %v2182_v61, %v2190_v24 }
 0x561   : > { %14420 = vmatpush1.bf16.msra.mxu1 %v17911_v27  ;;  %15544 = vst [vmem:[#allocation2 + $0x70] sm:$0xff] %v15512_v25  ;;  %v15513_v42 = vadd.f32 %v14112_v5, %v345_v52  ;;  %v2166_v41 = vld [vmem:[%s18790_s11 + $0x3820] sm:$0xff]  ;;  %v17576_v23 = vcombine.high %v1910_v44, %v1918_v14  ;;  %v17575_v7 = vcombine.low %v1910_v44, %v1918_v14 }
 0x562   : > { %14421 = vmatprep.subr.bf16.mxu1 %v17896_v47  ;;  %v2174_v51 = vld [vmem:[%s18790_s11 + $0x3860] sm:$0xff] }
 0x563   : > { %15545 = vst [vmem:[#allocation2 + $0xc0] sm:$0xff] %v15513_v42  ;;  %14379 = vmatpush1.bf16.msra.mxu0 %v17639_v32  ;;  %v17832_v45 = vcombine.high %v2166_v41, %v2174_v51  ;;  %v2150_v43 = vld [vmem:[%s18790_s11 + $0x37a0] sm:$0xff]  ;;  %v17831_v27 = vcombine.low %v2166_v41, %v2174_v51 }
 0x564   : > { %14380 = vmatprep.subr.bf16.mxu0 %v17624_v17  ;;  %v2158_v60 = vld [vmem:[%s18790_s11 + $0x37e0] sm:$0xff] }
 0x565   : > { %14422 = vmatpush1.bf16.msra.mxu1 %v17895_v13  ;;  %v2406_v3 = vld [vmem:[%s18790_s11 + $0x3fa0] sm:$0xff]  ;;  %v17816_v8 = vcombine.high %v2150_v43, %v2158_v60  ;;  %v17815_v2 = vcombine.low %v2150_v43, %v2158_v60 }
 0x566   : > { %14423 = vmatprep.subr.bf16.mxu1 %v17880_v4  ;;  %v2414_v57 = vld [vmem:[%s18790_s11 + $0x3fe0] sm:$0xff] }
 0x567   : > { %14381 = vmatpush1.bf16.msra.mxu0 %v17623_v16  ;;  %v18072_v40 = vcombine.high %v2406_v3, %v2414_v57  ;;  %v2134_v11 = vld [vmem:[%s18790_s11 + $0x3720] sm:$0xff]  ;;  %v18071_v52 = vcombine.low %v2406_v3, %v2414_v57 }
 0x568   : > { %14382 = vmatprep.subr.bf16.mxu0 %v17608_v39  ;;  %v2142_v1 = vld [vmem:[%s18790_s11 + $0x3760] sm:$0xff] }
 0x569   : > { %14424 = vmatpush1.bf16.msra.mxu1 %v17879_v38  ;;  %v2390_v47 = vld [vmem:[%s18790_s11 + $0x3f20] sm:$0xff]  ;;  %v17800_v31 = vcombine.high %v2134_v11, %v2142_v1  ;;  %v17799_v13 = vcombine.low %v2134_v11, %v2142_v1 }
 0x56a   : > { %14425 = vmatprep.subr.bf16.mxu1 %v17864_v10  ;;  %v2398_v6 = vld [vmem:[%s18790_s11 + $0x3f60] sm:$0xff] }
 0x56b   : > { %14383 = vmatpush1.bf16.msra.mxu0 %v17607_v37  ;;  %v18056_v29 = vcombine.high %v2390_v47, %v2398_v6  ;;  %v2118_v54 = vld [vmem:[%s18790_s11 + $0x36a0] sm:$0xff]  ;;  %v18055_v17 = vcombine.low %v2390_v47, %v2398_v6 }
 0x56c   : > { %14384 = vmatprep.subr.bf16.mxu0 %v17592_v15  ;;  %v2126_v25 = vld [vmem:[%s18790_s11 + $0x36e0] sm:$0xff] }
 0x56d   : > { %14426 = vmatpush1.bf16.msra.mxu1 %v17863_v48  ;;  %v2374_v5 = vld [vmem:[%s18790_s11 + $0x3ea0] sm:$0xff]  ;;  %v17784_v42 = vcombine.high %v2118_v54, %v2126_v25  ;;  %v17783_v16 = vcombine.low %v2118_v54, %v2126_v25  ;;  %v487_v54 = vld [vmem:[%s18790_s11 + $0x3a8] sm:$0xff] }
 0x56e   : > { %14427 = vmatprep.subr.bf16.mxu1 %v17848_v30  ;;  %v2382_v32 = vld [vmem:[%s18790_s11 + $0x3ee0] sm:$0xff]  ;;  %v495_v25 = vld [vmem:[%s18790_s11 + $0x3e8] sm:$0xff] }
 0x56f   : > { %14385 = vmatpush1.bf16.msra.mxu0 %v17591_v53  ;;  %v18040_v4 = vcombine.high %v2374_v5, %v2382_v32  ;;  %v2102_v21 = vld [vmem:[%s18790_s11 + $0x3620] sm:$0xff]  ;;  %v18039_v38 = vcombine.low %v2374_v5, %v2382_v32  ;;  %v743_v5 = vld [vmem:[%s18790_s11 + $0xba8] sm:$0xff] }
 0x570   : > { %14386 = vmatprep.subr.bf16.mxu0 %v17576_v23  ;;  %v2110_v28 = vld [vmem:[%s18790_s11 + $0x3660] sm:$0xff]  ;;  %v751_v32 = vld [vmem:[%s18790_s11 + $0xbe8] sm:$0xff] }
 0x571   : > { %14428 = vmatpush1.bf16.msra.mxu1 %v17847_v58  ;;  %v2358_v18 = vld [vmem:[%s18790_s11 + $0x3e20] sm:$0xff]  ;;  %v17768_v39 = vcombine.high %v2102_v21, %v2110_v28  ;;  %v17767_v37 = vcombine.low %v2102_v21, %v2110_v28  ;;  %v471_v21 = vld [vmem:[%s18790_s11 + $0x328] sm:$0xff] }
 0x572   : > { %14429 = vmatprep.subr.bf16.mxu1 %v17832_v45  ;;  %v2366_v56 = vld [vmem:[%s18790_s11 + $0x3e60] sm:$0xff]  ;;  %v479_v28 = vld [vmem:[%s18790_s11 + $0x368] sm:$0xff] }
 0x573   : > { %14387 = vmatpush1.bf16.msra.mxu0 %v17575_v7  ;;  %v18024_v10 = vcombine.high %v2358_v18, %v2366_v56  ;;  %v2086_v19 = vld [vmem:[%s18790_s11 + $0x35a0] sm:$0xff]  ;;  %v18023_v48 = vcombine.low %v2358_v18, %v2366_v56  ;;  %v727_v18 = vld [vmem:[%s18790_s11 + $0xb28] sm:$0xff] }
 0x574   : > { %14388 = vmatprep.subr.bf16.mxu0 %v17816_v8  ;;  %v2094_v49 = vld [vmem:[%s18790_s11 + $0x35e0] sm:$0xff]  ;;  %v735_v56 = vld [vmem:[%s18790_s11 + $0xb68] sm:$0xff] }
 0x575   : > { %14430 = vmatpush1.bf16.msra.mxu1 %v17831_v27  ;;  %v2342_v61 = vld [vmem:[%s18790_s11 + $0x3da0] sm:$0xff]  ;;  %v17752_v15 = vcombine.high %v2086_v19, %v2094_v49  ;;  %v17751_v53 = vcombine.low %v2086_v19, %v2094_v49  ;;  %v455_v19 = vld [vmem:[%s18790_s11 + $0x2a8] sm:$0xff] }
 0x576   : > { %14431 = vmatprep.subr.bf16.mxu1 %v18072_v40  ;;  %v2350_v24 = vld [vmem:[%s18790_s11 + $0x3de0] sm:$0xff]  ;;  %v463_v49 = vld [vmem:[%s18790_s11 + $0x2e8] sm:$0xff] }
 0x577   : > { %14389 = vmatpush2.bf16.msra.mxu0 %v17815_v2  ;;  %v18008_v30 = vcombine.high %v2342_v61, %v2350_v24  ;;  %v2070_v44 = vld [vmem:[%s18790_s11 + $0x3520] sm:$0xff]  ;;  %v18007_v58 = vcombine.low %v2342_v61, %v2350_v24  ;;  %v711_v61 = vld [vmem:[%s18790_s11 + $0xaa8] sm:$0xff] }
 0x578   : > { %14390 = vmatprep.subr.bf16.mxu0 %v17800_v31  ;;  %v2078_v14 = vld [vmem:[%s18790_s11 + $0x3560] sm:$0xff]  ;;  %v719_v24 = vld [vmem:[%s18790_s11 + $0xae8] sm:$0xff] }
 0x579   : > { %14432 = vmatpush2.bf16.msra.mxu1 %v18071_v52  ;;  %v2326_v41 = vld [vmem:[%s18790_s11 + $0x3d20] sm:$0xff]  ;;  %v17736_v23 = vcombine.high %v2070_v44, %v2078_v14  ;;  %v17735_v7 = vcombine.low %v2070_v44, %v2078_v14  ;;  %v439_v44 = vld [vmem:[%s18790_s11 + $0x228] sm:$0xff] }
 0x57a   : > { %14433 = vmatprep.subr.bf16.mxu1 %v18056_v29  ;;  %v2334_v51 = vld [vmem:[%s18790_s11 + $0x3d60] sm:$0xff]  ;;  %v447_v14 = vld [vmem:[%s18790_s11 + $0x268] sm:$0xff] }
 0x57b   : > { %14391 = vmatpush2.bf16.msra.mxu0 %v17799_v13  ;;  %v17992_v45 = vcombine.high %v2326_v41, %v2334_v51  ;;  %v2054_v43 = vld [vmem:[%s18790_s11 + $0x34a0] sm:$0xff]  ;;  %v17991_v27 = vcombine.low %v2326_v41, %v2334_v51  ;;  %v695_v41 = vld [vmem:[%s18790_s11 + $0xa28] sm:$0xff] }
 0x57c   : > { %14392 = vmatprep.subr.bf16.mxu0 %v17784_v42  ;;  %v2062_v60 = vld [vmem:[%s18790_s11 + $0x34e0] sm:$0xff]  ;;  %v16154_v42 = vcombine.high %v487_v54, %v495_v25  ;;  %v703_v51 = vld [vmem:[%s18790_s11 + $0xa68] sm:$0xff] }
 0x57d   : > { %14434 = vmatpush2.bf16.msra.mxu1 %v18055_v17  ;;  %v2310_v3 = vld [vmem:[%s18790_s11 + $0x3ca0] sm:$0xff]  ;;  %v17720_v8 = vcombine.high %v2054_v43, %v2062_v60  ;;  %v17719_v2 = vcombine.low %v2054_v43, %v2062_v60  ;;  %v423_v43 = vld [vmem:[%s18790_s11 + $0x1a8] sm:$0xff] }
 0x57e   : > { %14435 = vmatprep.subr.bf16.mxu1 %v18040_v4  ;;  %v2318_v57 = vld [vmem:[%s18790_s11 + $0x3ce0] sm:$0xff]  ;;  %v16410_v4 = vcombine.high %v743_v5, %v751_v32  ;;  %v431_v60 = vld [vmem:[%s18790_s11 + $0x1e8] sm:$0xff] }
 0x57f   : > { %14393 = vmatpush2.bf16.msra.mxu0 %v17783_v16  ;;  %v17976_v40 = vcombine.high %v2310_v3, %v2318_v57  ;;  %v2038_v11 = vld [vmem:[%s18790_s11 + $0x3420] sm:$0xff]  ;;  %v17975_v52 = vcombine.low %v2310_v3, %v2318_v57  ;;  %v16153_v16 = vcombine.low %v487_v54, %v495_v25  ;;  %v679_v3 = vld [vmem:[%s18790_s11 + $0x9a8] sm:$0xff] }
 0x580   : > { %14394 = vmatprep.subr.bf16.mxu0 %v17768_v39  ;;  %v2046_v1 = vld [vmem:[%s18790_s11 + $0x3460] sm:$0xff]  ;;  %v16138_v39 = vcombine.high %v471_v21, %v479_v28  ;;  %v687_v57 = vld [vmem:[%s18790_s11 + $0x9e8] sm:$0xff] }
 0x581   : > { %14436 = vmatpush2.bf16.msra.mxu1 %v18039_v38  ;;  %v2294_v47 = vld [vmem:[%s18790_s11 + $0x3c20] sm:$0xff]  ;;  %v17704_v31 = vcombine.high %v2038_v11, %v2046_v1  ;;  %v17703_v13 = vcombine.low %v2038_v11, %v2046_v1  ;;  %v16409_v38 = vcombine.low %v743_v5, %v751_v32  ;;  %v407_v11 = vld [vmem:[%s18790_s11 + $0x128] sm:$0xff] }
 0x582   : > { %14437 = vmatprep.subr.bf16.mxu1 %v18024_v10  ;;  %v2302_v6 = vld [vmem:[%s18790_s11 + $0x3c60] sm:$0xff]  ;;  %v16394_v10 = vcombine.high %v727_v18, %v735_v56  ;;  %v415_v1 = vld [vmem:[%s18790_s11 + $0x168] sm:$0xff] }
 0x583   : > { %14395 = vmatpush2.bf16.msra.mxu0 %v17767_v37  ;;  %v17960_v29 = vcombine.high %v2294_v47, %v2302_v6  ;;  %v17959_v17 = vcombine.low %v2294_v47, %v2302_v6  ;;  %v16137_v37 = vcombine.low %v471_v21, %v479_v28  ;;  %v663_v47 = vld [vmem:[%s18790_s11 + $0x928] sm:$0xff] }
 0x584   : > { %14396 = vmatprep.subr.bf16.mxu0 %v17752_v15  ;;  %v16122_v15 = vcombine.high %v455_v19, %v463_v49  ;;  %v671_v6 = vld [vmem:[%s18790_s11 + $0x968] sm:$0xff] }
 0x585   : > { %14438 = vmatpush2.bf16.msra.mxu1 %v18023_v48  ;;  %v16393_v48 = vcombine.low %v727_v18, %v735_v56  ;;  %v391_v54 = vld [vmem:[%s18790_s11 + $0xa8] sm:$0xff] }
 0x586   : > { %14439 = vmatprep.subr.bf16.mxu1 %v18008_v30  ;;  %v16378_v30 = vcombine.high %v711_v61, %v719_v24  ;;  %v399_v25 = vld [vmem:[%s18790_s11 + $0xe8] sm:$0xff] }
 0x587   : > { %14397 = vmatpush2.bf16.msra.mxu0 %v17751_v53  ;;  %v16121_v53 = vcombine.low %v455_v19, %v463_v49  ;;  %v647_v5 = vld [vmem:[%s18790_s11 + $0x8a8] sm:$0xff] }
 0x588   : > { %14398 = vmatprep.subr.bf16.mxu0 %v17736_v23  ;;  %v16106_v23 = vcombine.high %v439_v44, %v447_v14  ;;  %v655_v32 = vld [vmem:[%s18790_s11 + $0x8e8] sm:$0xff] }
 0x589   : > { %14440 = vmatpush2.bf16.msra.mxu1 %v18007_v58  ;;  %v16377_v58 = vcombine.low %v711_v61, %v719_v24  ;;  %v375_v21 = vld [vmem:[%s18790_s11 + $0x28] sm:$0xff] }
 0x58a   : > { %14441 = vmatprep.subr.bf16.mxu1 %v17992_v45  ;;  %v16362_v45 = vcombine.high %v695_v41, %v703_v51  ;;  %v383_v28 = vld [vmem:[%s18790_s11 + $0x68] sm:$0xff] }
 0x58b   : > { %14399 = vmatpush2.bf16.msra.mxu0 %v17735_v7  ;;  %v16105_v7 = vcombine.low %v439_v44, %v447_v14  ;;  %v631_v18 = vld [vmem:[%s18790_s11 + $0x828] sm:$0xff] }
 0x58c   : > { %14400 = vmatprep.subr.bf16.mxu0 %v17720_v8  ;;  %v16090_v8 = vcombine.high %v423_v43, %v431_v60  ;;  %v639_v56 = vld [vmem:[%s18790_s11 + $0x868] sm:$0xff] }
 0x58d   : > { %14442 = vmatpush2.bf16.msra.mxu1 %v17991_v27  ;;  %v16361_v27 = vcombine.low %v695_v41, %v703_v51  ;;  %v615_v19 = vld [vmem:[%s18790_s11 + $0x7a8] sm:$0xff] }
 0x58e   : > { %14443 = vmatprep.subr.bf16.mxu1 %v17976_v40  ;;  %v16346_v40 = vcombine.high %v679_v3, %v687_v57  ;;  %v623_v49 = vld [vmem:[%s18790_s11 + $0x7e8] sm:$0xff] }
 0x58f   : > { %14401 = vmatpush2.bf16.msra.mxu0 %v17719_v2  ;;  %v16089_v2 = vcombine.low %v423_v43, %v431_v60  ;;  %v871_v61 = vld [vmem:[%s18790_s11 + $0xfa8] sm:$0xff] }
 0x590   : > { %14402 = vmatprep.subr.bf16.mxu0 %v17704_v31  ;;  %v16074_v31 = vcombine.high %v407_v11, %v415_v1  ;;  %v879_v24 = vld [vmem:[%s18790_s11 + $0xfe8] sm:$0xff] }
 0x591   : > { %14444 = vmatpush2.bf16.msra.mxu1 %v17975_v52  ;;  %v16345_v52 = vcombine.low %v679_v3, %v687_v57  ;;  %v599_v44 = vld [vmem:[%s18790_s11 + $0x728] sm:$0xff] }
 0x592   : > { %14445 = vmatprep.subr.bf16.mxu1 %v17960_v29  ;;  %v16330_v29 = vcombine.high %v663_v47, %v671_v6  ;;  %v607_v14 = vld [vmem:[%s18790_s11 + $0x768] sm:$0xff] }
 0x593   : > { %14403 = vmatpush2.bf16.msra.mxu0 %v17703_v13  ;;  %v16073_v13 = vcombine.low %v407_v11, %v415_v1  ;;  %v855_v41 = vld [vmem:[%s18790_s11 + $0xf28] sm:$0xff] }
 0x594   : > { %14458 = vmatprep.subr.bf16.mxu0 %v16154_v42  ;;  %v16058_v42 = vcombine.high %v391_v54, %v399_v25  ;;  %v863_v51 = vld [vmem:[%s18790_s11 + $0xf68] sm:$0xff] }
 0x595   : > { %14446 = vmatpush2.bf16.msra.mxu1 %v17959_v17  ;;  %v16329_v17 = vcombine.low %v663_v47, %v671_v6  ;;  %v583_v43 = vld [vmem:[%s18790_s11 + $0x6a8] sm:$0xff] }
 0x596   : > { %14501 = vmatprep.subr.bf16.mxu1 %v16410_v4  ;;  %14405 = vmatmul.mubr.bf16.vlgmr.msra.gmra.mxu0 %v19192_v9  ;;  %v16314_v4 = vcombine.high %v647_v5, %v655_v32  ;;  %v591_v60 = vld [vmem:[%s18790_s11 + $0x6e8] sm:$0xff] }
 0x597   : > { %14459 = vmatpush1.bf16.msra.mxu0 %v16153_v16  ;;  %14490 = vmatprep.mubr.bf16.mxu0 %v18848_v59  ;;  %v16057_v16 = vcombine.low %v391_v54, %v399_v25  ;;  %v839_v3 = vld [vmem:[%s18790_s11 + $0xea8] sm:$0xff] }
 0x598   : > { %14448 = vmatmul.mubr.bf16.vlgmr.msra.gmra.mxu1 %v19198_v12  ;;  %14460 = vmatprep.subr.bf16.mxu0 %v16138_v39  ;;  %v16042_v39 = vcombine.high %v375_v21, %v383_v28  ;;  %v847_v57 = vld [vmem:[%s18790_s11 + $0xee8] sm:$0xff] }
 0x599   : > { %14502 = vmatpush1.bf16.msra.mxu1 %v16409_v38  ;;  %14533 = vmatprep.mubr.bf16.mxu1 %v18860_v0  ;;  %v16313_v38 = vcombine.low %v647_v5, %v655_v32  ;;  %v567_v11 = vld [vmem:[%s18790_s11 + $0x628] sm:$0xff] }
 0x59a   : > { %14503 = vmatprep.subr.bf16.mxu1 %v16394_v10  ;;  %v16298_v10 = vcombine.high %v631_v18, %v639_v56  ;;  %v575_v1 = vld [vmem:[%s18790_s11 + $0x668] sm:$0xff] }
 0x59b   : > { %14461 = vmatpush1.bf16.msra.mxu0 %v16137_v37  ;;  %v16041_v37 = vcombine.low %v375_v21, %v383_v28  ;;  %v823_v47 = vld [vmem:[%s18790_s11 + $0xe28] sm:$0xff] }
 0x59c   : > { %14462 = vmatprep.subr.bf16.mxu0 %v16122_v15  ;;  %v16282_v15 = vcombine.high %v615_v19, %v623_v49  ;;  %v831_v6 = vld [vmem:[%s18790_s11 + $0xe68] sm:$0xff] }
 0x59d   : > { %14504 = vmatpush1.bf16.msra.mxu1 %v16393_v48  ;;  %v16297_v48 = vcombine.low %v631_v18, %v639_v56  ;;  %v551_v54 = vld [vmem:[%s18790_s11 + $0x5a8] sm:$0xff] }
 0x59e   : > { %14505 = vmatprep.subr.bf16.mxu1 %v16378_v30  ;;  %v16538_v30 = vcombine.high %v871_v61, %v879_v24  ;;  %v559_v25 = vld [vmem:[%s18790_s11 + $0x5e8] sm:$0xff] }
 0x59f   : > { %14463 = vmatpush1.bf16.msra.mxu0 %v16121_v53  ;;  %v16281_v53 = vcombine.low %v615_v19, %v623_v49  ;;  %v807_v5 = vld [vmem:[%s18790_s11 + $0xda8] sm:$0xff] }
 0x5a0   : > { %14464 = vmatprep.subr.bf16.mxu0 %v16106_v23  ;;  %v16266_v23 = vcombine.high %v599_v44, %v607_v14  ;;  %v815_v32 = vld [vmem:[%s18790_s11 + $0xde8] sm:$0xff] }
 0x5a1   : > { %14506 = vmatpush1.bf16.msra.mxu1 %v16377_v58  ;;  %v16537_v58 = vcombine.low %v871_v61, %v879_v24  ;;  %v535_v21 = vld [vmem:[%s18790_s11 + $0x528] sm:$0xff] }
 0x5a2   : > { %14507 = vmatprep.subr.bf16.mxu1 %v16362_v45  ;;  %v16522_v45 = vcombine.high %v855_v41, %v863_v51  ;;  %v543_v28 = vld [vmem:[%s18790_s11 + $0x568] sm:$0xff] }
 0x5a3   : > { %14465 = vmatpush1.bf16.msra.mxu0 %v16105_v7  ;;  %v16265_v7 = vcombine.low %v599_v44, %v607_v14  ;;  %v791_v18 = vld [vmem:[%s18790_s11 + $0xd28] sm:$0xff] }
 0x5a4   : > { %14466 = vmatprep.subr.bf16.mxu0 %v16090_v8  ;;  %v16250_v8 = vcombine.high %v583_v43, %v591_v60  ;;  %v799_v56 = vld [vmem:[%s18790_s11 + $0xd68] sm:$0xff] }
 0x5a5   : > { %14508 = vmatpush1.bf16.msra.mxu1 %v16361_v27  ;;  %v16521_v27 = vcombine.low %v855_v41, %v863_v51  ;;  %v519_v19 = vld [vmem:[%s18790_s11 + $0x4a8] sm:$0xff] }
 0x5a6   : > { %14509 = vmatprep.subr.bf16.mxu1 %v16346_v40  ;;  %v16506_v40 = vcombine.high %v839_v3, %v847_v57  ;;  %v527_v49 = vld [vmem:[%s18790_s11 + $0x4e8] sm:$0xff] }
 0x5a7   : > { %14467 = vmatpush1.bf16.msra.mxu0 %v16089_v2  ;;  %v16249_v2 = vcombine.low %v583_v43, %v591_v60  ;;  %v775_v61 = vld [vmem:[%s18790_s11 + $0xca8] sm:$0xff] }
 0x5a8   : > { %14468 = vmatprep.subr.bf16.mxu0 %v16074_v31  ;;  %v16234_v31 = vcombine.high %v567_v11, %v575_v1  ;;  %v783_v24 = vld [vmem:[%s18790_s11 + $0xce8] sm:$0xff] }
 0x5a9   : > { %14510 = vmatpush1.bf16.msra.mxu1 %v16345_v52  ;;  %v16505_v52 = vcombine.low %v839_v3, %v847_v57  ;;  %v503_v44 = vld [vmem:[%s18790_s11 + $0x428] sm:$0xff] }
 0x5aa   : > { %14511 = vmatprep.subr.bf16.mxu1 %v16330_v29  ;;  %v16490_v29 = vcombine.high %v823_v47, %v831_v6  ;;  %v511_v14 = vld [vmem:[%s18790_s11 + $0x468] sm:$0xff] }
 0x5ab   : > { %14469 = vmatpush1.bf16.msra.mxu0 %v16073_v13  ;;  %v16233_v13 = vcombine.low %v567_v11, %v575_v1  ;;  %v759_v41 = vld [vmem:[%s18790_s11 + $0xc28] sm:$0xff] }
 0x5ac   : > { %14470 = vmatprep.subr.bf16.mxu0 %v16058_v42  ;;  %v16218_v42 = vcombine.high %v551_v54, %v559_v25  ;;  %v767_v51 = vld [vmem:[%s18790_s11 + $0xc68] sm:$0xff] }
 0x5ad   : > { %14512 = vmatpush1.bf16.msra.mxu1 %v16329_v17  ;;  %v16489_v17 = vcombine.low %v823_v47, %v831_v6  ;;  %v999_v43 = vld [vmem:[%s18790_s11 + $0x13a8] sm:$0xff] }
 0x5ae   : > { %14513 = vmatprep.subr.bf16.mxu1 %v16314_v4  ;;  %v16474_v4 = vcombine.high %v807_v5, %v815_v32  ;;  %v1007_v60 = vld [vmem:[%s18790_s11 + $0x13e8] sm:$0xff] }
 0x5af   : > { %14471 = vmatpush1.bf16.msra.mxu0 %v16057_v16  ;;  %v16217_v16 = vcombine.low %v551_v54, %v559_v25  ;;  %v1255_v3 = vld [vmem:[%s18790_s11 + $0x1ba8] sm:$0xff] }
 0x5b0   : > { %14472 = vmatprep.subr.bf16.mxu0 %v16042_v39  ;;  %v16202_v39 = vcombine.high %v535_v21, %v543_v28  ;;  %v1263_v57 = vld [vmem:[%s18790_s11 + $0x1be8] sm:$0xff] }
 0x5b1   : > { %14514 = vmatpush1.bf16.msra.mxu1 %v16313_v38  ;;  %v16473_v38 = vcombine.low %v807_v5, %v815_v32  ;;  %v983_v11 = vld [vmem:[%s18790_s11 + $0x1328] sm:$0xff] }
 0x5b2   : > { %14515 = vmatprep.subr.bf16.mxu1 %v16298_v10  ;;  %v16458_v10 = vcombine.high %v791_v18, %v799_v56  ;;  %v991_v1 = vld [vmem:[%s18790_s11 + $0x1368] sm:$0xff] }
 0x5b3   : > { %14473 = vmatpush1.bf16.msra.mxu0 %v16041_v37  ;;  %v16201_v37 = vcombine.low %v535_v21, %v543_v28  ;;  %v1239_v47 = vld [vmem:[%s18790_s11 + $0x1b28] sm:$0xff] }
 0x5b4   : > { %14474 = vmatprep.subr.bf16.mxu0 %v16282_v15  ;;  %v16186_v15 = vcombine.high %v519_v19, %v527_v49  ;;  %v1247_v6 = vld [vmem:[%s18790_s11 + $0x1b68] sm:$0xff] }
 0x5b5   : > { %14516 = vmatpush1.bf16.msra.mxu1 %v16297_v48  ;;  %v16457_v48 = vcombine.low %v791_v18, %v799_v56  ;;  %v967_v54 = vld [vmem:[%s18790_s11 + $0x12a8] sm:$0xff] }
 0x5b6   : > { %14517 = vmatprep.subr.bf16.mxu1 %v16538_v30  ;;  %v16442_v30 = vcombine.high %v775_v61, %v783_v24  ;;  %v975_v25 = vld [vmem:[%s18790_s11 + $0x12e8] sm:$0xff] }
 0x5b7   : > { %14475 = vmatpush2.bf16.msra.mxu0 %v16281_v53  ;;  %v16185_v53 = vcombine.low %v519_v19, %v527_v49  ;;  %v1223_v5 = vld [vmem:[%s18790_s11 + $0x1aa8] sm:$0xff] }
 0x5b8   : > { %14476 = vmatprep.subr.bf16.mxu0 %v16266_v23  ;;  %v16170_v23 = vcombine.high %v503_v44, %v511_v14  ;;  %v1231_v32 = vld [vmem:[%s18790_s11 + $0x1ae8] sm:$0xff] }
 0x5b9   : > { %14518 = vmatpush2.bf16.msra.mxu1 %v16537_v58  ;;  %v16441_v58 = vcombine.low %v775_v61, %v783_v24  ;;  %v951_v21 = vld [vmem:[%s18790_s11 + $0x1228] sm:$0xff] }
 0x5ba   : > { %14519 = vmatprep.subr.bf16.mxu1 %v16522_v45  ;;  %v16426_v45 = vcombine.high %v759_v41, %v767_v51  ;;  %v959_v28 = vld [vmem:[%s18790_s11 + $0x1268] sm:$0xff] }
 0x5bb   : > { %14477 = vmatpush2.bf16.msra.mxu0 %v16265_v7  ;;  %v16169_v7 = vcombine.low %v503_v44, %v511_v14  ;;  %v1207_v18 = vld [vmem:[%s18790_s11 + $0x1a28] sm:$0xff] }
 0x5bc   : > { %14478 = vmatprep.subr.bf16.mxu0 %v16250_v8  ;;  %v16666_v8 = vcombine.high %v999_v43, %v1007_v60  ;;  %v1215_v56 = vld [vmem:[%s18790_s11 + $0x1a68] sm:$0xff] }
 0x5bd   : > { %14520 = vmatpush2.bf16.msra.mxu1 %v16521_v27  ;;  %v16425_v27 = vcombine.low %v759_v41, %v767_v51  ;;  %v935_v19 = vld [vmem:[%s18790_s11 + $0x11a8] sm:$0xff] }
 0x5be   : > { %14521 = vmatprep.subr.bf16.mxu1 %v16506_v40  ;;  %v16922_v40 = vcombine.high %v1255_v3, %v1263_v57  ;;  %v943_v49 = vld [vmem:[%s18790_s11 + $0x11e8] sm:$0xff] }
 0x5bf   : > { %14479 = vmatpush2.bf16.msra.mxu0 %v16249_v2  ;;  %v16665_v2 = vcombine.low %v999_v43, %v1007_v60  ;;  %v1191_v61 = vld [vmem:[%s18790_s11 + $0x19a8] sm:$0xff] }
 0x5c0   : > { %14480 = vmatprep.subr.bf16.mxu0 %v16234_v31  ;;  %v16650_v31 = vcombine.high %v983_v11, %v991_v1  ;;  %v1199_v24 = vld [vmem:[%s18790_s11 + $0x19e8] sm:$0xff] }
 0x5c1   : > { %14522 = vmatpush2.bf16.msra.mxu1 %v16505_v52  ;;  %v16921_v52 = vcombine.low %v1255_v3, %v1263_v57  ;;  %v919_v44 = vld [vmem:[%s18790_s11 + $0x1128] sm:$0xff] }
 0x5c2   : > { %14523 = vmatprep.subr.bf16.mxu1 %v16490_v29  ;;  %v16906_v29 = vcombine.high %v1239_v47, %v1247_v6  ;;  %v927_v14 = vld [vmem:[%s18790_s11 + $0x1168] sm:$0xff] }
 0x5c3   : > { %14481 = vmatpush2.bf16.msra.mxu0 %v16233_v13  ;;  %v16649_v13 = vcombine.low %v983_v11, %v991_v1  ;;  %v1175_v41 = vld [vmem:[%s18790_s11 + $0x1928] sm:$0xff] }
 0x5c4   : > { %14482 = vmatprep.subr.bf16.mxu0 %v16218_v42  ;;  %v16634_v42 = vcombine.high %v967_v54, %v975_v25  ;;  %v1183_v51 = vld [vmem:[%s18790_s11 + $0x1968] sm:$0xff] }
 0x5c5   : > { %14524 = vmatpush2.bf16.msra.mxu1 %v16489_v17  ;;  %v16905_v17 = vcombine.low %v1239_v47, %v1247_v6  ;;  %v903_v43 = vld [vmem:[%s18790_s11 + $0x10a8] sm:$0xff] }
 0x5c6   : > { %14525 = vmatprep.subr.bf16.mxu1 %v16474_v4  ;;  %v16890_v4 = vcombine.high %v1223_v5, %v1231_v32  ;;  %v911_v60 = vld [vmem:[%s18790_s11 + $0x10e8] sm:$0xff] }
 0x5c7   : > { %14483 = vmatpush2.bf16.msra.mxu0 %v16217_v16  ;;  %v16633_v16 = vcombine.low %v967_v54, %v975_v25  ;;  %v1159_v3 = vld [vmem:[%s18790_s11 + $0x18a8] sm:$0xff] }
 0x5c8   : > { %14484 = vmatprep.subr.bf16.mxu0 %v16202_v39  ;;  %v16618_v39 = vcombine.high %v951_v21, %v959_v28  ;;  %v1167_v57 = vld [vmem:[%s18790_s11 + $0x18e8] sm:$0xff] }
 0x5c9   : > { %14526 = vmatpush2.bf16.msra.mxu1 %v16473_v38  ;;  %v16889_v38 = vcombine.low %v1223_v5, %v1231_v32  ;;  %v887_v11 = vld [vmem:[%s18790_s11 + $0x1028] sm:$0xff] }
 0x5ca   : > { %14527 = vmatprep.subr.bf16.mxu1 %v16458_v10  ;;  %v16874_v10 = vcombine.high %v1207_v18, %v1215_v56  ;;  %v895_v1 = vld [vmem:[%s18790_s11 + $0x1068] sm:$0xff] }
 0x5cb   : > { %14485 = vmatpush2.bf16.msra.mxu0 %v16201_v37  ;;  %v16617_v37 = vcombine.low %v951_v21, %v959_v28  ;;  %v1143_v47 = vld [vmem:[%s18790_s11 + $0x1828] sm:$0xff] }
 0x5cc   : > { %14486 = vmatprep.subr.bf16.mxu0 %v16186_v15  ;;  %v16602_v15 = vcombine.high %v935_v19, %v943_v49  ;;  %v1151_v6 = vld [vmem:[%s18790_s11 + $0x1868] sm:$0xff] }
 0x5cd   : > { %14528 = vmatpush2.bf16.msra.mxu1 %v16457_v48  ;;  %v16873_v48 = vcombine.low %v1207_v18, %v1215_v56  ;;  %v1127_v54 = vld [vmem:[%s18790_s11 + $0x17a8] sm:$0xff] }
 0x5ce   : > { %14529 = vmatprep.subr.bf16.mxu1 %v16442_v30  ;;  %v16858_v30 = vcombine.high %v1191_v61, %v1199_v24  ;;  %v1135_v25 = vld [vmem:[%s18790_s11 + $0x17e8] sm:$0xff] }
 0x5cf   : > { %14487 = vmatpush2.bf16.msra.mxu0 %v16185_v53  ;;  %v16601_v53 = vcombine.low %v935_v19, %v943_v49  ;;  %v1383_v5 = vld [vmem:[%s18790_s11 + $0x1fa8] sm:$0xff] }
 0x5d0   : > { %14488 = vmatprep.subr.bf16.mxu0 %v16170_v23  ;;  %v16586_v23 = vcombine.high %v919_v44, %v927_v14  ;;  %v1391_v32 = vld [vmem:[%s18790_s11 + $0x1fe8] sm:$0xff] }
 0x5d1   : > { %14530 = vmatpush2.bf16.msra.mxu1 %v16441_v58  ;;  %v16857_v58 = vcombine.low %v1191_v61, %v1199_v24  ;;  %v1111_v21 = vld [vmem:[%s18790_s11 + $0x1728] sm:$0xff] }
 0x5d2   : > { %14531 = vmatprep.subr.bf16.mxu1 %v16426_v45  ;;  %v16842_v45 = vcombine.high %v1175_v41, %v1183_v51  ;;  %v1119_v28 = vld [vmem:[%s18790_s11 + $0x1768] sm:$0xff] }
 0x5d3   : > { %14489 = vmatpush2.bf16.msra.mxu0 %v16169_v7  ;;  %v16585_v7 = vcombine.low %v919_v44, %v927_v14  ;;  %v1367_v18 = vld [vmem:[%s18790_s11 + $0x1f28] sm:$0xff] }
 0x5d4   : > { %14544 = vmatprep.subr.bf16.mxu0 %v16666_v8  ;;  %v16570_v8 = vcombine.high %v903_v43, %v911_v60  ;;  %v1375_v56 = vld [vmem:[%s18790_s11 + $0x1f68] sm:$0xff] }
 0x5d5   : > { %14532 = vmatpush2.bf16.msra.mxu1 %v16425_v27  ;;  %v16841_v27 = vcombine.low %v1175_v41, %v1183_v51  ;;  %v1095_v19 = vld [vmem:[%s18790_s11 + $0x16a8] sm:$0xff] }
 0x5d6   : > { %14587 = vmatprep.subr.bf16.mxu1 %v16922_v40  ;;  %14491 = vmatmul.mubr.bf16.vlgmr.msra.gmra.mxu0 %v18905_v22  ;;  %v16826_v40 = vcombine.high %v1159_v3, %v1167_v57  ;;  %v1103_v49 = vld [vmem:[%s18790_s11 + $0x16e8] sm:$0xff] }
 0x5d7   : > { %14545 = vmatpush1.bf16.msra.mxu0 %v16665_v2  ;;  %14576 = vmatprep.mubr.bf16.mxu0 %v18928_v33  ;;  %v16569_v2 = vcombine.low %v903_v43, %v911_v60  ;;  %v1351_v61 = vld [vmem:[%s18790_s11 + $0x1ea8] sm:$0xff] }
 0x5d8   : > { %14534 = vmatmul.mubr.bf16.vlgmr.msra.gmra.mxu1 %v18916_v26  ;;  %14546 = vmatprep.subr.bf16.mxu0 %v16650_v31  ;;  %v16554_v31 = vcombine.high %v887_v11, %v895_v1  ;;  %v1359_v24 = vld [vmem:[%s18790_s11 + $0x1ee8] sm:$0xff] }
 0x5d9   : > { %14588 = vmatpush1.bf16.msra.mxu1 %v16921_v52  ;;  %14619 = vmatprep.mubr.bf16.mxu1 %v18935_v34  ;;  %v16825_v52 = vcombine.low %v1159_v3, %v1167_v57  ;;  %v1079_v44 = vld [vmem:[%s18790_s11 + $0x1628] sm:$0xff] }
 0x5da   : > { %14589 = vmatprep.subr.bf16.mxu1 %v16906_v29  ;;  %v16810_v29 = vcombine.high %v1143_v47, %v1151_v6  ;;  %v1087_v14 = vld [vmem:[%s18790_s11 + $0x1668] sm:$0xff] }
 0x5db   : > { %14547 = vmatpush1.bf16.msra.mxu0 %v16649_v13  ;;  %v16553_v13 = vcombine.low %v887_v11, %v895_v1  ;;  %v1335_v41 = vld [vmem:[%s18790_s11 + $0x1e28] sm:$0xff] }
 0x5dc   : > { %14548 = vmatprep.subr.bf16.mxu0 %v16634_v42  ;;  %v16794_v42 = vcombine.high %v1127_v54, %v1135_v25  ;;  %v1343_v51 = vld [vmem:[%s18790_s11 + $0x1e68] sm:$0xff] }
 0x5dd   : > { %14590 = vmatpush1.bf16.msra.mxu1 %v16905_v17  ;;  %v16809_v17 = vcombine.low %v1143_v47, %v1151_v6  ;;  %v1063_v43 = vld [vmem:[%s18790_s11 + $0x15a8] sm:$0xff] }
 0x5de   : > { %14591 = vmatprep.subr.bf16.mxu1 %v16890_v4  ;;  %v17050_v4 = vcombine.high %v1383_v5, %v1391_v32  ;;  %v1071_v60 = vld [vmem:[%s18790_s11 + $0x15e8] sm:$0xff] }
 0x5df   : > { %14549 = vmatpush1.bf16.msra.mxu0 %v16633_v16  ;;  %v16793_v16 = vcombine.low %v1127_v54, %v1135_v25  ;;  %v1319_v3 = vld [vmem:[%s18790_s11 + $0x1da8] sm:$0xff] }
 0x5e0   : > { %14550 = vmatprep.subr.bf16.mxu0 %v16618_v39  ;;  %v16778_v39 = vcombine.high %v1111_v21, %v1119_v28  ;;  %v1327_v57 = vld [vmem:[%s18790_s11 + $0x1de8] sm:$0xff] }
 0x5e1   : > { %14592 = vmatpush1.bf16.msra.mxu1 %v16889_v38  ;;  %v17049_v38 = vcombine.low %v1383_v5, %v1391_v32  ;;  %v1047_v11 = vld [vmem:[%s18790_s11 + $0x1528] sm:$0xff] }
 0x5e2   : > { %14593 = vmatprep.subr.bf16.mxu1 %v16874_v10  ;;  %v17034_v10 = vcombine.high %v1367_v18, %v1375_v56  ;;  %v1055_v1 = vld [vmem:[%s18790_s11 + $0x1568] sm:$0xff] }
 0x5e3   : > { %14551 = vmatpush1.bf16.msra.mxu0 %v16617_v37  ;;  %v16777_v37 = vcombine.low %v1111_v21, %v1119_v28  ;;  %v1303_v47 = vld [vmem:[%s18790_s11 + $0x1d28] sm:$0xff] }
 0x5e4   : > { %14552 = vmatprep.subr.bf16.mxu0 %v16602_v15  ;;  %v16762_v15 = vcombine.high %v1095_v19, %v1103_v49  ;;  %v1311_v6 = vld [vmem:[%s18790_s11 + $0x1d68] sm:$0xff] }
 0x5e5   : > { %14594 = vmatpush1.bf16.msra.mxu1 %v16873_v48  ;;  %v17033_v48 = vcombine.low %v1367_v18, %v1375_v56  ;;  %v1031_v54 = vld [vmem:[%s18790_s11 + $0x14a8] sm:$0xff] }
 0x5e6   : > { %14595 = vmatprep.subr.bf16.mxu1 %v16858_v30  ;;  %v17018_v30 = vcombine.high %v1351_v61, %v1359_v24  ;;  %v1039_v25 = vld [vmem:[%s18790_s11 + $0x14e8] sm:$0xff] }
 0x5e7   : > { %14553 = vmatpush1.bf16.msra.mxu0 %v16601_v53  ;;  %v16761_v53 = vcombine.low %v1095_v19, %v1103_v49  ;;  %v1287_v5 = vld [vmem:[%s18790_s11 + $0x1ca8] sm:$0xff] }
 0x5e8   : > { %14554 = vmatprep.subr.bf16.mxu0 %v16586_v23  ;;  %v16746_v23 = vcombine.high %v1079_v44, %v1087_v14  ;;  %v1295_v32 = vld [vmem:[%s18790_s11 + $0x1ce8] sm:$0xff] }
 0x5e9   : > { %14596 = vmatpush1.bf16.msra.mxu1 %v16857_v58  ;;  %v17017_v58 = vcombine.low %v1351_v61, %v1359_v24  ;;  %v1015_v21 = vld [vmem:[%s18790_s11 + $0x1428] sm:$0xff] }
 0x5ea   : > { %14597 = vmatprep.subr.bf16.mxu1 %v16842_v45  ;;  %v17002_v45 = vcombine.high %v1335_v41, %v1343_v51  ;;  %v1023_v28 = vld [vmem:[%s18790_s11 + $0x1468] sm:$0xff] }
 0x5eb   : > { %14555 = vmatpush1.bf16.msra.mxu0 %v16585_v7  ;;  %v16745_v7 = vcombine.low %v1079_v44, %v1087_v14  ;;  %v1271_v18 = vld [vmem:[%s18790_s11 + $0x1c28] sm:$0xff] }
 0x5ec   : > { %14556 = vmatprep.subr.bf16.mxu0 %v16570_v8  ;;  %v16730_v8 = vcombine.high %v1063_v43, %v1071_v60  ;;  %v1279_v56 = vld [vmem:[%s18790_s11 + $0x1c68] sm:$0xff] }
 0x5ed   : > { %14598 = vmatpush1.bf16.msra.mxu1 %v16841_v27  ;;  %v17001_v27 = vcombine.low %v1335_v41, %v1343_v51  ;;  %v1511_v19 = vld [vmem:[%s18790_s11 + $0x23a8] sm:$0xff] }
 0x5ee   : > { %14599 = vmatprep.subr.bf16.mxu1 %v16826_v40  ;;  %v16986_v40 = vcombine.high %v1319_v3, %v1327_v57  ;;  %v1519_v49 = vld [vmem:[%s18790_s11 + $0x23e8] sm:$0xff] }
 0x5ef   : > { %14557 = vmatpush1.bf16.msra.mxu0 %v16569_v2  ;;  %v16729_v2 = vcombine.low %v1063_v43, %v1071_v60  ;;  %v1767_v61 = vld [vmem:[%s18790_s11 + $0x2ba8] sm:$0xff] }
 0x5f0   : > { %14558 = vmatprep.subr.bf16.mxu0 %v16554_v31  ;;  %v16714_v31 = vcombine.high %v1047_v11, %v1055_v1  ;;  %v1775_v24 = vld [vmem:[%s18790_s11 + $0x2be8] sm:$0xff] }
 0x5f1   : > { %14600 = vmatpush1.bf16.msra.mxu1 %v16825_v52  ;;  %v16985_v52 = vcombine.low %v1319_v3, %v1327_v57  ;;  %v1495_v44 = vld [vmem:[%s18790_s11 + $0x2328] sm:$0xff] }
 0x5f2   : > { %14601 = vmatprep.subr.bf16.mxu1 %v16810_v29  ;;  %v16970_v29 = vcombine.high %v1303_v47, %v1311_v6  ;;  %v1503_v14 = vld [vmem:[%s18790_s11 + $0x2368] sm:$0xff] }
 0x5f3   : > { %14559 = vmatpush1.bf16.msra.mxu0 %v16553_v13  ;;  %v16713_v13 = vcombine.low %v1047_v11, %v1055_v1  ;;  %v1751_v41 = vld [vmem:[%s18790_s11 + $0x2b28] sm:$0xff] }
 0x5f4   : > { %14560 = vmatprep.subr.bf16.mxu0 %v16794_v42  ;;  %v16698_v42 = vcombine.high %v1031_v54, %v1039_v25  ;;  %v1759_v51 = vld [vmem:[%s18790_s11 + $0x2b68] sm:$0xff] }
 0x5f5   : > { %14602 = vmatpush1.bf16.msra.mxu1 %v16809_v17  ;;  %v16969_v17 = vcombine.low %v1303_v47, %v1311_v6  ;;  %v1479_v43 = vld [vmem:[%s18790_s11 + $0x22a8] sm:$0xff] }
 0x5f6   : > { %14603 = vmatprep.subr.bf16.mxu1 %v17050_v4  ;;  %v16954_v4 = vcombine.high %v1287_v5, %v1295_v32  ;;  %v1487_v60 = vld [vmem:[%s18790_s11 + $0x22e8] sm:$0xff] }
 0x5f7   : > { %14561 = vmatpush2.bf16.msra.mxu0 %v16793_v16  ;;  %v16697_v16 = vcombine.low %v1031_v54, %v1039_v25  ;;  %v1735_v3 = vld [vmem:[%s18790_s11 + $0x2aa8] sm:$0xff] }
 0x5f8   : > { %14562 = vmatprep.subr.bf16.mxu0 %v16778_v39  ;;  %v16682_v39 = vcombine.high %v1015_v21, %v1023_v28  ;;  %v1743_v57 = vld [vmem:[%s18790_s11 + $0x2ae8] sm:$0xff] }
 0x5f9   : > { %14604 = vmatpush2.bf16.msra.mxu1 %v17049_v38  ;;  %v16953_v38 = vcombine.low %v1287_v5, %v1295_v32  ;;  %v1463_v11 = vld [vmem:[%s18790_s11 + $0x2228] sm:$0xff] }
 0x5fa   : > { %14605 = vmatprep.subr.bf16.mxu1 %v17034_v10  ;;  %v16938_v10 = vcombine.high %v1271_v18, %v1279_v56  ;;  %v1471_v1 = vld [vmem:[%s18790_s11 + $0x2268] sm:$0xff] }
 0x5fb   : > { %14563 = vmatpush2.bf16.msra.mxu0 %v16777_v37  ;;  %v16681_v37 = vcombine.low %v1015_v21, %v1023_v28  ;;  %v1719_v47 = vld [vmem:[%s18790_s11 + $0x2a28] sm:$0xff] }
 0x5fc   : > { %14564 = vmatprep.subr.bf16.mxu0 %v16762_v15  ;;  %v17178_v15 = vcombine.high %v1511_v19, %v1519_v49  ;;  %v1727_v6 = vld [vmem:[%s18790_s11 + $0x2a68] sm:$0xff] }
 0x5fd   : > { %14606 = vmatpush2.bf16.msra.mxu1 %v17033_v48  ;;  %v16937_v48 = vcombine.low %v1271_v18, %v1279_v56  ;;  %v1447_v54 = vld [vmem:[%s18790_s11 + $0x21a8] sm:$0xff] }
 0x5fe   : > { %14607 = vmatprep.subr.bf16.mxu1 %v17018_v30  ;;  %v17434_v30 = vcombine.high %v1767_v61, %v1775_v24  ;;  %v1455_v25 = vld [vmem:[%s18790_s11 + $0x21e8] sm:$0xff] }
 0x5ff   : > { %14565 = vmatpush2.bf16.msra.mxu0 %v16761_v53  ;;  %v17177_v53 = vcombine.low %v1511_v19, %v1519_v49  ;;  %v1703_v5 = vld [vmem:[%s18790_s11 + $0x29a8] sm:$0xff] }
 0x600   : > { %14566 = vmatprep.subr.bf16.mxu0 %v16746_v23  ;;  %v17162_v23 = vcombine.high %v1495_v44, %v1503_v14  ;;  %v1711_v32 = vld [vmem:[%s18790_s11 + $0x29e8] sm:$0xff] }
 0x601   : > { %14608 = vmatpush2.bf16.msra.mxu1 %v17017_v58  ;;  %v17433_v58 = vcombine.low %v1767_v61, %v1775_v24  ;;  %v1431_v21 = vld [vmem:[%s18790_s11 + $0x2128] sm:$0xff] }
 0x602   : > { %14609 = vmatprep.subr.bf16.mxu1 %v17002_v45  ;;  %v17418_v45 = vcombine.high %v1751_v41, %v1759_v51  ;;  %v1439_v28 = vld [vmem:[%s18790_s11 + $0x2168] sm:$0xff] }
 0x603   : > { %14567 = vmatpush2.bf16.msra.mxu0 %v16745_v7  ;;  %v17161_v7 = vcombine.low %v1495_v44, %v1503_v14  ;;  %v1687_v18 = vld [vmem:[%s18790_s11 + $0x2928] sm:$0xff] }
 0x604   : > { %14568 = vmatprep.subr.bf16.mxu0 %v16730_v8  ;;  %v17146_v8 = vcombine.high %v1479_v43, %v1487_v60  ;;  %v1695_v56 = vld [vmem:[%s18790_s11 + $0x2968] sm:$0xff] }
 0x605   : > { %14610 = vmatpush2.bf16.msra.mxu1 %v17001_v27  ;;  %v17417_v27 = vcombine.low %v1751_v41, %v1759_v51  ;;  %v1415_v19 = vld [vmem:[%s18790_s11 + $0x20a8] sm:$0xff] }
 0x606   : > { %14611 = vmatprep.subr.bf16.mxu1 %v16986_v40  ;;  %v17402_v40 = vcombine.high %v1735_v3, %v1743_v57  ;;  %v1423_v49 = vld [vmem:[%s18790_s11 + $0x20e8] sm:$0xff] }
 0x607   : > { %14569 = vmatpush2.bf16.msra.mxu0 %v16729_v2  ;;  %v17145_v2 = vcombine.low %v1479_v43, %v1487_v60  ;;  %v1671_v61 = vld [vmem:[%s18790_s11 + $0x28a8] sm:$0xff]  ;;  %v20614_v43 = vpop.f32.mrf.mxu1 }
 0x608   : > { %14570 = vmatprep.subr.bf16.mxu0 %v16714_v31  ;;  %v17130_v31 = vcombine.high %v1463_v11, %v1471_v1  ;;  %v1679_v24 = vld [vmem:[%s18790_s11 + $0x28e8] sm:$0xff] }
 0x609   : > { %14612 = vmatpush2.bf16.msra.mxu1 %v16985_v52  ;;  %v17401_v52 = vcombine.low %v1735_v3, %v1743_v57  ;;  %v1399_v44 = vld [vmem:[%s18790_s11 + $0x2028] sm:$0xff] }
 0x60a   : > { %14613 = vmatprep.subr.bf16.mxu1 %v16970_v29  ;;  %v17386_v29 = vcombine.high %v1719_v47, %v1727_v6  ;;  %v1407_v14 = vld [vmem:[%s18790_s11 + $0x2068] sm:$0xff] }
 0x60b   : > { %14571 = vmatpush2.bf16.msra.mxu0 %v16713_v13  ;;  %v17129_v13 = vcombine.low %v1463_v11, %v1471_v1  ;;  %v1655_v41 = vld [vmem:[%s18790_s11 + $0x2828] sm:$0xff] }
 0x60c   : > { %14572 = vmatprep.subr.bf16.mxu0 %v16698_v42  ;;  %v17114_v42 = vcombine.high %v1447_v54, %v1455_v25  ;;  %v1663_v51 = vld [vmem:[%s18790_s11 + $0x2868] sm:$0xff] }
 0x60d   : > { %14614 = vmatpush2.bf16.msra.mxu1 %v16969_v17  ;;  %v17385_v17 = vcombine.low %v1719_v47, %v1727_v6  ;;  %v17322_v60 = vcombine.high %v1655_v41, %v1663_v51  ;;  %v1639_v3 = vld [vmem:[%s18790_s11 + $0x27a8] sm:$0xff]  ;;  %v17321_v11 = vcombine.low %v1655_v41, %v1663_v51  ;;  %v20622_v47 = vpop.f32.mrf.mxu1 }
 0x60e   : > { %14615 = vmatprep.subr.bf16.mxu1 %v16954_v4  ;;  %v17370_v4 = vcombine.high %v1703_v5, %v1711_v32  ;;  %v1647_v57 = vld [vmem:[%s18790_s11 + $0x27e8] sm:$0xff] }
 0x60f   : > { %14573 = vmatpush2.bf16.msra.mxu0 %v16697_v16  ;;  %v17113_v16 = vcombine.low %v1447_v54, %v1455_v25  ;;  %v17306_v1 = vcombine.high %v1639_v3, %v1647_v57  ;;  %v17305_v54 = vcombine.low %v1639_v3, %v1647_v57  ;;  %v1575_v41 = vld [vmem:[%s18790_s11 + $0x25a8] sm:$0xff] }
 0x610   : > { %14574 = vmatprep.subr.bf16.mxu0 %v16682_v39  ;;  %v17098_v39 = vcombine.high %v1431_v21, %v1439_v28  ;;  %v1583_v51 = vld [vmem:[%s18790_s11 + $0x25e8] sm:$0xff] }
 0x611   : > { %14616 = vmatpush2.bf16.msra.mxu1 %v16953_v38  ;;  %v17369_v38 = vcombine.low %v1703_v5, %v1711_v32 }
 0x612   : > { %14617 = vmatprep.subr.bf16.mxu1 %v16938_v10  ;;  %v17354_v10 = vcombine.high %v1687_v18, %v1695_v56 }
 0x613   : > { %14575 = vmatpush2.bf16.msra.mxu0 %v16681_v37  ;;  %v17097_v37 = vcombine.low %v1431_v21, %v1439_v28  ;;  %v1863_v21 = vld [vmem:[%s18790_s11 + $0x2ea8] sm:$0xff] }
 0x614   : > { %14630 = vmatprep.subr.bf16.mxu0 %v17178_v15  ;;  %v17082_v15 = vcombine.high %v1415_v19, %v1423_v49  ;;  %v1871_v28 = vld [vmem:[%s18790_s11 + $0x2ee8] sm:$0xff] }
 0x615   : > { %14618 = vmatpush2.bf16.msra.mxu1 %v16937_v48  ;;  %v17353_v48 = vcombine.low %v1687_v18, %v1695_v56 }
 0x616   : > { %14673 = vmatprep.subr.bf16.mxu1 %v17434_v30  ;;  %14577 = vmatmul.mubr.bf16.vlgmr.msra.gmra.mxu0 %v19001_v46  ;;  %v17338_v30 = vcombine.high %v1671_v61, %v1679_v24 }
 0x617   : > { %14631 = vmatpush1.bf16.msra.mxu0 %v17177_v53  ;;  %14662 = vmatprep.mubr.bf16.mxu0 %v19024_v62  ;;  %v17081_v53 = vcombine.low %v1415_v19, %v1423_v49  ;;  %v1591_v19 = vld [vmem:[%s18790_s11 + $0x2628] sm:$0xff] }
 0x618   : > { %14620 = vmatmul.mubr.bf16.vlgmr.msra.gmra.mxu1 %v19012_v50  ;;  %14632 = vmatprep.subr.bf16.mxu0 %v17162_v23  ;;  %v17337_v23 = vcombine.low %v1671_v61, %v1679_v24  ;;  %v1599_v49 = vld [vmem:[%s18790_s11 + $0x2668] sm:$0xff] }
 0x619   : > { %14674 = vmatpush1.bf16.msra.mxu1 %v17433_v58  ;;  %14705 = vmatprep.mubr.bf16.mxu1 %v19031_v63  ;;  %v20612_v58 = vpop.f32.mrf.mxu0  ;;  %v1847_v24 = vld [vmem:[%s18790_s11 + $0x2e28] sm:$0xff]  ;;  %v17257_v3 = vcombine.low %v1591_v19, %v1599_v49 }
 0x61a   : > { %14675 = vmatprep.subr.bf16.mxu1 %v17418_v45  ;;  %v17066_v45 = vcombine.high %v1399_v44, %v1407_v14 }
 0x61b   : > { %14633 = vmatpush1.bf16.msra.mxu0 %v17161_v7  ;;  %v1895_v7 = vld [vmem:[%s18790_s11 + $0x2fa8] sm:$0xff] }
 0x61c   : > { %14634 = vmatprep.subr.bf16.mxu0 %v17146_v8  ;;  %v17065_v8 = vcombine.low %v1399_v44, %v1407_v14  ;;  %v17258_v44 = vcombine.high %v1591_v19, %v1599_v49  ;;  %v14192_v19 = vadd.f32 %v20614_v43, %v20612_v58 }
 0x61d   : > { %14676 = vmatpush1.bf16.msra.mxu1 %v17417_v27  ;;  %v1903_v27 = vld [vmem:[%s18790_s11 + $0x2fe8] sm:$0xff] }
 0x61e   : > { %14677 = vmatprep.subr.bf16.mxu1 %v17402_v40  ;;  %v20620_v40 = vpop.f32.mrf.mxu0  ;;  %v17562_v6 = vcombine.high %v1895_v7, %v1903_v27  ;;  %v17561_v5 = vcombine.low %v1895_v7, %v1903_v27  ;;  %v17242_v7 = vcombine.high %v1575_v41, %v1583_v51 }
 0x61f   : > { %14635 = vmatpush1.bf16.msra.mxu0 %v17145_v2  ;;  %v1623_v2 = vld [vmem:[%s18790_s11 + $0x2728] sm:$0xff] }
 0x620   : > { %14636 = vmatprep.subr.bf16.mxu0 %v17130_v31  ;;  %v1879_v31 = vld [vmem:[%s18790_s11 + $0x2f28] sm:$0xff]  ;;  %v20628_v25 = vpop.f32.mrf.mxu0 }
 0x621   : > { %14678 = vmatpush1.bf16.msra.mxu1 %v17401_v52  ;;  %v1631_v52 = vld [vmem:[%s18790_s11 + $0x2768] sm:$0xff] }
 0x622   : > { %14679 = vmatprep.subr.bf16.mxu1 %v17386_v29  ;;  %v1887_v29 = vld [vmem:[%s18790_s11 + $0x2f68] sm:$0xff]  ;;  %v17290_v32 = vcombine.high %v1623_v2, %v1631_v52  ;;  %v17289_v18 = vcombine.low %v1623_v2, %v1631_v52  ;;  %v20636_v56 = vpop.f32.mrf.mxu0 }
 0x623   : > { %14637 = vmatpush1.bf16.msra.mxu0 %v17129_v13  ;;  %v20630_v13 = vpop.f32.mrf.mxu1  ;;  %v1823_v2 = vld [vmem:[%s18790_s11 + $0x2d68] sm:$0xff] }
 0x624   : > { %14638 = vmatprep.subr.bf16.mxu0 %v17114_v42  ;;  %v1607_v42 = vld [vmem:[%s18790_s11 + $0x26a8] sm:$0xff]  ;;  %v14234_v61 = vpop.f32.mrf.mxu0 }
 0x625   : > { %14680 = vmatpush1.bf16.msra.mxu1 %v17385_v17  ;;  %v17546_v17 = vcombine.high %v1879_v31, %v1887_v29 }
 0x626   : > { %14681 = vmatprep.subr.bf16.mxu1 %v17370_v4  ;;  %v1615_v4 = vld [vmem:[%s18790_s11 + $0x26e8] sm:$0xff] }
 0x627   : > { %14639 = vmatpush1.bf16.msra.mxu0 %v17113_v16  ;;  %v17545_v16 = vcombine.low %v1879_v31, %v1887_v29  ;;  %v17241_v31 = vcombine.low %v1575_v41, %v1583_v51  ;;  %v14235_v41 = vadd.f32 %v14234_v61, %v14192_v19 }
 0x628   : > { %14640 = vmatprep.subr.bf16.mxu0 %v17098_v39  ;;  %v20638_v39 = vpop.f32.mrf.mxu1 }
 0x629   : > { %14682 = vmatpush1.bf16.msra.mxu1 %v17369_v38  ;;  %v17274_v38 = vcombine.high %v1607_v42, %v1615_v4  ;;  %v14198_v61 = vadd.f32 %v20638_v39, %v20636_v56  ;;  %v2007_v39 = vld [vmem:[%s18790_s11 + $0x3328] sm:$0xff] }
 0x62a   : > { %14683 = vmatprep.subr.bf16.mxu1 %v17354_v10  ;;  %v17530_v10 = vcombine.high %v1863_v21, %v1871_v28 }
 0x62b   : > { %14641 = vmatpush1.bf16.msra.mxu0 %v17097_v37  ;;  %v1855_v37 = vld [vmem:[%s18790_s11 + $0x2e68] sm:$0xff] }
 0x62c   : > { %14642 = vmatprep.subr.bf16.mxu0 %v17082_v15  ;;  %v17273_v15 = vcombine.low %v1607_v42, %v1615_v4  ;;  %v17514_v14 = vcombine.high %v1847_v24, %v1855_v37  ;;  %v17513_v57 = vcombine.low %v1847_v24, %v1855_v37  ;;  %v1799_v4 = vld [vmem:[%s18790_s11 + $0x2ca8] sm:$0xff] }
 0x62d   : > { %14684 = vmatpush1.bf16.msra.mxu1 %v17353_v48  ;;  %v20644_v48 = vpop.f32.mrf.mxu1  ;;  %v1527_v37 = vld [vmem:[%s18790_s11 + $0x2428] sm:$0xff] }
 0x62e   : > { %14685 = vmatprep.subr.bf16.mxu1 %v17338_v30  ;;  %v17529_v30 = vcombine.low %v1863_v21, %v1871_v28  ;;  %v1807_v21 = vld [vmem:[%s18790_s11 + $0x2ce8] sm:$0xff] }
 0x62f   : > { %14643 = vmatpush1.bf16.msra.mxu0 %v17081_v53  ;;  %v14236_v53 = vpop.f32.mrf.mxu0  ;;  %v17466_v24 = vcombine.high %v1799_v4, %v1807_v21  ;;  %v17465_v58 = vcombine.low %v1799_v4, %v1807_v21 }
 0x630   : > { %14644 = vmatprep.subr.bf16.mxu0 %v17066_v45  ;;  %v1839_v45 = vld [vmem:[%s18790_s11 + $0x2de8] sm:$0xff] }
 0x631   : > { %14686 = vmatpush1.bf16.msra.mxu1 %v17337_v23  ;;  %v1831_v23 = vld [vmem:[%s18790_s11 + $0x2da8] sm:$0xff] }
 0x632   : > { %14687 = vmatprep.subr.bf16.mxu1 %v17322_v60  ;;  %v20650_v60 = vpop.f32.mrf.mxu1  ;;  %v17498_v27 = vcombine.high %v1831_v23, %v1839_v45  ;;  %v17497_v29 = vcombine.low %v1831_v23, %v1839_v45  ;;  %v14196_v45 = vadd.f32 %v20630_v13, %v20628_v25 }
 0x633   : > { %14645 = vmatpush1.bf16.msra.mxu0 %v17065_v8  ;;  %v1559_v8 = vld [vmem:[%s18790_s11 + $0x2528] sm:$0xff] }
 0x634   : > { %14646 = vmatprep.subr.bf16.mxu0 %v17306_v1  ;;  %v14238_v1 = vpop.f32.mrf.mxu0  ;;  %v20656_v52 = vpop.f32.mrf.mxu1 }
 0x635   : > { %14688 = vmatpush1.bf16.msra.mxu1 %v17321_v11  ;;  %v1567_v11 = vld [vmem:[%s18790_s11 + $0x2568] sm:$0xff] }
 0x636   : > { %14689 = vmatprep.subr.bf16.mxu1 %v17562_v6  ;;  %v1815_v6 = vld [vmem:[%s18790_s11 + $0x2d28] sm:$0xff]  ;;  %v14240_v42 = vpop.f32.mrf.mxu0  ;;  %v20662_v28 = vpop.f32.mrf.mxu1 }
 0x637   : > { %14647 = vmatpush2.bf16.msra.mxu0 %v17305_v54  ;;  %v17226_v54 = vcombine.high %v1559_v8, %v1567_v11 }
 0x638   : > { %14648 = vmatprep.subr.bf16.mxu0 %v17290_v32  ;;  %v1543_v32 = vld [vmem:[%s18790_s11 + $0x24a8] sm:$0xff]  ;;  %v14363_v49 = vpop.f32.mrf.mxu1 }
 0x639   : > { %14690 = vmatpush2.bf16.msra.mxu1 %v17561_v5  ;;  %v17482_v5 = vcombine.high %v1815_v6, %v1823_v2 }
 0x63a   : > { %14691 = vmatprep.subr.bf16.mxu1 %v17546_v17  ;;  %v1551_v17 = vld [vmem:[%s18790_s11 + $0x24e8] sm:$0xff] }
 0x63b   : > { %14649 = vmatpush2.bf16.msra.mxu0 %v17289_v18  ;;  %v17225_v18 = vcombine.low %v1559_v8, %v1567_v11  ;;  %v17209_v51 = vcombine.low %v1543_v32, %v1551_v17  ;;  %v2031_v8 = vld [vmem:[%s18790_s11 + $0x33e8] sm:$0xff]  ;;  %v14278_v11 = vadd.f32 %v20644_v48, %v14235_v41 }
 0x63c   : > { %14650 = vmatprep.subr.bf16.mxu0 %v17274_v38  ;;  %v17481_v38 = vcombine.low %v1815_v6, %v1823_v2  ;;  %v14239_v6 = vadd.f32 %v14238_v1, %v14196_v45  ;;  %v2015_v48 = vld [vmem:[%s18790_s11 + $0x3368] sm:$0xff] }
 0x63d   : > { %14692 = vmatpush2.bf16.msra.mxu1 %v17545_v16  ;;  %v14320_v16 = vpop.f32.mrf.mxu0  ;;  %v2263_v1 = vld [vmem:[%s18790_s11 + $0x3b28] sm:$0xff] }
 0x63e   : > { %14693 = vmatprep.subr.bf16.mxu1 %v17530_v10  ;;  %v17210_v10 = vcombine.high %v1543_v32, %v1551_v17  ;;  %v2271_v32 = vld [vmem:[%s18790_s11 + $0x3b68] sm:$0xff]  ;;  %v14282_v17 = vadd.f32 %v20656_v52, %v14239_v6 }
 0x63f   : > { %14651 = vmatpush2.bf16.msra.mxu0 %v17273_v15  ;;  %v1535_v15 = vld [vmem:[%s18790_s11 + $0x2468] sm:$0xff]  ;;  %v14322_v23 = vpop.f32.mrf.mxu0  ;;  %v17930_v52 = vcombine.high %v2263_v1, %v2271_v32 }
 0x640   : > { %14652 = vmatprep.subr.bf16.mxu0 %v17258_v44  ;;  %v1791_v44 = vld [vmem:[%s18790_s11 + $0x2c68] sm:$0xff]  ;;  %v17194_v43 = vcombine.high %v1527_v37, %v1535_v15  ;;  %v17193_v25 = vcombine.low %v1527_v37, %v1535_v15 }
 0x641   : > { %14694 = vmatpush2.bf16.msra.mxu1 %v17529_v30  ;;  %v1783_v30 = vld [vmem:[%s18790_s11 + $0x2c28] sm:$0xff]  ;;  %v14324_v13 = vpop.f32.mrf.mxu0 }
 0x642   : > { %14695 = vmatprep.subr.bf16.mxu1 %v17514_v14  ;;  %v14194_v14 = vadd.f32 %v20622_v47, %v20620_v40  ;;  %v2279_v40 = vld [vmem:[%s18790_s11 + $0x3ba8] sm:$0xff]  ;;  %v14325_v19 = vadd.f32 %v14324_v13, %v14282_v17 }
 0x643   : > { %14653 = vmatpush2.bf16.msra.mxu0 %v17257_v3  ;;  %v2287_v47 = vld [vmem:[%s18790_s11 + $0x3be8] sm:$0xff] }
 0x644   : > { %14654 = vmatprep.subr.bf16.mxu0 %v17242_v7  ;;  %v14237_v3 = vadd.f32 %v14236_v53, %v14194_v14  ;;  %v17450_v7 = vcombine.high %v1783_v30, %v1791_v44  ;;  %v17449_v53 = vcombine.low %v1783_v30, %v1791_v44  ;;  %v17946_v56 = vcombine.high %v2279_v40, %v2287_v47  ;;  %v1999_v37 = vld [vmem:[%s18790_s11 + $0x32e8] sm:$0xff] }
 0x645   : > { %14696 = vmatpush2.bf16.msra.mxu1 %v17513_v57  ;;  %v14365_v57 = vpop.f32.mrf.mxu1  ;;  %v2247_v15 = vld [vmem:[%s18790_s11 + $0x3aa8] sm:$0xff]  ;;  %v17673_v14 = vcombine.low %v2007_v39, %v2015_v48 }
 0x646   : > { %14697 = vmatprep.subr.bf16.mxu1 %v17498_v27  ;;  %v2023_v27 = vld [vmem:[%s18790_s11 + $0x33a8] sm:$0xff] }
 0x647   : > { %14655 = vmatpush2.bf16.msra.mxu0 %v17241_v31  ;;  %v17690_v2 = vcombine.high %v2023_v27, %v2031_v8  ;;  %v14280_v31 = vadd.f32 %v20650_v60, %v14237_v3  ;;  %v17689_v21 = vcombine.low %v2023_v27, %v2031_v8  ;;  %v17945_v60 = vcombine.low %v2279_v40, %v2287_v47  ;;  %v2255_v30 = vld [vmem:[%s18790_s11 + $0x3ae8] sm:$0xff] }
 0x648   : > { %14656 = vmatprep.subr.bf16.mxu0 %v17226_v54  ;;  %v14321_v54 = vadd.f32 %v14320_v16, %v14278_v11  ;;  %v20688_v16 = vld [vmem:[%s18790_s11 + $0x32a8] sm:$0xff]  ;;  %v17914_v3 = vcombine.high %v2247_v15, %v2255_v30 }
 0x649   : > { %14698 = vmatpush2.bf16.msra.mxu1 %v17497_v29  ;;  %v14241_v29 = vadd.f32 %v14240_v42, %v14198_v61  ;;  %v14323_v4 = vadd.f32 %v14322_v23, %v14280_v31  ;;  %v17674_v42 = vcombine.high %v2007_v39, %v2015_v48  ;;  %v17658_v45 = vcombine.high %v20688_v16, %v1999_v37  ;;  %v1975_v40 = vld [vmem:[%s18790_s11 + $0x3228] sm:$0xff] }
 0x64a   : > { %14699 = vmatprep.subr.bf16.mxu1 %v17482_v5  ;;  %v14367_v5 = vpop.f32.mrf.mxu1  ;;  %v1983_v47 = vld [vmem:[%s18790_s11 + $0x3268] sm:$0xff]  ;;  %v17657_v6 = vcombine.low %v20688_v16, %v1999_v37  ;;  %v17913_v39 = vcombine.low %v2247_v15, %v2255_v30 }
 0x64b   : > { %14657 = vmatpush2.bf16.msra.mxu0 %v17225_v18  ;;  %v14326_v18 = vpop.f32.mrf.mxu0  ;;  %v14366_v41 = vadd.f32 %v14365_v57, %v14323_v4  ;;  %v331_v61 = vld [vmem:[#allocation2 + $0x88] sm:$0xff]  ;;  %v17642_v48 = vcombine.high %v1975_v40, %v1983_v47 }
 0x64c   : > { %14658 = vmatprep.subr.bf16.mxu0 %v17210_v10  ;;  %v14364_v10 = vadd.f32 %v14363_v49, %v14321_v54  ;;  %v2239_v13 = vld [vmem:[%s18790_s11 + $0x3a68] sm:$0xff] }
 0x64d   : > { %14700 = vmatpush2.bf16.msra.mxu1 %v17481_v38  ;;  %v14284_v38 = vadd.f32 %v20662_v28, %v14241_v29  ;;  %v330_v28 = vld [vmem:[#allocation2 + $0x80] sm:$0xff]  ;;  %v2215_v16 = vld [vmem:[%s18790_s11 + $0x39a8] sm:$0xff] }
 0x64e   : > { %14701 = vmatprep.subr.bf16.mxu1 %v17466_v24  ;;  %v14369_v24 = vpop.f32.mrf.mxu1 }
 0x64f   : > { %14659 = vmatpush2.bf16.msra.mxu0 %v17209_v51  ;;  %v14327_v51 = vadd.f32 %v14326_v18, %v14284_v38  ;;  %v1967_v18 = vld [vmem:[%s18790_s11 + $0x31e8] sm:$0xff] }
 0x650   : > { %14660 = vmatprep.subr.bf16.mxu0 %v17194_v43  ;;  %v17929_v43 = vcombine.low %v2263_v1, %v2271_v32  ;;  %v2223_v38 = vld [vmem:[%s18790_s11 + $0x39e8] sm:$0xff] }
 0x651   : > { %14702 = vmatpush2.bf16.msra.mxu1 %v17465_v58  ;;  %v17882_v30 = vcombine.high %v2215_v16, %v2223_v38 }
 0x652   : > { %14703 = vmatprep.subr.bf16.mxu1 %v17450_v7  ;;  %v14368_v7 = vadd.f32 %v14367_v5, %v14325_v19  ;;  %v346_v5 = vld [vmem:[#allocation2 + $0xa8] sm:$0xff] }
 0x653   : > { %14661 = vmatpush2.bf16.msra.mxu0 %v17193_v25  ;;  %v2231_v25 = vld [vmem:[%s18790_s11 + $0x3a28] sm:$0xff] }
 0x654   : > { %14716 = vmatprep.subr.bf16.mxu0 %v17690_v2  ;;  %v17898_v4 = vcombine.high %v2231_v25, %v2239_v13 }
 0x655   : > { %14704 = vmatpush2.bf16.msra.mxu1 %v17449_v53  ;;  %v14370_v53 = vadd.f32 %v14369_v24, %v14327_v51  ;;  %v17641_v24 = vcombine.low %v1975_v40, %v1983_v47  ;;  %v2207_v51 = vld [vmem:[%s18790_s11 + $0x3968] sm:$0xff] }
 0x656   : > { %14759 = vmatprep.subr.bf16.mxu1 %v17946_v56  ;;  %v14406_v44 = vpop.f32.mrf.mxu0  ;;  %14663 = vmatmul.mubr.bf16.vlgmr.msra.gmra.mxu0 %v19097_v20  ;;  %v1911_v47 = vld [vmem:[%s18790_s11 + $0x3028] sm:$0xff] }
 0x657   : > { %v14407_v23 = vadd.f32 %v14406_v44, %v14364_v10  ;;  %14717 = vmatpush1.bf16.msra.mxu0 %v17689_v21  ;;  %14748 = vmatprep.mubr.bf16.mxu0 %v19120_v35  ;;  %v1959_v21 = vld [vmem:[%s18790_s11 + $0x31a8] sm:$0xff] }
 0x658   : > { %v14449_v58 = vpop.f32.mrf.mxu1  ;;  %14706 = vmatmul.mubr.bf16.vlgmr.msra.gmra.mxu1 %v19108_v55  ;;  %v14408_v49 = vpop.f32.mrf.mxu0  ;;  %14718 = vmatprep.subr.bf16.mxu0 %v17674_v42  ;;  %v17626_v37 = vcombine.high %v1959_v21, %v1967_v18  ;;  %v1943_v44 = vld [vmem:[%s18790_s11 + $0x3128] sm:$0xff] }
 0x659   : > { %14760 = vmatpush1.bf16.msra.mxu1 %v17945_v60  ;;  %v14450_v57 = vadd.f32 %v14449_v58, %v14407_v23  ;;  %v14409_v27 = vadd.f32 %v14408_v49, %v14366_v41  ;;  %14791 = vmatprep.mubr.bf16.mxu1 %v19127_v36  ;;  %v347_v60 = vld [vmem:[#allocation2 + $0xd0] sm:$0xff]  ;;  %v2199_v41 = vld [vmem:[%s18790_s11 + $0x3928] sm:$0xff]  ;;  %v17625_v23 = vcombine.low %v1959_v21, %v1967_v18 }
 0x65a   : > { %v14451_v8 = vpop.f32.mrf.mxu1  ;;  %14761 = vmatprep.subr.bf16.mxu1 %v17930_v52  ;;  %v14410_v11 = vpop.f32.mrf.mxu0  ;;  %v17897_v52 = vcombine.low %v2231_v25, %v2239_v13  ;;  %v17881_v58 = vcombine.low %v2215_v16, %v2223_v38  ;;  %v17866_v49 = vcombine.high %v2199_v41, %v2207_v51  ;;  %v2399_v21 = vld [vmem:[%s18790_s11 + $0x3f68] sm:$0xff] }
 0x65b   : > { %v15498_v2 = vadd.f32 %v14450_v57, %v330_v28  ;;  %v14452_v31 = vadd.f32 %v14451_v8, %v14409_v27  ;;  %v14411_v29 = vadd.f32 %v14410_v11, %v14368_v7  ;;  %14719 = vmatpush1.bf16.msra.mxu0 %v17673_v14  ;;  %v1951_v14 = vld [vmem:[%s18790_s11 + $0x3168] sm:$0xff]  ;;  %v17865_v27 = vcombine.low %v2199_v41, %v2207_v51 }
 0x65c   : > { %v14453_v54 = vpop.f32.mrf.mxu1  ;;  %v14412_v56 = vpop.f32.mrf.mxu0  ;;  %14720 = vmatprep.subr.bf16.mxu0 %v17658_v45  ;;  %v17610_v28 = vcombine.high %v1943_v44, %v1951_v14  ;;  %v1935_v45 = vld [vmem:[%s18790_s11 + $0x30e8] sm:$0xff]  ;;  %v17609_v57 = vcombine.low %v1943_v44, %v1951_v14 }
 0x65d   : > { %14762 = vmatpush1.bf16.msra.mxu1 %v17929_v43  ;;  %15530 = vst [vmem:[#allocation2 + $0x80] sm:$0xff] %v15498_v2  ;;  %v15499_v1 = vadd.f32 %v14452_v31, %v331_v61  ;;  %v14454_v32 = vadd.f32 %v14453_v54, %v14411_v29  ;;  %v14413_v17 = vadd.f32 %v14412_v56, %v14370_v53  ;;  %v1927_v43 = vld [vmem:[%s18790_s11 + $0x30a8] sm:$0xff] }
 0x65e   : > { %14763 = vmatprep.subr.bf16.mxu1 %v17914_v3  ;;  %v14455_v42 = vpop.f32.mrf.mxu1  ;;  %v2183_v3 = vld [vmem:[%s18790_s11 + $0x38a8] sm:$0xff]  ;;  %v17594_v8 = vcombine.high %v1927_v43, %v1935_v45  ;;  %v17593_v25 = vcombine.low %v1927_v43, %v1935_v45 }
 0x65f   : > { %15531 = vst [vmem:[#allocation2 + $0x88] sm:$0xff] %v15499_v1  ;;  %v15514_v10 = vadd.f32 %v14454_v32, %v346_v5  ;;  %v14456_v19 = vadd.f32 %v14455_v42, %v14413_v17  ;;  %14721 = vmatpush1.bf16.msra.mxu0 %v17657_v6  ;;  %v2191_v7 = vld [vmem:[%s18790_s11 + $0x38e8] sm:$0xff] }
 0x660   : > { %14722 = vmatprep.subr.bf16.mxu0 %v17642_v48  ;;  %v17850_v40 = vcombine.high %v2183_v3, %v2191_v7  ;;  %v1919_v61 = vld [vmem:[%s18790_s11 + $0x3068] sm:$0xff]  ;;  %v17849_v13 = vcombine.low %v2183_v3, %v2191_v7 }
 0x661   : > { %14764 = vmatpush1.bf16.msra.mxu1 %v17913_v39  ;;  %15546 = vst [vmem:[#allocation2 + $0xa8] sm:$0xff] %v15514_v10  ;;  %v15515_v15 = vadd.f32 %v14456_v19, %v347_v60  ;;  %v2167_v11 = vld [vmem:[%s18790_s11 + $0x3828] sm:$0xff]  ;;  %v17578_v53 = vcombine.high %v1911_v47, %v1919_v61  ;;  %v17577_v56 = vcombine.low %v1911_v47, %v1919_v61 }
 0x662   : > { %14765 = vmatprep.subr.bf16.mxu1 %v17898_v4  ;;  %v2175_v6 = vld [vmem:[%s18790_s11 + $0x3868] sm:$0xff] }
 0x663   : > { %15547 = vst [vmem:[#allocation2 + $0xd0] sm:$0xff] %v15515_v15  ;;  %14723 = vmatpush1.bf16.msra.mxu0 %v17641_v24  ;;  %v17834_v2 = vcombine.high %v2167_v11, %v2175_v6  ;;  %v2151_v31 = vld [vmem:[%s18790_s11 + $0x37a8] sm:$0xff]  ;;  %v17833_v39 = vcombine.low %v2167_v11, %v2175_v6 }
 0x664   : > { %14724 = vmatprep.subr.bf16.mxu0 %v17626_v37  ;;  %v2159_v29 = vld [vmem:[%s18790_s11 + $0x37e8] sm:$0xff] }
 0x665   : > { %14766 = vmatpush1.bf16.msra.mxu1 %v17897_v52  ;;  %v2407_v54 = vld [vmem:[%s18790_s11 + $0x3fa8] sm:$0xff]  ;;  %v17818_v48 = vcombine.high %v2151_v31, %v2159_v29  ;;  %v17817_v18 = vcombine.low %v2151_v31, %v2159_v29 }
 0x666   : > { %14767 = vmatprep.subr.bf16.mxu1 %v17882_v30  ;;  %v2415_v5 = vld [vmem:[%s18790_s11 + $0x3fe8] sm:$0xff] }
 0x667   : > { %14725 = vmatpush1.bf16.msra.mxu0 %v17625_v23  ;;  %v18074_v1 = vcombine.high %v2407_v54, %v2415_v5  ;;  %v2135_v32 = vld [vmem:[%s18790_s11 + $0x3728] sm:$0xff]  ;;  %v18073_v60 = vcombine.low %v2407_v54, %v2415_v5 }
 0x668   : > { %14726 = vmatprep.subr.bf16.mxu0 %v17610_v28  ;;  %v2143_v17 = vld [vmem:[%s18790_s11 + $0x3768] sm:$0xff] }
 0x669   : > { %14768 = vmatpush1.bf16.msra.mxu1 %v17881_v58  ;;  %v2391_v4 = vld [vmem:[%s18790_s11 + $0x3f28] sm:$0xff]  ;;  %v17802_v42 = vcombine.high %v2135_v32, %v2143_v17  ;;  %v17801_v52 = vcombine.low %v2135_v32, %v2143_v17 }
 0x66a   : > { %14769 = vmatprep.subr.bf16.mxu1 %v17866_v49  ;;  %v18058_v16 = vcombine.high %v2391_v4, %v2399_v21  ;;  %v2119_v38 = vld [vmem:[%s18790_s11 + $0x36a8] sm:$0xff]  ;;  %v18057_v37 = vcombine.low %v2391_v4, %v2399_v21 }
 0x66b   : > { %14727 = vmatpush1.bf16.msra.mxu0 %v17609_v57  ;;  %v2127_v10 = vld [vmem:[%s18790_s11 + $0x36e8] sm:$0xff] }
 0x66c   : > { %14728 = vmatprep.subr.bf16.mxu0 %v17594_v8  ;;  %v2375_v19 = vld [vmem:[%s18790_s11 + $0x3ea8] sm:$0xff]  ;;  %v17786_v15 = vcombine.high %v2119_v38, %v2127_v10  ;;  %v17785_v23 = vcombine.low %v2119_v38, %v2127_v10  ;;  %v488_v38 = vld [vmem:[%s18790_s11 + $0x3b0] sm:$0xff] }
 0x66d   : > { %14770 = vmatpush1.bf16.msra.mxu1 %v17865_v27  ;;  %v2383_v24 = vld [vmem:[%s18790_s11 + $0x3ee8] sm:$0xff]  ;;  %v496_v10 = vld [vmem:[%s18790_s11 + $0x3f0] sm:$0xff] }
 0x66e   : > { %14771 = vmatprep.subr.bf16.mxu1 %v17850_v40  ;;  %v18042_v30 = vcombine.high %v2375_v19, %v2383_v24  ;;  %v2103_v44 = vld [vmem:[%s18790_s11 + $0x3628] sm:$0xff]  ;;  %v18041_v58 = vcombine.low %v2375_v19, %v2383_v24  ;;  %v744_v19 = vld [vmem:[%s18790_s11 + $0xbb0] sm:$0xff] }
 0x66f   : > { %14729 = vmatpush1.bf16.msra.mxu0 %v17593_v25  ;;  %v2111_v14 = vld [vmem:[%s18790_s11 + $0x3668] sm:$0xff]  ;;  %v752_v24 = vld [vmem:[%s18790_s11 + $0xbf0] sm:$0xff] }
 0x670   : > { %14730 = vmatprep.subr.bf16.mxu0 %v17578_v53  ;;  %v2359_v41 = vld [vmem:[%s18790_s11 + $0x3e28] sm:$0xff]  ;;  %v17770_v28 = vcombine.high %v2103_v44, %v2111_v14  ;;  %v17769_v57 = vcombine.low %v2103_v44, %v2111_v14  ;;  %v472_v44 = vld [vmem:[%s18790_s11 + $0x330] sm:$0xff] }
 0x671   : > { %14772 = vmatpush1.bf16.msra.mxu1 %v17849_v13  ;;  %v2367_v51 = vld [vmem:[%s18790_s11 + $0x3e68] sm:$0xff]  ;;  %v480_v14 = vld [vmem:[%s18790_s11 + $0x370] sm:$0xff] }
 0x672   : > { %14773 = vmatprep.subr.bf16.mxu1 %v17834_v2  ;;  %v18026_v49 = vcombine.high %v2359_v41, %v2367_v51  ;;  %v2087_v43 = vld [vmem:[%s18790_s11 + $0x35a8] sm:$0xff]  ;;  %v18025_v27 = vcombine.low %v2359_v41, %v2367_v51  ;;  %v728_v41 = vld [vmem:[%s18790_s11 + $0xb30] sm:$0xff] }
 0x673   : > { %14731 = vmatpush1.bf16.msra.mxu0 %v17577_v56  ;;  %v2095_v45 = vld [vmem:[%s18790_s11 + $0x35e8] sm:$0xff]  ;;  %v736_v51 = vld [vmem:[%s18790_s11 + $0xb70] sm:$0xff] }
 0x674   : > { %14732 = vmatprep.subr.bf16.mxu0 %v17818_v48  ;;  %v2343_v3 = vld [vmem:[%s18790_s11 + $0x3da8] sm:$0xff]  ;;  %v17754_v8 = vcombine.high %v2087_v43, %v2095_v45  ;;  %v17753_v25 = vcombine.low %v2087_v43, %v2095_v45  ;;  %v456_v43 = vld [vmem:[%s18790_s11 + $0x2b0] sm:$0xff] }
 0x675   : > { %14774 = vmatpush1.bf16.msra.mxu1 %v17833_v39  ;;  %v2351_v7 = vld [vmem:[%s18790_s11 + $0x3de8] sm:$0xff]  ;;  %v464_v45 = vld [vmem:[%s18790_s11 + $0x2f0] sm:$0xff] }
 0x676   : > { %14775 = vmatprep.subr.bf16.mxu1 %v18074_v1  ;;  %v18010_v40 = vcombine.high %v2343_v3, %v2351_v7  ;;  %v2071_v47 = vld [vmem:[%s18790_s11 + $0x3528] sm:$0xff]  ;;  %v18009_v13 = vcombine.low %v2343_v3, %v2351_v7  ;;  %v712_v3 = vld [vmem:[%s18790_s11 + $0xab0] sm:$0xff] }
 0x677   : > { %14733 = vmatpush2.bf16.msra.mxu0 %v17817_v18  ;;  %v2079_v61 = vld [vmem:[%s18790_s11 + $0x3568] sm:$0xff]  ;;  %v720_v7 = vld [vmem:[%s18790_s11 + $0xaf0] sm:$0xff] }
 0x678   : > { %14734 = vmatprep.subr.bf16.mxu0 %v17802_v42  ;;  %v2327_v11 = vld [vmem:[%s18790_s11 + $0x3d28] sm:$0xff]  ;;  %v17738_v53 = vcombine.high %v2071_v47, %v2079_v61  ;;  %v17737_v56 = vcombine.low %v2071_v47, %v2079_v61  ;;  %v440_v47 = vld [vmem:[%s18790_s11 + $0x230] sm:$0xff] }
 0x679   : > { %14776 = vmatpush2.bf16.msra.mxu1 %v18073_v60  ;;  %v2335_v6 = vld [vmem:[%s18790_s11 + $0x3d68] sm:$0xff]  ;;  %v448_v61 = vld [vmem:[%s18790_s11 + $0x270] sm:$0xff] }
 0x67a   : > { %14777 = vmatprep.subr.bf16.mxu1 %v18058_v16  ;;  %v17994_v2 = vcombine.high %v2327_v11, %v2335_v6  ;;  %v2055_v31 = vld [vmem:[%s18790_s11 + $0x34a8] sm:$0xff]  ;;  %v17993_v39 = vcombine.low %v2327_v11, %v2335_v6  ;;  %v696_v11 = vld [vmem:[%s18790_s11 + $0xa30] sm:$0xff] }
 0x67b   : > { %14735 = vmatpush2.bf16.msra.mxu0 %v17801_v52  ;;  %v2063_v29 = vld [vmem:[%s18790_s11 + $0x34e8] sm:$0xff]  ;;  %v704_v6 = vld [vmem:[%s18790_s11 + $0xa70] sm:$0xff] }
 0x67c   : > { %14736 = vmatprep.subr.bf16.mxu0 %v17786_v15  ;;  %v2311_v54 = vld [vmem:[%s18790_s11 + $0x3ca8] sm:$0xff]  ;;  %v17722_v48 = vcombine.high %v2055_v31, %v2063_v29  ;;  %v17721_v18 = vcombine.low %v2055_v31, %v2063_v29  ;;  %v16156_v15 = vcombine.high %v488_v38, %v496_v10  ;;  %v424_v31 = vld [vmem:[%s18790_s11 + $0x1b0] sm:$0xff] }
 0x67d   : > { %14778 = vmatpush2.bf16.msra.mxu1 %v18057_v37  ;;  %v2319_v5 = vld [vmem:[%s18790_s11 + $0x3ce8] sm:$0xff]  ;;  %v432_v29 = vld [vmem:[%s18790_s11 + $0x1f0] sm:$0xff] }
 0x67e   : > { %14779 = vmatprep.subr.bf16.mxu1 %v18042_v30  ;;  %v17978_v1 = vcombine.high %v2311_v54, %v2319_v5  ;;  %v2039_v32 = vld [vmem:[%s18790_s11 + $0x3428] sm:$0xff]  ;;  %v17977_v60 = vcombine.low %v2311_v54, %v2319_v5  ;;  %v16412_v30 = vcombine.high %v744_v19, %v752_v24  ;;  %v680_v54 = vld [vmem:[%s18790_s11 + $0x9b0] sm:$0xff] }
 0x67f   : > { %14737 = vmatpush2.bf16.msra.mxu0 %v17785_v23  ;;  %v2047_v17 = vld [vmem:[%s18790_s11 + $0x3468] sm:$0xff]  ;;  %v16155_v23 = vcombine.low %v488_v38, %v496_v10  ;;  %v688_v5 = vld [vmem:[%s18790_s11 + $0x9f0] sm:$0xff] }
 0x680   : > { %14738 = vmatprep.subr.bf16.mxu0 %v17770_v28  ;;  %v2295_v4 = vld [vmem:[%s18790_s11 + $0x3c28] sm:$0xff]  ;;  %v17706_v42 = vcombine.high %v2039_v32, %v2047_v17  ;;  %v17705_v52 = vcombine.low %v2039_v32, %v2047_v17  ;;  %v16140_v28 = vcombine.high %v472_v44, %v480_v14  ;;  %v408_v32 = vld [vmem:[%s18790_s11 + $0x130] sm:$0xff] }
 0x681   : > { %14780 = vmatpush2.bf16.msra.mxu1 %v18041_v58  ;;  %v2303_v21 = vld [vmem:[%s18790_s11 + $0x3c68] sm:$0xff]  ;;  %v16411_v58 = vcombine.low %v744_v19, %v752_v24  ;;  %v416_v17 = vld [vmem:[%s18790_s11 + $0x170] sm:$0xff] }
 0x682   : > { %14781 = vmatprep.subr.bf16.mxu1 %v18026_v49  ;;  %v17962_v16 = vcombine.high %v2295_v4, %v2303_v21  ;;  %v17961_v37 = vcombine.low %v2295_v4, %v2303_v21  ;;  %v16396_v49 = vcombine.high %v728_v41, %v736_v51  ;;  %v664_v4 = vld [vmem:[%s18790_s11 + $0x930] sm:$0xff] }
 0x683   : > { %14739 = vmatpush2.bf16.msra.mxu0 %v17769_v57  ;;  %v16139_v57 = vcombine.low %v472_v44, %v480_v14  ;;  %v672_v21 = vld [vmem:[%s18790_s11 + $0x970] sm:$0xff] }
 0x684   : > { %14740 = vmatprep.subr.bf16.mxu0 %v17754_v8  ;;  %v16124_v8 = vcombine.high %v456_v43, %v464_v45  ;;  %v392_v38 = vld [vmem:[%s18790_s11 + $0xb0] sm:$0xff] }
 0x685   : > { %14782 = vmatpush2.bf16.msra.mxu1 %v18025_v27  ;;  %v16395_v27 = vcombine.low %v728_v41, %v736_v51  ;;  %v400_v10 = vld [vmem:[%s18790_s11 + $0xf0] sm:$0xff] }
 0x686   : > { %14783 = vmatprep.subr.bf16.mxu1 %v18010_v40  ;;  %v16380_v40 = vcombine.high %v712_v3, %v720_v7  ;;  %v648_v19 = vld [vmem:[%s18790_s11 + $0x8b0] sm:$0xff] }
 0x687   : > { %14741 = vmatpush2.bf16.msra.mxu0 %v17753_v25  ;;  %v16123_v25 = vcombine.low %v456_v43, %v464_v45  ;;  %v656_v24 = vld [vmem:[%s18790_s11 + $0x8f0] sm:$0xff] }
 0x688   : > { %14742 = vmatprep.subr.bf16.mxu0 %v17738_v53  ;;  %v16108_v53 = vcombine.high %v440_v47, %v448_v61  ;;  %v376_v44 = vld [vmem:[%s18790_s11 + $0x30] sm:$0xff] }
 0x689   : > { %14784 = vmatpush2.bf16.msra.mxu1 %v18009_v13  ;;  %v16379_v13 = vcombine.low %v712_v3, %v720_v7  ;;  %v384_v14 = vld [vmem:[%s18790_s11 + $0x70] sm:$0xff] }
 0x68a   : > { %14785 = vmatprep.subr.bf16.mxu1 %v17994_v2  ;;  %v16364_v2 = vcombine.high %v696_v11, %v704_v6  ;;  %v632_v41 = vld [vmem:[%s18790_s11 + $0x830] sm:$0xff] }
 0x68b   : > { %14743 = vmatpush2.bf16.msra.mxu0 %v17737_v56  ;;  %v16107_v56 = vcombine.low %v440_v47, %v448_v61  ;;  %v640_v51 = vld [vmem:[%s18790_s11 + $0x870] sm:$0xff] }
 0x68c   : > { %14744 = vmatprep.subr.bf16.mxu0 %v17722_v48  ;;  %v16092_v48 = vcombine.high %v424_v31, %v432_v29  ;;  %v616_v43 = vld [vmem:[%s18790_s11 + $0x7b0] sm:$0xff] }
 0x68d   : > { %14786 = vmatpush2.bf16.msra.mxu1 %v17993_v39  ;;  %v16363_v39 = vcombine.low %v696_v11, %v704_v6  ;;  %v624_v45 = vld [vmem:[%s18790_s11 + $0x7f0] sm:$0xff] }
 0x68e   : > { %14787 = vmatprep.subr.bf16.mxu1 %v17978_v1  ;;  %v16348_v1 = vcombine.high %v680_v54, %v688_v5  ;;  %v872_v3 = vld [vmem:[%s18790_s11 + $0xfb0] sm:$0xff] }
 0x68f   : > { %14745 = vmatpush2.bf16.msra.mxu0 %v17721_v18  ;;  %v16091_v18 = vcombine.low %v424_v31, %v432_v29  ;;  %v880_v7 = vld [vmem:[%s18790_s11 + $0xff0] sm:$0xff] }
 0x690   : > { %14746 = vmatprep.subr.bf16.mxu0 %v17706_v42  ;;  %v16076_v42 = vcombine.high %v408_v32, %v416_v17  ;;  %v600_v47 = vld [vmem:[%s18790_s11 + $0x730] sm:$0xff] }
 0x691   : > { %14788 = vmatpush2.bf16.msra.mxu1 %v17977_v60  ;;  %v16347_v60 = vcombine.low %v680_v54, %v688_v5  ;;  %v608_v61 = vld [vmem:[%s18790_s11 + $0x770] sm:$0xff] }
 0x692   : > { %14789 = vmatprep.subr.bf16.mxu1 %v17962_v16  ;;  %v16332_v16 = vcombine.high %v664_v4, %v672_v21  ;;  %v856_v11 = vld [vmem:[%s18790_s11 + $0xf30] sm:$0xff] }
 0x693   : > { %14747 = vmatpush2.bf16.msra.mxu0 %v17705_v52  ;;  %v16075_v52 = vcombine.low %v408_v32, %v416_v17  ;;  %v864_v6 = vld [vmem:[%s18790_s11 + $0xf70] sm:$0xff] }
 0x694   : > { %14802 = vmatprep.subr.bf16.mxu0 %v16156_v15  ;;  %v16060_v15 = vcombine.high %v392_v38, %v400_v10  ;;  %v584_v31 = vld [vmem:[%s18790_s11 + $0x6b0] sm:$0xff] }
 0x695   : > { %14790 = vmatpush2.bf16.msra.mxu1 %v17961_v37  ;;  %v16331_v37 = vcombine.low %v664_v4, %v672_v21  ;;  %v592_v29 = vld [vmem:[%s18790_s11 + $0x6f0] sm:$0xff] }
 0x696   : > { %14845 = vmatprep.subr.bf16.mxu1 %v16412_v30  ;;  %14749 = vmatmul.mubr.bf16.vlgmr.msra.gmra.mxu0 %v19192_v9  ;;  %v16316_v30 = vcombine.high %v648_v19, %v656_v24  ;;  %v840_v54 = vld [vmem:[%s18790_s11 + $0xeb0] sm:$0xff] }
 0x697   : > { %14803 = vmatpush1.bf16.msra.mxu0 %v16155_v23  ;;  %14834 = vmatprep.mubr.bf16.mxu0 %v18848_v59  ;;  %v16059_v23 = vcombine.low %v392_v38, %v400_v10  ;;  %v848_v5 = vld [vmem:[%s18790_s11 + $0xef0] sm:$0xff] }
 0x698   : > { %14792 = vmatmul.mubr.bf16.vlgmr.msra.gmra.mxu1 %v19198_v12  ;;  %14804 = vmatprep.subr.bf16.mxu0 %v16140_v28  ;;  %v16044_v28 = vcombine.high %v376_v44, %v384_v14  ;;  %v568_v32 = vld [vmem:[%s18790_s11 + $0x630] sm:$0xff] }
 0x699   : > { %14846 = vmatpush1.bf16.msra.mxu1 %v16411_v58  ;;  %14877 = vmatprep.mubr.bf16.mxu1 %v18860_v0  ;;  %v16315_v58 = vcombine.low %v648_v19, %v656_v24  ;;  %v576_v17 = vld [vmem:[%s18790_s11 + $0x670] sm:$0xff] }
 0x69a   : > { %14847 = vmatprep.subr.bf16.mxu1 %v16396_v49  ;;  %v16300_v49 = vcombine.high %v632_v41, %v640_v51  ;;  %v824_v4 = vld [vmem:[%s18790_s11 + $0xe30] sm:$0xff] }
 0x69b   : > { %14805 = vmatpush1.bf16.msra.mxu0 %v16139_v57  ;;  %v16043_v57 = vcombine.low %v376_v44, %v384_v14  ;;  %v832_v21 = vld [vmem:[%s18790_s11 + $0xe70] sm:$0xff] }
 0x69c   : > { %14806 = vmatprep.subr.bf16.mxu0 %v16124_v8  ;;  %v16284_v8 = vcombine.high %v616_v43, %v624_v45  ;;  %v552_v38 = vld [vmem:[%s18790_s11 + $0x5b0] sm:$0xff] }
 0x69d   : > { %14848 = vmatpush1.bf16.msra.mxu1 %v16395_v27  ;;  %v16299_v27 = vcombine.low %v632_v41, %v640_v51  ;;  %v560_v10 = vld [vmem:[%s18790_s11 + $0x5f0] sm:$0xff] }
 0x69e   : > { %14849 = vmatprep.subr.bf16.mxu1 %v16380_v40  ;;  %v16540_v40 = vcombine.high %v872_v3, %v880_v7  ;;  %v808_v19 = vld [vmem:[%s18790_s11 + $0xdb0] sm:$0xff] }
 0x69f   : > { %14807 = vmatpush1.bf16.msra.mxu0 %v16123_v25  ;;  %v16283_v25 = vcombine.low %v616_v43, %v624_v45  ;;  %v816_v24 = vld [vmem:[%s18790_s11 + $0xdf0] sm:$0xff] }
 0x6a0   : > { %14808 = vmatprep.subr.bf16.mxu0 %v16108_v53  ;;  %v16268_v53 = vcombine.high %v600_v47, %v608_v61  ;;  %v536_v44 = vld [vmem:[%s18790_s11 + $0x530] sm:$0xff] }
 0x6a1   : > { %14850 = vmatpush1.bf16.msra.mxu1 %v16379_v13  ;;  %v16539_v13 = vcombine.low %v872_v3, %v880_v7  ;;  %v544_v14 = vld [vmem:[%s18790_s11 + $0x570] sm:$0xff] }
 0x6a2   : > { %14851 = vmatprep.subr.bf16.mxu1 %v16364_v2  ;;  %v16524_v2 = vcombine.high %v856_v11, %v864_v6  ;;  %v792_v41 = vld [vmem:[%s18790_s11 + $0xd30] sm:$0xff] }
 0x6a3   : > { %14809 = vmatpush1.bf16.msra.mxu0 %v16107_v56  ;;  %v16267_v56 = vcombine.low %v600_v47, %v608_v61  ;;  %v800_v51 = vld [vmem:[%s18790_s11 + $0xd70] sm:$0xff] }
 0x6a4   : > { %14810 = vmatprep.subr.bf16.mxu0 %v16092_v48  ;;  %v16252_v48 = vcombine.high %v584_v31, %v592_v29  ;;  %v520_v43 = vld [vmem:[%s18790_s11 + $0x4b0] sm:$0xff] }
 0x6a5   : > { %14852 = vmatpush1.bf16.msra.mxu1 %v16363_v39  ;;  %v16523_v39 = vcombine.low %v856_v11, %v864_v6  ;;  %v528_v45 = vld [vmem:[%s18790_s11 + $0x4f0] sm:$0xff] }
 0x6a6   : > { %14853 = vmatprep.subr.bf16.mxu1 %v16348_v1  ;;  %v16508_v1 = vcombine.high %v840_v54, %v848_v5  ;;  %v776_v3 = vld [vmem:[%s18790_s11 + $0xcb0] sm:$0xff] }
 0x6a7   : > { %14811 = vmatpush1.bf16.msra.mxu0 %v16091_v18  ;;  %v16251_v18 = vcombine.low %v584_v31, %v592_v29  ;;  %v784_v7 = vld [vmem:[%s18790_s11 + $0xcf0] sm:$0xff] }
 0x6a8   : > { %14812 = vmatprep.subr.bf16.mxu0 %v16076_v42  ;;  %v16236_v42 = vcombine.high %v568_v32, %v576_v17  ;;  %v504_v47 = vld [vmem:[%s18790_s11 + $0x430] sm:$0xff] }
 0x6a9   : > { %14854 = vmatpush1.bf16.msra.mxu1 %v16347_v60  ;;  %v16507_v60 = vcombine.low %v840_v54, %v848_v5  ;;  %v512_v61 = vld [vmem:[%s18790_s11 + $0x470] sm:$0xff] }
 0x6aa   : > { %14855 = vmatprep.subr.bf16.mxu1 %v16332_v16  ;;  %v16492_v16 = vcombine.high %v824_v4, %v832_v21  ;;  %v760_v11 = vld [vmem:[%s18790_s11 + $0xc30] sm:$0xff] }
 0x6ab   : > { %14813 = vmatpush1.bf16.msra.mxu0 %v16075_v52  ;;  %v16235_v52 = vcombine.low %v568_v32, %v576_v17  ;;  %v768_v6 = vld [vmem:[%s18790_s11 + $0xc70] sm:$0xff] }
 0x6ac   : > { %14814 = vmatprep.subr.bf16.mxu0 %v16060_v15  ;;  %v16220_v15 = vcombine.high %v552_v38, %v560_v10  ;;  %v1000_v31 = vld [vmem:[%s18790_s11 + $0x13b0] sm:$0xff] }
 0x6ad   : > { %14856 = vmatpush1.bf16.msra.mxu1 %v16331_v37  ;;  %v16491_v37 = vcombine.low %v824_v4, %v832_v21  ;;  %v1008_v29 = vld [vmem:[%s18790_s11 + $0x13f0] sm:$0xff] }
 0x6ae   : > { %14857 = vmatprep.subr.bf16.mxu1 %v16316_v30  ;;  %v16476_v30 = vcombine.high %v808_v19, %v816_v24  ;;  %v1256_v54 = vld [vmem:[%s18790_s11 + $0x1bb0] sm:$0xff] }
 0x6af   : > { %14815 = vmatpush1.bf16.msra.mxu0 %v16059_v23  ;;  %v16219_v23 = vcombine.low %v552_v38, %v560_v10  ;;  %v1264_v5 = vld [vmem:[%s18790_s11 + $0x1bf0] sm:$0xff] }
 0x6b0   : > { %14816 = vmatprep.subr.bf16.mxu0 %v16044_v28  ;;  %v16204_v28 = vcombine.high %v536_v44, %v544_v14  ;;  %v984_v32 = vld [vmem:[%s18790_s11 + $0x1330] sm:$0xff] }
 0x6b1   : > { %14858 = vmatpush1.bf16.msra.mxu1 %v16315_v58  ;;  %v16475_v58 = vcombine.low %v808_v19, %v816_v24  ;;  %v992_v17 = vld [vmem:[%s18790_s11 + $0x1370] sm:$0xff] }
 0x6b2   : > { %14859 = vmatprep.subr.bf16.mxu1 %v16300_v49  ;;  %v16460_v49 = vcombine.high %v792_v41, %v800_v51  ;;  %v1240_v4 = vld [vmem:[%s18790_s11 + $0x1b30] sm:$0xff] }
 0x6b3   : > { %14817 = vmatpush1.bf16.msra.mxu0 %v16043_v57  ;;  %v16203_v57 = vcombine.low %v536_v44, %v544_v14  ;;  %v1248_v21 = vld [vmem:[%s18790_s11 + $0x1b70] sm:$0xff] }
 0x6b4   : > { %14818 = vmatprep.subr.bf16.mxu0 %v16284_v8  ;;  %v16188_v8 = vcombine.high %v520_v43, %v528_v45  ;;  %v968_v38 = vld [vmem:[%s18790_s11 + $0x12b0] sm:$0xff] }
 0x6b5   : > { %14860 = vmatpush1.bf16.msra.mxu1 %v16299_v27  ;;  %v16459_v27 = vcombine.low %v792_v41, %v800_v51  ;;  %v976_v10 = vld [vmem:[%s18790_s11 + $0x12f0] sm:$0xff] }
 0x6b6   : > { %14861 = vmatprep.subr.bf16.mxu1 %v16540_v40  ;;  %v16444_v40 = vcombine.high %v776_v3, %v784_v7  ;;  %v1224_v19 = vld [vmem:[%s18790_s11 + $0x1ab0] sm:$0xff] }
 0x6b7   : > { %14819 = vmatpush2.bf16.msra.mxu0 %v16283_v25  ;;  %v16187_v25 = vcombine.low %v520_v43, %v528_v45  ;;  %v1232_v24 = vld [vmem:[%s18790_s11 + $0x1af0] sm:$0xff] }
 0x6b8   : > { %14820 = vmatprep.subr.bf16.mxu0 %v16268_v53  ;;  %v16172_v53 = vcombine.high %v504_v47, %v512_v61  ;;  %v952_v44 = vld [vmem:[%s18790_s11 + $0x1230] sm:$0xff] }
 0x6b9   : > { %14862 = vmatpush2.bf16.msra.mxu1 %v16539_v13  ;;  %v16443_v13 = vcombine.low %v776_v3, %v784_v7  ;;  %v960_v14 = vld [vmem:[%s18790_s11 + $0x1270] sm:$0xff] }
 0x6ba   : > { %14863 = vmatprep.subr.bf16.mxu1 %v16524_v2  ;;  %v16428_v2 = vcombine.high %v760_v11, %v768_v6  ;;  %v1208_v41 = vld [vmem:[%s18790_s11 + $0x1a30] sm:$0xff] }
 0x6bb   : > { %14821 = vmatpush2.bf16.msra.mxu0 %v16267_v56  ;;  %v16171_v56 = vcombine.low %v504_v47, %v512_v61  ;;  %v1216_v51 = vld [vmem:[%s18790_s11 + $0x1a70] sm:$0xff] }
 0x6bc   : > { %14822 = vmatprep.subr.bf16.mxu0 %v16252_v48  ;;  %v16668_v48 = vcombine.high %v1000_v31, %v1008_v29  ;;  %v936_v43 = vld [vmem:[%s18790_s11 + $0x11b0] sm:$0xff] }
 0x6bd   : > { %14864 = vmatpush2.bf16.msra.mxu1 %v16523_v39  ;;  %v16427_v39 = vcombine.low %v760_v11, %v768_v6  ;;  %v944_v45 = vld [vmem:[%s18790_s11 + $0x11f0] sm:$0xff] }
 0x6be   : > { %14865 = vmatprep.subr.bf16.mxu1 %v16508_v1  ;;  %v16924_v1 = vcombine.high %v1256_v54, %v1264_v5  ;;  %v1192_v3 = vld [vmem:[%s18790_s11 + $0x19b0] sm:$0xff] }
 0x6bf   : > { %14823 = vmatpush2.bf16.msra.mxu0 %v16251_v18  ;;  %v16667_v18 = vcombine.low %v1000_v31, %v1008_v29  ;;  %v1200_v7 = vld [vmem:[%s18790_s11 + $0x19f0] sm:$0xff] }
 0x6c0   : > { %14824 = vmatprep.subr.bf16.mxu0 %v16236_v42  ;;  %v16652_v42 = vcombine.high %v984_v32, %v992_v17  ;;  %v920_v47 = vld [vmem:[%s18790_s11 + $0x1130] sm:$0xff] }
 0x6c1   : > { %14866 = vmatpush2.bf16.msra.mxu1 %v16507_v60  ;;  %v16923_v60 = vcombine.low %v1256_v54, %v1264_v5  ;;  %v928_v61 = vld [vmem:[%s18790_s11 + $0x1170] sm:$0xff] }
 0x6c2   : > { %14867 = vmatprep.subr.bf16.mxu1 %v16492_v16  ;;  %v16908_v16 = vcombine.high %v1240_v4, %v1248_v21  ;;  %v1176_v11 = vld [vmem:[%s18790_s11 + $0x1930] sm:$0xff] }
 0x6c3   : > { %14825 = vmatpush2.bf16.msra.mxu0 %v16235_v52  ;;  %v16651_v52 = vcombine.low %v984_v32, %v992_v17  ;;  %v1184_v6 = vld [vmem:[%s18790_s11 + $0x1970] sm:$0xff] }
 0x6c4   : > { %14826 = vmatprep.subr.bf16.mxu0 %v16220_v15  ;;  %v16636_v15 = vcombine.high %v968_v38, %v976_v10  ;;  %v904_v31 = vld [vmem:[%s18790_s11 + $0x10b0] sm:$0xff] }
 0x6c5   : > { %14868 = vmatpush2.bf16.msra.mxu1 %v16491_v37  ;;  %v16907_v37 = vcombine.low %v1240_v4, %v1248_v21  ;;  %v912_v29 = vld [vmem:[%s18790_s11 + $0x10f0] sm:$0xff] }
 0x6c6   : > { %14869 = vmatprep.subr.bf16.mxu1 %v16476_v30  ;;  %v16892_v30 = vcombine.high %v1224_v19, %v1232_v24  ;;  %v1160_v54 = vld [vmem:[%s18790_s11 + $0x18b0] sm:$0xff] }
 0x6c7   : > { %14827 = vmatpush2.bf16.msra.mxu0 %v16219_v23  ;;  %v16635_v23 = vcombine.low %v968_v38, %v976_v10  ;;  %v1168_v5 = vld [vmem:[%s18790_s11 + $0x18f0] sm:$0xff] }
 0x6c8   : > { %14828 = vmatprep.subr.bf16.mxu0 %v16204_v28  ;;  %v16620_v28 = vcombine.high %v952_v44, %v960_v14  ;;  %v888_v32 = vld [vmem:[%s18790_s11 + $0x1030] sm:$0xff] }
 0x6c9   : > { %14870 = vmatpush2.bf16.msra.mxu1 %v16475_v58  ;;  %v16891_v58 = vcombine.low %v1224_v19, %v1232_v24  ;;  %v896_v17 = vld [vmem:[%s18790_s11 + $0x1070] sm:$0xff] }
 0x6ca   : > { %14871 = vmatprep.subr.bf16.mxu1 %v16460_v49  ;;  %v16876_v49 = vcombine.high %v1208_v41, %v1216_v51  ;;  %v1144_v4 = vld [vmem:[%s18790_s11 + $0x1830] sm:$0xff] }
 0x6cb   : > { %14829 = vmatpush2.bf16.msra.mxu0 %v16203_v57  ;;  %v16619_v57 = vcombine.low %v952_v44, %v960_v14  ;;  %v1152_v21 = vld [vmem:[%s18790_s11 + $0x1870] sm:$0xff] }
 0x6cc   : > { %14830 = vmatprep.subr.bf16.mxu0 %v16188_v8  ;;  %v16604_v8 = vcombine.high %v936_v43, %v944_v45  ;;  %v1128_v38 = vld [vmem:[%s18790_s11 + $0x17b0] sm:$0xff] }
 0x6cd   : > { %14872 = vmatpush2.bf16.msra.mxu1 %v16459_v27  ;;  %v16875_v27 = vcombine.low %v1208_v41, %v1216_v51  ;;  %v1136_v10 = vld [vmem:[%s18790_s11 + $0x17f0] sm:$0xff] }
 0x6ce   : > { %14873 = vmatprep.subr.bf16.mxu1 %v16444_v40  ;;  %v16860_v40 = vcombine.high %v1192_v3, %v1200_v7  ;;  %v1384_v19 = vld [vmem:[%s18790_s11 + $0x1fb0] sm:$0xff] }
 0x6cf   : > { %14831 = vmatpush2.bf16.msra.mxu0 %v16187_v25  ;;  %v16603_v25 = vcombine.low %v936_v43, %v944_v45  ;;  %v1392_v24 = vld [vmem:[%s18790_s11 + $0x1ff0] sm:$0xff] }
 0x6d0   : > { %14832 = vmatprep.subr.bf16.mxu0 %v16172_v53  ;;  %v16588_v53 = vcombine.high %v920_v47, %v928_v61  ;;  %v1112_v44 = vld [vmem:[%s18790_s11 + $0x1730] sm:$0xff] }
 0x6d1   : > { %14874 = vmatpush2.bf16.msra.mxu1 %v16443_v13  ;;  %v16859_v13 = vcombine.low %v1192_v3, %v1200_v7  ;;  %v1120_v14 = vld [vmem:[%s18790_s11 + $0x1770] sm:$0xff] }
 0x6d2   : > { %14875 = vmatprep.subr.bf16.mxu1 %v16428_v2  ;;  %v16844_v2 = vcombine.high %v1176_v11, %v1184_v6  ;;  %v1368_v41 = vld [vmem:[%s18790_s11 + $0x1f30] sm:$0xff] }
 0x6d3   : > { %14833 = vmatpush2.bf16.msra.mxu0 %v16171_v56  ;;  %v16587_v56 = vcombine.low %v920_v47, %v928_v61  ;;  %v1376_v51 = vld [vmem:[%s18790_s11 + $0x1f70] sm:$0xff] }
 0x6d4   : > { %14888 = vmatprep.subr.bf16.mxu0 %v16668_v48  ;;  %v16572_v48 = vcombine.high %v904_v31, %v912_v29  ;;  %v1096_v43 = vld [vmem:[%s18790_s11 + $0x16b0] sm:$0xff] }
 0x6d5   : > { %14876 = vmatpush2.bf16.msra.mxu1 %v16427_v39  ;;  %v16843_v39 = vcombine.low %v1176_v11, %v1184_v6  ;;  %v1104_v45 = vld [vmem:[%s18790_s11 + $0x16f0] sm:$0xff] }
 0x6d6   : > { %14931 = vmatprep.subr.bf16.mxu1 %v16924_v1  ;;  %14835 = vmatmul.mubr.bf16.vlgmr.msra.gmra.mxu0 %v18905_v22  ;;  %v16828_v1 = vcombine.high %v1160_v54, %v1168_v5  ;;  %v1352_v3 = vld [vmem:[%s18790_s11 + $0x1eb0] sm:$0xff] }
 0x6d7   : > { %14889 = vmatpush1.bf16.msra.mxu0 %v16667_v18  ;;  %14920 = vmatprep.mubr.bf16.mxu0 %v18928_v33  ;;  %v16571_v18 = vcombine.low %v904_v31, %v912_v29  ;;  %v1360_v7 = vld [vmem:[%s18790_s11 + $0x1ef0] sm:$0xff] }
 0x6d8   : > { %14878 = vmatmul.mubr.bf16.vlgmr.msra.gmra.mxu1 %v18916_v26  ;;  %14890 = vmatprep.subr.bf16.mxu0 %v16652_v42  ;;  %v16556_v42 = vcombine.high %v888_v32, %v896_v17  ;;  %v1080_v47 = vld [vmem:[%s18790_s11 + $0x1630] sm:$0xff] }
 0x6d9   : > { %14932 = vmatpush1.bf16.msra.mxu1 %v16923_v60  ;;  %14963 = vmatprep.mubr.bf16.mxu1 %v18935_v34  ;;  %v16827_v60 = vcombine.low %v1160_v54, %v1168_v5  ;;  %v1088_v61 = vld [vmem:[%s18790_s11 + $0x1670] sm:$0xff] }
 0x6da   : > { %14933 = vmatprep.subr.bf16.mxu1 %v16908_v16  ;;  %v16812_v16 = vcombine.high %v1144_v4, %v1152_v21  ;;  %v1336_v11 = vld [vmem:[%s18790_s11 + $0x1e30] sm:$0xff] }
 0x6db   : > { %14891 = vmatpush1.bf16.msra.mxu0 %v16651_v52  ;;  %v16555_v52 = vcombine.low %v888_v32, %v896_v17  ;;  %v1344_v6 = vld [vmem:[%s18790_s11 + $0x1e70] sm:$0xff] }
 0x6dc   : > { %14892 = vmatprep.subr.bf16.mxu0 %v16636_v15  ;;  %v16796_v15 = vcombine.high %v1128_v38, %v1136_v10  ;;  %v1064_v31 = vld [vmem:[%s18790_s11 + $0x15b0] sm:$0xff] }
 0x6dd   : > { %14934 = vmatpush1.bf16.msra.mxu1 %v16907_v37  ;;  %v16811_v37 = vcombine.low %v1144_v4, %v1152_v21  ;;  %v1072_v29 = vld [vmem:[%s18790_s11 + $0x15f0] sm:$0xff] }
 0x6de   : > { %14935 = vmatprep.subr.bf16.mxu1 %v16892_v30  ;;  %v17052_v30 = vcombine.high %v1384_v19, %v1392_v24  ;;  %v1320_v54 = vld [vmem:[%s18790_s11 + $0x1db0] sm:$0xff] }
 0x6df   : > { %14893 = vmatpush1.bf16.msra.mxu0 %v16635_v23  ;;  %v16795_v23 = vcombine.low %v1128_v38, %v1136_v10  ;;  %v1328_v5 = vld [vmem:[%s18790_s11 + $0x1df0] sm:$0xff] }
 0x6e0   : > { %14894 = vmatprep.subr.bf16.mxu0 %v16620_v28  ;;  %v16780_v28 = vcombine.high %v1112_v44, %v1120_v14  ;;  %v1048_v32 = vld [vmem:[%s18790_s11 + $0x1530] sm:$0xff] }
 0x6e1   : > { %14936 = vmatpush1.bf16.msra.mxu1 %v16891_v58  ;;  %v17051_v58 = vcombine.low %v1384_v19, %v1392_v24  ;;  %v1056_v17 = vld [vmem:[%s18790_s11 + $0x1570] sm:$0xff] }
 0x6e2   : > { %14937 = vmatprep.subr.bf16.mxu1 %v16876_v49  ;;  %v17036_v49 = vcombine.high %v1368_v41, %v1376_v51  ;;  %v1304_v4 = vld [vmem:[%s18790_s11 + $0x1d30] sm:$0xff] }
 0x6e3   : > { %14895 = vmatpush1.bf16.msra.mxu0 %v16619_v57  ;;  %v16779_v57 = vcombine.low %v1112_v44, %v1120_v14  ;;  %v1312_v21 = vld [vmem:[%s18790_s11 + $0x1d70] sm:$0xff] }
 0x6e4   : > { %14896 = vmatprep.subr.bf16.mxu0 %v16604_v8  ;;  %v16764_v8 = vcombine.high %v1096_v43, %v1104_v45  ;;  %v1032_v38 = vld [vmem:[%s18790_s11 + $0x14b0] sm:$0xff] }
 0x6e5   : > { %14938 = vmatpush1.bf16.msra.mxu1 %v16875_v27  ;;  %v17035_v27 = vcombine.low %v1368_v41, %v1376_v51  ;;  %v1040_v10 = vld [vmem:[%s18790_s11 + $0x14f0] sm:$0xff] }
 0x6e6   : > { %14939 = vmatprep.subr.bf16.mxu1 %v16860_v40  ;;  %v17020_v40 = vcombine.high %v1352_v3, %v1360_v7  ;;  %v1288_v19 = vld [vmem:[%s18790_s11 + $0x1cb0] sm:$0xff] }
 0x6e7   : > { %14897 = vmatpush1.bf16.msra.mxu0 %v16603_v25  ;;  %v16763_v25 = vcombine.low %v1096_v43, %v1104_v45  ;;  %v1296_v24 = vld [vmem:[%s18790_s11 + $0x1cf0] sm:$0xff] }
 0x6e8   : > { %14898 = vmatprep.subr.bf16.mxu0 %v16588_v53  ;;  %v16748_v53 = vcombine.high %v1080_v47, %v1088_v61  ;;  %v1016_v44 = vld [vmem:[%s18790_s11 + $0x1430] sm:$0xff] }
 0x6e9   : > { %14940 = vmatpush1.bf16.msra.mxu1 %v16859_v13  ;;  %v17019_v13 = vcombine.low %v1352_v3, %v1360_v7  ;;  %v1024_v14 = vld [vmem:[%s18790_s11 + $0x1470] sm:$0xff] }
 0x6ea   : > { %14941 = vmatprep.subr.bf16.mxu1 %v16844_v2  ;;  %v17004_v2 = vcombine.high %v1336_v11, %v1344_v6  ;;  %v1272_v41 = vld [vmem:[%s18790_s11 + $0x1c30] sm:$0xff] }
 0x6eb   : > { %14899 = vmatpush1.bf16.msra.mxu0 %v16587_v56  ;;  %v16747_v56 = vcombine.low %v1080_v47, %v1088_v61  ;;  %v1280_v51 = vld [vmem:[%s18790_s11 + $0x1c70] sm:$0xff] }
 0x6ec   : > { %14900 = vmatprep.subr.bf16.mxu0 %v16572_v48  ;;  %v16732_v48 = vcombine.high %v1064_v31, %v1072_v29  ;;  %v1512_v43 = vld [vmem:[%s18790_s11 + $0x23b0] sm:$0xff] }
 0x6ed   : > { %14942 = vmatpush1.bf16.msra.mxu1 %v16843_v39  ;;  %v17003_v39 = vcombine.low %v1336_v11, %v1344_v6  ;;  %v1520_v45 = vld [vmem:[%s18790_s11 + $0x23f0] sm:$0xff] }
 0x6ee   : > { %14943 = vmatprep.subr.bf16.mxu1 %v16828_v1  ;;  %v16988_v1 = vcombine.high %v1320_v54, %v1328_v5  ;;  %v1768_v3 = vld [vmem:[%s18790_s11 + $0x2bb0] sm:$0xff] }
 0x6ef   : > { %14901 = vmatpush1.bf16.msra.mxu0 %v16571_v18  ;;  %v16731_v18 = vcombine.low %v1064_v31, %v1072_v29  ;;  %v1776_v7 = vld [vmem:[%s18790_s11 + $0x2bf0] sm:$0xff] }
 0x6f0   : > { %14902 = vmatprep.subr.bf16.mxu0 %v16556_v42  ;;  %v16716_v42 = vcombine.high %v1048_v32, %v1056_v17  ;;  %v1496_v47 = vld [vmem:[%s18790_s11 + $0x2330] sm:$0xff] }
 0x6f1   : > { %14944 = vmatpush1.bf16.msra.mxu1 %v16827_v60  ;;  %v16987_v60 = vcombine.low %v1320_v54, %v1328_v5  ;;  %v1504_v61 = vld [vmem:[%s18790_s11 + $0x2370] sm:$0xff] }
 0x6f2   : > { %14945 = vmatprep.subr.bf16.mxu1 %v16812_v16  ;;  %v16972_v16 = vcombine.high %v1304_v4, %v1312_v21  ;;  %v1752_v11 = vld [vmem:[%s18790_s11 + $0x2b30] sm:$0xff] }
 0x6f3   : > { %14903 = vmatpush1.bf16.msra.mxu0 %v16555_v52  ;;  %v16715_v52 = vcombine.low %v1048_v32, %v1056_v17  ;;  %v1760_v6 = vld [vmem:[%s18790_s11 + $0x2b70] sm:$0xff] }
 0x6f4   : > { %14904 = vmatprep.subr.bf16.mxu0 %v16796_v15  ;;  %v16700_v15 = vcombine.high %v1032_v38, %v1040_v10  ;;  %v1480_v31 = vld [vmem:[%s18790_s11 + $0x22b0] sm:$0xff] }
 0x6f5   : > { %14946 = vmatpush1.bf16.msra.mxu1 %v16811_v37  ;;  %v16971_v37 = vcombine.low %v1304_v4, %v1312_v21  ;;  %v1488_v29 = vld [vmem:[%s18790_s11 + $0x22f0] sm:$0xff] }
 0x6f6   : > { %14947 = vmatprep.subr.bf16.mxu1 %v17052_v30  ;;  %v16956_v30 = vcombine.high %v1288_v19, %v1296_v24  ;;  %v1736_v54 = vld [vmem:[%s18790_s11 + $0x2ab0] sm:$0xff] }
 0x6f7   : > { %14905 = vmatpush2.bf16.msra.mxu0 %v16795_v23  ;;  %v16699_v23 = vcombine.low %v1032_v38, %v1040_v10  ;;  %v1744_v5 = vld [vmem:[%s18790_s11 + $0x2af0] sm:$0xff] }
 0x6f8   : > { %14906 = vmatprep.subr.bf16.mxu0 %v16780_v28  ;;  %v16684_v28 = vcombine.high %v1016_v44, %v1024_v14  ;;  %v1464_v32 = vld [vmem:[%s18790_s11 + $0x2230] sm:$0xff] }
 0x6f9   : > { %14948 = vmatpush2.bf16.msra.mxu1 %v17051_v58  ;;  %v16955_v58 = vcombine.low %v1288_v19, %v1296_v24  ;;  %v1472_v17 = vld [vmem:[%s18790_s11 + $0x2270] sm:$0xff] }
 0x6fa   : > { %14949 = vmatprep.subr.bf16.mxu1 %v17036_v49  ;;  %v16940_v49 = vcombine.high %v1272_v41, %v1280_v51  ;;  %v1720_v4 = vld [vmem:[%s18790_s11 + $0x2a30] sm:$0xff] }
 0x6fb   : > { %14907 = vmatpush2.bf16.msra.mxu0 %v16779_v57  ;;  %v16683_v57 = vcombine.low %v1016_v44, %v1024_v14  ;;  %v1728_v21 = vld [vmem:[%s18790_s11 + $0x2a70] sm:$0xff] }
 0x6fc   : > { %14908 = vmatprep.subr.bf16.mxu0 %v16764_v8  ;;  %v17180_v8 = vcombine.high %v1512_v43, %v1520_v45  ;;  %v1448_v38 = vld [vmem:[%s18790_s11 + $0x21b0] sm:$0xff] }
 0x6fd   : > { %14950 = vmatpush2.bf16.msra.mxu1 %v17035_v27  ;;  %v16939_v27 = vcombine.low %v1272_v41, %v1280_v51  ;;  %v1456_v10 = vld [vmem:[%s18790_s11 + $0x21f0] sm:$0xff] }
 0x6fe   : > { %14951 = vmatprep.subr.bf16.mxu1 %v17020_v40  ;;  %v17436_v40 = vcombine.high %v1768_v3, %v1776_v7  ;;  %v1704_v19 = vld [vmem:[%s18790_s11 + $0x29b0] sm:$0xff] }
 0x6ff   : > { %14909 = vmatpush2.bf16.msra.mxu0 %v16763_v25  ;;  %v17179_v25 = vcombine.low %v1512_v43, %v1520_v45  ;;  %v1712_v24 = vld [vmem:[%s18790_s11 + $0x29f0] sm:$0xff] }
 0x700   : > { %14910 = vmatprep.subr.bf16.mxu0 %v16748_v53  ;;  %v17164_v53 = vcombine.high %v1496_v47, %v1504_v61  ;;  %v1432_v44 = vld [vmem:[%s18790_s11 + $0x2130] sm:$0xff] }
 0x701   : > { %14952 = vmatpush2.bf16.msra.mxu1 %v17019_v13  ;;  %v17435_v13 = vcombine.low %v1768_v3, %v1776_v7  ;;  %v1440_v14 = vld [vmem:[%s18790_s11 + $0x2170] sm:$0xff] }
 0x702   : > { %14953 = vmatprep.subr.bf16.mxu1 %v17004_v2  ;;  %v17420_v2 = vcombine.high %v1752_v11, %v1760_v6  ;;  %v1688_v41 = vld [vmem:[%s18790_s11 + $0x2930] sm:$0xff] }
 0x703   : > { %14911 = vmatpush2.bf16.msra.mxu0 %v16747_v56  ;;  %v17163_v56 = vcombine.low %v1496_v47, %v1504_v61  ;;  %v1696_v51 = vld [vmem:[%s18790_s11 + $0x2970] sm:$0xff] }
 0x704   : > { %14912 = vmatprep.subr.bf16.mxu0 %v16732_v48  ;;  %v17148_v48 = vcombine.high %v1480_v31, %v1488_v29  ;;  %v1416_v43 = vld [vmem:[%s18790_s11 + $0x20b0] sm:$0xff] }
 0x705   : > { %14954 = vmatpush2.bf16.msra.mxu1 %v17003_v39  ;;  %v17419_v39 = vcombine.low %v1752_v11, %v1760_v6  ;;  %v1424_v45 = vld [vmem:[%s18790_s11 + $0x20f0] sm:$0xff] }
 0x706   : > { %14955 = vmatprep.subr.bf16.mxu1 %v16988_v1  ;;  %v17404_v1 = vcombine.high %v1736_v54, %v1744_v5  ;;  %v1672_v3 = vld [vmem:[%s18790_s11 + $0x28b0] sm:$0xff] }
 0x707   : > { %14913 = vmatpush2.bf16.msra.mxu0 %v16731_v18  ;;  %v17147_v18 = vcombine.low %v1480_v31, %v1488_v29  ;;  %v1680_v7 = vld [vmem:[%s18790_s11 + $0x28f0] sm:$0xff]  ;;  %v20926_v31 = vpop.f32.mrf.mxu1 }
 0x708   : > { %14914 = vmatprep.subr.bf16.mxu0 %v16716_v42  ;;  %v17132_v42 = vcombine.high %v1464_v32, %v1472_v17  ;;  %v1400_v47 = vld [vmem:[%s18790_s11 + $0x2030] sm:$0xff] }
 0x709   : > { %14956 = vmatpush2.bf16.msra.mxu1 %v16987_v60  ;;  %v17403_v60 = vcombine.low %v1736_v54, %v1744_v5  ;;  %v1408_v61 = vld [vmem:[%s18790_s11 + $0x2070] sm:$0xff] }
 0x70a   : > { %14957 = vmatprep.subr.bf16.mxu1 %v16972_v16  ;;  %v17388_v16 = vcombine.high %v1720_v4, %v1728_v21  ;;  %v1656_v11 = vld [vmem:[%s18790_s11 + $0x2830] sm:$0xff] }
 0x70b   : > { %14915 = vmatpush2.bf16.msra.mxu0 %v16715_v52  ;;  %v17131_v52 = vcombine.low %v1464_v32, %v1472_v17  ;;  %v1664_v6 = vld [vmem:[%s18790_s11 + $0x2870] sm:$0xff] }
 0x70c   : > { %14916 = vmatprep.subr.bf16.mxu0 %v16700_v15  ;;  %v17116_v15 = vcombine.high %v1448_v38, %v1456_v10  ;;  %v17324_v29 = vcombine.high %v1656_v11, %v1664_v6  ;;  %v1640_v54 = vld [vmem:[%s18790_s11 + $0x27b0] sm:$0xff]  ;;  %v17323_v32 = vcombine.low %v1656_v11, %v1664_v6 }
 0x70d   : > { %14958 = vmatpush2.bf16.msra.mxu1 %v16971_v37  ;;  %v17387_v37 = vcombine.low %v1720_v4, %v1728_v21  ;;  %v1648_v5 = vld [vmem:[%s18790_s11 + $0x27f0] sm:$0xff]  ;;  %v20934_v4 = vpop.f32.mrf.mxu1 }
 0x70e   : > { %14959 = vmatprep.subr.bf16.mxu1 %v16956_v30  ;;  %v17372_v30 = vcombine.high %v1704_v19, %v1712_v24  ;;  %v17308_v17 = vcombine.high %v1640_v54, %v1648_v5  ;;  %v1576_v11 = vld [vmem:[%s18790_s11 + $0x25b0] sm:$0xff] }
 0x70f   : > { %14917 = vmatpush2.bf16.msra.mxu0 %v16699_v23  ;;  %v17115_v23 = vcombine.low %v1448_v38, %v1456_v10  ;;  %v17307_v38 = vcombine.low %v1640_v54, %v1648_v5  ;;  %v1584_v6 = vld [vmem:[%s18790_s11 + $0x25f0] sm:$0xff] }
 0x710   : > { %14918 = vmatprep.subr.bf16.mxu0 %v16684_v28  ;;  %v17100_v28 = vcombine.high %v1432_v44, %v1440_v14 }
 0x711   : > { %14960 = vmatpush2.bf16.msra.mxu1 %v16955_v58  ;;  %v17371_v58 = vcombine.low %v1704_v19, %v1712_v24 }
 0x712   : > { %14961 = vmatprep.subr.bf16.mxu1 %v16940_v49  ;;  %v17356_v49 = vcombine.high %v1688_v41, %v1696_v51 }
 0x713   : > { %14919 = vmatpush2.bf16.msra.mxu0 %v16683_v57  ;;  %v17099_v57 = vcombine.low %v1432_v44, %v1440_v14  ;;  %v1864_v44 = vld [vmem:[%s18790_s11 + $0x2eb0] sm:$0xff] }
 0x714   : > { %14974 = vmatprep.subr.bf16.mxu0 %v17180_v8  ;;  %v17084_v8 = vcombine.high %v1416_v43, %v1424_v45  ;;  %v1872_v14 = vld [vmem:[%s18790_s11 + $0x2ef0] sm:$0xff] }
 0x715   : > { %14962 = vmatpush2.bf16.msra.mxu1 %v16939_v27  ;;  %v17355_v27 = vcombine.low %v1688_v41, %v1696_v51 }
 0x716   : > { %15017 = vmatprep.subr.bf16.mxu1 %v17436_v40  ;;  %14921 = vmatmul.mubr.bf16.vlgmr.msra.gmra.mxu0 %v19001_v46  ;;  %v17340_v40 = vcombine.high %v1672_v3, %v1680_v7 }
 0x717   : > { %14975 = vmatpush1.bf16.msra.mxu0 %v17179_v25  ;;  %15006 = vmatprep.mubr.bf16.mxu0 %v19024_v62  ;;  %v17083_v25 = vcombine.low %v1416_v43, %v1424_v45  ;;  %v1592_v43 = vld [vmem:[%s18790_s11 + $0x2630] sm:$0xff] }
 0x718   : > { %14964 = vmatmul.mubr.bf16.vlgmr.msra.gmra.mxu1 %v19012_v50  ;;  %14976 = vmatprep.subr.bf16.mxu0 %v17164_v53  ;;  %v17339_v53 = vcombine.low %v1672_v3, %v1680_v7  ;;  %v1600_v45 = vld [vmem:[%s18790_s11 + $0x2670] sm:$0xff] }
 0x719   : > { %15018 = vmatpush1.bf16.msra.mxu1 %v17435_v13  ;;  %15049 = vmatprep.mubr.bf16.mxu1 %v19031_v63  ;;  %v20924_v13 = vpop.f32.mrf.mxu0  ;;  %v1848_v7 = vld [vmem:[%s18790_s11 + $0x2e30] sm:$0xff]  ;;  %v17259_v54 = vcombine.low %v1592_v43, %v1600_v45 }
 0x71a   : > { %15019 = vmatprep.subr.bf16.mxu1 %v17420_v2  ;;  %v17068_v2 = vcombine.high %v1400_v47, %v1408_v61 }
 0x71b   : > { %14977 = vmatpush1.bf16.msra.mxu0 %v17163_v56  ;;  %v1896_v56 = vld [vmem:[%s18790_s11 + $0x2fb0] sm:$0xff] }
 0x71c   : > { %14978 = vmatprep.subr.bf16.mxu0 %v17148_v48  ;;  %v17067_v48 = vcombine.low %v1400_v47, %v1408_v61  ;;  %v17260_v47 = vcombine.high %v1592_v43, %v1600_v45  ;;  %v14536_v43 = vadd.f32 %v20926_v31, %v20924_v13 }
 0x71d   : > { %15020 = vmatpush1.bf16.msra.mxu1 %v17419_v39  ;;  %v1904_v39 = vld [vmem:[%s18790_s11 + $0x2ff0] sm:$0xff] }
 0x71e   : > { %15021 = vmatprep.subr.bf16.mxu1 %v17404_v1  ;;  %v20932_v1 = vpop.f32.mrf.mxu0  ;;  %v17564_v21 = vcombine.high %v1896_v56, %v1904_v39  ;;  %v17563_v19 = vcombine.low %v1896_v56, %v1904_v39  ;;  %v17244_v56 = vcombine.high %v1576_v11, %v1584_v6 }
 0x71f   : > { %14979 = vmatpush1.bf16.msra.mxu0 %v17147_v18  ;;  %v1624_v18 = vld [vmem:[%s18790_s11 + $0x2730] sm:$0xff] }
 0x720   : > { %14980 = vmatprep.subr.bf16.mxu0 %v17132_v42  ;;  %v1880_v42 = vld [vmem:[%s18790_s11 + $0x2f30] sm:$0xff]  ;;  %v20940_v10 = vpop.f32.mrf.mxu0 }
 0x721   : > { %15022 = vmatpush1.bf16.msra.mxu1 %v17403_v60  ;;  %v1632_v60 = vld [vmem:[%s18790_s11 + $0x2770] sm:$0xff] }
 0x722   : > { %15023 = vmatprep.subr.bf16.mxu1 %v17388_v16  ;;  %v1888_v16 = vld [vmem:[%s18790_s11 + $0x2f70] sm:$0xff]  ;;  %v17292_v24 = vcombine.high %v1624_v18, %v1632_v60  ;;  %v17291_v41 = vcombine.low %v1624_v18, %v1632_v60  ;;  %v20948_v51 = vpop.f32.mrf.mxu0 }
 0x723   : > { %14981 = vmatpush1.bf16.msra.mxu0 %v17131_v52  ;;  %v20942_v52 = vpop.f32.mrf.mxu1  ;;  %v1824_v18 = vld [vmem:[%s18790_s11 + $0x2d70] sm:$0xff] }
 0x724   : > { %14982 = vmatprep.subr.bf16.mxu0 %v17116_v15  ;;  %v1608_v15 = vld [vmem:[%s18790_s11 + $0x26b0] sm:$0xff]  ;;  %v14578_v3 = vpop.f32.mrf.mxu0 }
 0x725   : > { %15024 = vmatpush1.bf16.msra.mxu1 %v17387_v37  ;;  %v17548_v37 = vcombine.high %v1880_v42, %v1888_v16 }
 0x726   : > { %15025 = vmatprep.subr.bf16.mxu1 %v17372_v30  ;;  %v1616_v30 = vld [vmem:[%s18790_s11 + $0x26f0] sm:$0xff] }
 0x727   : > { %14983 = vmatpush1.bf16.msra.mxu0 %v17115_v23  ;;  %v17547_v23 = vcombine.low %v1880_v42, %v1888_v16  ;;  %v17243_v42 = vcombine.low %v1576_v11, %v1584_v6  ;;  %v14579_v11 = vadd.f32 %v14578_v3, %v14536_v43 }
 0x728   : > { %14984 = vmatprep.subr.bf16.mxu0 %v17100_v28  ;;  %v20950_v28 = vpop.f32.mrf.mxu1 }
 0x729   : > { %15026 = vmatpush1.bf16.msra.mxu1 %v17371_v58  ;;  %v17276_v58 = vcombine.high %v1608_v15, %v1616_v30  ;;  %v14542_v3 = vadd.f32 %v20950_v28, %v20948_v51  ;;  %v2008_v28 = vld [vmem:[%s18790_s11 + $0x3330] sm:$0xff] }
 0x72a   : > { %15027 = vmatprep.subr.bf16.mxu1 %v17356_v49  ;;  %v17532_v49 = vcombine.high %v1864_v44, %v1872_v14 }
 0x72b   : > { %14985 = vmatpush1.bf16.msra.mxu0 %v17099_v57  ;;  %v1856_v57 = vld [vmem:[%s18790_s11 + $0x2e70] sm:$0xff] }
 0x72c   : > { %14986 = vmatprep.subr.bf16.mxu0 %v17084_v8  ;;  %v17275_v8 = vcombine.low %v1608_v15, %v1616_v30  ;;  %v17516_v61 = vcombine.high %v1848_v7, %v1856_v57  ;;  %v17515_v5 = vcombine.low %v1848_v7, %v1856_v57  ;;  %v1800_v30 = vld [vmem:[%s18790_s11 + $0x2cb0] sm:$0xff] }
 0x72d   : > { %15028 = vmatpush1.bf16.msra.mxu1 %v17355_v27  ;;  %v20956_v27 = vpop.f32.mrf.mxu1  ;;  %v1528_v57 = vld [vmem:[%s18790_s11 + $0x2430] sm:$0xff] }
 0x72e   : > { %15029 = vmatprep.subr.bf16.mxu1 %v17340_v40  ;;  %v17531_v40 = vcombine.low %v1864_v44, %v1872_v14  ;;  %v1808_v44 = vld [vmem:[%s18790_s11 + $0x2cf0] sm:$0xff] }
 0x72f   : > { %14987 = vmatpush1.bf16.msra.mxu0 %v17083_v25  ;;  %v14580_v25 = vpop.f32.mrf.mxu0  ;;  %v17468_v7 = vcombine.high %v1800_v30, %v1808_v44  ;;  %v17467_v13 = vcombine.low %v1800_v30, %v1808_v44 }
 0x730   : > { %14988 = vmatprep.subr.bf16.mxu0 %v17068_v2  ;;  %v1840_v2 = vld [vmem:[%s18790_s11 + $0x2df0] sm:$0xff] }
 0x731   : > { %15030 = vmatpush1.bf16.msra.mxu1 %v17339_v53  ;;  %v1832_v53 = vld [vmem:[%s18790_s11 + $0x2db0] sm:$0xff] }
 0x732   : > { %15031 = vmatprep.subr.bf16.mxu1 %v17324_v29  ;;  %v20962_v29 = vpop.f32.mrf.mxu1  ;;  %v17500_v39 = vcombine.high %v1832_v53, %v1840_v2  ;;  %v17499_v16 = vcombine.low %v1832_v53, %v1840_v2  ;;  %v14540_v2 = vadd.f32 %v20942_v52, %v20940_v10 }
 0x733   : > { %14989 = vmatpush1.bf16.msra.mxu0 %v17067_v48  ;;  %v1560_v48 = vld [vmem:[%s18790_s11 + $0x2530] sm:$0xff] }
 0x734   : > { %14990 = vmatprep.subr.bf16.mxu0 %v17308_v17  ;;  %v14582_v17 = vpop.f32.mrf.mxu0  ;;  %v20968_v60 = vpop.f32.mrf.mxu1 }
 0x735   : > { %15032 = vmatpush1.bf16.msra.mxu1 %v17323_v32  ;;  %v1568_v32 = vld [vmem:[%s18790_s11 + $0x2570] sm:$0xff] }
 0x736   : > { %15033 = vmatprep.subr.bf16.mxu1 %v17564_v21  ;;  %v1816_v21 = vld [vmem:[%s18790_s11 + $0x2d30] sm:$0xff]  ;;  %v14584_v15 = vpop.f32.mrf.mxu0  ;;  %v20974_v14 = vpop.f32.mrf.mxu1 }
 0x737   : > { %14991 = vmatpush2.bf16.msra.mxu0 %v17307_v38  ;;  %v17228_v38 = vcombine.high %v1560_v48, %v1568_v32 }
 0x738   : > { %14992 = vmatprep.subr.bf16.mxu0 %v17292_v24  ;;  %v1544_v24 = vld [vmem:[%s18790_s11 + $0x24b0] sm:$0xff]  ;;  %v14707_v45 = vpop.f32.mrf.mxu1 }
 0x739   : > { %15034 = vmatpush2.bf16.msra.mxu1 %v17563_v19  ;;  %v17484_v19 = vcombine.high %v1816_v21, %v1824_v18 }
 0x73a   : > { %15035 = vmatprep.subr.bf16.mxu1 %v17548_v37  ;;  %v1552_v37 = vld [vmem:[%s18790_s11 + $0x24f0] sm:$0xff] }
 0x73b   : > { %14993 = vmatpush2.bf16.msra.mxu0 %v17291_v41  ;;  %v17227_v41 = vcombine.low %v1560_v48, %v1568_v32  ;;  %v17211_v6 = vcombine.low %v1544_v24, %v1552_v37  ;;  %v2032_v48 = vld [vmem:[%s18790_s11 + $0x33f0] sm:$0xff]  ;;  %v14622_v32 = vadd.f32 %v20956_v27, %v14579_v11 }
 0x73c   : > { %14994 = vmatprep.subr.bf16.mxu0 %v17276_v58  ;;  %v17483_v58 = vcombine.low %v1816_v21, %v1824_v18  ;;  %v14583_v21 = vadd.f32 %v14582_v17, %v14540_v2  ;;  %v2016_v27 = vld [vmem:[%s18790_s11 + $0x3370] sm:$0xff] }
 0x73d   : > { %15036 = vmatpush2.bf16.msra.mxu1 %v17547_v23  ;;  %v14664_v23 = vpop.f32.mrf.mxu0  ;;  %v2264_v17 = vld [vmem:[%s18790_s11 + $0x3b30] sm:$0xff] }
 0x73e   : > { %15037 = vmatprep.subr.bf16.mxu1 %v17532_v49  ;;  %v17212_v49 = vcombine.high %v1544_v24, %v1552_v37  ;;  %v2272_v24 = vld [vmem:[%s18790_s11 + $0x3b70] sm:$0xff]  ;;  %v14626_v37 = vadd.f32 %v20968_v60, %v14583_v21 }
 0x73f   : > { %14995 = vmatpush2.bf16.msra.mxu0 %v17275_v8  ;;  %v1536_v8 = vld [vmem:[%s18790_s11 + $0x2470] sm:$0xff]  ;;  %v14666_v53 = vpop.f32.mrf.mxu0  ;;  %v17932_v60 = vcombine.high %v2264_v17, %v2272_v24 }
 0x740   : > { %14996 = vmatprep.subr.bf16.mxu0 %v17260_v47  ;;  %v1792_v47 = vld [vmem:[%s18790_s11 + $0x2c70] sm:$0xff]  ;;  %v17196_v31 = vcombine.high %v1528_v57, %v1536_v8  ;;  %v17195_v10 = vcombine.low %v1528_v57, %v1536_v8 }
 0x741   : > { %15038 = vmatpush2.bf16.msra.mxu1 %v17531_v40  ;;  %v1784_v40 = vld [vmem:[%s18790_s11 + $0x2c30] sm:$0xff]  ;;  %v14668_v52 = vpop.f32.mrf.mxu0 }
 0x742   : > { %15039 = vmatprep.subr.bf16.mxu1 %v17516_v61  ;;  %v14538_v61 = vadd.f32 %v20934_v4, %v20932_v1  ;;  %v2280_v1 = vld [vmem:[%s18790_s11 + $0x3bb0] sm:$0xff]  ;;  %v14669_v43 = vadd.f32 %v14668_v52, %v14626_v37 }
 0x743   : > { %14997 = vmatpush2.bf16.msra.mxu0 %v17259_v54  ;;  %v2288_v4 = vld [vmem:[%s18790_s11 + $0x3bf0] sm:$0xff] }
 0x744   : > { %14998 = vmatprep.subr.bf16.mxu0 %v17244_v56  ;;  %v14581_v54 = vadd.f32 %v14580_v25, %v14538_v61  ;;  %v17452_v56 = vcombine.high %v1784_v40, %v1792_v47  ;;  %v17451_v25 = vcombine.low %v1784_v40, %v1792_v47  ;;  %v17948_v51 = vcombine.high %v2280_v1, %v2288_v4  ;;  %v2000_v57 = vld [vmem:[%s18790_s11 + $0x32f0] sm:$0xff] }
 0x745   : > { %15040 = vmatpush2.bf16.msra.mxu1 %v17515_v5  ;;  %v14709_v5 = vpop.f32.mrf.mxu1  ;;  %v2248_v8 = vld [vmem:[%s18790_s11 + $0x3ab0] sm:$0xff]  ;;  %v17675_v61 = vcombine.low %v2008_v28, %v2016_v27 }
 0x746   : > { %15041 = vmatprep.subr.bf16.mxu1 %v17500_v39  ;;  %v2024_v39 = vld [vmem:[%s18790_s11 + $0x33b0] sm:$0xff] }
 0x747   : > { %14999 = vmatpush2.bf16.msra.mxu0 %v17243_v42  ;;  %v17692_v18 = vcombine.high %v2024_v39, %v2032_v48  ;;  %v14624_v42 = vadd.f32 %v20962_v29, %v14581_v54  ;;  %v17691_v44 = vcombine.low %v2024_v39, %v2032_v48  ;;  %v17947_v29 = vcombine.low %v2280_v1, %v2288_v4  ;;  %v2256_v40 = vld [vmem:[%s18790_s11 + $0x3af0] sm:$0xff] }
 0x748   : > { %15000 = vmatprep.subr.bf16.mxu0 %v17228_v38  ;;  %v14665_v38 = vadd.f32 %v14664_v23, %v14622_v32  ;;  %v21000_v23 = vld [vmem:[%s18790_s11 + $0x32b0] sm:$0xff]  ;;  %v17916_v54 = vcombine.high %v2248_v8, %v2256_v40 }
 0x749   : > { %15042 = vmatpush2.bf16.msra.mxu1 %v17499_v16  ;;  %v14585_v16 = vadd.f32 %v14584_v15, %v14542_v3  ;;  %v14667_v30 = vadd.f32 %v14666_v53, %v14624_v42  ;;  %v17676_v15 = vcombine.high %v2008_v28, %v2016_v27  ;;  %v17660_v2 = vcombine.high %v21000_v23, %v2000_v57  ;;  %v1976_v1 = vld [vmem:[%s18790_s11 + $0x3230] sm:$0xff]  ;;  %v333_v3 = vld [vmem:[#allocation2 + $0xb8] sm:$0xff] }
 0x74a   : > { %15043 = vmatprep.subr.bf16.mxu1 %v17484_v19  ;;  %v14711_v19 = vpop.f32.mrf.mxu1  ;;  %v1984_v4 = vld [vmem:[%s18790_s11 + $0x3270] sm:$0xff]  ;;  %v17659_v21 = vcombine.low %v21000_v23, %v2000_v57  ;;  %v17915_v28 = vcombine.low %v2248_v8, %v2256_v40 }
 0x74b   : > { %15001 = vmatpush2.bf16.msra.mxu0 %v17227_v41  ;;  %v14670_v41 = vpop.f32.mrf.mxu0  ;;  %v14710_v11 = vadd.f32 %v14709_v5, %v14667_v30  ;;  %v2240_v52 = vld [vmem:[%s18790_s11 + $0x3a70] sm:$0xff]  ;;  %v17644_v27 = vcombine.high %v1976_v1, %v1984_v4 }
 0x74c   : > { %15002 = vmatprep.subr.bf16.mxu0 %v17212_v49  ;;  %v14708_v49 = vadd.f32 %v14707_v45, %v14665_v38  ;;  %v2216_v23 = vld [vmem:[%s18790_s11 + $0x39b0] sm:$0xff] }
 0x74d   : > { %15044 = vmatpush2.bf16.msra.mxu1 %v17483_v58  ;;  %v14628_v58 = vadd.f32 %v20974_v14, %v14585_v16  ;;  %v332_v14 = vld [vmem:[#allocation2 + $0xe8] sm:$0xff] }
 0x74e   : > { %15045 = vmatprep.subr.bf16.mxu1 %v17468_v7  ;;  %v14713_v7 = vpop.f32.mrf.mxu1 }
 0x74f   : > { %15003 = vmatpush2.bf16.msra.mxu0 %v17211_v6  ;;  %v14671_v6 = vadd.f32 %v14670_v41, %v14628_v58  ;;  %v1968_v41 = vld [vmem:[%s18790_s11 + $0x31f0] sm:$0xff] }
 0x750   : > { %15004 = vmatprep.subr.bf16.mxu0 %v17196_v31  ;;  %v17931_v31 = vcombine.low %v2264_v17, %v2272_v24  ;;  %v2224_v58 = vld [vmem:[%s18790_s11 + $0x39f0] sm:$0xff] }
 0x751   : > { %15046 = vmatpush2.bf16.msra.mxu1 %v17467_v13  ;;  %v17884_v40 = vcombine.high %v2216_v23, %v2224_v58 }
 0x752   : > { %15047 = vmatprep.subr.bf16.mxu1 %v17452_v56  ;;  %v14712_v56 = vadd.f32 %v14711_v19, %v14669_v43  ;;  %v348_v19 = vld [vmem:[#allocation2 + $0x10] sm:$0xff] }
 0x753   : > { %15005 = vmatpush2.bf16.msra.mxu0 %v17195_v10  ;;  %v2232_v10 = vld [vmem:[%s18790_s11 + $0x3a30] sm:$0xff] }
 0x754   : > { %15060 = vmatprep.subr.bf16.mxu0 %v17692_v18  ;;  %v17900_v30 = vcombine.high %v2232_v10, %v2240_v52 }
 0x755   : > { %15048 = vmatpush2.bf16.msra.mxu1 %v17451_v25  ;;  %v14714_v25 = vadd.f32 %v14713_v7, %v14671_v6  ;;  %v17643_v7 = vcombine.low %v1976_v1, %v1984_v4  ;;  %v2208_v6 = vld [vmem:[%s18790_s11 + $0x3970] sm:$0xff] }
 0x756   : > { %15103 = vmatprep.subr.bf16.mxu1 %v17948_v51  ;;  %v14750_v47 = vpop.f32.mrf.mxu0  ;;  %15007 = vmatmul.mubr.bf16.vlgmr.msra.gmra.mxu0 %v19097_v20  ;;  %v1912_v4 = vld [vmem:[%s18790_s11 + $0x3030] sm:$0xff] }
 0x757   : > { %v14751_v53 = vadd.f32 %v14750_v47, %v14708_v49  ;;  %15061 = vmatpush1.bf16.msra.mxu0 %v17691_v44  ;;  %15092 = vmatprep.mubr.bf16.mxu0 %v19120_v35  ;;  %v1960_v44 = vld [vmem:[%s18790_s11 + $0x31b0] sm:$0xff] }
 0x758   : > { %v14793_v13 = vpop.f32.mrf.mxu1  ;;  %15050 = vmatmul.mubr.bf16.vlgmr.msra.gmra.mxu1 %v19108_v55  ;;  %v14752_v45 = vpop.f32.mrf.mxu0  ;;  %15062 = vmatprep.subr.bf16.mxu0 %v17676_v15  ;;  %v17628_v57 = vcombine.high %v1960_v44, %v1968_v41  ;;  %v1944_v47 = vld [vmem:[%s18790_s11 + $0x3130] sm:$0xff] }
 0x759   : > { %15104 = vmatpush1.bf16.msra.mxu1 %v17947_v29  ;;  %v14794_v5 = vadd.f32 %v14793_v13, %v14751_v53  ;;  %v14753_v39 = vadd.f32 %v14752_v45, %v14710_v11  ;;  %15135 = vmatprep.mubr.bf16.mxu1 %v19127_v36  ;;  %v349_v29 = vld [vmem:[#allocation2 + $0x28] sm:$0xff]  ;;  %v2200_v11 = vld [vmem:[%s18790_s11 + $0x3930] sm:$0xff]  ;;  %v17627_v53 = vcombine.low %v1960_v44, %v1968_v41 }
 0x75a   : > { %v14795_v48 = vpop.f32.mrf.mxu1  ;;  %15105 = vmatprep.subr.bf16.mxu1 %v17932_v60  ;;  %v14754_v32 = vpop.f32.mrf.mxu0  ;;  %v17899_v60 = vcombine.low %v2232_v10, %v2240_v52  ;;  %v17883_v13 = vcombine.low %v2216_v23, %v2224_v58  ;;  %v17868_v45 = vcombine.high %v2200_v11, %v2208_v6  ;;  %v2400_v44 = vld [vmem:[%s18790_s11 + $0x3f70] sm:$0xff] }
 0x75b   : > { %v15500_v18 = vadd.f32 %v14794_v5, %v332_v14  ;;  %v14796_v42 = vadd.f32 %v14795_v48, %v14753_v39  ;;  %v14755_v16 = vadd.f32 %v14754_v32, %v14712_v56  ;;  %15063 = vmatpush1.bf16.msra.mxu0 %v17675_v61  ;;  %v1952_v61 = vld [vmem:[%s18790_s11 + $0x3170] sm:$0xff]  ;;  %v17867_v39 = vcombine.low %v2200_v11, %v2208_v6 }
 0x75c   : > { %v14797_v38 = vpop.f32.mrf.mxu1  ;;  %v14756_v51 = vpop.f32.mrf.mxu0  ;;  %15064 = vmatprep.subr.bf16.mxu0 %v17660_v2  ;;  %v17612_v14 = vcombine.high %v1944_v47, %v1952_v61  ;;  %v1936_v2 = vld [vmem:[%s18790_s11 + $0x30f0] sm:$0xff]  ;;  %v17611_v5 = vcombine.low %v1944_v47, %v1952_v61 }
 0x75d   : > { %15106 = vmatpush1.bf16.msra.mxu1 %v17931_v31  ;;  %15532 = vst [vmem:[#allocation2 + $0xe8] sm:$0xff] %v15500_v18  ;;  %v15501_v17 = vadd.f32 %v14796_v42, %v333_v3  ;;  %v14798_v24 = vadd.f32 %v14797_v38, %v14755_v16  ;;  %v14757_v37 = vadd.f32 %v14756_v51, %v14714_v25  ;;  %v1928_v31 = vld [vmem:[%s18790_s11 + $0x30b0] sm:$0xff] }
 0x75e   : > { %15107 = vmatprep.subr.bf16.mxu1 %v17916_v54  ;;  %v14799_v15 = vpop.f32.mrf.mxu1  ;;  %v2184_v54 = vld [vmem:[%s18790_s11 + $0x38b0] sm:$0xff]  ;;  %v17596_v48 = vcombine.high %v1928_v31, %v1936_v2  ;;  %v17595_v10 = vcombine.low %v1928_v31, %v1936_v2 }
 0x75f   : > { %15533 = vst [vmem:[#allocation2 + $0xb8] sm:$0xff] %v15501_v17  ;;  %v15516_v49 = vadd.f32 %v14798_v24, %v348_v19  ;;  %v14800_v43 = vadd.f32 %v14799_v15, %v14757_v37  ;;  %15065 = vmatpush1.bf16.msra.mxu0 %v17659_v21  ;;  %v2192_v56 = vld [vmem:[%s18790_s11 + $0x38f0] sm:$0xff] }
 0x760   : > { %15066 = vmatprep.subr.bf16.mxu0 %v17644_v27  ;;  %v17852_v1 = vcombine.high %v2184_v54, %v2192_v56  ;;  %v1920_v3 = vld [vmem:[%s18790_s11 + $0x3070] sm:$0xff]  ;;  %v17851_v52 = vcombine.low %v2184_v54, %v2192_v56 }
 0x761   : > { %15108 = vmatpush1.bf16.msra.mxu1 %v17915_v28  ;;  %15548 = vst [vmem:[#allocation2 + $0x10] sm:$0xff] %v15516_v49  ;;  %v15517_v8 = vadd.f32 %v14800_v43, %v349_v29  ;;  %v2168_v32 = vld [vmem:[%s18790_s11 + $0x3830] sm:$0xff]  ;;  %v17580_v25 = vcombine.high %v1912_v4, %v1920_v3  ;;  %v17579_v51 = vcombine.low %v1912_v4, %v1920_v3 }
 0x762   : > { %15109 = vmatprep.subr.bf16.mxu1 %v17900_v30  ;;  %v2176_v21 = vld [vmem:[%s18790_s11 + $0x3870] sm:$0xff] }
 0x763   : > { %15549 = vst [vmem:[#allocation2 + $0x28] sm:$0xff] %v15517_v8  ;;  %15067 = vmatpush1.bf16.msra.mxu0 %v17643_v7  ;;  %v17836_v18 = vcombine.high %v2168_v32, %v2176_v21  ;;  %v2152_v42 = vld [vmem:[%s18790_s11 + $0x37b0] sm:$0xff]  ;;  %v17835_v28 = vcombine.low %v2168_v32, %v2176_v21 }
 0x764   : > { %15068 = vmatprep.subr.bf16.mxu0 %v17628_v57  ;;  %v2160_v16 = vld [vmem:[%s18790_s11 + $0x37f0] sm:$0xff] }
 0x765   : > { %15110 = vmatpush1.bf16.msra.mxu1 %v17899_v60  ;;  %v2408_v38 = vld [vmem:[%s18790_s11 + $0x3fb0] sm:$0xff]  ;;  %v17820_v27 = vcombine.high %v2152_v42, %v2160_v16  ;;  %v17819_v41 = vcombine.low %v2152_v42, %v2160_v16 }
 0x766   : > { %15111 = vmatprep.subr.bf16.mxu1 %v17884_v40  ;;  %v2416_v19 = vld [vmem:[%s18790_s11 + $0x3ff0] sm:$0xff] }
 0x767   : > { %15069 = vmatpush1.bf16.msra.mxu0 %v17627_v53  ;;  %v18076_v17 = vcombine.high %v2408_v38, %v2416_v19  ;;  %v2136_v24 = vld [vmem:[%s18790_s11 + $0x3730] sm:$0xff]  ;;  %v18075_v29 = vcombine.low %v2408_v38, %v2416_v19 }
 0x768   : > { %15070 = vmatprep.subr.bf16.mxu0 %v17612_v14  ;;  %v2144_v37 = vld [vmem:[%s18790_s11 + $0x3770] sm:$0xff] }
 0x769   : > { %15112 = vmatpush1.bf16.msra.mxu1 %v17883_v13  ;;  %v2392_v30 = vld [vmem:[%s18790_s11 + $0x3f30] sm:$0xff]  ;;  %v17804_v15 = vcombine.high %v2136_v24, %v2144_v37  ;;  %v17803_v60 = vcombine.low %v2136_v24, %v2144_v37 }
 0x76a   : > { %15113 = vmatprep.subr.bf16.mxu1 %v17868_v45  ;;  %v18060_v23 = vcombine.high %v2392_v30, %v2400_v44  ;;  %v2120_v58 = vld [vmem:[%s18790_s11 + $0x36b0] sm:$0xff]  ;;  %v18059_v57 = vcombine.low %v2392_v30, %v2400_v44 }
 0x76b   : > { %15071 = vmatpush1.bf16.msra.mxu0 %v17611_v5  ;;  %v2128_v49 = vld [vmem:[%s18790_s11 + $0x36f0] sm:$0xff] }
 0x76c   : > { %15072 = vmatprep.subr.bf16.mxu0 %v17596_v48  ;;  %v2376_v43 = vld [vmem:[%s18790_s11 + $0x3eb0] sm:$0xff]  ;;  %v17788_v8 = vcombine.high %v2120_v58, %v2128_v49  ;;  %v17787_v53 = vcombine.low %v2120_v58, %v2128_v49  ;;  %v489_v58 = vld [vmem:[%s18790_s11 + $0x3b8] sm:$0xff] }
 0x76d   : > { %15114 = vmatpush1.bf16.msra.mxu1 %v17867_v39  ;;  %v2384_v7 = vld [vmem:[%s18790_s11 + $0x3ef0] sm:$0xff]  ;;  %v497_v49 = vld [vmem:[%s18790_s11 + $0x3f8] sm:$0xff] }
 0x76e   : > { %15115 = vmatprep.subr.bf16.mxu1 %v17852_v1  ;;  %v18044_v40 = vcombine.high %v2376_v43, %v2384_v7  ;;  %v2104_v47 = vld [vmem:[%s18790_s11 + $0x3630] sm:$0xff]  ;;  %v18043_v13 = vcombine.low %v2376_v43, %v2384_v7  ;;  %v745_v43 = vld [vmem:[%s18790_s11 + $0xbb8] sm:$0xff] }
 0x76f   : > { %15073 = vmatpush1.bf16.msra.mxu0 %v17595_v10  ;;  %v2112_v61 = vld [vmem:[%s18790_s11 + $0x3670] sm:$0xff]  ;;  %v753_v7 = vld [vmem:[%s18790_s11 + $0xbf8] sm:$0xff] }
 0x770   : > { %15074 = vmatprep.subr.bf16.mxu0 %v17580_v25  ;;  %v2360_v11 = vld [vmem:[%s18790_s11 + $0x3e30] sm:$0xff]  ;;  %v17772_v14 = vcombine.high %v2104_v47, %v2112_v61  ;;  %v17771_v5 = vcombine.low %v2104_v47, %v2112_v61  ;;  %v473_v47 = vld [vmem:[%s18790_s11 + $0x338] sm:$0xff] }
 0x771   : > { %15116 = vmatpush1.bf16.msra.mxu1 %v17851_v52  ;;  %v2368_v6 = vld [vmem:[%s18790_s11 + $0x3e70] sm:$0xff]  ;;  %v481_v61 = vld [vmem:[%s18790_s11 + $0x378] sm:$0xff] }
 0x772   : > { %15117 = vmatprep.subr.bf16.mxu1 %v17836_v18  ;;  %v18028_v45 = vcombine.high %v2360_v11, %v2368_v6  ;;  %v2088_v31 = vld [vmem:[%s18790_s11 + $0x35b0] sm:$0xff]  ;;  %v18027_v39 = vcombine.low %v2360_v11, %v2368_v6  ;;  %v729_v11 = vld [vmem:[%s18790_s11 + $0xb38] sm:$0xff] }
 0x773   : > { %15075 = vmatpush1.bf16.msra.mxu0 %v17579_v51  ;;  %v2096_v2 = vld [vmem:[%s18790_s11 + $0x35f0] sm:$0xff]  ;;  %v737_v6 = vld [vmem:[%s18790_s11 + $0xb78] sm:$0xff] }
 0x774   : > { %15076 = vmatprep.subr.bf16.mxu0 %v17820_v27  ;;  %v2344_v54 = vld [vmem:[%s18790_s11 + $0x3db0] sm:$0xff]  ;;  %v17756_v48 = vcombine.high %v2088_v31, %v2096_v2  ;;  %v17755_v10 = vcombine.low %v2088_v31, %v2096_v2  ;;  %v457_v31 = vld [vmem:[%s18790_s11 + $0x2b8] sm:$0xff] }
 0x775   : > { %15118 = vmatpush1.bf16.msra.mxu1 %v17835_v28  ;;  %v2352_v56 = vld [vmem:[%s18790_s11 + $0x3df0] sm:$0xff]  ;;  %v465_v2 = vld [vmem:[%s18790_s11 + $0x2f8] sm:$0xff] }
 0x776   : > { %15119 = vmatprep.subr.bf16.mxu1 %v18076_v17  ;;  %v18012_v1 = vcombine.high %v2344_v54, %v2352_v56  ;;  %v2072_v4 = vld [vmem:[%s18790_s11 + $0x3530] sm:$0xff]  ;;  %v18011_v52 = vcombine.low %v2344_v54, %v2352_v56  ;;  %v713_v54 = vld [vmem:[%s18790_s11 + $0xab8] sm:$0xff] }
 0x777   : > { %15077 = vmatpush2.bf16.msra.mxu0 %v17819_v41  ;;  %v2080_v3 = vld [vmem:[%s18790_s11 + $0x3570] sm:$0xff]  ;;  %v721_v56 = vld [vmem:[%s18790_s11 + $0xaf8] sm:$0xff] }
 0x778   : > { %15078 = vmatprep.subr.bf16.mxu0 %v17804_v15  ;;  %v2328_v32 = vld [vmem:[%s18790_s11 + $0x3d30] sm:$0xff]  ;;  %v17740_v25 = vcombine.high %v2072_v4, %v2080_v3  ;;  %v17739_v51 = vcombine.low %v2072_v4, %v2080_v3  ;;  %v441_v4 = vld [vmem:[%s18790_s11 + $0x238] sm:$0xff] }
 0x779   : > { %15120 = vmatpush2.bf16.msra.mxu1 %v18075_v29  ;;  %v2336_v21 = vld [vmem:[%s18790_s11 + $0x3d70] sm:$0xff]  ;;  %v449_v3 = vld [vmem:[%s18790_s11 + $0x278] sm:$0xff] }
 0x77a   : > { %15121 = vmatprep.subr.bf16.mxu1 %v18060_v23  ;;  %v17996_v18 = vcombine.high %v2328_v32, %v2336_v21  ;;  %v2056_v42 = vld [vmem:[%s18790_s11 + $0x34b0] sm:$0xff]  ;;  %v17995_v28 = vcombine.low %v2328_v32, %v2336_v21  ;;  %v697_v32 = vld [vmem:[%s18790_s11 + $0xa38] sm:$0xff] }
 0x77b   : > { %15079 = vmatpush2.bf16.msra.mxu0 %v17803_v60  ;;  %v2064_v16 = vld [vmem:[%s18790_s11 + $0x34f0] sm:$0xff]  ;;  %v705_v21 = vld [vmem:[%s18790_s11 + $0xa78] sm:$0xff] }
 0x77c   : > { %15080 = vmatprep.subr.bf16.mxu0 %v17788_v8  ;;  %v2312_v38 = vld [vmem:[%s18790_s11 + $0x3cb0] sm:$0xff]  ;;  %v17724_v27 = vcombine.high %v2056_v42, %v2064_v16  ;;  %v17723_v41 = vcombine.low %v2056_v42, %v2064_v16  ;;  %v16158_v8 = vcombine.high %v489_v58, %v497_v49  ;;  %v425_v42 = vld [vmem:[%s18790_s11 + $0x1b8] sm:$0xff] }
 0x77d   : > { %15122 = vmatpush2.bf16.msra.mxu1 %v18059_v57  ;;  %v2320_v19 = vld [vmem:[%s18790_s11 + $0x3cf0] sm:$0xff]  ;;  %v433_v16 = vld [vmem:[%s18790_s11 + $0x1f8] sm:$0xff] }
 0x77e   : > { %15123 = vmatprep.subr.bf16.mxu1 %v18044_v40  ;;  %v17980_v17 = vcombine.high %v2312_v38, %v2320_v19  ;;  %v2040_v24 = vld [vmem:[%s18790_s11 + $0x3430] sm:$0xff]  ;;  %v17979_v29 = vcombine.low %v2312_v38, %v2320_v19  ;;  %v16414_v40 = vcombine.high %v745_v43, %v753_v7  ;;  %v681_v38 = vld [vmem:[%s18790_s11 + $0x9b8] sm:$0xff]  ;;  %v16109_v19 = vcombine.low %v441_v4, %v449_v3 }
 0x77f   : > { %15081 = vmatpush2.bf16.msra.mxu0 %v17787_v53  ;;  %v2048_v37 = vld [vmem:[%s18790_s11 + $0x3470] sm:$0xff]  ;;  %v16157_v53 = vcombine.low %v489_v58, %v497_v49  ;;  %v649_v58 = vld [vmem:[%s18790_s11 + $0x8b8] sm:$0xff] }
 0x780   : > { %15082 = vmatprep.subr.bf16.mxu0 %v17772_v14  ;;  %v2296_v30 = vld [vmem:[%s18790_s11 + $0x3c30] sm:$0xff]  ;;  %v17708_v15 = vcombine.high %v2040_v24, %v2048_v37  ;;  %v17707_v60 = vcombine.low %v2040_v24, %v2048_v37  ;;  %v16142_v14 = vcombine.high %v473_v47, %v481_v61  ;;  %v665_v24 = vld [vmem:[%s18790_s11 + $0x938] sm:$0xff] }
 0x781   : > { %15124 = vmatpush2.bf16.msra.mxu1 %v18043_v13  ;;  %v2304_v44 = vld [vmem:[%s18790_s11 + $0x3c70] sm:$0xff]  ;;  %v16413_v13 = vcombine.low %v745_v43, %v753_v7  ;;  %v673_v37 = vld [vmem:[%s18790_s11 + $0x978] sm:$0xff] }
 0x782   : > { %15125 = vmatprep.subr.bf16.mxu1 %v18028_v45  ;;  %v17964_v23 = vcombine.high %v2296_v30, %v2304_v44  ;;  %v17963_v57 = vcombine.low %v2296_v30, %v2304_v44  ;;  %v16398_v45 = vcombine.high %v729_v11, %v737_v6  ;;  %v16093_v30 = vcombine.low %v425_v42, %v433_v16  ;;  %v657_v49 = vld [vmem:[%s18790_s11 + $0x8f8] sm:$0xff] }
 0x783   : > { %15083 = vmatpush2.bf16.msra.mxu0 %v17771_v5  ;;  %v16141_v5 = vcombine.low %v473_v47, %v481_v61  ;;  %v16333_v7 = vcombine.low %v665_v24, %v673_v37  ;;  %v633_v47 = vld [vmem:[%s18790_s11 + $0x838] sm:$0xff] }
 0x784   : > { %15084 = vmatprep.subr.bf16.mxu0 %v17756_v48  ;;  %v16126_v48 = vcombine.high %v457_v31, %v465_v2  ;;  %v641_v61 = vld [vmem:[%s18790_s11 + $0x878] sm:$0xff] }
 0x785   : > { %15126 = vmatpush2.bf16.msra.mxu1 %v18027_v39  ;;  %v16397_v39 = vcombine.low %v729_v11, %v737_v6  ;;  %v16317_v6 = vcombine.low %v649_v58, %v657_v49 }
 0x786   : > { %15127 = vmatprep.subr.bf16.mxu1 %v18012_v1  ;;  %v16382_v1 = vcombine.high %v713_v54, %v721_v56 }
 0x787   : > { %15085 = vmatpush2.bf16.msra.mxu0 %v17755_v10  ;;  %v16125_v10 = vcombine.low %v457_v31, %v465_v2  ;;  %v873_v31 = vld [vmem:[%s18790_s11 + $0xfb8] sm:$0xff] }
 0x788   : > { %15086 = vmatprep.subr.bf16.mxu0 %v17740_v25  ;;  %v16110_v25 = vcombine.high %v441_v4, %v449_v3  ;;  %v881_v2 = vld [vmem:[%s18790_s11 + $0xff8] sm:$0xff] }
 0x789   : > { %15128 = vmatpush2.bf16.msra.mxu1 %v18011_v52  ;;  %v16381_v52 = vcombine.low %v713_v54, %v721_v56  ;;  %v16301_v56 = vcombine.low %v633_v47, %v641_v61  ;;  %v857_v4 = vld [vmem:[%s18790_s11 + $0xf38] sm:$0xff] }
 0x78a   : > { %15129 = vmatprep.subr.bf16.mxu1 %v17996_v18  ;;  %v16366_v18 = vcombine.high %v697_v32, %v705_v21  ;;  %v865_v3 = vld [vmem:[%s18790_s11 + $0xf78] sm:$0xff] }
 0x78b   : > { %15087 = vmatpush2.bf16.msra.mxu0 %v17739_v51  ;;  %v16094_v51 = vcombine.high %v425_v42, %v433_v16  ;;  %v841_v42 = vld [vmem:[%s18790_s11 + $0xeb8] sm:$0xff] }
 0x78c   : > { %15088 = vmatprep.subr.bf16.mxu0 %v17724_v27  ;;  %v409_v27 = vld [vmem:[%s18790_s11 + $0x138] sm:$0xff] }
 0x78d   : > { %15130 = vmatpush2.bf16.msra.mxu1 %v17995_v28  ;;  %v849_v16 = vld [vmem:[%s18790_s11 + $0xef8] sm:$0xff] }
 0x78e   : > { %15131 = vmatprep.subr.bf16.mxu1 %v17980_v17  ;;  %v417_v17 = vld [vmem:[%s18790_s11 + $0x178] sm:$0xff] }
 0x78f   : > { %15089 = vmatpush2.bf16.msra.mxu0 %v17723_v41  ;;  %v16078_v41 = vcombine.high %v409_v27, %v417_v17  ;;  %v16077_v43 = vcombine.low %v409_v27, %v417_v17  ;;  %v825_v27 = vld [vmem:[%s18790_s11 + $0xe38] sm:$0xff] }
 0x790   : > { %15090 = vmatprep.subr.bf16.mxu0 %v17708_v15  ;;  %v393_v15 = vld [vmem:[%s18790_s11 + $0xb8] sm:$0xff] }
 0x791   : > { %15132 = vmatpush2.bf16.msra.mxu1 %v17979_v29  ;;  %v16334_v29 = vcombine.high %v665_v24, %v673_v37  ;;  %v833_v17 = vld [vmem:[%s18790_s11 + $0xe78] sm:$0xff]  ;;  %v16509_v37 = vcombine.low %v841_v42, %v849_v16 }
 0x792   : > { %15133 = vmatprep.subr.bf16.mxu1 %v17964_v23  ;;  %v401_v23 = vld [vmem:[%s18790_s11 + $0xf8] sm:$0xff] }
 0x793   : > { %15091 = vmatpush2.bf16.msra.mxu0 %v17707_v60  ;;  %v16062_v60 = vcombine.high %v393_v15, %v401_v23  ;;  %v16061_v11 = vcombine.low %v393_v15, %v401_v23  ;;  %v809_v15 = vld [vmem:[%s18790_s11 + $0xdb8] sm:$0xff] }
 0x794   : > { %15146 = vmatprep.subr.bf16.mxu0 %v16158_v8  ;;  %v377_v8 = vld [vmem:[%s18790_s11 + $0x38] sm:$0xff] }
 0x795   : > { %15134 = vmatpush2.bf16.msra.mxu1 %v17963_v57  ;;  %v16318_v57 = vcombine.high %v649_v58, %v657_v49  ;;  %v817_v23 = vld [vmem:[%s18790_s11 + $0xdf8] sm:$0xff]  ;;  %v16493_v49 = vcombine.low %v825_v27, %v833_v17 }
 0x796   : > { %15189 = vmatprep.subr.bf16.mxu1 %v16414_v40  ;;  %15093 = vmatmul.mubr.bf16.vlgmr.msra.gmra.mxu0 %v19192_v9  ;;  %v385_v40 = vld [vmem:[%s18790_s11 + $0x78] sm:$0xff] }
 0x797   : > { %15147 = vmatpush1.bf16.msra.mxu0 %v16157_v53  ;;  %15178 = vmatprep.mubr.bf16.mxu0 %v18848_v59  ;;  %v689_v59 = vld [vmem:[%s18790_s11 + $0x9f8] sm:$0xff]  ;;  %v16046_v53 = vcombine.high %v377_v8, %v385_v40  ;;  %v16045_v54 = vcombine.low %v377_v8, %v385_v40 }
 0x798   : > { %15136 = vmatmul.mubr.bf16.vlgmr.msra.gmra.mxu1 %v19198_v12  ;;  %15148 = vmatprep.subr.bf16.mxu0 %v16142_v14  ;;  %v16350_v28 = vcombine.high %v681_v38, %v689_v59  ;;  %v16349_v44 = vcombine.low %v681_v38, %v689_v59  ;;  %v617_v14 = vld [vmem:[%s18790_s11 + $0x7b8] sm:$0xff]  ;;  %v16525_v59 = vcombine.low %v857_v4, %v865_v3 }
 0x799   : > { %15190 = vmatpush1.bf16.msra.mxu1 %v16413_v13  ;;  %15221 = vmatprep.mubr.bf16.mxu1 %v18860_v0  ;;  %v16365_v0 = vcombine.low %v697_v32, %v705_v21  ;;  %v16302_v13 = vcombine.high %v633_v47, %v641_v61  ;;  %v16541_v21 = vcombine.low %v873_v31, %v881_v2  ;;  %v793_v8 = vld [vmem:[%s18790_s11 + $0xd38] sm:$0xff] }
 0x79a   : > { %15191 = vmatprep.subr.bf16.mxu1 %v16398_v45  ;;  %v625_v45 = vld [vmem:[%s18790_s11 + $0x7f8] sm:$0xff]  ;;  %v16477_v61 = vcombine.low %v809_v15, %v817_v23 }
 0x79b   : > { %15149 = vmatpush1.bf16.msra.mxu0 %v16141_v5  ;;  %v16286_v5 = vcombine.high %v617_v14, %v625_v45  ;;  %v16285_v32 = vcombine.low %v617_v14, %v625_v45  ;;  %v801_v40 = vld [vmem:[%s18790_s11 + $0xd78] sm:$0xff] }
 0x79c   : > { %15150 = vmatprep.subr.bf16.mxu0 %v16126_v48  ;;  %v601_v48 = vld [vmem:[%s18790_s11 + $0x738] sm:$0xff] }
 0x79d   : > { %15192 = vmatpush1.bf16.msra.mxu1 %v16397_v39  ;;  %v16542_v39 = vcombine.high %v873_v31, %v881_v2  ;;  %v777_v14 = vld [vmem:[%s18790_s11 + $0xcb8] sm:$0xff]  ;;  %v16461_v2 = vcombine.low %v793_v8, %v801_v40 }
 0x79e   : > { %15193 = vmatprep.subr.bf16.mxu1 %v16382_v1  ;;  %v609_v1 = vld [vmem:[%s18790_s11 + $0x778] sm:$0xff] }
 0x79f   : > { %15151 = vmatpush1.bf16.msra.mxu0 %v16125_v10  ;;  %v16270_v10 = vcombine.high %v601_v48, %v609_v1  ;;  %v16269_v38 = vcombine.low %v601_v48, %v609_v1  ;;  %v785_v45 = vld [vmem:[%s18790_s11 + $0xcf8] sm:$0xff] }
 0x7a0   : > { %15152 = vmatprep.subr.bf16.mxu0 %v16110_v25  ;;  %v585_v25 = vld [vmem:[%s18790_s11 + $0x6b8] sm:$0xff] }
 0x7a1   : > { %15194 = vmatpush1.bf16.msra.mxu1 %v16381_v52  ;;  %v16526_v52 = vcombine.high %v857_v4, %v865_v3  ;;  %v761_v48 = vld [vmem:[%s18790_s11 + $0xc38] sm:$0xff]  ;;  %v16445_v3 = vcombine.low %v777_v14, %v785_v45 }
 0x7a2   : > { %15195 = vmatprep.subr.bf16.mxu1 %v16366_v18  ;;  %v593_v18 = vld [vmem:[%s18790_s11 + $0x6f8] sm:$0xff] }
 0x7a3   : > { %15153 = vmatpush1.bf16.msra.mxu0 %v16109_v19  ;;  %v16254_v19 = vcombine.high %v585_v25, %v593_v18  ;;  %v16253_v24 = vcombine.low %v585_v25, %v593_v18  ;;  %v769_v1 = vld [vmem:[%s18790_s11 + $0xc78] sm:$0xff] }
 0x7a4   : > { %15154 = vmatprep.subr.bf16.mxu0 %v16094_v51  ;;  %v569_v51 = vld [vmem:[%s18790_s11 + $0x638] sm:$0xff] }
 0x7a5   : > { %15196 = vmatpush1.bf16.msra.mxu1 %v16365_v0  ;;  %v16510_v0 = vcombine.high %v841_v42, %v849_v16  ;;  %v1257_v25 = vld [vmem:[%s18790_s11 + $0x1bb8] sm:$0xff]  ;;  %v16429_v16 = vcombine.low %v761_v48, %v769_v1 }
 0x7a6   : > { %15197 = vmatprep.subr.bf16.mxu1 %v16350_v28  ;;  %v577_v28 = vld [vmem:[%s18790_s11 + $0x678] sm:$0xff] }
 0x7a7   : > { %15155 = vmatpush1.bf16.msra.mxu0 %v16093_v30  ;;  %v16238_v30 = vcombine.high %v569_v51, %v577_v28  ;;  %v16237_v58 = vcombine.low %v569_v51, %v577_v28  ;;  %v1265_v18 = vld [vmem:[%s18790_s11 + $0x1bf8] sm:$0xff] }
 0x7a8   : > { %15156 = vmatprep.subr.bf16.mxu0 %v16078_v41  ;;  %v553_v41 = vld [vmem:[%s18790_s11 + $0x5b8] sm:$0xff] }
 0x7a9   : > { %15198 = vmatpush1.bf16.msra.mxu1 %v16349_v44  ;;  %v16494_v44 = vcombine.high %v825_v27, %v833_v17  ;;  %v1241_v51 = vld [vmem:[%s18790_s11 + $0x1b38] sm:$0xff]  ;;  %v16925_v17 = vcombine.low %v1257_v25, %v1265_v18 }
 0x7aa   : > { %15199 = vmatprep.subr.bf16.mxu1 %v16334_v29  ;;  %v561_v29 = vld [vmem:[%s18790_s11 + $0x5f8] sm:$0xff] }
 0x7ab   : > { %15157 = vmatpush1.bf16.msra.mxu0 %v16077_v43  ;;  %v16222_v43 = vcombine.high %v553_v41, %v561_v29  ;;  %v16221_v47 = vcombine.low %v553_v41, %v561_v29  ;;  %v1249_v28 = vld [vmem:[%s18790_s11 + $0x1b78] sm:$0xff] }
 0x7ac   : > { %15158 = vmatprep.subr.bf16.mxu0 %v16062_v60  ;;  %v537_v60 = vld [vmem:[%s18790_s11 + $0x538] sm:$0xff] }
 0x7ad   : > { %15200 = vmatpush1.bf16.msra.mxu1 %v16333_v7  ;;  %v16478_v7 = vcombine.high %v809_v15, %v817_v23  ;;  %v1225_v41 = vld [vmem:[%s18790_s11 + $0x1ab8] sm:$0xff]  ;;  %v16909_v23 = vcombine.low %v1241_v51, %v1249_v28 }
 0x7ae   : > { %15201 = vmatprep.subr.bf16.mxu1 %v16318_v57  ;;  %v545_v57 = vld [vmem:[%s18790_s11 + $0x578] sm:$0xff] }
 0x7af   : > { %15159 = vmatpush1.bf16.msra.mxu0 %v16061_v11  ;;  %v16206_v11 = vcombine.high %v537_v60, %v545_v57  ;;  %v16205_v31 = vcombine.low %v537_v60, %v545_v57  ;;  %v1233_v29 = vld [vmem:[%s18790_s11 + $0x1af8] sm:$0xff] }
 0x7b0   : > { %15160 = vmatprep.subr.bf16.mxu0 %v16046_v53  ;;  %v521_v53 = vld [vmem:[%s18790_s11 + $0x4b8] sm:$0xff]  ;;  %v16893_v57 = vcombine.low %v1225_v41, %v1233_v29 }
 0x7b1   : > { %15202 = vmatpush1.bf16.msra.mxu1 %v16317_v6  ;;  %v16462_v6 = vcombine.high %v793_v8, %v801_v40  ;;  %v1217_v60 = vld [vmem:[%s18790_s11 + $0x1a78] sm:$0xff] }
 0x7b2   : > { %15203 = vmatprep.subr.bf16.mxu1 %v16302_v13  ;;  %v529_v13 = vld [vmem:[%s18790_s11 + $0x4f8] sm:$0xff] }
 0x7b3   : > { %15161 = vmatpush1.bf16.msra.mxu0 %v16045_v54  ;;  %v16190_v54 = vcombine.high %v521_v53, %v529_v13  ;;  %v16189_v4 = vcombine.low %v521_v53, %v529_v13 }
 0x7b4   : > { %15162 = vmatprep.subr.bf16.mxu0 %v16286_v5  ;;  %v505_v5 = vld [vmem:[%s18790_s11 + $0x438] sm:$0xff] }
 0x7b5   : > { %15204 = vmatpush1.bf16.msra.mxu1 %v16301_v56  ;;  %v16446_v56 = vcombine.high %v777_v14, %v785_v45  ;;  %v921_v14 = vld [vmem:[%s18790_s11 + $0x1138] sm:$0xff] }
 0x7b6   : > { %15205 = vmatprep.subr.bf16.mxu1 %v16542_v39  ;;  %v513_v39 = vld [vmem:[%s18790_s11 + $0x478] sm:$0xff] }
 0x7b7   : > { %15163 = vmatpush2.bf16.msra.mxu0 %v16285_v32  ;;  %v16174_v32 = vcombine.high %v505_v5, %v513_v39  ;;  %v16173_v42 = vcombine.low %v505_v5, %v513_v39  ;;  %v929_v45 = vld [vmem:[%s18790_s11 + $0x1178] sm:$0xff] }
 0x7b8   : > { %15164 = vmatprep.subr.bf16.mxu0 %v16270_v10  ;;  %v1001_v10 = vld [vmem:[%s18790_s11 + $0x13b8] sm:$0xff]  ;;  %v16590_v5 = vcombine.high %v921_v14, %v929_v45 }
 0x7b9   : > { %15206 = vmatpush2.bf16.msra.mxu1 %v16541_v21  ;;  %v16430_v21 = vcombine.high %v761_v48, %v769_v1  ;;  %v905_v48 = vld [vmem:[%s18790_s11 + $0x10b8] sm:$0xff] }
 0x7ba   : > { %15207 = vmatprep.subr.bf16.mxu1 %v16526_v52  ;;  %v1009_v52 = vld [vmem:[%s18790_s11 + $0x13f8] sm:$0xff] }
 0x7bb   : > { %15165 = vmatpush2.bf16.msra.mxu0 %v16269_v38  ;;  %v16670_v38 = vcombine.high %v1001_v10, %v1009_v52  ;;  %v16669_v27 = vcombine.low %v1001_v10, %v1009_v52  ;;  %v913_v1 = vld [vmem:[%s18790_s11 + $0x10f8] sm:$0xff] }
 0x7bc   : > { %15166 = vmatprep.subr.bf16.mxu0 %v16254_v19  ;;  %v985_v19 = vld [vmem:[%s18790_s11 + $0x1338] sm:$0xff]  ;;  %v16574_v10 = vcombine.high %v905_v48, %v913_v1 }
 0x7bd   : > { %15208 = vmatpush2.bf16.msra.mxu1 %v16525_v59  ;;  %v16926_v59 = vcombine.high %v1257_v25, %v1265_v18  ;;  %v889_v25 = vld [vmem:[%s18790_s11 + $0x1038] sm:$0xff] }
 0x7be   : > { %15209 = vmatprep.subr.bf16.mxu1 %v16510_v0  ;;  %v993_v0 = vld [vmem:[%s18790_s11 + $0x1378] sm:$0xff] }
 0x7bf   : > { %15167 = vmatpush2.bf16.msra.mxu0 %v16253_v24  ;;  %v16654_v24 = vcombine.high %v985_v19, %v993_v0  ;;  %v16653_v15 = vcombine.low %v985_v19, %v993_v0  ;;  %v897_v18 = vld [vmem:[%s18790_s11 + $0x1078] sm:$0xff] }
 0x7c0   : > { %15168 = vmatprep.subr.bf16.mxu0 %v16238_v30  ;;  %v969_v30 = vld [vmem:[%s18790_s11 + $0x12b8] sm:$0xff]  ;;  %v16558_v19 = vcombine.high %v889_v25, %v897_v18 }
 0x7c1   : > { %15210 = vmatpush2.bf16.msra.mxu1 %v16509_v37  ;;  %v16910_v37 = vcombine.high %v1241_v51, %v1249_v28  ;;  %v1129_v51 = vld [vmem:[%s18790_s11 + $0x17b8] sm:$0xff] }
 0x7c2   : > { %15211 = vmatprep.subr.bf16.mxu1 %v16494_v44  ;;  %v977_v44 = vld [vmem:[%s18790_s11 + $0x12f8] sm:$0xff] }
 0x7c3   : > { %15169 = vmatpush2.bf16.msra.mxu0 %v16237_v58  ;;  %v16638_v58 = vcombine.high %v969_v30, %v977_v44  ;;  %v1137_v28 = vld [vmem:[%s18790_s11 + $0x17f8] sm:$0xff] }
 0x7c4   : > { %15170 = vmatprep.subr.bf16.mxu0 %v16222_v43  ;;  %v953_v43 = vld [vmem:[%s18790_s11 + $0x1238] sm:$0xff] }
 0x7c5   : > { %15212 = vmatpush2.bf16.msra.mxu1 %v16493_v49  ;;  %v16894_v49 = vcombine.high %v1225_v41, %v1233_v29  ;;  %v1113_v41 = vld [vmem:[%s18790_s11 + $0x1738] sm:$0xff] }
 0x7c6   : > { %15213 = vmatprep.subr.bf16.mxu1 %v16478_v7  ;;  %v961_v7 = vld [vmem:[%s18790_s11 + $0x1278] sm:$0xff] }
 0x7c7   : > { %15171 = vmatpush2.bf16.msra.mxu0 %v16221_v47  ;;  %v16622_v8 = vcombine.high %v953_v43, %v961_v7  ;;  %v937_v47 = vld [vmem:[%s18790_s11 + $0x11b8] sm:$0xff] }
 0x7c8   : > { %15172 = vmatprep.subr.bf16.mxu0 %v16206_v11  ;;  %v1193_v11 = vld [vmem:[%s18790_s11 + $0x19b8] sm:$0xff] }
 0x7c9   : > { %15214 = vmatpush2.bf16.msra.mxu1 %v16477_v61  ;;  %v945_v61 = vld [vmem:[%s18790_s11 + $0x11f8] sm:$0xff] }
 0x7ca   : > { %15215 = vmatprep.subr.bf16.mxu1 %v16462_v6  ;;  %v16621_v6 = vcombine.low %v953_v43, %v961_v7  ;;  %v16606_v53 = vcombine.high %v937_v47, %v945_v61  ;;  %v1121_v29 = vld [vmem:[%s18790_s11 + $0x1778] sm:$0xff] }
 0x7cb   : > { %15173 = vmatpush2.bf16.msra.mxu0 %v16205_v31  ;;  %v1177_v31 = vld [vmem:[%s18790_s11 + $0x1938] sm:$0xff]  ;;  %v16782_v43 = vcombine.high %v1113_v41, %v1121_v29 }
 0x7cc   : > { %15174 = vmatprep.subr.bf16.mxu0 %v16190_v54  ;;  %v16605_v54 = vcombine.low %v937_v47, %v945_v61 }
 0x7cd   : > { %15216 = vmatpush2.bf16.msra.mxu1 %v16461_v2  ;;  %v1185_v2 = vld [vmem:[%s18790_s11 + $0x1978] sm:$0xff] }
 0x7ce   : > { %15217 = vmatprep.subr.bf16.mxu1 %v16446_v56  ;;  %v16846_v39 = vcombine.high %v1177_v31, %v1185_v2 }
 0x7cf   : > { %15175 = vmatpush2.bf16.msra.mxu0 %v16189_v4  ;;  %v1161_v4 = vld [vmem:[%s18790_s11 + $0x18b8] sm:$0xff] }
 0x7d0   : > { %15176 = vmatprep.subr.bf16.mxu0 %v16174_v32  ;;  %v16589_v32 = vcombine.low %v921_v14, %v929_v45 }
 0x7d1   : > { %15218 = vmatpush2.bf16.msra.mxu1 %v16445_v3  ;;  %v1169_v3 = vld [vmem:[%s18790_s11 + $0x18f8] sm:$0xff] }
 0x7d2   : > { %15219 = vmatprep.subr.bf16.mxu1 %v16430_v21  ;;  %v16845_v21 = vcombine.low %v1177_v31, %v1185_v2  ;;  %v16830_v52 = vcombine.high %v1161_v4, %v1169_v3  ;;  %v1065_v31 = vld [vmem:[%s18790_s11 + $0x15b8] sm:$0xff] }
 0x7d3   : > { %15177 = vmatpush2.bf16.msra.mxu0 %v16173_v42  ;;  %v1145_v42 = vld [vmem:[%s18790_s11 + $0x1838] sm:$0xff] }
 0x7d4   : > { %15232 = vmatprep.subr.bf16.mxu0 %v16670_v38  ;;  %v16573_v38 = vcombine.low %v905_v48, %v913_v1  ;;  %v1073_v2 = vld [vmem:[%s18790_s11 + $0x15f8] sm:$0xff] }
 0x7d5   : > { %15220 = vmatpush2.bf16.msra.mxu1 %v16429_v16  ;;  %v1153_v16 = vld [vmem:[%s18790_s11 + $0x1878] sm:$0xff]  ;;  %v16734_v48 = vcombine.high %v1065_v31, %v1073_v2 }
 0x7d6   : > { %15275 = vmatprep.subr.bf16.mxu1 %v16926_v59  ;;  %15179 = vmatmul.mubr.bf16.vlgmr.msra.gmra.mxu0 %v18905_v22  ;;  %v1209_v22 = vld [vmem:[%s18790_s11 + $0x1a38] sm:$0xff]  ;;  %v16829_v59 = vcombine.low %v1161_v4, %v1169_v3  ;;  %v16814_v0 = vcombine.high %v1145_v42, %v1153_v16 }
 0x7d7   : > { %15233 = vmatpush1.bf16.msra.mxu0 %v16669_v27  ;;  %15264 = vmatprep.mubr.bf16.mxu0 %v18928_v33  ;;  %v16878_v40 = vcombine.high %v1209_v22, %v1217_v60  ;;  %v1201_v33 = vld [vmem:[%s18790_s11 + $0x19f8] sm:$0xff] }
 0x7d8   : > { %15222 = vmatmul.mubr.bf16.vlgmr.msra.gmra.mxu1 %v18916_v26  ;;  %15234 = vmatprep.subr.bf16.mxu0 %v16654_v24  ;;  %v16637_v26 = vcombine.low %v969_v30, %v977_v44  ;;  %v16862_v13 = vcombine.high %v1193_v11, %v1201_v33  ;;  %v16861_v56 = vcombine.low %v1193_v11, %v1201_v33  ;;  %v1385_v27 = vld [vmem:[%s18790_s11 + $0x1fb8] sm:$0xff] }
 0x7d9   : > { %15276 = vmatpush1.bf16.msra.mxu1 %v16925_v17  ;;  %15307 = vmatprep.mubr.bf16.mxu1 %v18935_v34  ;;  %v16877_v34 = vcombine.low %v1209_v22, %v1217_v60  ;;  %v1393_v17 = vld [vmem:[%s18790_s11 + $0x1ff8] sm:$0xff]  ;;  %v16557_v24 = vcombine.low %v889_v25, %v897_v18  ;;  %v16798_v30 = vcombine.high %v1129_v51, %v1137_v28 }
 0x7da   : > { %15277 = vmatprep.subr.bf16.mxu1 %v16910_v37  ;;  %v16813_v37 = vcombine.low %v1145_v42, %v1153_v16  ;;  %v17054_v44 = vcombine.high %v1385_v27, %v1393_v17  ;;  %v1097_v22 = vld [vmem:[%s18790_s11 + $0x16b8] sm:$0xff] }
 0x7db   : > { %15235 = vmatpush1.bf16.msra.mxu0 %v16653_v15  ;;  %v1369_v15 = vld [vmem:[%s18790_s11 + $0x1f38] sm:$0xff] }
 0x7dc   : > { %15236 = vmatprep.subr.bf16.mxu0 %v16638_v58  ;;  %v16797_v58 = vcombine.low %v1129_v51, %v1137_v28  ;;  %v1105_v60 = vld [vmem:[%s18790_s11 + $0x16f8] sm:$0xff] }
 0x7dd   : > { %15278 = vmatpush1.bf16.msra.mxu1 %v16909_v23  ;;  %v1377_v23 = vld [vmem:[%s18790_s11 + $0x1f78] sm:$0xff]  ;;  %v16766_v47 = vcombine.high %v1097_v22, %v1105_v60 }
 0x7de   : > { %15279 = vmatprep.subr.bf16.mxu1 %v16894_v49  ;;  %v17053_v49 = vcombine.low %v1385_v27, %v1393_v17  ;;  %v17038_v7 = vcombine.high %v1369_v15, %v1377_v23  ;;  %v1081_v11 = vld [vmem:[%s18790_s11 + $0x1638] sm:$0xff] }
 0x7df   : > { %15237 = vmatpush1.bf16.msra.mxu0 %v16637_v26  ;;  %v1353_v26 = vld [vmem:[%s18790_s11 + $0x1eb8] sm:$0xff] }
 0x7e0   : > { %15238 = vmatprep.subr.bf16.mxu0 %v16622_v8  ;;  %v16781_v8 = vcombine.low %v1113_v41, %v1121_v29  ;;  %v1089_v33 = vld [vmem:[%s18790_s11 + $0x1678] sm:$0xff] }
 0x7e1   : > { %15280 = vmatpush1.bf16.msra.mxu1 %v16893_v57  ;;  %v1361_v57 = vld [vmem:[%s18790_s11 + $0x1ef8] sm:$0xff]  ;;  %v16750_v14 = vcombine.high %v1081_v11, %v1089_v33 }
 0x7e2   : > { %15281 = vmatprep.subr.bf16.mxu1 %v16878_v40  ;;  %v17037_v40 = vcombine.low %v1369_v15, %v1377_v23  ;;  %v17022_v61 = vcombine.high %v1353_v26, %v1361_v57  ;;  %v1049_v4 = vld [vmem:[%s18790_s11 + $0x1538] sm:$0xff] }
 0x7e3   : > { %15239 = vmatpush1.bf16.msra.mxu0 %v16621_v6  ;;  %v1337_v6 = vld [vmem:[%s18790_s11 + $0x1e38] sm:$0xff] }
 0x7e4   : > { %15240 = vmatprep.subr.bf16.mxu0 %v16606_v53  ;;  %v16765_v53 = vcombine.low %v1097_v22, %v1105_v60  ;;  %v1057_v3 = vld [vmem:[%s18790_s11 + $0x1578] sm:$0xff] }
 0x7e5   : > { %15282 = vmatpush1.bf16.msra.mxu1 %v16877_v34  ;;  %v1345_v34 = vld [vmem:[%s18790_s11 + $0x1e78] sm:$0xff]  ;;  %v16718_v25 = vcombine.high %v1049_v4, %v1057_v3 }
 0x7e6   : > { %15283 = vmatprep.subr.bf16.mxu1 %v16862_v13  ;;  %v17021_v13 = vcombine.low %v1353_v26, %v1361_v57  ;;  %v17006_v45 = vcombine.high %v1337_v6, %v1345_v34  ;;  %v1033_v42 = vld [vmem:[%s18790_s11 + $0x14b8] sm:$0xff] }
 0x7e7   : > { %15241 = vmatpush1.bf16.msra.mxu0 %v16605_v54  ;;  %v1321_v54 = vld [vmem:[%s18790_s11 + $0x1db8] sm:$0xff] }
 0x7e8   : > { %15242 = vmatprep.subr.bf16.mxu0 %v16590_v5  ;;  %v16749_v5 = vcombine.low %v1081_v11, %v1089_v33  ;;  %v1041_v16 = vld [vmem:[%s18790_s11 + $0x14f8] sm:$0xff] }
 0x7e9   : > { %15284 = vmatpush1.bf16.msra.mxu1 %v16861_v56  ;;  %v1329_v56 = vld [vmem:[%s18790_s11 + $0x1df8] sm:$0xff]  ;;  %v16702_v51 = vcombine.high %v1033_v42, %v1041_v16 }
 0x7ea   : > { %15285 = vmatprep.subr.bf16.mxu1 %v16846_v39  ;;  %v17005_v39 = vcombine.low %v1337_v6, %v1345_v34  ;;  %v16990_v1 = vcombine.high %v1321_v54, %v1329_v56  ;;  %v1017_v27 = vld [vmem:[%s18790_s11 + $0x1438] sm:$0xff] }
 0x7eb   : > { %15243 = vmatpush1.bf16.msra.mxu0 %v16589_v32  ;;  %v1305_v32 = vld [vmem:[%s18790_s11 + $0x1d38] sm:$0xff] }
 0x7ec   : > { %15244 = vmatprep.subr.bf16.mxu0 %v16574_v10  ;;  %v16733_v10 = vcombine.low %v1065_v31, %v1073_v2  ;;  %v1025_v17 = vld [vmem:[%s18790_s11 + $0x1478] sm:$0xff] }
 0x7ed   : > { %15286 = vmatpush1.bf16.msra.mxu1 %v16845_v21  ;;  %v1313_v21 = vld [vmem:[%s18790_s11 + $0x1d78] sm:$0xff]  ;;  %v16686_v41 = vcombine.high %v1017_v27, %v1025_v17 }
 0x7ee   : > { %15287 = vmatprep.subr.bf16.mxu1 %v16830_v52  ;;  %v16989_v52 = vcombine.low %v1321_v54, %v1329_v56  ;;  %v16974_v18 = vcombine.high %v1305_v32, %v1313_v21  ;;  %v1513_v15 = vld [vmem:[%s18790_s11 + $0x23b8] sm:$0xff] }
 0x7ef   : > { %15245 = vmatpush1.bf16.msra.mxu0 %v16573_v38  ;;  %v1289_v38 = vld [vmem:[%s18790_s11 + $0x1cb8] sm:$0xff] }
 0x7f0   : > { %15246 = vmatprep.subr.bf16.mxu0 %v16558_v19  ;;  %v16717_v19 = vcombine.low %v1049_v4, %v1057_v3  ;;  %v1521_v23 = vld [vmem:[%s18790_s11 + $0x23f8] sm:$0xff] }
 0x7f1   : > { %15288 = vmatpush1.bf16.msra.mxu1 %v16829_v59  ;;  %v1297_v59 = vld [vmem:[%s18790_s11 + $0x1cf8] sm:$0xff]  ;;  %v17182_v22 = vcombine.high %v1513_v15, %v1521_v23 }
 0x7f2   : > { %15289 = vmatprep.subr.bf16.mxu1 %v16814_v0  ;;  %v16973_v0 = vcombine.low %v1305_v32, %v1313_v21  ;;  %v16958_v28 = vcombine.high %v1289_v38, %v1297_v59  ;;  %v1497_v26 = vld [vmem:[%s18790_s11 + $0x2338] sm:$0xff] }
 0x7f3   : > { %15247 = vmatpush1.bf16.msra.mxu0 %v16557_v24  ;;  %v1273_v24 = vld [vmem:[%s18790_s11 + $0x1c38] sm:$0xff] }
 0x7f4   : > { %15248 = vmatprep.subr.bf16.mxu0 %v16798_v30  ;;  %v16701_v30 = vcombine.low %v1033_v42, %v1041_v16  ;;  %v1505_v57 = vld [vmem:[%s18790_s11 + $0x2378] sm:$0xff] }
 0x7f5   : > { %15290 = vmatpush1.bf16.msra.mxu1 %v16813_v37  ;;  %v1281_v37 = vld [vmem:[%s18790_s11 + $0x1c78] sm:$0xff]  ;;  %v17166_v11 = vcombine.high %v1497_v26, %v1505_v57 }
 0x7f6   : > { %15291 = vmatprep.subr.bf16.mxu1 %v17054_v44  ;;  %v16957_v44 = vcombine.low %v1289_v38, %v1297_v59  ;;  %v16942_v29 = vcombine.high %v1273_v24, %v1281_v37  ;;  %v1481_v6 = vld [vmem:[%s18790_s11 + $0x22b8] sm:$0xff] }
 0x7f7   : > { %15249 = vmatpush2.bf16.msra.mxu0 %v16797_v58  ;;  %v1769_v58 = vld [vmem:[%s18790_s11 + $0x2bb8] sm:$0xff] }
 0x7f8   : > { %15250 = vmatprep.subr.bf16.mxu0 %v16782_v43  ;;  %v16685_v43 = vcombine.low %v1017_v27, %v1025_v17  ;;  %v1489_v34 = vld [vmem:[%s18790_s11 + $0x22f8] sm:$0xff] }
 0x7f9   : > { %15292 = vmatpush2.bf16.msra.mxu1 %v17053_v49  ;;  %v1777_v49 = vld [vmem:[%s18790_s11 + $0x2bf8] sm:$0xff]  ;;  %v17150_v31 = vcombine.high %v1481_v6, %v1489_v34 }
 0x7fa   : > { %15293 = vmatprep.subr.bf16.mxu1 %v17038_v7  ;;  %v16941_v7 = vcombine.low %v1273_v24, %v1281_v37  ;;  %v17438_v60 = vcombine.high %v1769_v58, %v1777_v49  ;;  %v1465_v54 = vld [vmem:[%s18790_s11 + $0x2238] sm:$0xff] }
 0x7fb   : > { %15251 = vmatpush2.bf16.msra.mxu0 %v16781_v8  ;;  %v1753_v8 = vld [vmem:[%s18790_s11 + $0x2b38] sm:$0xff] }
 0x7fc   : > { %15252 = vmatprep.subr.bf16.mxu0 %v16766_v47  ;;  %v17181_v47 = vcombine.low %v1513_v15, %v1521_v23  ;;  %v1473_v56 = vld [vmem:[%s18790_s11 + $0x2278] sm:$0xff] }
 0x7fd   : > { %15294 = vmatpush2.bf16.msra.mxu1 %v17037_v40  ;;  %v1761_v40 = vld [vmem:[%s18790_s11 + $0x2b78] sm:$0xff]  ;;  %v17133_v21 = vcombine.low %v1465_v54, %v1473_v56 }
 0x7fe   : > { %15295 = vmatprep.subr.bf16.mxu1 %v17022_v61  ;;  %v17437_v61 = vcombine.low %v1769_v58, %v1777_v49  ;;  %v17422_v33 = vcombine.high %v1753_v8, %v1761_v40  ;;  %v1449_v4 = vld [vmem:[%s18790_s11 + $0x21b8] sm:$0xff]  ;;  %v21236_v49 = vpop.f32.mrf.mxu0 }
 0x7ff   : > { %15253 = vmatpush2.bf16.msra.mxu0 %v16765_v53  ;;  %v1737_v53 = vld [vmem:[%s18790_s11 + $0x2ab8] sm:$0xff] }
 0x800   : > { %15254 = vmatprep.subr.bf16.mxu0 %v16750_v14  ;;  %v17165_v14 = vcombine.low %v1497_v26, %v1505_v57  ;;  %v1457_v3 = vld [vmem:[%s18790_s11 + $0x21f8] sm:$0xff] }
 0x801   : > { %15296 = vmatpush2.bf16.msra.mxu1 %v17021_v13  ;;  %v1745_v13 = vld [vmem:[%s18790_s11 + $0x2af8] sm:$0xff]  ;;  %v17117_v38 = vcombine.low %v1449_v4, %v1457_v3 }
 0x802   : > { %15297 = vmatprep.subr.bf16.mxu1 %v17006_v45  ;;  %v17421_v45 = vcombine.low %v1753_v8, %v1761_v40  ;;  %v17406_v2 = vcombine.high %v1737_v53, %v1745_v13  ;;  %v1705_v32 = vld [vmem:[%s18790_s11 + $0x29b8] sm:$0xff] }
 0x803   : > { %15255 = vmatpush2.bf16.msra.mxu0 %v16749_v5  ;;  %v1729_v5 = vld [vmem:[%s18790_s11 + $0x2a78] sm:$0xff] }
 0x804   : > { %15256 = vmatprep.subr.bf16.mxu0 %v16734_v48  ;;  %v17134_v48 = vcombine.high %v1465_v54, %v1473_v56  ;;  %v1689_v42 = vld [vmem:[%s18790_s11 + $0x2938] sm:$0xff] }
 0x805   : > { %15298 = vmatpush2.bf16.msra.mxu1 %v17005_v39  ;;  %v17405_v39 = vcombine.low %v1737_v53, %v1745_v13  ;;  %v1697_v16 = vld [vmem:[%s18790_s11 + $0x2978] sm:$0xff] }
 0x806   : > { %15299 = vmatprep.subr.bf16.mxu1 %v16990_v1  ;;  %v1673_v27 = vld [vmem:[%s18790_s11 + $0x28b8] sm:$0xff]  ;;  %v17357_v37 = vcombine.low %v1689_v42, %v1697_v16 }
 0x807   : > { %15257 = vmatpush2.bf16.msra.mxu0 %v16733_v10  ;;  %v17118_v10 = vcombine.high %v1449_v4, %v1457_v3  ;;  %v1681_v17 = vld [vmem:[%s18790_s11 + $0x28f8] sm:$0xff] }
 0x808   : > { %15258 = vmatprep.subr.bf16.mxu0 %v16718_v25  ;;  %v1433_v25 = vld [vmem:[%s18790_s11 + $0x2138] sm:$0xff] }
 0x809   : > { %15300 = vmatpush2.bf16.msra.mxu1 %v16989_v52  ;;  %v1657_v15 = vld [vmem:[%s18790_s11 + $0x2838] sm:$0xff] }
 0x80a   : > { %15301 = vmatprep.subr.bf16.mxu1 %v16974_v18  ;;  %v1441_v18 = vld [vmem:[%s18790_s11 + $0x2178] sm:$0xff] }
 0x80b   : > { %15259 = vmatpush2.bf16.msra.mxu0 %v16717_v19  ;;  %v17102_v19 = vcombine.high %v1433_v25, %v1441_v18  ;;  %v17101_v24 = vcombine.low %v1433_v25, %v1441_v18  ;;  %v1665_v23 = vld [vmem:[%s18790_s11 + $0x2878] sm:$0xff] }
 0x80c   : > { %15260 = vmatprep.subr.bf16.mxu0 %v16702_v51  ;;  %v1417_v51 = vld [vmem:[%s18790_s11 + $0x20b8] sm:$0xff] }
 0x80d   : > { %15302 = vmatpush2.bf16.msra.mxu1 %v16973_v0  ;;  %v17358_v0 = vcombine.high %v1689_v42, %v1697_v16  ;;  %v1641_v26 = vld [vmem:[%s18790_s11 + $0x27b8] sm:$0xff] }
 0x80e   : > { %15303 = vmatprep.subr.bf16.mxu1 %v16958_v28  ;;  %v1425_v28 = vld [vmem:[%s18790_s11 + $0x20f8] sm:$0xff] }
 0x80f   : > { %15261 = vmatpush2.bf16.msra.mxu0 %v16701_v30  ;;  %v17086_v30 = vcombine.high %v1417_v51, %v1425_v28  ;;  %v17085_v58 = vcombine.low %v1417_v51, %v1425_v28  ;;  %v1649_v57 = vld [vmem:[%s18790_s11 + $0x27f8] sm:$0xff] }
 0x810   : > { %15262 = vmatprep.subr.bf16.mxu0 %v16686_v41  ;;  %v1401_v41 = vld [vmem:[%s18790_s11 + $0x2038] sm:$0xff] }
 0x811   : > { %15304 = vmatpush2.bf16.msra.mxu1 %v16957_v44  ;;  %v17342_v44 = vcombine.high %v1673_v27, %v1681_v17  ;;  %v1897_v8 = vld [vmem:[%s18790_s11 + $0x2fb8] sm:$0xff] }
 0x812   : > { %15305 = vmatprep.subr.bf16.mxu1 %v16942_v29  ;;  %v1409_v29 = vld [vmem:[%s18790_s11 + $0x2078] sm:$0xff] }
 0x813   : > { %15263 = vmatpush2.bf16.msra.mxu0 %v16685_v43  ;;  %v17341_v43 = vcombine.low %v1673_v27, %v1681_v17  ;;  %v1905_v40 = vld [vmem:[%s18790_s11 + $0x2ff8] sm:$0xff] }
 0x814   : > { %15318 = vmatprep.subr.bf16.mxu0 %v17182_v22  ;;  %v21238_v22 = vpop.f32.mrf.mxu1  ;;  %v1625_v53 = vld [vmem:[%s18790_s11 + $0x2738] sm:$0xff]  ;;  %v17565_v54 = vcombine.low %v1897_v8, %v1905_v40 }
 0x815   : > { %15306 = vmatpush2.bf16.msra.mxu1 %v16941_v7  ;;  %v17070_v7 = vcombine.high %v1401_v41, %v1409_v29  ;;  %v1633_v13 = vld [vmem:[%s18790_s11 + $0x2778] sm:$0xff] }
 0x816   : > { %15361 = vmatprep.subr.bf16.mxu1 %v17438_v60  ;;  %15265 = vmatmul.mubr.bf16.vlgmr.msra.gmra.mxu0 %v19001_v46  ;;  %v1721_v46 = vld [vmem:[%s18790_s11 + $0x2a38] sm:$0xff]  ;;  %v17326_v60 = vcombine.high %v1657_v15, %v1665_v23  ;;  %v17294_v56 = vcombine.high %v1625_v53, %v1633_v13  ;;  %v17293_v4 = vcombine.low %v1625_v53, %v1633_v13 }
 0x817   : > { %15319 = vmatpush1.bf16.msra.mxu0 %v17181_v47  ;;  %15350 = vmatprep.mubr.bf16.mxu0 %v19024_v62  ;;  %v17390_v1 = vcombine.high %v1721_v46, %v1729_v5  ;;  %v1713_v62 = vld [vmem:[%s18790_s11 + $0x29f8] sm:$0xff]  ;;  %v17069_v47 = vcombine.low %v1401_v41, %v1409_v29 }
 0x818   : > { %15308 = vmatmul.mubr.bf16.vlgmr.msra.gmra.mxu1 %v19012_v50  ;;  %15320 = vmatprep.subr.bf16.mxu0 %v17166_v11  ;;  %v17149_v50 = vcombine.low %v1481_v6, %v1489_v34  ;;  %v17374_v52 = vcombine.high %v1705_v32, %v1713_v62  ;;  %v17373_v59 = vcombine.low %v1705_v32, %v1713_v62  ;;  %v21246_v6 = vpop.f32.mrf.mxu1  ;;  %v1849_v18 = vld [vmem:[%s18790_s11 + $0x2e38] sm:$0xff] }
 0x819   : > { %15362 = vmatpush1.bf16.msra.mxu1 %v17437_v61  ;;  %15393 = vmatprep.mubr.bf16.mxu1 %v19031_v63  ;;  %v17389_v63 = vcombine.low %v1721_v46, %v1729_v5  ;;  %v21244_v61 = vpop.f32.mrf.mxu0  ;;  %v17325_v11 = vcombine.low %v1657_v15, %v1665_v23  ;;  %v17566_v34 = vcombine.high %v1897_v8, %v1905_v40  ;;  %v1857_v42 = vld [vmem:[%s18790_s11 + $0x2e78] sm:$0xff] }
 0x81a   : > { %15363 = vmatprep.subr.bf16.mxu1 %v17422_v33  ;;  %v17310_v33 = vcombine.high %v1641_v26, %v1649_v57  ;;  %v21254_v46 = vpop.f32.mrf.mxu1  ;;  %v1577_v51 = vld [vmem:[%s18790_s11 + $0x25b8] sm:$0xff] }
 0x81b   : > { %15321 = vmatpush1.bf16.msra.mxu0 %v17165_v14  ;;  %v1881_v14 = vld [vmem:[%s18790_s11 + $0x2f38] sm:$0xff] }
 0x81c   : > { %15322 = vmatprep.subr.bf16.mxu0 %v17150_v31  ;;  %v17309_v31 = vcombine.low %v1641_v26, %v1649_v57  ;;  %v1585_v28 = vld [vmem:[%s18790_s11 + $0x25f8] sm:$0xff] }
 0x81d   : > { %15364 = vmatpush1.bf16.msra.mxu1 %v17421_v45  ;;  %v1889_v45 = vld [vmem:[%s18790_s11 + $0x2f78] sm:$0xff]  ;;  %v17246_v41 = vcombine.high %v1577_v51, %v1585_v28  ;;  %v17245_v26 = vcombine.low %v1577_v51, %v1585_v28 }
 0x81e   : > { %15365 = vmatprep.subr.bf16.mxu1 %v17406_v2  ;;  %v21252_v2 = vpop.f32.mrf.mxu0  ;;  %v17550_v5 = vcombine.high %v1881_v14, %v1889_v45  ;;  %v17549_v32 = vcombine.low %v1881_v14, %v1889_v45  ;;  %v1833_v17 = vld [vmem:[%s18790_s11 + $0x2db8] sm:$0xff] }
 0x81f   : > { %15323 = vmatpush1.bf16.msra.mxu0 %v17149_v50  ;;  %v1609_v50 = vld [vmem:[%s18790_s11 + $0x26b8] sm:$0xff] }
 0x820   : > { %15324 = vmatprep.subr.bf16.mxu0 %v17134_v48  ;;  %v1865_v48 = vld [vmem:[%s18790_s11 + $0x2eb8] sm:$0xff]  ;;  %v21260_v3 = vpop.f32.mrf.mxu0 }
 0x821   : > { %15366 = vmatpush1.bf16.msra.mxu1 %v17405_v39  ;;  %v1617_v39 = vld [vmem:[%s18790_s11 + $0x26f8] sm:$0xff] }
 0x822   : > { %15367 = vmatprep.subr.bf16.mxu1 %v17390_v1  ;;  %v1873_v1 = vld [vmem:[%s18790_s11 + $0x2ef8] sm:$0xff]  ;;  %v17278_v62 = vcombine.high %v1609_v50, %v1617_v39  ;;  %v14922_v25 = vpop.f32.mrf.mxu0 }
 0x823   : > { %15325 = vmatpush1.bf16.msra.mxu0 %v17133_v21  ;;  %v21262_v21 = vpop.f32.mrf.mxu1  ;;  %v1561_v15 = vld [vmem:[%s18790_s11 + $0x2538] sm:$0xff] }
 0x824   : > { %15326 = vmatprep.subr.bf16.mxu0 %v17118_v10  ;;  %v1593_v10 = vld [vmem:[%s18790_s11 + $0x2638] sm:$0xff]  ;;  %v14924_v27 = vpop.f32.mrf.mxu0 }
 0x825   : > { %15368 = vmatpush1.bf16.msra.mxu1 %v17389_v63  ;;  %v17534_v63 = vcombine.high %v1865_v48, %v1873_v1  ;;  %v21268_v16 = vpop.f32.mrf.mxu1  ;;  %v1569_v23 = vld [vmem:[%s18790_s11 + $0x2578] sm:$0xff] }
 0x826   : > { %15369 = vmatprep.subr.bf16.mxu1 %v17374_v52  ;;  %v1601_v52 = vld [vmem:[%s18790_s11 + $0x2678] sm:$0xff]  ;;  %v17230_v8 = vcombine.high %v1561_v15, %v1569_v23  ;;  %v17229_v14 = vcombine.low %v1561_v15, %v1569_v23 }
 0x827   : > { %15327 = vmatpush1.bf16.msra.mxu0 %v17117_v38  ;;  %v17277_v38 = vcombine.low %v1609_v50, %v1617_v39  ;;  %v1809_v53 = vld [vmem:[%s18790_s11 + $0x2cf8] sm:$0xff] }
 0x828   : > { %15328 = vmatprep.subr.bf16.mxu0 %v17102_v19  ;;  %v17262_v19 = vcombine.high %v1593_v10, %v1601_v52  ;;  %v1529_v39 = vld [vmem:[%s18790_s11 + $0x2438] sm:$0xff] }
 0x829   : > { %15370 = vmatpush1.bf16.msra.mxu1 %v17373_v59  ;;  %v17533_v59 = vcombine.low %v1865_v48, %v1873_v1  ;;  %v1537_v48 = vld [vmem:[%s18790_s11 + $0x2478] sm:$0xff] }
 0x82a   : > { %15371 = vmatprep.subr.bf16.mxu1 %v17358_v0  ;;  %v17518_v0 = vcombine.high %v1849_v18, %v1857_v42  ;;  %v1785_v1 = vld [vmem:[%s18790_s11 + $0x2c38] sm:$0xff] }
 0x82b   : > { %15329 = vmatpush1.bf16.msra.mxu0 %v17101_v24  ;;  %v1841_v24 = vld [vmem:[%s18790_s11 + $0x2df8] sm:$0xff] }
 0x82c   : > { %15330 = vmatprep.subr.bf16.mxu0 %v17086_v30  ;;  %v17261_v30 = vcombine.low %v1593_v10, %v1601_v52  ;;  %v17502_v29 = vcombine.high %v1833_v17, %v1841_v24  ;;  %v17501_v57 = vcombine.low %v1833_v17, %v1841_v24  ;;  %v14884_v52 = vadd.f32 %v21254_v46, %v21252_v2 }
 0x82d   : > { %15372 = vmatpush1.bf16.msra.mxu1 %v17357_v37  ;;  %v21274_v37 = vpop.f32.mrf.mxu1  ;;  %v17197_v2 = vcombine.low %v1529_v39, %v1537_v48 }
 0x82e   : > { %15373 = vmatprep.subr.bf16.mxu1 %v17342_v44  ;;  %v17517_v44 = vcombine.low %v1849_v18, %v1857_v42 }
 0x82f   : > { %15331 = vmatpush1.bf16.msra.mxu0 %v17085_v58  ;;  %v14926_v58 = vpop.f32.mrf.mxu0 }
 0x830   : > { %15332 = vmatprep.subr.bf16.mxu0 %v17070_v7  ;;  %v1825_v7 = vld [vmem:[%s18790_s11 + $0x2d78] sm:$0xff]  ;;  %v14927_v51 = vadd.f32 %v14926_v58, %v14884_v52 }
 0x831   : > { %15374 = vmatpush1.bf16.msra.mxu1 %v17341_v43  ;;  %v1817_v43 = vld [vmem:[%s18790_s11 + $0x2d38] sm:$0xff] }
 0x832   : > { %15375 = vmatprep.subr.bf16.mxu1 %v17326_v60  ;;  %v21280_v60 = vpop.f32.mrf.mxu1  ;;  %v17486_v40 = vcombine.high %v1817_v43, %v1825_v7  ;;  %v2241_v52 = vld [vmem:[%s18790_s11 + $0x3a78] sm:$0xff] }
 0x833   : > { %15333 = vmatpush1.bf16.msra.mxu0 %v17069_v47  ;;  %v1545_v47 = vld [vmem:[%s18790_s11 + $0x24b8] sm:$0xff]  ;;  %v14970_v15 = vadd.f32 %v21280_v60, %v14927_v51 }
 0x834   : > { %15334 = vmatprep.subr.bf16.mxu0 %v17310_v33  ;;  %v14928_v33 = vpop.f32.mrf.mxu0  ;;  %v21286_v13 = vpop.f32.mrf.mxu1 }
 0x835   : > { %15376 = vmatpush1.bf16.msra.mxu1 %v17325_v11  ;;  %v1553_v11 = vld [vmem:[%s18790_s11 + $0x24f8] sm:$0xff] }
 0x836   : > { %15377 = vmatprep.subr.bf16.mxu1 %v17566_v34  ;;  %v1801_v34 = vld [vmem:[%s18790_s11 + $0x2cb8] sm:$0xff]  ;;  %v15008_v45 = vpop.f32.mrf.mxu0 }
 0x837   : > { %15335 = vmatpush2.bf16.msra.mxu0 %v17309_v31  ;;  %v17485_v31 = vcombine.low %v1817_v43, %v1825_v7  ;;  %v17470_v50 = vcombine.high %v1801_v34, %v1809_v53 }
 0x838   : > { %15336 = vmatprep.subr.bf16.mxu0 %v17294_v56  ;;  %v14880_v56 = vadd.f32 %v21238_v22, %v21236_v49  ;;  %v15010_v10 = vpop.f32.mrf.mxu0  ;;  %v17469_v49 = vcombine.low %v1801_v34, %v1809_v53  ;;  %v17198_v22 = vcombine.high %v1529_v39, %v1537_v48  ;;  %v2257_v34 = vld [vmem:[%s18790_s11 + $0x3af8] sm:$0xff] }
 0x839   : > { %15378 = vmatpush2.bf16.msra.mxu1 %v17565_v54  ;;  %v17214_v54 = vcombine.high %v1545_v47, %v1553_v11 }
 0x83a   : > { %15379 = vmatprep.subr.bf16.mxu1 %v17550_v5  ;;  %v15051_v5 = vpop.f32.mrf.mxu1  ;;  %v15012_v46 = vpop.f32.mrf.mxu0 }
 0x83b   : > { %15337 = vmatpush2.bf16.msra.mxu0 %v17293_v4  ;;  %v1793_v4 = vld [vmem:[%s18790_s11 + $0x2c78] sm:$0xff] }
 0x83c   : > { %15338 = vmatprep.subr.bf16.mxu0 %v17278_v62  ;;  %v14923_v62 = vadd.f32 %v14922_v25, %v14880_v56  ;;  %v15053_v42 = vpop.f32.mrf.mxu1  ;;  %v14886_v25 = vadd.f32 %v21262_v21, %v21260_v3  ;;  %v17453_v28 = vcombine.low %v1785_v1, %v1793_v4  ;;  %v2009_v21 = vld [vmem:[%s18790_s11 + $0x3338] sm:$0xff]  ;;  %v15014_v43 = vpop.f32.mrf.mxu0 }
 0x83d   : > { %15380 = vmatpush2.bf16.msra.mxu1 %v17549_v32  ;;  %v14882_v32 = vadd.f32 %v21246_v6, %v21244_v61  ;;  %v2281_v61 = vld [vmem:[%s18790_s11 + $0x3bb8] sm:$0xff] }
 0x83e   : > { %15381 = vmatprep.subr.bf16.mxu1 %v17534_v63  ;;  %v17213_v63 = vcombine.low %v1545_v47, %v1553_v11  ;;  %v2289_v6 = vld [vmem:[%s18790_s11 + $0x3bf8] sm:$0xff]  ;;  %v14929_v24 = vadd.f32 %v14928_v33, %v14886_v25 }
 0x83f   : > { %15339 = vmatpush2.bf16.msra.mxu0 %v17277_v38  ;;  %v14925_v18 = vadd.f32 %v14924_v27, %v14882_v32  ;;  %v17454_v38 = vcombine.high %v1785_v1, %v1793_v4  ;;  %v17950_v3 = vcombine.high %v2281_v61, %v2289_v6  ;;  %v2001_v11 = vld [vmem:[%s18790_s11 + $0x32f8] sm:$0xff] }
 0x840   : > { %15340 = vmatprep.subr.bf16.mxu0 %v17262_v19  ;;  %v2033_v19 = vld [vmem:[%s18790_s11 + $0x33f8] sm:$0xff] }
 0x841   : > { %15382 = vmatpush2.bf16.msra.mxu1 %v17533_v59  ;;  %v2025_v59 = vld [vmem:[%s18790_s11 + $0x33b8] sm:$0xff]  ;;  %v14968_v17 = vadd.f32 %v21274_v37, %v14925_v18  ;;  %v17949_v37 = vcombine.low %v2281_v61, %v2289_v6  ;;  %v350_v61 = vld [vmem:[#allocation2 + $0xa0] sm:$0xff] }
 0x842   : > { %15383 = vmatprep.subr.bf16.mxu1 %v17518_v0  ;;  %v14966_v0 = vadd.f32 %v21268_v16, %v14923_v62  ;;  %v17694_v27 = vcombine.high %v2025_v59, %v2033_v19  ;;  %v2017_v16 = vld [vmem:[%s18790_s11 + $0x3378] sm:$0xff]  ;;  %v17693_v58 = vcombine.low %v2025_v59, %v2033_v19 }
 0x843   : > { %15341 = vmatpush2.bf16.msra.mxu0 %v17261_v30  ;;  %v15011_v23 = vadd.f32 %v15010_v10, %v14968_v17  ;;  %v17678_v7 = vcombine.high %v2009_v21, %v2017_v16  ;;  %v2249_v33 = vld [vmem:[%s18790_s11 + $0x3ab8] sm:$0xff] }
 0x844   : > { %15342 = vmatprep.subr.bf16.mxu0 %v17246_v41  ;;  %v15009_v30 = vadd.f32 %v15008_v45, %v14966_v0  ;;  %v2265_v41 = vld [vmem:[%s18790_s11 + $0x3b38] sm:$0xff]  ;;  %v17917_v6 = vcombine.low %v2249_v33, %v2257_v34 }
 0x845   : > { %15384 = vmatpush2.bf16.msra.mxu1 %v17517_v44  ;;  %v15055_v44 = vpop.f32.mrf.mxu1  ;;  %v15054_v45 = vadd.f32 %v15053_v42, %v15011_v23  ;;  %v1977_v62 = vld [vmem:[%s18790_s11 + $0x3238] sm:$0xff] }
 0x846   : > { %15385 = vmatprep.subr.bf16.mxu1 %v17502_v29  ;;  %v2273_v29 = vld [vmem:[%s18790_s11 + $0x3b78] sm:$0xff] }
 0x847   : > { %15343 = vmatpush2.bf16.msra.mxu0 %v17245_v26  ;;  %v21312_v26 = vld [vmem:[%s18790_s11 + $0x32b8] sm:$0xff]  ;;  %v15057_v47 = vpop.f32.mrf.mxu1  ;;  %v17934_v60 = vcombine.high %v2265_v41, %v2273_v29 }
 0x848   : > { %15344 = vmatprep.subr.bf16.mxu0 %v17230_v8  ;;  %v15052_v8 = vadd.f32 %v15051_v5, %v15009_v30  ;;  %v17662_v39 = vcombine.high %v21312_v26, %v2001_v11  ;;  %v2225_v30 = vld [vmem:[%s18790_s11 + $0x39f8] sm:$0xff] }
 0x849   : > { %15386 = vmatpush2.bf16.msra.mxu1 %v17501_v57  ;;  %v14972_v57 = vadd.f32 %v21286_v13, %v14929_v24  ;;  %v334_v13 = vld [vmem:[#allocation2 + $0x60] sm:$0xff]  ;;  %v2217_v24 = vld [vmem:[%s18790_s11 + $0x39b8] sm:$0xff] }
 0x84a   : > { %15387 = vmatprep.subr.bf16.mxu1 %v17486_v40  ;;  %v15013_v40 = vadd.f32 %v15012_v46, %v14970_v15  ;;  %v1961_v46 = vld [vmem:[%s18790_s11 + $0x31b8] sm:$0xff]  ;;  %v17886_v15 = vcombine.high %v2217_v24, %v2225_v30 }
 0x84b   : > { %15345 = vmatpush2.bf16.msra.mxu0 %v17229_v14  ;;  %v17677_v14 = vcombine.low %v2009_v21, %v2017_v16  ;;  %v1945_v23 = vld [vmem:[%s18790_s11 + $0x3138] sm:$0xff] }
 0x84c   : > { %15346 = vmatprep.subr.bf16.mxu0 %v17214_v54  ;;  %v15056_v48 = vadd.f32 %v15055_v44, %v15013_v40  ;;  %v1929_v40 = vld [vmem:[%s18790_s11 + $0x30b8] sm:$0xff] }
 0x84d   : > { %15388 = vmatpush2.bf16.msra.mxu1 %v17485_v31  ;;  %v15015_v31 = vadd.f32 %v15014_v43, %v14972_v57  ;;  %v2201_v43 = vld [vmem:[%s18790_s11 + $0x3938] sm:$0xff] }
 0x84e   : > { %15389 = vmatprep.subr.bf16.mxu1 %v17470_v50  ;;  %v17933_v50 = vcombine.low %v2265_v41, %v2273_v29 }
 0x84f   : > { %15347 = vmatpush2.bf16.msra.mxu0 %v17213_v63  ;;  %v1985_v63 = vld [vmem:[%s18790_s11 + $0x3278] sm:$0xff]  ;;  %v15058_v18 = vadd.f32 %v15057_v47, %v15015_v31 }
 0x850   : > { %15348 = vmatprep.subr.bf16.mxu0 %v17198_v22  ;;  %v2233_v22 = vld [vmem:[%s18790_s11 + $0x3a38] sm:$0xff]  ;;  %v17646_v25 = vcombine.high %v1977_v62, %v1985_v63  ;;  %v17645_v21 = vcombine.low %v1977_v62, %v1985_v63 }
 0x851   : > { %15390 = vmatpush2.bf16.msra.mxu1 %v17469_v49  ;;  %v17661_v49 = vcombine.low %v21312_v26, %v2001_v11  ;;  %v17901_v16 = vcombine.low %v2233_v22, %v2241_v52  ;;  %v17885_v26 = vcombine.low %v2217_v24, %v2225_v30  ;;  %v1937_v47 = vld [vmem:[%s18790_s11 + $0x30f8] sm:$0xff] }
 0x852   : > { %15391 = vmatprep.subr.bf16.mxu1 %v17454_v38  ;;  %v2193_v11 = vld [vmem:[%s18790_s11 + $0x38f8] sm:$0xff] }
 0x853   : > { %15349 = vmatpush2.bf16.msra.mxu0 %v17197_v2  ;;  %v17902_v2 = vcombine.high %v2233_v22, %v2241_v52  ;;  %v1921_v31 = vld [vmem:[%s18790_s11 + $0x3078] sm:$0xff] }
 0x854   : > { %15404 = vmatprep.subr.bf16.mxu0 %v17694_v27  ;;  %v351_v27 = vld [vmem:[#allocation2 + $0xf8] sm:$0xff] }
 0x855   : > { %15392 = vmatpush2.bf16.msra.mxu1 %v17453_v28  ;;  %v1969_v28 = vld [vmem:[%s18790_s11 + $0x31f8] sm:$0xff] }
 0x856   : > { %15447 = vmatprep.subr.bf16.mxu1 %v17950_v3  ;;  %v15094_v53 = vpop.f32.mrf.mxu0  ;;  %15351 = vmatmul.mubr.bf16.vlgmr.msra.gmra.mxu0 %v19097_v20  ;;  %v17918_v20 = vcombine.high %v2249_v33, %v2257_v34  ;;  %v17630_v41 = vcombine.high %v1961_v46, %v1969_v28  ;;  %v2393_v22 = vld [vmem:[%s18790_s11 + $0x3f38] sm:$0xff] }
 0x857   : > { %v15095_v54 = vadd.f32 %v15094_v53, %v15052_v8  ;;  %15405 = vmatpush1.bf16.msra.mxu0 %v17693_v58  ;;  %15436 = vmatprep.mubr.bf16.mxu0 %v19120_v35  ;;  %v1953_v58 = vld [vmem:[%s18790_s11 + $0x3178] sm:$0xff]  ;;  %v17598_v53 = vcombine.high %v1929_v40, %v1937_v47 }
 0x858   : > { %v15137_v56 = vpop.f32.mrf.mxu1  ;;  %15394 = vmatmul.mubr.bf16.vlgmr.msra.gmra.mxu1 %v19108_v55  ;;  %v15096_v5 = vpop.f32.mrf.mxu0  ;;  %15406 = vmatprep.subr.bf16.mxu0 %v17678_v7  ;;  %v335_v55 = vld [vmem:[#allocation2 + $0xf0] sm:$0xff]  ;;  %v17629_v7 = vcombine.low %v1961_v46, %v1969_v28  ;;  %v17614_v57 = vcombine.high %v1945_v23, %v1953_v58  ;;  %v17613_v33 = vcombine.low %v1945_v23, %v1953_v58  ;;  %v2401_v52 = vld [vmem:[%s18790_s11 + $0x3f78] sm:$0xff] }
 0x859   : > { %15448 = vmatpush1.bf16.msra.mxu1 %v17949_v37  ;;  %v15138_v1 = vadd.f32 %v15137_v56, %v15095_v54  ;;  %v15097_v4 = vadd.f32 %v15096_v5, %v15054_v45  ;;  %15479 = vmatprep.mubr.bf16.mxu1 %v19127_v36  ;;  %v2209_v37 = vld [vmem:[%s18790_s11 + $0x3978] sm:$0xff] }
 0x85a   : > { %v15139_v32 = vpop.f32.mrf.mxu1  ;;  %15449 = vmatprep.subr.bf16.mxu1 %v17934_v60  ;;  %v15098_v10 = vpop.f32.mrf.mxu0  ;;  %v17870_v8 = vcombine.high %v2201_v43, %v2209_v37  ;;  %v2185_v60 = vld [vmem:[%s18790_s11 + $0x38b8] sm:$0xff]  ;;  %v17869_v34 = vcombine.low %v2201_v43, %v2209_v37 }
 0x85b   : > { %v15502_v42 = vadd.f32 %v15138_v1, %v334_v13  ;;  %v15140_v38 = vadd.f32 %v15139_v32, %v15097_v4  ;;  %v15099_v59 = vadd.f32 %v15098_v10, %v15056_v48  ;;  %15407 = vmatpush1.bf16.msra.mxu0 %v17677_v14  ;;  %v17854_v14 = vcombine.high %v2185_v60, %v2193_v11  ;;  %v1913_v45 = vld [vmem:[%s18790_s11 + $0x3038] sm:$0xff] }
 0x85c   : > { %v15141_v19 = vpop.f32.mrf.mxu1  ;;  %v15100_v35 = vpop.f32.mrf.mxu0  ;;  %15408 = vmatprep.subr.bf16.mxu0 %v17662_v39  ;;  %v2169_v54 = vld [vmem:[%s18790_s11 + $0x3838] sm:$0xff]  ;;  %v17597_v13 = vcombine.low %v1929_v40, %v1937_v47  ;;  %v17853_v5 = vcombine.low %v2185_v60, %v2193_v11  ;;  %v17581_v32 = vcombine.low %v1913_v45, %v1921_v31 }
 0x85d   : > { %15450 = vmatpush1.bf16.msra.mxu1 %v17933_v50  ;;  %15534 = vst [vmem:[#allocation2 + $0x60] sm:$0xff] %v15502_v42  ;;  %v15503_v0 = vadd.f32 %v15140_v38, %v335_v55  ;;  %v15142_v51 = vadd.f32 %v15141_v19, %v15099_v59  ;;  %v15101_v36 = vadd.f32 %v15100_v35, %v15058_v18  ;;  %v2177_v56 = vld [vmem:[%s18790_s11 + $0x3878] sm:$0xff] }
 0x85e   : > { %15451 = vmatprep.subr.bf16.mxu1 %v17918_v20  ;;  %v15143_v17 = vpop.f32.mrf.mxu1  ;;  %v17582_v50 = vcombine.high %v1913_v45, %v1921_v31  ;;  %v17838_v39 = vcombine.high %v2169_v54, %v2177_v56  ;;  %v2153_v20 = vld [vmem:[%s18790_s11 + $0x37b8] sm:$0xff]  ;;  %v17837_v62 = vcombine.low %v2169_v54, %v2177_v56  ;;  %v18062_v59 = vcombine.high %v2393_v22, %v2401_v52 }
 0x85f   : > { %15535 = vst [vmem:[#allocation2 + $0xf0] sm:$0xff] %v15503_v0  ;;  %v15518_v44 = vadd.f32 %v15142_v51, %v350_v61  ;;  %v15144_v3 = vadd.f32 %v15143_v17, %v15101_v36  ;;  %15409 = vmatpush1.bf16.msra.mxu0 %v17661_v49  ;;  %v2161_v48 = vld [vmem:[%s18790_s11 + $0x37f8] sm:$0xff]  ;;  %v18061_v0 = vcombine.low %v2393_v22, %v2401_v52 }
 0x860   : > { %15410 = vmatprep.subr.bf16.mxu0 %v17646_v25  ;;  %v2409_v1 = vld [vmem:[%s18790_s11 + $0x3fb8] sm:$0xff]  ;;  %v17822_v63 = vcombine.high %v2153_v20, %v2161_v48  ;;  %v17821_v18 = vcombine.low %v2153_v20, %v2161_v48 }
 0x861   : > { %15452 = vmatpush1.bf16.msra.mxu1 %v17917_v6  ;;  %15550 = vst [vmem:[#allocation2 + $0xa0] sm:$0xff] %v15518_v44  ;;  %v15519_v29 = vadd.f32 %v15144_v3, %v351_v27  ;;  %v2417_v4 = vld [vmem:[%s18790_s11 + $0x3ff8] sm:$0xff] }
 0x862   : > { %15453 = vmatprep.subr.bf16.mxu1 %v17902_v2  ;;  %v18078_v55 = vcombine.high %v2409_v1, %v2417_v4  ;;  %v2137_v10 = vld [vmem:[%s18790_s11 + $0x3738] sm:$0xff]  ;;  %v18077_v42 = vcombine.low %v2409_v1, %v2417_v4 }
 0x863   : > { %15551 = vst [vmem:[#allocation2 + $0xf8] sm:$0xff] %v15519_v29  ;;  %15411 = vmatpush1.bf16.msra.mxu0 %v17645_v21  ;;  %v2145_v49 = vld [vmem:[%s18790_s11 + $0x3778] sm:$0xff] }
 0x864   : > { %15412 = vmatprep.subr.bf16.mxu0 %v17630_v41  ;;  %v17806_v38 = vcombine.high %v2137_v10, %v2145_v49  ;;  %v2121_v19 = vld [vmem:[%s18790_s11 + $0x36b8] sm:$0xff]  ;;  %v17805_v25 = vcombine.low %v2137_v10, %v2145_v49 }
 0x865   : > { %15454 = vmatpush1.bf16.msra.mxu1 %v17901_v16  ;;  %v2129_v61 = vld [vmem:[%s18790_s11 + $0x36f8] sm:$0xff] }
 0x866   : > { %15455 = vmatprep.subr.bf16.mxu1 %v17886_v15  ;;  %v2377_v35 = vld [vmem:[%s18790_s11 + $0x3eb8] sm:$0xff]  ;;  %v17790_v51 = vcombine.high %v2121_v19, %v2129_v61  ;;  %v17789_v17 = vcombine.low %v2121_v19, %v2129_v61 }
 0x867   : > { %15413 = vmatpush1.bf16.msra.mxu0 %v17629_v7  ;;  %v2385_v6 = vld [vmem:[%s18790_s11 + $0x3ef8] sm:$0xff] }
 0x868   : > { %15414 = vmatprep.subr.bf16.mxu0 %v17614_v57  ;;  %v18046_v36 = vcombine.high %v2377_v35, %v2385_v6  ;;  %v2105_v2 = vld [vmem:[%s18790_s11 + $0x3638] sm:$0xff]  ;;  %v18045_v24 = vcombine.low %v2377_v35, %v2385_v6 }
 0x869   : > { %15456 = vmatpush1.bf16.msra.mxu1 %v17885_v26  ;;  %v2113_v46 = vld [vmem:[%s18790_s11 + $0x3678] sm:$0xff] }
 0x86a   : > { %15457 = vmatprep.subr.bf16.mxu1 %v17870_v8  ;;  %v2361_v28 = vld [vmem:[%s18790_s11 + $0x3e38] sm:$0xff]  ;;  %v17774_v30 = vcombine.high %v2105_v2, %v2113_v46  ;;  %v17773_v29 = vcombine.low %v2105_v2, %v2113_v46 }
 0x86b   : > { %15415 = vmatpush1.bf16.msra.mxu0 %v17613_v33  ;;  %v2369_v27 = vld [vmem:[%s18790_s11 + $0x3e78] sm:$0xff] }
 0x86c   : > { %15416 = vmatprep.subr.bf16.mxu0 %v17598_v53  ;;  %v18030_v44 = vcombine.high %v2361_v28, %v2369_v27  ;;  %v2089_v3 = vld [vmem:[%s18790_s11 + $0x35b8] sm:$0xff]  ;;  %v18029_v15 = vcombine.low %v2361_v28, %v2369_v27 }
 0x86d   : > { %15458 = vmatpush1.bf16.msra.mxu1 %v17869_v34  ;;  %v2097_v21 = vld [vmem:[%s18790_s11 + $0x35f8] sm:$0xff] }
 0x86e   : > { %15459 = vmatprep.subr.bf16.mxu1 %v17854_v14  ;;  %v2345_v16 = vld [vmem:[%s18790_s11 + $0x3db8] sm:$0xff]  ;;  %v17758_v23 = vcombine.high %v2089_v3, %v2097_v21  ;;  %v17757_v57 = vcombine.low %v2089_v3, %v2097_v21 }
 0x86f   : > { %15417 = vmatpush1.bf16.msra.mxu0 %v17597_v13  ;;  %v2353_v41 = vld [vmem:[%s18790_s11 + $0x3df8] sm:$0xff] }
 0x870   : > { %15418 = vmatprep.subr.bf16.mxu0 %v17582_v50  ;;  %v18014_v58 = vcombine.high %v2345_v16, %v2353_v41  ;;  %v2073_v43 = vld [vmem:[%s18790_s11 + $0x3538] sm:$0xff]  ;;  %v18013_v8 = vcombine.low %v2345_v16, %v2353_v41 }
 0x871   : > { %15460 = vmatpush1.bf16.msra.mxu1 %v17853_v5  ;;  %v2081_v37 = vld [vmem:[%s18790_s11 + $0x3578] sm:$0xff] }
 0x872   : > { %15461 = vmatprep.subr.bf16.mxu1 %v17838_v39  ;;  %v2329_v7 = vld [vmem:[%s18790_s11 + $0x3d38] sm:$0xff]  ;;  %v17742_v40 = vcombine.high %v2073_v43, %v2081_v37  ;;  %v17741_v53 = vcombine.low %v2073_v43, %v2081_v37 }
 0x873   : > { %15419 = vmatpush1.bf16.msra.mxu0 %v17581_v32  ;;  %v2337_v26 = vld [vmem:[%s18790_s11 + $0x3d78] sm:$0xff] }
 0x874   : > { %15420 = vmatprep.subr.bf16.mxu0 %v17822_v63  ;;  %v17998_v47 = vcombine.high %v2329_v7, %v2337_v26  ;;  %v2057_v60 = vld [vmem:[%s18790_s11 + $0x34b8] sm:$0xff]  ;;  %v17997_v14 = vcombine.low %v2329_v7, %v2337_v26 }
 0x875   : > { %15462 = vmatpush1.bf16.msra.mxu1 %v17837_v62  ;;  %v2065_v11 = vld [vmem:[%s18790_s11 + $0x34f8] sm:$0xff] }
 0x876   : > { %15463 = vmatprep.subr.bf16.mxu1 %v18078_v55  ;;  %v2313_v33 = vld [vmem:[%s18790_s11 + $0x3cb8] sm:$0xff]  ;;  %v17726_v45 = vcombine.high %v2057_v60, %v2065_v11  ;;  %v17725_v50 = vcombine.low %v2057_v60, %v2065_v11 }
 0x877   : > { %15421 = vmatpush2.bf16.msra.mxu0 %v17821_v18  ;;  %v2321_v34 = vld [vmem:[%s18790_s11 + $0x3cf8] sm:$0xff] }
 0x878   : > { %15422 = vmatprep.subr.bf16.mxu0 %v17806_v38  ;;  %v17982_v31 = vcombine.high %v2313_v33, %v2321_v34  ;;  %v2041_v54 = vld [vmem:[%s18790_s11 + $0x3438] sm:$0xff]  ;;  %v17981_v39 = vcombine.low %v2313_v33, %v2321_v34 }
 0x879   : > { %15464 = vmatpush2.bf16.msra.mxu1 %v18077_v42  ;;  %v2049_v56 = vld [vmem:[%s18790_s11 + $0x3478] sm:$0xff] }
 0x87a   : > { %15465 = vmatprep.subr.bf16.mxu1 %v18062_v59  ;;  %v2297_v13 = vld [vmem:[%s18790_s11 + $0x3c38] sm:$0xff]  ;;  %v17710_v20 = vcombine.high %v2041_v54, %v2049_v56  ;;  %v17709_v1 = vcombine.low %v2041_v54, %v2049_v56 }
 0x87b   : > { %15423 = vmatpush2.bf16.msra.mxu0 %v17805_v25  ;;  %v2305_v5 = vld [vmem:[%s18790_s11 + $0x3c78] sm:$0xff] }
 0x87c   : > { %15424 = vmatprep.subr.bf16.mxu0 %v17790_v51  ;;  %v17966_v48 = vcombine.high %v2297_v13, %v2305_v5  ;;  %v17965_v4 = vcombine.low %v2297_v13, %v2305_v5 }
 0x87d   : > { %15466 = vmatpush2.bf16.msra.mxu1 %v18061_v0 }
 0x87e   : > { %15467 = vmatprep.subr.bf16.mxu1 %v18046_v36 }
 0x87f   : > { %15425 = vmatpush2.bf16.msra.mxu0 %v17789_v17 }
 0x880   : > { %15426 = vmatprep.subr.bf16.mxu0 %v17774_v30 }
 0x881   : > { %15468 = vmatpush2.bf16.msra.mxu1 %v18045_v24 }
 0x882   : > { %15469 = vmatprep.subr.bf16.mxu1 %v18030_v44 }
 0x883   : > { %15427 = vmatpush2.bf16.msra.mxu0 %v17773_v29 }
 0x884   : > { %15428 = vmatprep.subr.bf16.mxu0 %v17758_v23 }
 0x885   : > { %15470 = vmatpush2.bf16.msra.mxu1 %v18029_v15 }
 0x886   : > { %15471 = vmatprep.subr.bf16.mxu1 %v18014_v58 }
 0x887   : > { %15429 = vmatpush2.bf16.msra.mxu0 %v17757_v57 }
 0x888   : > { %15430 = vmatprep.subr.bf16.mxu0 %v17742_v40 }
 0x889   : > { %15472 = vmatpush2.bf16.msra.mxu1 %v18013_v8 }
 0x88a   : > { %15473 = vmatprep.subr.bf16.mxu1 %v17998_v47  ;;  %v336_v47 = vld [vmem:[#allocation2 + $0x8] sm:$0xff] }
 0x88b   : > { %15431 = vmatpush2.bf16.msra.mxu0 %v17741_v53 }
 0x88c   : > { %15432 = vmatprep.subr.bf16.mxu0 %v17726_v45 }
 0x88d   : > { %15474 = vmatpush2.bf16.msra.mxu1 %v17997_v14  ;;  %v337_v14 = vld [vmem:[#allocation2 + $0x78] sm:$0xff] }
 0x88e   : > { %15475 = vmatprep.subr.bf16.mxu1 %v17982_v31 }
 0x88f   : > { %15433 = vmatpush2.bf16.msra.mxu0 %v17725_v50  ;;  %v352_v50 = vld [vmem:[#allocation2 + $0x20] sm:$0xff] }
 0x890   : > { %15434 = vmatprep.subr.bf16.mxu0 %v17710_v20 }
 0x891   : > { %15476 = vmatpush2.bf16.msra.mxu1 %v17981_v39 }
 0x892   : > { %15477 = vmatprep.subr.bf16.mxu1 %v17966_v48 }
 0x893   : > { %15435 = vmatpush2.bf16.msra.mxu0 %v17709_v1 }
 0x895   : > { %15478 = vmatpush2.bf16.msra.mxu1 %v17965_v4  ;;  %v353_v4 = vld [vmem:[#allocation2 + $0x98] sm:$0xff] }
 0x896   : > { %15437 = vmatmul.mubr.bf16.vlgmr.msra.gmra.mxu0 %v19192_v9  ;;  %v15180_v32 = vpop.f32.mrf.mxu0 }
 0x898   : > { %15480 = vmatmul.mubr.bf16.vlgmr.msra.gmra.mxu1 %v19198_v12  ;;  %v15223_v62 = vpop.f32.mrf.mxu1  ;;  %v15182_v63 = vpop.f32.mrf.mxu0 }
 0x899   : > { %v15224_v9 = vadd.f32 %v15223_v62, %v15180_v32 }
 0x89a   : > { %v15225_v55 = vpop.f32.mrf.mxu1  ;;  %v15184_v10 = vpop.f32.mrf.mxu0 }
 0x89b   : > { %v15226_v12 = vadd.f32 %v15225_v55, %v15182_v63 }
 0x89c   : > { %v15227_v49 = vpop.f32.mrf.mxu1  ;;  %v15186_v22 = vpop.f32.mrf.mxu0 }
 0x89d   : > { %v15228_v2 = vadd.f32 %v15227_v49, %v15184_v10 }
 0x89e   : > { %v15229_v52 = vpop.f32.mrf.mxu1 }
 0x89f   : > { %v15230_v27 = vadd.f32 %v15229_v52, %v15186_v22 }
 0x8d6   : > { %v15266_v18 = vpop.f32.mrf.mxu0 }
 0x8d7   : > { %v15267_v51 = vadd.f32 %v15266_v18, %v15224_v9 }
 0x8d8   : > { %v15309_v42 = vpop.f32.mrf.mxu1  ;;  %v15268_v38 = vpop.f32.mrf.mxu0 }
 0x8d9   : > { %v15269_v46 = vadd.f32 %v15268_v38, %v15226_v12  ;;  %v15310_v17 = vadd.f32 %v15309_v42, %v15267_v51 }
 0x8da   : > { %v15311_v59 = vpop.f32.mrf.mxu1  ;;  %v15270_v19 = vpop.f32.mrf.mxu0 }
 0x8db   : > { %v15271_v24 = vadd.f32 %v15270_v19, %v15228_v2  ;;  %v15312_v44 = vadd.f32 %v15311_v59, %v15269_v46 }
 0x8dc   : > { %v15313_v61 = vpop.f32.mrf.mxu1  ;;  %v15272_v35 = vpop.f32.mrf.mxu0 }
 0x8dd   : > { %v15273_v3 = vadd.f32 %v15272_v35, %v15230_v27  ;;  %v15314_v41 = vadd.f32 %v15313_v61, %v15271_v24 }
 0x8de   : > { %v15315_v6 = vpop.f32.mrf.mxu1 }
 0x8df   : > { %v15316_v23 = vadd.f32 %v15315_v6, %v15273_v3 }
 0x916   : > { %v15352_v25 = vpop.f32.mrf.mxu0 }
 0x917   : > { %v15353_v21 = vadd.f32 %v15352_v25, %v15310_v17 }
 0x918   : > { %v15395_v0 = vpop.f32.mrf.mxu1  ;;  %v15354_v36 = vpop.f32.mrf.mxu0 }
 0x919   : > { %v15355_v29 = vadd.f32 %v15354_v36, %v15312_v44  ;;  %v15396_v58 = vadd.f32 %v15395_v0, %v15353_v21 }
 0x91a   : > { %v15397_v28 = vpop.f32.mrf.mxu1  ;;  %v15356_v30 = vpop.f32.mrf.mxu0 }
 0x91b   : > { %v15357_v43 = vadd.f32 %v15356_v30, %v15314_v41  ;;  %v15398_v26 = vadd.f32 %v15397_v28, %v15355_v29 }
 0x91c   : > { %v15399_v16 = vpop.f32.mrf.mxu1  ;;  %v15358_v15 = vpop.f32.mrf.mxu0 }
 0x91d   : > { %v15359_v57 = vadd.f32 %v15358_v15, %v15316_v23  ;;  %v15400_v11 = vadd.f32 %v15399_v16, %v15357_v43 }
 0x91e   : > { %v15401_v37 = vpop.f32.mrf.mxu1 }
 0x91f   : > { %v15402_v31 = vadd.f32 %v15401_v37, %v15359_v57 }
 0x956   : > { %v15438_v7 = vpop.f32.mrf.mxu0 }
 0x957   : > { %v15439_v8 = vadd.f32 %v15438_v7, %v15396_v58 }
 0x958   : > { %v15481_v40 = vpop.f32.mrf.mxu1  ;;  %v15440_v60 = vpop.f32.mrf.mxu0 }
 0x959   : > { %v15482_v33 = vadd.f32 %v15481_v40, %v15439_v8  ;;  %v15441_v34 = vadd.f32 %v15440_v60, %v15398_v26 }
 0x95a   : > { %v15483_v53 = vpop.f32.mrf.mxu1  ;;  %v15442_v45 = vpop.f32.mrf.mxu0 }
 0x95b   : > { %v15504_v54 = vadd.f32 %v15482_v33, %v336_v47  ;;  %v15484_v56 = vadd.f32 %v15483_v53, %v15441_v34  ;;  %v15443_v13 = vadd.f32 %v15442_v45, %v15400_v11 }
 0x95c   : > { %v15485_v5 = vpop.f32.mrf.mxu1  ;;  %v15444_v39 = vpop.f32.mrf.mxu0 }
 0x95d   : > { %15536 = vst [vmem:[#allocation2 + $0x8] sm:$0xff] %v15504_v54  ;;  %v15505_v20 = vadd.f32 %v15484_v56, %v337_v14  ;;  %v15486_v48 = vadd.f32 %v15485_v5, %v15443_v13  ;;  %v15445_v1 = vadd.f32 %v15444_v39, %v15402_v31 }
 0x95e   : > { %v15487_v32 = vpop.f32.mrf.mxu1 }
 0x95f   : > { %15537 = vst [vmem:[#allocation2 + $0x78] sm:$0xff] %v15505_v20  ;;  %v15520_v62 = vadd.f32 %v15486_v48, %v352_v50  ;;  %v15488_v63 = vadd.f32 %v15487_v32, %v15445_v1  ;;  %15557 = sbr.rel (%p18079_p8) target bundleno = 2439 (0x987), region = 52 }
 0x961   : > { %15552 = vst [vmem:[#allocation2 + $0x20] sm:$0xff] %v15520_v62  ;;  %v15521_v55 = vadd.f32 %v15488_v63, %v353_v4 }
 0x963   : > { %15553 = vst [vmem:[#allocation2 + $0x98] sm:$0xff] %v15521_v55 }
 0x964   : > { %v15594_v10 = vlaneseq  ;;  %v15558_v22 = vld [vmem:[#allocation2 + $0xb0] sm:$0xff]  ;;  %v15559_v18 = vld [vmem:[#allocation2] sm:$0xff]  ;;  %v15560_v59 = vld [vmem:[#allocation2 + $0xd8] sm:$0xff] }
 0x965   : > { %v15590_v52 = vld [vmem:[%s18800_s23] sm:$0xff]  ;;  %v15561_v35 = vld [vmem:[#allocation2 + $0x18] sm:$0xff]  ;;  %v15563_v28 = vld [vmem:[#allocation2 + $0x68] sm:$0xff] }
 0x966   : > { %v21379_v49 = vshrl.u32 %v15594_v10, 7  ;;  %v15562_v6 = vld [vmem:[#allocation2 + $0x50] sm:$0xff]  ;;  %v15565_v17 = vld [vmem:[#allocation2 + $0x48] sm:$0xff]  ;;  %v15566_v33 = vld [vmem:[#allocation2 + $0x80] sm:$0xff] }
 0x967   : > { %v15564_v27 = vld [vmem:[#allocation2 + $0x30] sm:$0xff]  ;;  %v15591_v37 = vld [vmem:[%s18800_s23 + $0x8] sm:$0xff]  ;;  %v15570_v20 = vld [vmem:[#allocation2 + $0x60] sm:$0xff] }
 0x968   : > { %v15596_v42 = vsub.s32 0, %v21379_v49  ;;  %v15600_v38 = vsub.s32 1, %v21379_v49  ;;  %v15604_v19 = vsub.s32 2, %v21379_v49  ;;  %v15608_v61 = vsub.s32 3, %v21379_v49  ;;  %v15567_v34 = vld [vmem:[#allocation2 + $0x88] sm:$0xff]  ;;  %v15569_v56 = vld [vmem:[#allocation2 + $0xb8] sm:$0xff] }
 0x969   : > { %v15612_v25 = vsub.s32 4, %v21379_v49  ;;  %v15616_v9 = vsub.s32 5, %v21379_v49  ;;  %v15620_v0 = vsub.s32 6, %v21379_v49  ;;  %v15624_v12 = vsub.s32 7, %v21379_v49  ;;  %v15568_v54 = vld [vmem:[#allocation2 + $0xe8] sm:$0xff]  ;;  %v15571_v48 = vld [vmem:[#allocation2 + $0xf0] sm:$0xff] }
 0x96a   : > { %v21390_v51 = vrot.slane %v15590_v52, %v15596_v42  ;;  %v21392_v36 = vrot.slane %v15590_v52, %v15600_v38  ;;  %v21394_v2 = vrot.slane %v15590_v52, %v15604_v19  ;;  %v21396_v46 = vrot.slane %v15590_v52, %v15608_v61  ;;  %v15572_v63 = vld [vmem:[#allocation2 + $0x8] sm:$0xff]  ;;  %v15573_v55 = vld [vmem:[#allocation2 + $0x78] sm:$0xff] }
 0x96b   : > { %v21398_v24 = vrot.slane %v15590_v52, %v15612_v25  ;;  %v21400_v30 = vrot.slane %v15590_v52, %v15616_v9  ;;  %v21402_v44 = vrot.slane %v15590_v52, %v15620_v0  ;;  %v21404_v3 = vrot.slane %v15590_v52, %v15624_v12 }
 0x96c   : > { %v15674_v21 = vadd.f32 %v21390_v51, %v15558_v22  ;;  %v15675_v16 = vadd.f32 %v21392_v36, %v15559_v18  ;;  %v15676_v41 = vadd.f32 %v21394_v2, %v15560_v59  ;;  %v15677_v29 = vadd.f32 %v21396_v46, %v15561_v35  ;;  %v15574_v18 = vld [vmem:[#allocation2 + $0x38] sm:$0xff] }
 0x96d   : > { %v15678_v15 = vadd.f32 %v21398_v24, %v15562_v6  ;;  %v15679_v23 = vadd.f32 %v21400_v30, %v15563_v28  ;;  %v15680_v58 = vadd.f32 %v21402_v44, %v15564_v27  ;;  %v15681_v43 = vadd.f32 %v21404_v3, %v15565_v17  ;;  %v15576_v28 = vld [vmem:[#allocation2 + $0x40] sm:$0xff] }
 0x96e   : > { %v15706_v7 = vmax.f32 %v15674_v21, 0.0  ;;  %v15707_v26 = vmax.f32 %v15675_v16, 0.0  ;;  %v15708_v57 = vmax.f32 %v15676_v41, 0.0  ;;  %v15709_v8 = vmax.f32 %v15677_v29, 0.0  ;;  %v15578_v16 = vld [vmem:[#allocation2 + $0xe0] sm:$0xff]  ;;  %v15579_v41 = vld [vmem:[#allocation2 + $0x90] sm:$0xff] }
 0x96f   : > { %v15710_v40 = vmax.f32 %v15678_v15, 0.0  ;;  %v15711_v47 = vmax.f32 %v15679_v23, 0.0  ;;  %v15712_v60 = vmax.f32 %v15680_v58, 0.0  ;;  %v15713_v11 = vmax.f32 %v15681_v43, 0.0  ;;  %v15580_v43 = vld [vmem:[#allocation2 + $0x70] sm:$0xff] }
 0x970   : > { %v18104_v53 = vpack.c.bf16 %v15707_v26, %v15706_v7  ;;  %v18105_v14 = vpack.c.bf16 %v15709_v8, %v15708_v57  ;;  %v21415_v45 = vrot.slane %v15591_v37, %v15596_v42  ;;  %v21417_v31 = vrot.slane %v15591_v37, %v15600_v38 }
 0x971   : > { %v18106_v13 = vpack.c.bf16 %v15711_v47, %v15710_v40  ;;  %v18107_v5 = vpack.c.bf16 %v15713_v11, %v15712_v60  ;;  %v21419_v50 = vrot.slane %v15591_v37, %v15604_v19  ;;  %v21421_v39 = vrot.slane %v15591_v37, %v15608_v61  ;;  %v15575_v61 = vld [vmem:[#allocation2 + $0x58] sm:$0xff]  ;;  %v15582_v40 = vld [vmem:[#allocation2 + $0xa8] sm:$0xff] }
 0x972   : > { %15834 = vst [vmem:[%s18807_s29] sm:$0xff] %v18104_v53  ;;  %15835 = vst [vmem:[%s18807_s29 + $0x8] sm:$0xff] %v18105_v14  ;;  %v15682_v1 = vadd.f32 %v21415_v45, %v15566_v33  ;;  %v15683_v4 = vadd.f32 %v21417_v31, %v15567_v34  ;;  %v21427_v32 = vrot.slane %v15591_v37, %v15612_v25  ;;  %v15583_v33 = vld [vmem:[#allocation2 + $0xd0] sm:$0xff] }
 0x973   : > { %v21429_v62 = vrot.slane %v15591_v37, %v15616_v9  ;;  %15836 = vst [vmem:[%s18807_s29 + $0x10] sm:$0xff] %v18106_v13  ;;  %15837 = vst [vmem:[%s18807_s29 + $0x18] sm:$0xff] %v18107_v5  ;;  %v15684_v10 = vadd.f32 %v21419_v50, %v15568_v54  ;;  %v15685_v49 = vadd.f32 %v21421_v39, %v15569_v56  ;;  %v15585_v54 = vld [vmem:[#allocation2 + $0x28] sm:$0xff]  ;;  %v15586_v5 = vld [vmem:[#allocation2 + $0xa0] sm:$0xff] }
 0x974   : > { %v21435_v22 = vrot.slane %v15591_v37, %v15620_v0  ;;  %v21437_v52 = vrot.slane %v15591_v37, %v15624_v12  ;;  %v15714_v42 = vmax.f32 %v15682_v1, 0.0  ;;  %v15715_v38 = vmax.f32 %v15683_v4, 0.0  ;;  %v15577_v0 = vld [vmem:[#allocation2 + $0xc8] sm:$0xff]  ;;  %v15581_v37 = vld [vmem:[#allocation2 + $0xc0] sm:$0xff] }
 0x975   : > { %v15686_v59 = vadd.f32 %v21427_v32, %v15570_v20  ;;  %v15687_v19 = vadd.f32 %v21429_v62, %v15571_v48  ;;  %v15716_v35 = vmax.f32 %v15684_v10, 0.0  ;;  %v15717_v6 = vmax.f32 %v15685_v49, 0.0  ;;  %v15588_v4 = vld [vmem:[#allocation2 + $0x20] sm:$0xff] }
 0x976   : > { %v15688_v25 = vadd.f32 %v21435_v22, %v15572_v63  ;;  %v15689_v9 = vadd.f32 %v21437_v52, %v15573_v55  ;;  %v18108_v27 = vpack.c.bf16 %v15715_v38, %v15714_v42  ;;  %v15690_v21 = vadd.f32 %v21390_v51, %v15574_v18 }
 0x977   : > { %v15718_v12 = vmax.f32 %v15686_v59, 0.0  ;;  %v15719_v17 = vmax.f32 %v15687_v19, 0.0  ;;  %v18109_v29 = vpack.c.bf16 %v15717_v6, %v15716_v35  ;;  %v15691_v58 = vadd.f32 %v21392_v36, %v15575_v61 }
 0x978   : > { %v15720_v15 = vmax.f32 %v15688_v25, 0.0  ;;  %v15721_v23 = vmax.f32 %v15689_v9, 0.0  ;;  %15838 = vst [vmem:[%s18807_s29 + $0x20] sm:$0xff] %v18108_v27  ;;  %v15722_v26 = vmax.f32 %v15690_v21, 0.0  ;;  %v15692_v57 = vadd.f32 %v21394_v2, %v15576_v28  ;;  %v15584_v2 = vld [vmem:[#allocation2 + $0x10] sm:$0xff] }
 0x979   : > { %v18110_v7 = vpack.c.bf16 %v15719_v17, %v15718_v12  ;;  %v15693_v8 = vadd.f32 %v21396_v46, %v15577_v0  ;;  %15839 = vst [vmem:[%s18807_s29 + $0x28] sm:$0xff] %v18109_v29  ;;  %v15723_v47 = vmax.f32 %v15691_v58, 0.0  ;;  %v15694_v60 = vadd.f32 %v21398_v24, %v15578_v16 }
 0x97a   : > { %v18111_v51 = vpack.c.bf16 %v15721_v23, %v15720_v15  ;;  %v15695_v11 = vadd.f32 %v21400_v30, %v15579_v41  ;;  %v15724_v36 = vmax.f32 %v15692_v57, 0.0  ;;  %v15696_v53 = vadd.f32 %v21402_v44, %v15580_v43  ;;  %v15587_v30 = vld [vmem:[#allocation2 + $0xf8] sm:$0xff] }
 0x97b   : > { %15840 = vst [vmem:[%s18807_s29 + $0x30] sm:$0xff] %v18110_v7  ;;  %v15725_v34 = vmax.f32 %v15693_v8, 0.0  ;;  %v15697_v14 = vadd.f32 %v21404_v3, %v15581_v37  ;;  %v18112_v46 = vpack.c.bf16 %v15723_v47, %v15722_v26  ;;  %v15726_v56 = vmax.f32 %v15694_v60, 0.0  ;;  %v15589_v3 = vld [vmem:[#allocation2 + $0x98] sm:$0xff] }
 0x97c   : > { %15841 = vst [vmem:[%s18807_s29 + $0x38] sm:$0xff] %v18111_v51  ;;  %v15727_v13 = vmax.f32 %v15695_v11, 0.0  ;;  %v15698_v24 = vadd.f32 %v21415_v45, %v15582_v40  ;;  %v15728_v48 = vmax.f32 %v15696_v53, 0.0  ;;  %v15699_v44 = vadd.f32 %v21417_v31, %v15583_v33 }
 0x97d   : > { %v18113_v20 = vpack.c.bf16 %v15725_v34, %v15724_v36  ;;  %v15729_v1 = vmax.f32 %v15697_v14, 0.0  ;;  %15842 = vst [vmem:[%s18807_s29 + $0x40] sm:$0xff] %v18112_v46  ;;  %v15700_v10 = vadd.f32 %v21419_v50, %v15584_v2  ;;  %v15701_v49 = vadd.f32 %v21421_v39, %v15585_v54 }
 0x97e   : > { %v18114_v63 = vpack.c.bf16 %v15727_v13, %v15726_v56  ;;  %v15730_v55 = vmax.f32 %v15698_v24, 0.0  ;;  %v15731_v18 = vmax.f32 %v15699_v44, 0.0  ;;  %v15702_v42 = vadd.f32 %v21427_v32, %v15586_v5 }
 0x97f   : > { %15843 = vst [vmem:[%s18807_s29 + $0x48] sm:$0xff] %v18113_v20  ;;  %v18115_v45 = vpack.c.bf16 %v15729_v1, %v15728_v48  ;;  %v15703_v38 = vadd.f32 %v21429_v62, %v15587_v30  ;;  %v15732_v31 = vmax.f32 %v15700_v10, 0.0  ;;  %v15733_v59 = vmax.f32 %v15701_v49, 0.0 }
 0x980   : > { %15844 = vst [vmem:[%s18807_s29 + $0x50] sm:$0xff] %v18114_v63  ;;  %v15704_v19 = vadd.f32 %v21435_v22, %v15588_v4  ;;  %v15705_v50 = vadd.f32 %v21437_v52, %v15589_v3  ;;  %v18116_v39 = vpack.c.bf16 %v15731_v18, %v15730_v55  ;;  %v15734_v61 = vmax.f32 %v15702_v42, 0.0 }
 0x981   : > { %15845 = vst [vmem:[%s18807_s29 + $0x58] sm:$0xff] %v18115_v45  ;;  %v15735_v35 = vmax.f32 %v15703_v38, 0.0  ;;  %v18117_v6 = vpack.c.bf16 %v15733_v59, %v15732_v31 }
 0x982   : > { %v15736_v25 = vmax.f32 %v15704_v19, 0.0  ;;  %v15737_v9 = vmax.f32 %v15705_v50, 0.0  ;;  %15846 = vst [vmem:[%s18807_s29 + $0x60] sm:$0xff] %v18116_v39 }
 0x983   : > { %v18118_v32 = vpack.c.bf16 %v15735_v35, %v15734_v61  ;;  %15847 = vst [vmem:[%s18807_s29 + $0x68] sm:$0xff] %v18117_v6 }
 0x984   : > { %v18119_v62 = vpack.c.bf16 %v15737_v9, %v15736_v25 }
 0x985   : > { %15848 = vst [vmem:[%s18807_s29 + $0x70] sm:$0xff] %v18118_v32 }
 0x986   : > { %15849 = vst [vmem:[%s18807_s29 + $0x78] sm:$0xff] %v18119_v62 }
 0x987 PF: > { %s21600_s18 = sld [smem:[#allocation16_spill]]  ;;  %s15864_s28 = sshll.u32 %s18807_s29, 4  ;;  %s21478_s28 = int_to_ptr.vmem [resolvable:$true] %s15864_s28 }
 0x988   : > { %s21601_s7 = sld [smem:[#allocation23_spill]]  ;;  %s15851_s20 = scalar_lea.sflag [#allocation5], %s18797_s21 }
 0x989   : > { %s18349_s6 = scalar_lea.vmem %s21478_s28, 2048  ;;  %p21602_p0 = scmp.ne.s32.totalorder %s21593_s22, 0 }
 0x98a   : > { %p18350_p7 = scmp.ne.s32.totalorder %s21478_s28, %s18349_s6  ;;  %s18511_s5 = smov [#allocation9]  }
 0x98b   : > { %s18353_s11 = sshll.u32 %s18511_s5, 4  ;;  %s18354_s11 = int_to_ptr.vmem [resolvable:$false] %s18353_s11 }
 0x98c   : > { %p18351_p12 = pnand %p18350_p7, %p21602_p0  ;;  %s18355_s27 = scalar_lea.vmem %s18354_s11, 4096 }
 0x98d   : > { %s18120_s0 = sshll.u32 %s21600_s18, 10  ;;  %p18356_p5 = scmp.lt.s32.totalorder %s21478_s28, %s18354_s11 }
 0x98e   : > { %s21475_s4 = scalar_lea.hbm %s21601_s7, %s18120_s0  ;;  %p18352_p2 = pneg %p18351_p12 }
 0x98f   : > { %p18357_p3 = scmp.lt.s32.totalorder %s18355_s27, %s18349_s6 }
 0x991   : > { %p18358_p10 = por %p18357_p3, %p18356_p5 }
 0x993   : > { %p18359_p4 = pnand %p18358_p10, %p18352_p2 }
 0x995   : > { %18362 = shalt.err (!%p18359_p4)
}
 0x996   : > { %s18363_s23 = scalar_lea.hbm %s21475_s4, 2048  ;;  %s18367_s30 = scalar_lea.hbm %s21601_s7, 4096 }
 0x997   : > { %p18364_p11 = scmp.ne.s32.totalorder %s21475_s4, %s18363_s23  ;;  %p18368_p6 = scmp.lt.s32.totalorder %s21475_s4, %s21601_s7 }
 0x998   : > { %p18369_p9 = scmp.lt.s32.totalorder %s18367_s30, %s18363_s23 }
 0x999   : > { %p18365_p13 = pnand %p18364_p11, %p21602_p0 }
 0x99a   : > { %p18370_p8 = por %p18369_p9, %p18368_p6 }
 0x99b   : > { %p18366_p1 = pneg %p18365_p13 }
 0x99d   : > { %p18371_p7 = pnand %p18370_p8, %p18366_p1 }
 0x99f   : > { %18374 = shalt.err (!%p18371_p7)
}
 0x9a0   : > { %s18512_s0 = smov 1024   ;;  %s18513_s10 = smov 2048  }
 0x9a1   : > { %s18514_s15 = smov 64  }
 0x9a2   : > { %18127 = dma.vmem_to_hbm [thread:$0]  (%p21602_p0), %s21478_s28, 2048, %s21475_s4, %s15851_s20, %s18512_s0, %s18513_s10, %s18514_s15  }
 0x9a3 PF: > { %p18144_p12 = scmp.ge.s32.totalorder %s18501_s25, 2  ;;  %s15879_s6 = sand.u32 1, %s18449_s12  }
 0x9a4   : > { %p21603_p2 = scmp.ne.s32.totalorder %s21595_s26, 0  ;;  %s15880_s5 = scalar_lea.sflag [#allocation5], %s15879_s6 }
 0x9a6   : > { %p18140_p5 = pnand %p18144_p12, %p21603_p2 }
 0x9a8   : > { %p18141_p3 = pneg %p18140_p5 }
 0x9aa   : > { %18444 = dma.done.wait (%p18141_p3), %s15880_s5, 2048  }
 0x9ab   : > { %18446 = vsyncadd (%p18141_p3), %s15880_s5, 4294965248  ;;  %s22_s25 = sadd.s32 1, %s18501_s25   ;;  %s21605_s22 = sld [smem:[#allocation14_spill]] }
 0x9ac   : > { %p21508_p10 = scmp.ge.s32.totalorder %s22_s25, 10   ;;  %s21606_s20 = sld [smem:[#allocation19_spill]] }
 0x9ad   : > { %s21607_s21 = sld [smem:[#allocation17_spill]]  ;;  %s21610_s12 = smov %s18453_s13 }
 0x9ae   : > { %s21608_s23 = sld [smem:[#allocation18_spill]]  ;;  %s21611_s13 = smov %s18457_s14 }
 0x9af   : > { %s21609_s26 = sld [smem:[#allocation20_spill]]  ;;  %s21612_s14 = smov %s18747_s9 }
 0x9b0   : > { %s21613_s15 = smov %s18465_s16  ;;  %s21614_s16 = smov %s18469_s17 }
 0x9b1   : > { %s21615_s17 = smov %s18752_s3  ;;  %s21616_s18 = smov %s18477_s19 }
 0x9b2   : > { %s21617_s19 = smov %s21605_s22  ;;  %s21618_s22 = smov %s18497_s24 }
 0x9b3   :  { %21 = sbr.rel (!%p21508_p10) target bundleno = 16 (0x10), region = 109 }
 0x9b5   : > { %s21619_s24 = smov %s21609_s26 }
 0x9b8   :  { %15885 = vsyncpa [#allocation4], 1 }
 0x9b9   :  { %15887 = vsyncpa [#allocation4 + $0x1], 1 }
 0x9ba   :  { %15888 = vsyncpa [#allocation7], 1 }
 0x9bb   :  { %15890 = vsyncpa [#allocation7 + $0x1], 1 }
 0x9bc   :  { %15891 = vsyncpa [#allocation5], 1 }
 0x9bd   :  { %15893 = vsyncpa [#allocation5 + $0x1], 1 }

</bundles_post_ra>
